<compile_context>
chip_gen: v6e
topology: v6e:2x2x1
jax: 0.10.0
libtpu: 0.0.40
codegen_flags: <defaults>
</compile_context>

<pallas_src>
import functools

import jax
import jax.numpy as jnp
import numpy as np
from jax import lax
from jax.experimental import pallas as pl
from jax.experimental.pallas import tpu as pltpu

NEG_SLOPE = 0.01
BN_EPS = 1e-5
N_LAYERS = 3


def resblock_kernel(x_ref, w_ref, b_ref, g_ref, bt_ref, o_ref, *, h_size):
    # x_ref:  (MH, C)        activations, MH = N*W*H, rows ordered (n, w, h)
    # w_ref:  (3, 3, C, C)   [layer, tap, c_in, c_out]
    # b_ref:  (3, 1, C)      conv bias per layer
    # g_ref:  (3, 1, C)      BN gamma per layer
    # bt_ref: (3, 1, C)      BN beta per layer
    MH, C = x_ref.shape
    inv_n = 1.0 / MH  # BN averages over N*H*W rows per channel

    # Boundary masks along H, built once and reused by all three layers.
    # The h position of flat row r is r % h_size (rows are h-minor).
    h_pos = lax.broadcasted_iota(
        jnp.int32, (MH // h_size, h_size, C), 1).reshape(MH, C)
    not_first = h_pos != 0              # tap 0 (x[h-1]) invalid at h == 0
    not_last = h_pos != (h_size - 1)    # tap 2 (x[h+1]) invalid at h == H-1

    h = x_ref[...]
    if h.dtype != jnp.float32:
        h = h.astype(jnp.float32)

    for layer in range(N_LAYERS):
        # (3,1) 'same' conv along H via roll-on-output:
        #   y[h] = x[h-1] @ W0 + x[h] @ W1 + x[h+1] @ W2
        t0 = jnp.dot(h, w_ref[layer, 0], preferred_element_type=jnp.float32)
        t1 = jnp.dot(h, w_ref[layer, 1], preferred_element_type=jnp.float32)
        t2 = jnp.dot(h, w_ref[layer, 2], preferred_element_type=jnp.float32)
        y = (t1 + b_ref[layer]
             + jnp.where(not_first, pltpu.roll(t0, 1, axis=0), 0.0)
             + jnp.where(not_last, pltpu.roll(t2, MH - 1, axis=0), 0.0))

        # LeakyReLU(0.01) as a single max
        y = jnp.maximum(y, NEG_SLOPE * y)

        # BatchNorm2d (training-mode forward), single statistics pass,
        # folded into one per-channel scale/shift.
        mean = jnp.sum(y, axis=0, keepdims=True) * inv_n           # (1, C)
        ex2 = jnp.sum(y * y, axis=0, keepdims=True) * inv_n        # (1, C)
        var = ex2 - mean * mean                                    # biased var
        scale = g_ref[layer] * lax.rsqrt(var + BN_EPS)             # (1, C)
        shift = bt_ref[layer] - mean * scale                       # (1, C)
        h = y * scale + shift

    res = x_ref[...]
    if res.dtype != jnp.float32:
        res = res.astype(jnp.float32)
    o_ref[...] = (res + h).astype(o_ref.dtype)


def resblock_forward(x, w, b, gamma, beta):
    """x: (N, C, H, W) float32; w: (3,3,C,C); b/gamma/beta: (3,1,C)."""
    N, C, H, W = x.shape
    MH = N * W * H
    # NCHW -> (N, W, H, C) -> (MH, C); rows are (n, w, h) with h minor.
    xk = jnp.transpose(x, (0, 3, 2, 1)).reshape(MH, C)

    out = pl.pallas_call(
        functools.partial(resblock_kernel, h_size=H),
        out_shape=jax.ShapeDtypeStruct((MH, C), x.dtype),
        grid=(1,),
        in_specs=[
            pl.BlockSpec((MH, C), lambda i: (0, 0)),
            pl.BlockSpec((N_LAYERS, 3, C, C), lambda i: (0, 0, 0, 0)),
            pl.BlockSpec((N_LAYERS, 1, C), lambda i: (0, 0, 0)),
            pl.BlockSpec((N_LAYERS, 1, C), lambda i: (0, 0, 0)),
            pl.BlockSpec((N_LAYERS, 1, C), lambda i: (0, 0, 0)),
        ],
        out_specs=pl.BlockSpec((MH, C), lambda i: (0, 0)),
        compiler_params=pltpu.CompilerParams(
            dimension_semantics=("arbitrary",)),
    )(xk, w, b, gamma, beta)

    # (MH, C) -> (N, W, H, C) -> NCHW
    return jnp.transpose(out.reshape(N, W, H, C), (0, 3, 2, 1))


def resblock_ref(x, w, b, gamma, beta):
    """Pure-JAX reference mirroring the PyTorch forward (NCHW)."""
    h = x.astype(jnp.float32)
    x0 = h
    for l in range(N_LAYERS):
        # (tap, c_in, c_out) -> OIHW (c_out, c_in, 3, 1)
        w_oihw = jnp.transpose(w[l], (2, 1, 0))[:, :, :, None]
        y = lax.conv_general_dilated(
            h, w_oihw, window_strides=(1, 1), padding=((1, 1), (0, 0)),
            dimension_numbers=("NCHW", "OIHW", "NCHW"))
        y = y + b[l, 0][None, :, None, None]
        y = jnp.where(y >= 0, y, NEG_SLOPE * y)
        mean = jnp.mean(y, axis=(0, 2, 3), keepdims=True)
        var = jnp.mean((y - mean) ** 2, axis=(0, 2, 3), keepdims=True)
        y = (y - mean) * lax.rsqrt(var + BN_EPS)
        y = y * gamma[l, 0][None, :, None, None] + beta[l, 0][None, :, None, None]
        h = y
    return x0 + h


if __name__ == "__main__":
    key = jax.random.PRNGKey(0)
    N, C, H, W = 2, 4, 16, 16
    k1, k2, k3, k4, k5 = jax.random.split(key, 5)

    x = jax.random.normal(k1, (N, C, H, W), dtype=jnp.float32)

    # deterministic parameter init (PyTorch Conv2d-style uniform bounds)
    fan_in = C * 3 * 1
    bound = 1.0 / np.sqrt(fan_in)
    w = jax.random.uniform(k2, (N_LAYERS, 3, C, C), minval=-bound, maxval=bound,
                           dtype=jnp.float32)          # [layer, tap, c_in, c_out]
    b = jax.random.uniform(k3, (N_LAYERS, 1, C), minval=-bound, maxval=bound,
                           dtype=jnp.float32)
    gamma = jnp.ones((N_LAYERS, 1, C), jnp.float32) + \
        0.1 * jax.random.normal(k4, (N_LAYERS, 1, C), dtype=jnp.float32)
    beta = 0.1 * jax.random.normal(k5, (N_LAYERS, 1, C), dtype=jnp.float32)

    out = jax.block_until_ready(resblock_forward(x, w, b, gamma, beta))
    ref = resblock_ref(x, w, b, gamma, beta)

    assert out.shape == x.shape
    max_diff = float(np.max(np.abs(np.asarray(out) - np.asarray(ref))))
    if not np.allclose(np.asarray(out), np.asarray(ref), atol=2e-3, rtol=2e-3):
        raise AssertionError(f"kernel/reference mismatch, max abs diff {max_diff}")
    print("KERNEL_OK")
</pallas_src>

<mosaic_0001>
module attributes {stable_mosaic.version = 11 : i64} {
  func.func @resblock_kernel(%arg0: i32, %arg1: memref<512x4xf32, #tpu.memory_space<vmem>>, %arg2: memref<3x3x4x4xf32, #tpu.memory_space<vmem>>, %arg3: memref<3x1x4xf32, #tpu.memory_space<vmem>>, %arg4: memref<3x1x4xf32, #tpu.memory_space<vmem>>, %arg5: memref<3x1x4xf32, #tpu.memory_space<vmem>>, %arg6: memref<512x4xf32, #tpu.memory_space<vmem>>) attributes {dimension_semantics = [#tpu.dimension_semantics<arbitrary>], iteration_bounds = array<i64: 1>, scalar_prefetch = 0 : i64, scratch_operands = 0 : i64, tpu.core_type = #tpu.core_type<tc>, window_params = [{pipeline_mode = #tpu.pipeline_mode<synchronous>, transform_indices = @transform_0, window_bounds = array<i64: 512, 4>}, {pipeline_mode = #tpu.pipeline_mode<synchronous>, transform_indices = @transform_1, window_bounds = array<i64: 3, 3, 4, 4>}, {pipeline_mode = #tpu.pipeline_mode<synchronous>, transform_indices = @transform_2, window_bounds = array<i64: 3, 1, 4>}, {pipeline_mode = #tpu.pipeline_mode<synchronous>, transform_indices = @transform_3, window_bounds = array<i64: 3, 1, 4>}, {pipeline_mode = #tpu.pipeline_mode<synchronous>, transform_indices = @transform_4, window_bounds = array<i64: 3, 1, 4>}, {pipeline_mode = #tpu.pipeline_mode<synchronous>, transform_indices = @transform_5, window_bounds = array<i64: 512, 4>}]} {
    %0 = tpu.iota {dimensions = array<i32: 1>} : vector<32x16x4xi32>
    %1 = vector.shape_cast %0 : vector<32x16x4xi32> to vector<512x4xi32>
    %c0_i32 = arith.constant 0 : i32
    %2 = vector.broadcast %c0_i32 : i32 to vector<512x4xi32>
    %3 = arith.cmpi ne, %1, %2 : vector<512x4xi32>
    %c15_i32 = arith.constant 15 : i32
    %4 = vector.broadcast %c15_i32 : i32 to vector<512x4xi32>
    %5 = arith.cmpi ne, %1, %4 : vector<512x4xi32>
    %c0 = arith.constant 0 : index
    %c0_0 = arith.constant 0 : index
    %6 = vector.load %arg1[%c0, %c0_0] : memref<512x4xf32, #tpu.memory_space<vmem>>, vector<512x4xf32>
    %c0_1 = arith.constant 0 : index
    %c0_2 = arith.constant 0 : index
    %c0_3 = arith.constant 0 : index
    %c0_4 = arith.constant 0 : index
    %7 = vector.load %arg2[%c0_1, %c0_2, %c0_3, %c0_4] : memref<3x3x4x4xf32, #tpu.memory_space<vmem>>, vector<1x1x4x4xf32>
    %8 = vector.shape_cast %7 : vector<1x1x4x4xf32> to vector<4x4xf32>
    %cst = arith.constant dense<0.000000e+00> : vector<512x4xf32>
    %9 = tpu.matmul %6, %8, %cst {dimension_numbers = #tpu.dot_dimension_numbers<[1], [0], [0], [1], [0, 0, 1, 1], [], []>} : vector<512x4xf32>, vector<4x4xf32>, vector<512x4xf32> -> vector<512x4xf32>
    %c0_5 = arith.constant 0 : index
    %c1 = arith.constant 1 : index
    %c0_6 = arith.constant 0 : index
    %c0_7 = arith.constant 0 : index
    %10 = vector.load %arg2[%c0_5, %c1, %c0_6, %c0_7] : memref<3x3x4x4xf32, #tpu.memory_space<vmem>>, vector<1x1x4x4xf32>
    %11 = vector.shape_cast %10 : vector<1x1x4x4xf32> to vector<4x4xf32>
    %cst_8 = arith.constant dense<0.000000e+00> : vector<512x4xf32>
    %12 = tpu.matmul %6, %11, %cst_8 {dimension_numbers = #tpu.dot_dimension_numbers<[1], [0], [0], [1], [0, 0, 1, 1], [], []>} : vector<512x4xf32>, vector<4x4xf32>, vector<512x4xf32> -> vector<512x4xf32>
    %c0_9 = arith.constant 0 : index
    %c2 = arith.constant 2 : index
    %c0_10 = arith.constant 0 : index
    %c0_11 = arith.constant 0 : index
    %13 = vector.load %arg2[%c0_9, %c2, %c0_10, %c0_11] : memref<3x3x4x4xf32, #tpu.memory_space<vmem>>, vector<1x1x4x4xf32>
    %14 = vector.shape_cast %13 : vector<1x1x4x4xf32> to vector<4x4xf32>
    %cst_12 = arith.constant dense<0.000000e+00> : vector<512x4xf32>
    %15 = tpu.matmul %6, %14, %cst_12 {dimension_numbers = #tpu.dot_dimension_numbers<[1], [0], [0], [1], [0, 0, 1, 1], [], []>} : vector<512x4xf32>, vector<4x4xf32>, vector<512x4xf32> -> vector<512x4xf32>
    %c0_13 = arith.constant 0 : index
    %c0_14 = arith.constant 0 : index
    %c0_15 = arith.constant 0 : index
    %16 = vector.load %arg3[%c0_13, %c0_14, %c0_15] : memref<3x1x4xf32, #tpu.memory_space<vmem>>, vector<1x1x4xf32>
    %17 = vector.shape_cast %16 : vector<1x1x4xf32> to vector<1x4xf32>
    %18 = vector.broadcast %17 : vector<1x4xf32> to vector<512x4xf32>
    %19 = arith.addf %12, %18 : vector<512x4xf32>
    %c1_i32 = arith.constant 1 : i32
    %20 = tpu.dynamic_rotate %9 by %c1_i32 dim 0 : vector<512x4xf32>, i32 -> vector<512x4xf32>
    %cst_16 = arith.constant 0.000000e+00 : f32
    %21 = vector.broadcast %cst_16 : f32 to vector<512x4xf32>
    %22 = arith.select %3, %20, %21 : vector<512x4xi1>, vector<512x4xf32>
    %23 = arith.addf %19, %22 : vector<512x4xf32>
    %c511_i32 = arith.constant 511 : i32
    %24 = tpu.dynamic_rotate %15 by %c511_i32 dim 0 : vector<512x4xf32>, i32 -> vector<512x4xf32>
    %cst_17 = arith.constant 0.000000e+00 : f32
    %25 = vector.broadcast %cst_17 : f32 to vector<512x4xf32>
    %26 = arith.select %5, %24, %25 : vector<512x4xi1>, vector<512x4xf32>
    %27 = arith.addf %23, %26 : vector<512x4xf32>
    %cst_18 = arith.constant 0.00999999977 : f32
    %28 = vector.broadcast %cst_18 : f32 to vector<512x4xf32>
    %29 = arith.mulf %28, %27 : vector<512x4xf32>
    %30 = arith.maximumf %27, %29 : vector<512x4xf32>
    %cst_19 = arith.constant dense<0.000000e+00> : vector<4xf32>
    %31 = vector.multi_reduction <add>, %30, %cst_19 [0] : vector<512x4xf32> to vector<4xf32>
    %32 = vector.shape_cast %31 : vector<4xf32> to vector<1x4xf32>
    %cst_20 = arith.constant 0.001953125 : f32
    %33 = vector.broadcast %cst_20 : f32 to vector<1x4xf32>
    %34 = arith.mulf %32, %33 : vector<1x4xf32>
    %35 = arith.mulf %30, %30 : vector<512x4xf32>
    %cst_21 = arith.constant dense<0.000000e+00> : vector<4xf32>
    %36 = vector.multi_reduction <add>, %35, %cst_21 [0] : vector<512x4xf32> to vector<4xf32>
    %37 = vector.shape_cast %36 : vector<4xf32> to vector<1x4xf32>
    %cst_22 = arith.constant 0.001953125 : f32
    %38 = vector.broadcast %cst_22 : f32 to vector<1x4xf32>
    %39 = arith.mulf %37, %38 : vector<1x4xf32>
    %40 = arith.mulf %34, %34 : vector<1x4xf32>
    %41 = arith.subf %39, %40 : vector<1x4xf32>
    %c0_23 = arith.constant 0 : index
    %c0_24 = arith.constant 0 : index
    %c0_25 = arith.constant 0 : index
    %42 = vector.load %arg4[%c0_23, %c0_24, %c0_25] : memref<3x1x4xf32, #tpu.memory_space<vmem>>, vector<1x1x4xf32>
    %43 = vector.shape_cast %42 : vector<1x1x4xf32> to vector<1x4xf32>
    %cst_26 = arith.constant 9.99999974E-6 : f32
    %44 = vector.broadcast %cst_26 : f32 to vector<1x4xf32>
    %45 = arith.addf %41, %44 : vector<1x4xf32>
    %46 = math.rsqrt %45 : vector<1x4xf32>
    %47 = arith.mulf %43, %46 : vector<1x4xf32>
    %c0_27 = arith.constant 0 : index
    %c0_28 = arith.constant 0 : index
    %c0_29 = arith.constant 0 : index
    %48 = vector.load %arg5[%c0_27, %c0_28, %c0_29] : memref<3x1x4xf32, #tpu.memory_space<vmem>>, vector<1x1x4xf32>
    %49 = vector.shape_cast %48 : vector<1x1x4xf32> to vector<1x4xf32>
    %50 = arith.mulf %34, %47 : vector<1x4xf32>
    %51 = arith.subf %49, %50 : vector<1x4xf32>
    %52 = vector.broadcast %47 : vector<1x4xf32> to vector<512x4xf32>
    %53 = arith.mulf %30, %52 : vector<512x4xf32>
    %54 = vector.broadcast %51 : vector<1x4xf32> to vector<512x4xf32>
    %55 = arith.addf %53, %54 : vector<512x4xf32>
    %c1_30 = arith.constant 1 : index
    %c0_31 = arith.constant 0 : index
    %c0_32 = arith.constant 0 : index
    %c0_33 = arith.constant 0 : index
    %56 = vector.load %arg2[%c1_30, %c0_31, %c0_32, %c0_33] : memref<3x3x4x4xf32, #tpu.memory_space<vmem>>, vector<1x1x4x4xf32>
    %57 = vector.shape_cast %56 : vector<1x1x4x4xf32> to vector<4x4xf32>
    %cst_34 = arith.constant dense<0.000000e+00> : vector<512x4xf32>
    %58 = tpu.matmul %55, %57, %cst_34 {dimension_numbers = #tpu.dot_dimension_numbers<[1], [0], [0], [1], [0, 0, 1, 1], [], []>} : vector<512x4xf32>, vector<4x4xf32>, vector<512x4xf32> -> vector<512x4xf32>
    %c1_35 = arith.constant 1 : index
    %c1_36 = arith.constant 1 : index
    %c0_37 = arith.constant 0 : index
    %c0_38 = arith.constant 0 : index
    %59 = vector.load %arg2[%c1_35, %c1_36, %c0_37, %c0_38] : memref<3x3x4x4xf32, #tpu.memory_space<vmem>>, vector<1x1x4x4xf32>
    %60 = vector.shape_cast %59 : vector<1x1x4x4xf32> to vector<4x4xf32>
    %cst_39 = arith.constant dense<0.000000e+00> : vector<512x4xf32>
    %61 = tpu.matmul %55, %60, %cst_39 {dimension_numbers = #tpu.dot_dimension_numbers<[1], [0], [0], [1], [0, 0, 1, 1], [], []>} : vector<512x4xf32>, vector<4x4xf32>, vector<512x4xf32> -> vector<512x4xf32>
    %c1_40 = arith.constant 1 : index
    %c2_41 = arith.constant 2 : index
    %c0_42 = arith.constant 0 : index
    %c0_43 = arith.constant 0 : index
    %62 = vector.load %arg2[%c1_40, %c2_41, %c0_42, %c0_43] : memref<3x3x4x4xf32, #tpu.memory_space<vmem>>, vector<1x1x4x4xf32>
    %63 = vector.shape_cast %62 : vector<1x1x4x4xf32> to vector<4x4xf32>
    %cst_44 = arith.constant dense<0.000000e+00> : vector<512x4xf32>
    %64 = tpu.matmul %55, %63, %cst_44 {dimension_numbers = #tpu.dot_dimension_numbers<[1], [0], [0], [1], [0, 0, 1, 1], [], []>} : vector<512x4xf32>, vector<4x4xf32>, vector<512x4xf32> -> vector<512x4xf32>
    %c1_45 = arith.constant 1 : index
    %c0_46 = arith.constant 0 : index
    %c0_47 = arith.constant 0 : index
    %65 = vector.load %arg3[%c1_45, %c0_46, %c0_47] : memref<3x1x4xf32, #tpu.memory_space<vmem>>, vector<1x1x4xf32>
    %66 = vector.shape_cast %65 : vector<1x1x4xf32> to vector<1x4xf32>
    %67 = vector.broadcast %66 : vector<1x4xf32> to vector<512x4xf32>
    %68 = arith.addf %61, %67 : vector<512x4xf32>
    %c1_i32_48 = arith.constant 1 : i32
    %69 = tpu.dynamic_rotate %58 by %c1_i32_48 dim 0 : vector<512x4xf32>, i32 -> vector<512x4xf32>
    %cst_49 = arith.constant 0.000000e+00 : f32
    %70 = vector.broadcast %cst_49 : f32 to vector<512x4xf32>
    %71 = arith.select %3, %69, %70 : vector<512x4xi1>, vector<512x4xf32>
    %72 = arith.addf %68, %71 : vector<512x4xf32>
    %c511_i32_50 = arith.constant 511 : i32
    %73 = tpu.dynamic_rotate %64 by %c511_i32_50 dim 0 : vector<512x4xf32>, i32 -> vector<512x4xf32>
    %cst_51 = arith.constant 0.000000e+00 : f32
    %74 = vector.broadcast %cst_51 : f32 to vector<512x4xf32>
    %75 = arith.select %5, %73, %74 : vector<512x4xi1>, vector<512x4xf32>
    %76 = arith.addf %72, %75 : vector<512x4xf32>
    %cst_52 = arith.constant 0.00999999977 : f32
    %77 = vector.broadcast %cst_52 : f32 to vector<512x4xf32>
    %78 = arith.mulf %77, %76 : vector<512x4xf32>
    %79 = arith.maximumf %76, %78 : vector<512x4xf32>
    %cst_53 = arith.constant dense<0.000000e+00> : vector<4xf32>
    %80 = vector.multi_reduction <add>, %79, %cst_53 [0] : vector<512x4xf32> to vector<4xf32>
    %81 = vector.shape_cast %80 : vector<4xf32> to vector<1x4xf32>
    %cst_54 = arith.constant 0.001953125 : f32
    %82 = vector.broadcast %cst_54 : f32 to vector<1x4xf32>
    %83 = arith.mulf %81, %82 : vector<1x4xf32>
    %84 = arith.mulf %79, %79 : vector<512x4xf32>
    %cst_55 = arith.constant dense<0.000000e+00> : vector<4xf32>
    %85 = vector.multi_reduction <add>, %84, %cst_55 [0] : vector<512x4xf32> to vector<4xf32>
    %86 = vector.shape_cast %85 : vector<4xf32> to vector<1x4xf32>
    %cst_56 = arith.constant 0.001953125 : f32
    %87 = vector.broadcast %cst_56 : f32 to vector<1x4xf32>
    %88 = arith.mulf %86, %87 : vector<1x4xf32>
    %89 = arith.mulf %83, %83 : vector<1x4xf32>
    %90 = arith.subf %88, %89 : vector<1x4xf32>
    %c1_57 = arith.constant 1 : index
    %c0_58 = arith.constant 0 : index
    %c0_59 = arith.constant 0 : index
    %91 = vector.load %arg4[%c1_57, %c0_58, %c0_59] : memref<3x1x4xf32, #tpu.memory_space<vmem>>, vector<1x1x4xf32>
    %92 = vector.shape_cast %91 : vector<1x1x4xf32> to vector<1x4xf32>
    %cst_60 = arith.constant 9.99999974E-6 : f32
    %93 = vector.broadcast %cst_60 : f32 to vector<1x4xf32>
    %94 = arith.addf %90, %93 : vector<1x4xf32>
    %95 = math.rsqrt %94 : vector<1x4xf32>
    %96 = arith.mulf %92, %95 : vector<1x4xf32>
    %c1_61 = arith.constant 1 : index
    %c0_62 = arith.constant 0 : index
    %c0_63 = arith.constant 0 : index
    %97 = vector.load %arg5[%c1_61, %c0_62, %c0_63] : memref<3x1x4xf32, #tpu.memory_space<vmem>>, vector<1x1x4xf32>
    %98 = vector.shape_cast %97 : vector<1x1x4xf32> to vector<1x4xf32>
    %99 = arith.mulf %83, %96 : vector<1x4xf32>
    %100 = arith.subf %98, %99 : vector<1x4xf32>
    %101 = vector.broadcast %96 : vector<1x4xf32> to vector<512x4xf32>
    %102 = arith.mulf %79, %101 : vector<512x4xf32>
    %103 = vector.broadcast %100 : vector<1x4xf32> to vector<512x4xf32>
    %104 = arith.addf %102, %103 : vector<512x4xf32>
    %c2_64 = arith.constant 2 : index
    %c0_65 = arith.constant 0 : index
    %c0_66 = arith.constant 0 : index
    %c0_67 = arith.constant 0 : index
    %105 = vector.load %arg2[%c2_64, %c0_65, %c0_66, %c0_67] : memref<3x3x4x4xf32, #tpu.memory_space<vmem>>, vector<1x1x4x4xf32>
    %106 = vector.shape_cast %105 : vector<1x1x4x4xf32> to vector<4x4xf32>
    %cst_68 = arith.constant dense<0.000000e+00> : vector<512x4xf32>
    %107 = tpu.matmul %104, %106, %cst_68 {dimension_numbers = #tpu.dot_dimension_numbers<[1], [0], [0], [1], [0, 0, 1, 1], [], []>} : vector<512x4xf32>, vector<4x4xf32>, vector<512x4xf32> -> vector<512x4xf32>
    %c2_69 = arith.constant 2 : index
    %c1_70 = arith.constant 1 : index
    %c0_71 = arith.constant 0 : index
    %c0_72 = arith.constant 0 : index
    %108 = vector.load %arg2[%c2_69, %c1_70, %c0_71, %c0_72] : memref<3x3x4x4xf32, #tpu.memory_space<vmem>>, vector<1x1x4x4xf32>
    %109 = vector.shape_cast %108 : vector<1x1x4x4xf32> to vector<4x4xf32>
    %cst_73 = arith.constant dense<0.000000e+00> : vector<512x4xf32>
    %110 = tpu.matmul %104, %109, %cst_73 {dimension_numbers = #tpu.dot_dimension_numbers<[1], [0], [0], [1], [0, 0, 1, 1], [], []>} : vector<512x4xf32>, vector<4x4xf32>, vector<512x4xf32> -> vector<512x4xf32>
    %c2_74 = arith.constant 2 : index
    %c2_75 = arith.constant 2 : index
    %c0_76 = arith.constant 0 : index
    %c0_77 = arith.constant 0 : index
    %111 = vector.load %arg2[%c2_74, %c2_75, %c0_76, %c0_77] : memref<3x3x4x4xf32, #tpu.memory_space<vmem>>, vector<1x1x4x4xf32>
    %112 = vector.shape_cast %111 : vector<1x1x4x4xf32> to vector<4x4xf32>
    %cst_78 = arith.constant dense<0.000000e+00> : vector<512x4xf32>
    %113 = tpu.matmul %104, %112, %cst_78 {dimension_numbers = #tpu.dot_dimension_numbers<[1], [0], [0], [1], [0, 0, 1, 1], [], []>} : vector<512x4xf32>, vector<4x4xf32>, vector<512x4xf32> -> vector<512x4xf32>
    %c2_79 = arith.constant 2 : index
    %c0_80 = arith.constant 0 : index
    %c0_81 = arith.constant 0 : index
    %114 = vector.load %arg3[%c2_79, %c0_80, %c0_81] : memref<3x1x4xf32, #tpu.memory_space<vmem>>, vector<1x1x4xf32>
    %115 = vector.shape_cast %114 : vector<1x1x4xf32> to vector<1x4xf32>
    %116 = vector.broadcast %115 : vector<1x4xf32> to vector<512x4xf32>
    %117 = arith.addf %110, %116 : vector<512x4xf32>
    %c1_i32_82 = arith.constant 1 : i32
    %118 = tpu.dynamic_rotate %107 by %c1_i32_82 dim 0 : vector<512x4xf32>, i32 -> vector<512x4xf32>
    %cst_83 = arith.constant 0.000000e+00 : f32
    %119 = vector.broadcast %cst_83 : f32 to vector<512x4xf32>
    %120 = arith.select %3, %118, %119 : vector<512x4xi1>, vector<512x4xf32>
    %121 = arith.addf %117, %120 : vector<512x4xf32>
    %c511_i32_84 = arith.constant 511 : i32
    %122 = tpu.dynamic_rotate %113 by %c511_i32_84 dim 0 : vector<512x4xf32>, i32 -> vector<512x4xf32>
    %cst_85 = arith.constant 0.000000e+00 : f32
    %123 = vector.broadcast %cst_85 : f32 to vector<512x4xf32>
    %124 = arith.select %5, %122, %123 : vector<512x4xi1>, vector<512x4xf32>
    %125 = arith.addf %121, %124 : vector<512x4xf32>
    %cst_86 = arith.constant 0.00999999977 : f32
    %126 = vector.broadcast %cst_86 : f32 to vector<512x4xf32>
    %127 = arith.mulf %126, %125 : vector<512x4xf32>
    %128 = arith.maximumf %125, %127 : vector<512x4xf32>
    %cst_87 = arith.constant dense<0.000000e+00> : vector<4xf32>
    %129 = vector.multi_reduction <add>, %128, %cst_87 [0] : vector<512x4xf32> to vector<4xf32>
    %130 = vector.shape_cast %129 : vector<4xf32> to vector<1x4xf32>
    %cst_88 = arith.constant 0.001953125 : f32
    %131 = vector.broadcast %cst_88 : f32 to vector<1x4xf32>
    %132 = arith.mulf %130, %131 : vector<1x4xf32>
    %133 = arith.mulf %128, %128 : vector<512x4xf32>
    %cst_89 = arith.constant dense<0.000000e+00> : vector<4xf32>
    %134 = vector.multi_reduction <add>, %133, %cst_89 [0] : vector<512x4xf32> to vector<4xf32>
    %135 = vector.shape_cast %134 : vector<4xf32> to vector<1x4xf32>
    %cst_90 = arith.constant 0.001953125 : f32
    %136 = vector.broadcast %cst_90 : f32 to vector<1x4xf32>
    %137 = arith.mulf %135, %136 : vector<1x4xf32>
    %138 = arith.mulf %132, %132 : vector<1x4xf32>
    %139 = arith.subf %137, %138 : vector<1x4xf32>
    %c2_91 = arith.constant 2 : index
    %c0_92 = arith.constant 0 : index
    %c0_93 = arith.constant 0 : index
    %140 = vector.load %arg4[%c2_91, %c0_92, %c0_93] : memref<3x1x4xf32, #tpu.memory_space<vmem>>, vector<1x1x4xf32>
    %141 = vector.shape_cast %140 : vector<1x1x4xf32> to vector<1x4xf32>
    %cst_94 = arith.constant 9.99999974E-6 : f32
    %142 = vector.broadcast %cst_94 : f32 to vector<1x4xf32>
    %143 = arith.addf %139, %142 : vector<1x4xf32>
    %144 = math.rsqrt %143 : vector<1x4xf32>
    %145 = arith.mulf %141, %144 : vector<1x4xf32>
    %c2_95 = arith.constant 2 : index
    %c0_96 = arith.constant 0 : index
    %c0_97 = arith.constant 0 : index
    %146 = vector.load %arg5[%c2_95, %c0_96, %c0_97] : memref<3x1x4xf32, #tpu.memory_space<vmem>>, vector<1x1x4xf32>
    %147 = vector.shape_cast %146 : vector<1x1x4xf32> to vector<1x4xf32>
    %148 = arith.mulf %132, %145 : vector<1x4xf32>
    %149 = arith.subf %147, %148 : vector<1x4xf32>
    %150 = vector.broadcast %145 : vector<1x4xf32> to vector<512x4xf32>
    %151 = arith.mulf %128, %150 : vector<512x4xf32>
    %152 = vector.broadcast %149 : vector<1x4xf32> to vector<512x4xf32>
    %153 = arith.addf %151, %152 : vector<512x4xf32>
    %c0_98 = arith.constant 0 : index
    %c0_99 = arith.constant 0 : index
    %154 = vector.load %arg1[%c0_98, %c0_99] : memref<512x4xf32, #tpu.memory_space<vmem>>, vector<512x4xf32>
    %155 = arith.addf %154, %153 : vector<512x4xf32>
    %c0_100 = arith.constant 0 : index
    %c0_101 = arith.constant 0 : index
    %156 = vector.load %arg6[%c0_100, %c0_101] : memref<512x4xf32, #tpu.memory_space<vmem>>, vector<512x4xf32>
    tpu.vector_store %arg6[%c0_100, %c0_101], %155 {strides = array<i32>} : memref<512x4xf32, #tpu.memory_space<vmem>>, vector<512x4xf32>,
    return
  }
  func.func @transform_0(%arg0: i32) -> (i32, i32) {
    %c0_i32 = arith.constant 0 : i32
    %c0_i32_0 = arith.constant 0 : i32
    %c0_i32_1 = arith.constant 0 : i32
    return %c0_i32, %c0_i32_0 : i32, i32
  }
  func.func @transform_1(%arg0: i32) -> (i32, i32, i32, i32) {
    %c0_i32 = arith.constant 0 : i32
    %c0_i32_0 = arith.constant 0 : i32
    %c0_i32_1 = arith.constant 0 : i32
    %c0_i32_2 = arith.constant 0 : i32
    %c0_i32_3 = arith.constant 0 : i32
    return %c0_i32, %c0_i32_0, %c0_i32_1, %c0_i32_2 : i32, i32, i32, i32
  }
  func.func @transform_2(%arg0: i32) -> (i32, i32, i32) {
    %c0_i32 = arith.constant 0 : i32
    %c0_i32_0 = arith.constant 0 : i32
    %c0_i32_1 = arith.constant 0 : i32
    %c0_i32_2 = arith.constant 0 : i32
    return %c0_i32, %c0_i32_0, %c0_i32_1 : i32, i32, i32
  }
  func.func @transform_3(%arg0: i32) -> (i32, i32, i32) {
    %c0_i32 = arith.constant 0 : i32
    %c0_i32_0 = arith.constant 0 : i32
    %c0_i32_1 = arith.constant 0 : i32
    %c0_i32_2 = arith.constant 0 : i32
    return %c0_i32, %c0_i32_0, %c0_i32_1 : i32, i32, i32
  }
  func.func @transform_4(%arg0: i32) -> (i32, i32, i32) {
    %c0_i32 = arith.constant 0 : i32
    %c0_i32_0 = arith.constant 0 : i32
    %c0_i32_1 = arith.constant 0 : i32
    %c0_i32_2 = arith.constant 0 : i32
    return %c0_i32, %c0_i32_0, %c0_i32_1 : i32, i32, i32
  }
  func.func @transform_5(%arg0: i32) -> (i32, i32) {
    %c0_i32 = arith.constant 0 : i32
    %c0_i32_0 = arith.constant 0 : i32
    %c0_i32_1 = arith.constant 0 : i32
    return %c0_i32, %c0_i32_0 : i32, i32
  }
}

</mosaic_0001>

<bundles_post_ra>
// kernel: tpu_custom_call.1
= control target key start
LH: loop header
LB: loop body
LE: loop exit
PB: predicated region body
PF: predicated region fallthrough
CT: control target
= control target key end

     0   :  { %vm285_vm0 = vcmask 1043456   ;;  %vm92_vm1 = vcmask 31744   ;;  %s18117_s1 = inlined_call_operand.vmem [shape: f32[3,3,4,4], index: 1, kind: input, shape index: {}]   ;;  %s18118_s0 = inlined_call_operand.vmem [shape: f32[512,4], index: 0, kind: input, shape index: {}]   ;;  %s18119_s2 = inlined_call_operand.vmem [shape: f32[3,1,4], index: 2, kind: input, shape index: {}]   ;;  %s18120_s3 = inlined_call_operand.vmem [shape: f32[3,1,4], index: 3, kind: input, shape index: {}]   ;;  %s18121_s4 = inlined_call_operand.vmem [shape: f32[3,1,4], index: 4, kind: input, shape index: {}]   ;;  %s18122_s5 = inlined_call_operand.vmem [shape: f32[512,4], index: 5, kind: output, shape index: {}]  }
   0x1   :  { %v91_v0 = vld [vmem:[%s18117_s1] sm:$0xf]  ;;  %v9894_v3 = vld [vmem:[%s18118_s0 + $0x8] sm:$0xff]  ;;  %v7767_v6 = vld [vmem:[%s18117_s1 + $0x4] sm:$0xf] }
   0x2   :  { %v9882_v1 = vld [vmem:[%s18118_s0] sm:$0xff]  ;;  %8889 = vmatprep.subr.msk.mxu0 %vm285_vm0, %v91_v0  ;;  %9771 = vmatprep.subr.msk.mxu1 %vm285_vm0, %v91_v0  ;;  %v9899_v4 = vld [vmem:[%s18118_s0 + $0x108] sm:$0xff]  ;;  %v9916_v7 = vld [vmem:[%s18118_s0 + $0x10] sm:$0xff] }
   0x3   :  { %v9887_v2 = vld [vmem:[%s18118_s0 + $0x100] sm:$0xff]  ;;  %8890 = vmatpush3.msk.msra.mxu0 %vm285_vm0, %v91_v0  ;;  %9772 = vmatpush3.msk.msra.mxu1 %vm285_vm0, %v91_v0  ;;  %v7768_v5 = vld [vmem:[%s18117_s1 + $0x8] sm:$0xf]  ;;  %v9925_v8 = vld [vmem:[%s18118_s0 + $0x110] sm:$0xff] }
   0x4   :  { %8891 = vmatprep.mubr.msk.f32.mxu0 %vm92_vm1, %v9882_v1  ;;  %8939 = vmatprep.mubr.msk.f32.mxu1 %vm92_vm1, %v9887_v2  ;;  %v9932_v9 = vld [vmem:[%s18118_s0 + $0x18] sm:$0xff]  ;;  %v9945_v11 = vld [vmem:[%s18118_s0 + $0x20] sm:$0xff]  ;;  %v9966_v13 = vld [vmem:[%s18118_s0 + $0x28] sm:$0xff] }
   0x5   :  { %8892 = vmatmul.mubr.msk.f32.vlgmr.msra.gmra.mxu0 %vm92_vm1, %v9894_v3  ;;  %8940 = vmatmul.mubr.msk.f32.vlgmr.msra.gmra.mxu1 %vm92_vm1, %v9899_v4  ;;  %v9937_v10 = vld [vmem:[%s18118_s0 + $0x118] sm:$0xff]  ;;  %v9950_v12 = vld [vmem:[%s18118_s0 + $0x120] sm:$0xff]  ;;  %v9971_v14 = vld [vmem:[%s18118_s0 + $0x128] sm:$0xff] }
   0x6   :  { %8987 = vmatprep.subr.msk.mxu1 %vm285_vm0, %v7768_v5  ;;  %9085 = vmatprep.subr.msk.mxu0 %vm285_vm0, %v7767_v6  ;;  %v9976_v15 = vld [vmem:[%s18118_s0 + $0x30] sm:$0xff]  ;;  %v9994_v17 = vld [vmem:[%s18118_s0 + $0x38] sm:$0xff]  ;;  %v10004_v19 = vld [vmem:[%s18118_s0 + $0x40] sm:$0xff] }
   0x7   :  { %8988 = vmatpush3.msk.msra.mxu1 %vm285_vm0, %v7768_v5  ;;  %8894 = vmatprep.mubr.msk.f32.mxu0 %vm92_vm1, %v9916_v7  ;;  %v9981_v16 = vld [vmem:[%s18118_s0 + $0x130] sm:$0xff]  ;;  %v9999_v18 = vld [vmem:[%s18118_s0 + $0x138] sm:$0xff]  ;;  %v10009_v20 = vld [vmem:[%s18118_s0 + $0x140] sm:$0xff] }
   0x8   :  { %8942 = vmatprep.mubr.msk.f32.mxu1 %vm92_vm1, %v9925_v8  ;;  %9086 = vmatpush3.msk.msra.mxu0 %vm285_vm0, %v7767_v6  ;;  %v10022_v21 = vld [vmem:[%s18118_s0 + $0x48] sm:$0xff]  ;;  %v10032_v23 = vld [vmem:[%s18118_s0 + $0x50] sm:$0xff]  ;;  %v10050_v25 = vld [vmem:[%s18118_s0 + $0x58] sm:$0xff] }
   0x9   :  { %8895 = vmatmul.mubr.msk.f32.gmra.mxu0 %vm92_vm1, %v9932_v9  ;;  %8943 = vmatmul.mubr.msk.f32.gmra.mxu1 %vm92_vm1, %v9937_v10  ;;  %v10027_v22 = vld [vmem:[%s18118_s0 + $0x148] sm:$0xff]  ;;  %v10037_v24 = vld [vmem:[%s18118_s0 + $0x150] sm:$0xff]  ;;  %v10055_v26 = vld [vmem:[%s18118_s0 + $0x158] sm:$0xff] }
   0xa   :  { %8897 = vmatprep.mubr.msk.f32.mxu0 %vm92_vm1, %v9945_v11  ;;  %8945 = vmatprep.mubr.msk.f32.mxu1 %vm92_vm1, %v9950_v12  ;;  %v10060_v27 = vld [vmem:[%s18118_s0 + $0x60] sm:$0xff]  ;;  %v10078_v29 = vld [vmem:[%s18118_s0 + $0x68] sm:$0xff]  ;;  %v10088_v31 = vld [vmem:[%s18118_s0 + $0x70] sm:$0xff] }
   0xb   :  { %v10065_v28 = vld [vmem:[%s18118_s0 + $0x160] sm:$0xff]  ;;  %v10083_v30 = vld [vmem:[%s18118_s0 + $0x168] sm:$0xff]  ;;  %v10093_v32 = vld [vmem:[%s18118_s0 + $0x170] sm:$0xff] }
   0xc   :  { %v10106_v33 = vld [vmem:[%s18118_s0 + $0x78] sm:$0xff]  ;;  %v10116_v35 = vld [vmem:[%s18118_s0 + $0x80] sm:$0xff]  ;;  %v10134_v37 = vld [vmem:[%s18118_s0 + $0x88] sm:$0xff] }
   0xd   :  { %8898 = vmatmul.mubr.msk.f32.gmra.mxu0 %vm92_vm1, %v9966_v13  ;;  %8946 = vmatmul.mubr.msk.f32.gmra.mxu1 %vm92_vm1, %v9971_v14  ;;  %v10111_v34 = vld [vmem:[%s18118_s0 + $0x178] sm:$0xff]  ;;  %v10121_v36 = vld [vmem:[%s18118_s0 + $0x180] sm:$0xff]  ;;  %v10139_v38 = vld [vmem:[%s18118_s0 + $0x188] sm:$0xff] }
   0xe   :  { %8900 = vmatprep.mubr.msk.f32.mxu0 %vm92_vm1, %v9976_v15  ;;  %8948 = vmatprep.mubr.msk.f32.mxu1 %vm92_vm1, %v9981_v16  ;;  %v10144_v39 = vld [vmem:[%s18118_s0 + $0x90] sm:$0xff]  ;;  %v10162_v41 = vld [vmem:[%s18118_s0 + $0x98] sm:$0xff]  ;;  %v10172_v43 = vld [vmem:[%s18118_s0 + $0xa0] sm:$0xff] }
   0xf   :  { %v10149_v40 = vld [vmem:[%s18118_s0 + $0x190] sm:$0xff]  ;;  %v10167_v42 = vld [vmem:[%s18118_s0 + $0x198] sm:$0xff]  ;;  %v10177_v44 = vld [vmem:[%s18118_s0 + $0x1a0] sm:$0xff] }
  0x10   :  { %v10190_v45 = vld [vmem:[%s18118_s0 + $0xa8] sm:$0xff]  ;;  %v10200_v47 = vld [vmem:[%s18118_s0 + $0xb0] sm:$0xff]  ;;  %v10218_v49 = vld [vmem:[%s18118_s0 + $0xb8] sm:$0xff] }
  0x11   :  { %8901 = vmatmul.mubr.msk.f32.gmra.mxu0 %vm92_vm1, %v9994_v17  ;;  %8949 = vmatmul.mubr.msk.f32.gmra.mxu1 %vm92_vm1, %v9999_v18  ;;  %v10195_v46 = vld [vmem:[%s18118_s0 + $0x1a8] sm:$0xff]  ;;  %v10205_v48 = vld [vmem:[%s18118_s0 + $0x1b0] sm:$0xff]  ;;  %v10223_v50 = vld [vmem:[%s18118_s0 + $0x1b8] sm:$0xff] }
  0x12   :  { %8903 = vmatprep.mubr.msk.f32.mxu0 %vm92_vm1, %v10004_v19  ;;  %8951 = vmatprep.mubr.msk.f32.mxu1 %vm92_vm1, %v10009_v20  ;;  %v10228_v51 = vld [vmem:[%s18118_s0 + $0xc0] sm:$0xff]  ;;  %v10246_v53 = vld [vmem:[%s18118_s0 + $0xc8] sm:$0xff]  ;;  %v10256_v55 = vld [vmem:[%s18118_s0 + $0xd0] sm:$0xff] }
  0x13   :  { %v10233_v52 = vld [vmem:[%s18118_s0 + $0x1c0] sm:$0xff]  ;;  %v10251_v54 = vld [vmem:[%s18118_s0 + $0x1c8] sm:$0xff]  ;;  %v10261_v56 = vld [vmem:[%s18118_s0 + $0x1d0] sm:$0xff] }
  0x14   :  { %v10274_v57 = vld [vmem:[%s18118_s0 + $0xd8] sm:$0xff]  ;;  %v10284_v59 = vld [vmem:[%s18118_s0 + $0xe0] sm:$0xff]  ;;  %v10302_v61 = vld [vmem:[%s18118_s0 + $0xe8] sm:$0xff] }
  0x15   :  { %8904 = vmatmul.mubr.msk.f32.gmra.mxu0 %vm92_vm1, %v10022_v21  ;;  %8952 = vmatmul.mubr.msk.f32.gmra.mxu1 %vm92_vm1, %v10027_v22  ;;  %v10279_v58 = vld [vmem:[%s18118_s0 + $0x1d8] sm:$0xff]  ;;  %v10289_v60 = vld [vmem:[%s18118_s0 + $0x1e0] sm:$0xff]  ;;  %v10307_v62 = vld [vmem:[%s18118_s0 + $0x1e8] sm:$0xff] }
  0x16   :  { %8906 = vmatprep.mubr.msk.f32.mxu0 %vm92_vm1, %v10032_v23  ;;  %8954 = vmatprep.mubr.msk.f32.mxu1 %vm92_vm1, %v10037_v24  ;;  %v10312_v63 = vld [vmem:[%s18118_s0 + $0xf0] sm:$0xff]  ;;  %v10330_v5 = vld [vmem:[%s18118_s0 + $0xf8] sm:$0xff] }
  0x17   :  { %v10317_v0 = vld [vmem:[%s18118_s0 + $0x1f0] sm:$0xff]  ;;  %v10335_v6 = vld [vmem:[%s18118_s0 + $0x1f8] sm:$0xff] }
  0x19   :  { %8907 = vmatmul.mubr.msk.f32.gmra.mxu0 %vm92_vm1, %v10050_v25  ;;  %8955 = vmatmul.mubr.msk.f32.gmra.mxu1 %vm92_vm1, %v10055_v26 }
  0x1a   :  { %8909 = vmatprep.mubr.msk.f32.mxu0 %vm92_vm1, %v10060_v27  ;;  %8957 = vmatprep.mubr.msk.f32.mxu1 %vm92_vm1, %v10065_v28 }
  0x1d   :  { %8910 = vmatmul.mubr.msk.f32.gmra.mxu0 %vm92_vm1, %v10078_v29  ;;  %8958 = vmatmul.mubr.msk.f32.gmra.mxu1 %vm92_vm1, %v10083_v30 }
  0x1e   :  { %8912 = vmatprep.mubr.msk.f32.mxu0 %vm92_vm1, %v10088_v31  ;;  %8960 = vmatprep.mubr.msk.f32.mxu1 %vm92_vm1, %v10093_v32 }
  0x21   :  { %8913 = vmatmul.mubr.msk.f32.gmra.mxu0 %vm92_vm1, %v10106_v33  ;;  %8961 = vmatmul.mubr.msk.f32.gmra.mxu1 %vm92_vm1, %v10111_v34 }
  0x22   :  { %8915 = vmatprep.mubr.msk.f32.mxu0 %vm92_vm1, %v10116_v35  ;;  %8963 = vmatprep.mubr.msk.f32.mxu1 %vm92_vm1, %v10121_v36 }
  0x25   :  { %8916 = vmatmul.mubr.msk.f32.gmra.mxu0 %vm92_vm1, %v10134_v37  ;;  %8964 = vmatmul.mubr.msk.f32.gmra.mxu1 %vm92_vm1, %v10139_v38 }
  0x26   :  { %8918 = vmatprep.mubr.msk.f32.mxu0 %vm92_vm1, %v10144_v39  ;;  %8966 = vmatprep.mubr.msk.f32.mxu1 %vm92_vm1, %v10149_v40 }
  0x29   :  { %8919 = vmatmul.mubr.msk.f32.gmra.mxu0 %vm92_vm1, %v10162_v41  ;;  %8967 = vmatmul.mubr.msk.f32.gmra.mxu1 %vm92_vm1, %v10167_v42 }
  0x2a   :  { %8921 = vmatprep.mubr.msk.f32.mxu0 %vm92_vm1, %v10172_v43  ;;  %8969 = vmatprep.mubr.msk.f32.mxu1 %vm92_vm1, %v10177_v44 }
  0x2d   :  { %8922 = vmatmul.mubr.msk.f32.gmra.mxu0 %vm92_vm1, %v10190_v45  ;;  %8970 = vmatmul.mubr.msk.f32.gmra.mxu1 %vm92_vm1, %v10195_v46 }
  0x2e   :  { %8924 = vmatprep.mubr.msk.f32.mxu0 %vm92_vm1, %v10200_v47  ;;  %8972 = vmatprep.mubr.msk.f32.mxu1 %vm92_vm1, %v10205_v48 }
  0x31   :  { %8925 = vmatmul.mubr.msk.f32.gmra.mxu0 %vm92_vm1, %v10218_v49  ;;  %8973 = vmatmul.mubr.msk.f32.gmra.mxu1 %vm92_vm1, %v10223_v50 }
  0x32   :  { %8927 = vmatprep.mubr.msk.f32.mxu0 %vm92_vm1, %v10228_v51  ;;  %8975 = vmatprep.mubr.msk.f32.mxu1 %vm92_vm1, %v10233_v52 }
  0x35   :  { %8928 = vmatmul.mubr.msk.f32.gmra.mxu0 %vm92_vm1, %v10246_v53  ;;  %8976 = vmatmul.mubr.msk.f32.gmra.mxu1 %vm92_vm1, %v10251_v54 }
  0x36   :  { %8930 = vmatprep.mubr.msk.f32.mxu0 %vm92_vm1, %v10256_v55  ;;  %8978 = vmatprep.mubr.msk.f32.mxu1 %vm92_vm1, %v10261_v56 }
  0x39   :  { %8931 = vmatmul.mubr.msk.f32.gmra.mxu0 %vm92_vm1, %v10274_v57  ;;  %8979 = vmatmul.mubr.msk.f32.gmra.mxu1 %vm92_vm1, %v10279_v58 }
  0x3a   :  { %8933 = vmatprep.mubr.msk.f32.mxu0 %vm92_vm1, %v10284_v59  ;;  %8981 = vmatprep.mubr.msk.f32.mxu1 %vm92_vm1, %v10289_v60 }
  0x3d   :  { %8934 = vmatmul.mubr.msk.f32.gmra.mxu0 %vm92_vm1, %v10302_v61  ;;  %8982 = vmatmul.mubr.msk.f32.gmra.mxu1 %vm92_vm1, %v10307_v62 }
  0x3e   :  { %8936 = vmatprep.mubr.msk.f32.mxu0 %vm92_vm1, %v10312_v63  ;;  %8984 = vmatprep.mubr.msk.f32.mxu1 %vm92_vm1, %v10317_v0 }
  0x41   :  { %8937 = vmatmul.mubr.msk.f32.gmra.mxu0 %vm92_vm1, %v10330_v5  ;;  %8985 = vmatmul.mubr.msk.f32.gmra.mxu1 %vm92_vm1, %v10335_v6 }
  0x42   :  { %8989 = vmatprep.mubr.msk.f32.mxu1 %vm92_vm1, %v9882_v1  ;;  %9087 = vmatprep.mubr.msk.f32.mxu0 %vm92_vm1, %v9882_v1 }
  0x45   :  { %8990 = vmatmul.mubr.msk.f32.vlgmr.msra.gmra.mxu1 %vm92_vm1, %v9894_v3  ;;  %9088 = vmatmul.mubr.msk.f32.vlgmr.msra.gmra.mxu0 %vm92_vm1, %v9894_v3 }
  0x46   :  { %8992 = vmatprep.mubr.msk.f32.mxu1 %vm92_vm1, %v9916_v7  ;;  %9090 = vmatprep.mubr.msk.f32.mxu0 %vm92_vm1, %v9916_v7 }
  0x49   :  { %8993 = vmatmul.mubr.msk.f32.gmra.mxu1 %vm92_vm1, %v9932_v9  ;;  %9091 = vmatmul.mubr.msk.f32.gmra.mxu0 %vm92_vm1, %v9932_v9 }
  0x4a   :  { %8995 = vmatprep.mubr.msk.f32.mxu1 %vm92_vm1, %v9945_v11  ;;  %9093 = vmatprep.mubr.msk.f32.mxu0 %vm92_vm1, %v9945_v11 }
  0x4d   :  { %8996 = vmatmul.mubr.msk.f32.gmra.mxu1 %vm92_vm1, %v9966_v13  ;;  %9094 = vmatmul.mubr.msk.f32.gmra.mxu0 %vm92_vm1, %v9966_v13 }
  0x4e   :  { %8998 = vmatprep.mubr.msk.f32.mxu1 %vm92_vm1, %v9976_v15  ;;  %9096 = vmatprep.mubr.msk.f32.mxu0 %vm92_vm1, %v9976_v15 }
  0x51   :  { %8999 = vmatmul.mubr.msk.f32.gmra.mxu1 %vm92_vm1, %v9994_v17  ;;  %9097 = vmatmul.mubr.msk.f32.gmra.mxu0 %vm92_vm1, %v9994_v17 }
  0x52   :  { %9001 = vmatprep.mubr.msk.f32.mxu1 %vm92_vm1, %v10004_v19  ;;  %9099 = vmatprep.mubr.msk.f32.mxu0 %vm92_vm1, %v10004_v19 }
  0x55   :  { %9002 = vmatmul.mubr.msk.f32.gmra.mxu1 %vm92_vm1, %v10022_v21  ;;  %9100 = vmatmul.mubr.msk.f32.gmra.mxu0 %vm92_vm1, %v10022_v21 }
  0x56   :  { %9004 = vmatprep.mubr.msk.f32.mxu1 %vm92_vm1, %v10032_v23  ;;  %9102 = vmatprep.mubr.msk.f32.mxu0 %vm92_vm1, %v10032_v23 }
  0x59   :  { %9005 = vmatmul.mubr.msk.f32.gmra.mxu1 %vm92_vm1, %v10050_v25  ;;  %9103 = vmatmul.mubr.msk.f32.gmra.mxu0 %vm92_vm1, %v10050_v25 }
  0x5a   :  { %9007 = vmatprep.mubr.msk.f32.mxu1 %vm92_vm1, %v10060_v27  ;;  %9105 = vmatprep.mubr.msk.f32.mxu0 %vm92_vm1, %v10060_v27  ;;  %v20_v27 = vlaneseq }
  0x5d   :  { %9008 = vmatmul.mubr.msk.f32.gmra.mxu1 %vm92_vm1, %v10078_v29  ;;  %9106 = vmatmul.mubr.msk.f32.gmra.mxu0 %vm92_vm1, %v10078_v29 }
  0x5e   :  { %9010 = vmatprep.mubr.msk.f32.mxu1 %vm92_vm1, %v10088_v31  ;;  %9108 = vmatprep.mubr.msk.f32.mxu0 %vm92_vm1, %v10088_v31 }
  0x61   :  { %9011 = vmatmul.mubr.msk.f32.gmra.mxu1 %vm92_vm1, %v10106_v33  ;;  %9109 = vmatmul.mubr.msk.f32.gmra.mxu0 %vm92_vm1, %v10106_v33 }
  0x62   :  { %9013 = vmatprep.mubr.msk.f32.mxu1 %vm92_vm1, %v10116_v35  ;;  %9111 = vmatprep.mubr.msk.f32.mxu0 %vm92_vm1, %v10116_v35 }
  0x65   :  { %9014 = vmatmul.mubr.msk.f32.gmra.mxu1 %vm92_vm1, %v10134_v37  ;;  %9112 = vmatmul.mubr.msk.f32.gmra.mxu0 %vm92_vm1, %v10134_v37 }
  0x66   :  { %9016 = vmatprep.mubr.msk.f32.mxu1 %vm92_vm1, %v10144_v39  ;;  %9114 = vmatprep.mubr.msk.f32.mxu0 %vm92_vm1, %v10144_v39 }
  0x69   :  { %9017 = vmatmul.mubr.msk.f32.gmra.mxu1 %vm92_vm1, %v10162_v41  ;;  %9115 = vmatmul.mubr.msk.f32.gmra.mxu0 %vm92_vm1, %v10162_v41 }
  0x6a   :  { %9019 = vmatprep.mubr.msk.f32.mxu1 %vm92_vm1, %v10172_v43  ;;  %9117 = vmatprep.mubr.msk.f32.mxu0 %vm92_vm1, %v10172_v43 }
  0x6d   :  { %9020 = vmatmul.mubr.msk.f32.gmra.mxu1 %vm92_vm1, %v10190_v45  ;;  %9118 = vmatmul.mubr.msk.f32.gmra.mxu0 %vm92_vm1, %v10190_v45 }
  0x6e   :  { %9022 = vmatprep.mubr.msk.f32.mxu1 %vm92_vm1, %v10200_v47  ;;  %9120 = vmatprep.mubr.msk.f32.mxu0 %vm92_vm1, %v10200_v47 }
  0x71   :  { %9023 = vmatmul.mubr.msk.f32.gmra.mxu1 %vm92_vm1, %v10218_v49  ;;  %9121 = vmatmul.mubr.msk.f32.gmra.mxu0 %vm92_vm1, %v10218_v49 }
  0x72   :  { %9025 = vmatprep.mubr.msk.f32.mxu1 %vm92_vm1, %v10228_v51  ;;  %9123 = vmatprep.mubr.msk.f32.mxu0 %vm92_vm1, %v10228_v51 }
  0x75   :  { %9026 = vmatmul.mubr.msk.f32.gmra.mxu1 %vm92_vm1, %v10246_v53  ;;  %9124 = vmatmul.mubr.msk.f32.gmra.mxu0 %vm92_vm1, %v10246_v53 }
  0x76   :  { %9028 = vmatprep.mubr.msk.f32.mxu1 %vm92_vm1, %v10256_v55  ;;  %9126 = vmatprep.mubr.msk.f32.mxu0 %vm92_vm1, %v10256_v55 }
  0x79   :  { %9029 = vmatmul.mubr.msk.f32.gmra.mxu1 %vm92_vm1, %v10274_v57  ;;  %9127 = vmatmul.mubr.msk.f32.gmra.mxu0 %vm92_vm1, %v10274_v57 }
  0x7a   :  { %9031 = vmatprep.mubr.msk.f32.mxu1 %vm92_vm1, %v10284_v59  ;;  %9129 = vmatprep.mubr.msk.f32.mxu0 %vm92_vm1, %v10284_v59 }
  0x7d   :  { %9032 = vmatmul.mubr.msk.f32.gmra.mxu1 %vm92_vm1, %v10302_v61  ;;  %9130 = vmatmul.mubr.msk.f32.gmra.mxu0 %vm92_vm1, %v10302_v61 }
  0x7e   :  { %9034 = vmatprep.mubr.msk.f32.mxu1 %vm92_vm1, %v10312_v63  ;;  %9132 = vmatprep.mubr.msk.f32.mxu0 %vm92_vm1, %v10312_v63 }
  0x81   :  { %9035 = vmatmul.mubr.msk.f32.gmra.mxu1 %vm92_vm1, %v10330_v5  ;;  %9133 = vmatmul.mubr.msk.f32.gmra.mxu0 %vm92_vm1, %v10330_v5 }
  0x82   :  { %9037 = vmatprep.mubr.msk.f32.mxu1 %vm92_vm1, %v9887_v2  ;;  %9135 = vmatprep.mubr.msk.f32.mxu0 %vm92_vm1, %v9887_v2 }
  0x85   :  { %9038 = vmatmul.mubr.msk.f32.gmra.mxu1 %vm92_vm1, %v9899_v4  ;;  %9136 = vmatmul.mubr.msk.f32.gmra.mxu0 %vm92_vm1, %v9899_v4 }
  0x86   :  { %9040 = vmatprep.mubr.msk.f32.mxu1 %vm92_vm1, %v9925_v8  ;;  %9138 = vmatprep.mubr.msk.f32.mxu0 %vm92_vm1, %v9925_v8 }
  0x89   :  { %9041 = vmatmul.mubr.msk.f32.gmra.mxu1 %vm92_vm1, %v9937_v10  ;;  %9139 = vmatmul.mubr.msk.f32.gmra.mxu0 %vm92_vm1, %v9937_v10 }
  0x8a   :  { %9043 = vmatprep.mubr.msk.f32.mxu1 %vm92_vm1, %v9950_v12  ;;  %9141 = vmatprep.mubr.msk.f32.mxu0 %vm92_vm1, %v9950_v12 }
  0x8d   :  { %9044 = vmatmul.mubr.msk.f32.gmra.mxu1 %vm92_vm1, %v9971_v14  ;;  %9142 = vmatmul.mubr.msk.f32.gmra.mxu0 %vm92_vm1, %v9971_v14 }
  0x8e   :  { %9046 = vmatprep.mubr.msk.f32.mxu1 %vm92_vm1, %v9981_v16  ;;  %9144 = vmatprep.mubr.msk.f32.mxu0 %vm92_vm1, %v9981_v16 }
  0x91   :  { %9047 = vmatmul.mubr.msk.f32.gmra.mxu1 %vm92_vm1, %v9999_v18  ;;  %9145 = vmatmul.mubr.msk.f32.gmra.mxu0 %vm92_vm1, %v9999_v18 }
  0x92   :  { %9049 = vmatprep.mubr.msk.f32.mxu1 %vm92_vm1, %v10009_v20  ;;  %9147 = vmatprep.mubr.msk.f32.mxu0 %vm92_vm1, %v10009_v20 }
  0x95   :  { %9050 = vmatmul.mubr.msk.f32.gmra.mxu1 %vm92_vm1, %v10027_v22  ;;  %9148 = vmatmul.mubr.msk.f32.gmra.mxu0 %vm92_vm1, %v10027_v22 }
  0x96   :  { %9052 = vmatprep.mubr.msk.f32.mxu1 %vm92_vm1, %v10037_v24  ;;  %9150 = vmatprep.mubr.msk.f32.mxu0 %vm92_vm1, %v10037_v24 }
  0x99   :  { %9053 = vmatmul.mubr.msk.f32.gmra.mxu1 %vm92_vm1, %v10055_v26  ;;  %9151 = vmatmul.mubr.msk.f32.gmra.mxu0 %vm92_vm1, %v10055_v26 }
  0x9a   :  { %9055 = vmatprep.mubr.msk.f32.mxu1 %vm92_vm1, %v10065_v28  ;;  %9153 = vmatprep.mubr.msk.f32.mxu0 %vm92_vm1, %v10065_v28 }
  0x9d   :  { %9056 = vmatmul.mubr.msk.f32.gmra.mxu1 %vm92_vm1, %v10083_v30  ;;  %9154 = vmatmul.mubr.msk.f32.gmra.mxu0 %vm92_vm1, %v10083_v30 }
  0x9e   :  { %9058 = vmatprep.mubr.msk.f32.mxu1 %vm92_vm1, %v10093_v32  ;;  %9156 = vmatprep.mubr.msk.f32.mxu0 %vm92_vm1, %v10093_v32  ;;  %v10643_v32 = vshrl.u32 %v20_v27, 7 }
  0xa0   :  { %18248 = vst [vmem:[#allocation2_spill] sm:$0xff] %v10643_v32  ;;  %vm1525_vm2 = vcmp.lt.s32.totalorder %v10643_v32, 1  ;;  %vm23_vm3 = vcmp.ne.s32.totalorder %v10643_v32, 0  ;;  %vm1782_vm4 = vcmp.lt.s32.totalorder %v10643_v32, 7 }
  0xa1   :  { %9059 = vmatmul.mubr.msk.f32.gmra.mxu1 %vm92_vm1, %v10111_v34  ;;  %9157 = vmatmul.mubr.msk.f32.gmra.mxu0 %vm92_vm1, %v10111_v34 }
  0xa2   :  { %9061 = vmatprep.mubr.msk.f32.mxu1 %vm92_vm1, %v10121_v36  ;;  %9159 = vmatprep.mubr.msk.f32.mxu0 %vm92_vm1, %v10121_v36 }
  0xa5   :  { %9062 = vmatmul.mubr.msk.f32.gmra.mxu1 %vm92_vm1, %v10139_v38  ;;  %9160 = vmatmul.mubr.msk.f32.gmra.mxu0 %vm92_vm1, %v10139_v38 }
  0xa6   :  { %9064 = vmatprep.mubr.msk.f32.mxu1 %vm92_vm1, %v10149_v40  ;;  %9162 = vmatprep.mubr.msk.f32.mxu0 %vm92_vm1, %v10149_v40 }
  0xa9   :  { %9065 = vmatmul.mubr.msk.f32.gmra.mxu1 %vm92_vm1, %v10167_v42  ;;  %9163 = vmatmul.mubr.msk.f32.gmra.mxu0 %vm92_vm1, %v10167_v42 }
  0xaa   :  { %9067 = vmatprep.mubr.msk.f32.mxu1 %vm92_vm1, %v10177_v44  ;;  %9165 = vmatprep.mubr.msk.f32.mxu0 %vm92_vm1, %v10177_v44 }
  0xad   :  { %9068 = vmatmul.mubr.msk.f32.gmra.mxu1 %vm92_vm1, %v10195_v46  ;;  %9166 = vmatmul.mubr.msk.f32.gmra.mxu0 %vm92_vm1, %v10195_v46 }
  0xae   :  { %9070 = vmatprep.mubr.msk.f32.mxu1 %vm92_vm1, %v10205_v48  ;;  %9168 = vmatprep.mubr.msk.f32.mxu0 %vm92_vm1, %v10205_v48 }
  0xb1   :  { %9071 = vmatmul.mubr.msk.f32.gmra.mxu1 %vm92_vm1, %v10223_v50  ;;  %9169 = vmatmul.mubr.msk.f32.gmra.mxu0 %vm92_vm1, %v10223_v50 }
  0xb2   :  { %9073 = vmatprep.mubr.msk.f32.mxu1 %vm92_vm1, %v10233_v52  ;;  %9171 = vmatprep.mubr.msk.f32.mxu0 %vm92_vm1, %v10233_v52  ;;  %v10674_v52 = vadd.s32 8, %v10643_v32 }
  0xb4   :  { %18249 = vst [vmem:[#allocation3_spill] sm:$0xff] %v10674_v52  ;;  %vm26_vm5 = vcmp.ne.s32.totalorder %v10674_v52, 15 }
  0xb5   :  { %9074 = vmatmul.mubr.msk.f32.gmra.mxu1 %vm92_vm1, %v10251_v54  ;;  %9172 = vmatmul.mubr.msk.f32.gmra.mxu0 %vm92_vm1, %v10251_v54 }
  0xb6   :  { %9076 = vmatprep.mubr.msk.f32.mxu1 %vm92_vm1, %v10261_v56  ;;  %9174 = vmatprep.mubr.msk.f32.mxu0 %vm92_vm1, %v10261_v56 }
  0xb9   :  { %9077 = vmatmul.mubr.msk.f32.gmra.mxu1 %vm92_vm1, %v10279_v58  ;;  %9175 = vmatmul.mubr.msk.f32.gmra.mxu0 %vm92_vm1, %v10279_v58 }
  0xba   :  { %9079 = vmatprep.mubr.msk.f32.mxu1 %vm92_vm1, %v10289_v60  ;;  %9177 = vmatprep.mubr.msk.f32.mxu0 %vm92_vm1, %v10289_v60 }
  0xbd   :  { %9080 = vmatmul.mubr.msk.f32.gmra.mxu1 %vm92_vm1, %v10307_v62  ;;  %9178 = vmatmul.mubr.msk.f32.gmra.mxu0 %vm92_vm1, %v10307_v62 }
  0xbe   :  { %9082 = vmatprep.mubr.msk.f32.mxu1 %vm92_vm1, %v10317_v0  ;;  %9180 = vmatprep.mubr.msk.f32.mxu0 %vm92_vm1, %v10317_v0 }
  0xc1   :  { %9083 = vmatmul.mubr.msk.f32.gmra.mxu1 %vm92_vm1, %v10335_v6  ;;  %9181 = vmatmul.mubr.msk.f32.gmra.mxu0 %vm92_vm1, %v10335_v6 }
  0xc5   :  { %v8893_v1 = vpop.f32.mrf.mxu0  ;;  %v8941_v2 = vpop.f32.mrf.mxu1 }
  0xc6   :  { %v1462_v36 = vrot.slane %v8893_v1, 7  ;;  %v1494_v44 = vrot.slane %v8941_v2, 7 }
  0xc7   :  { %v10597_v3 = vpop.f32.mrf.mxu0  ;;  %v10599_v4 = vpop.f32.mrf.mxu1 }
  0xc8   :  { %v18124_v37 = vrot.slane %v10597_v3, 7  ;;  %v18123_v38 = vrot.slane %v10599_v4, 7 }
  0xc9   :  { %v8896_v7 = vpop.f32.mrf.mxu0  ;;  %v10601_v8 = vpop.f32.mrf.mxu1 }
  0xca   :  { %v1464_v42 = vrot.slane %v8896_v7, 7  ;;  %v1496_v49 = vrot.slane %v10601_v8, 7  ;;  %v10671_v51 = vsel %vm1525_vm2, %v18124_v37, %v1462_v36  ;;  %v10686_v57 = vsel %vm1525_vm2, %v18123_v38, %v1494_v44 }
  0xcb   :  { %v365_v9 = vpop.f32.mrf.mxu0  ;;  %v525_v10 = vpop.f32.mrf.mxu1 }
  0xcc   :  { %v1463_v33 = vrot.slane %v365_v9, 7  ;;  %v1495_v39 = vrot.slane %v525_v10, 7 }
  0xcd   :  { %v10603_v11 = vpop.f32.mrf.mxu0  ;;  %v10605_v12 = vpop.f32.mrf.mxu1 }
  0xce   :  { %v1587_v48 = vsel %vm1525_vm2, %v1462_v36, %v1463_v33  ;;  %v1466_v53 = vrot.slane %v10603_v11, 7  ;;  %v1498_v54 = vrot.slane %v10605_v12, 7  ;;  %v1555_v58 = vsel %vm1525_vm2, %v1494_v44, %v1495_v39 }
  0xcf   :  { %v10607_v13 = vpop.f32.mrf.mxu0  ;;  %v10609_v14 = vpop.f32.mrf.mxu1  ;;  %v10693_v60 = vsel %vm1525_vm2, %v1463_v33, %v1464_v42  ;;  %v10697_v61 = vsel %vm23_vm3, %v1587_v48, 0.0  ;;  %v10709_v1 = vsel %vm1525_vm2, %v1495_v39, %v1496_v49  ;;  %v10719_v10 = vsel %vm23_vm3, %v1555_v58, 0.0 }
  0xd0   :  { %v1465_v43 = vrot.slane %v10607_v13, 7  ;;  %v1497_v45 = vrot.slane %v10609_v14, 7  ;;  %18250 = vst [vmem:[#allocation4_spill] sm:$0xff] %v10719_v10 }
  0xd1   :  { %v10611_v15 = vpop.f32.mrf.mxu0  ;;  %v10613_v16 = vpop.f32.mrf.mxu1 }
  0xd2   :  { %v1585_v62 = vsel %vm1525_vm2, %v1464_v42, %v1465_v43  ;;  %v1468_v63 = vrot.slane %v10611_v15, 7  ;;  %v1553_v2 = vsel %vm1525_vm2, %v1496_v49, %v1497_v45  ;;  %v1500_v7 = vrot.slane %v10613_v16, 7  ;;  %v7900_v16 = vld [vmem:[%s18117_s1 + $0xc] sm:$0xf] }
  0xd3   :  { %v10615_v17 = vpop.f32.mrf.mxu0  ;;  %v10617_v18 = vpop.f32.mrf.mxu1  ;;  %v10728_v14 = vsel %vm1525_vm2, %v1465_v43, %v1466_v53  ;;  %v10732_v15 = vsel %vm23_vm3, %v1585_v62, 0.0  ;;  %9183 = vmatprep.subr.msk.mxu1 %vm285_vm0, %v7900_v16 }
  0xd4   :  { %v1467_v50 = vrot.slane %v10615_v17, 7  ;;  %v1499_v59 = vrot.slane %v10617_v18, 7  ;;  %v10739_v17 = vsel %vm1525_vm2, %v1497_v45, %v1498_v54  ;;  %9184 = vmatpush3.msk.msra.mxu1 %vm285_vm0, %v7900_v16 }
  0xd5   :  { %v10619_v19 = vpop.f32.mrf.mxu0  ;;  %v10621_v20 = vpop.f32.mrf.mxu1  ;;  %18251 = vst [vmem:[#allocation5_spill] sm:$0xff] %v10739_v17 }
  0xd6   :  { %v1583_v9 = vsel %vm1525_vm2, %v1466_v53, %v1467_v50  ;;  %v1470_v18 = vrot.slane %v10619_v19, 7  ;;  %v10757_v19 = vsel %vm1525_vm2, %v1467_v50, %v1468_v63  ;;  %v10770_v43 = vsel %vm1525_vm2, %v1499_v59, %v1500_v7 }
  0xd7   :  { %v10623_v21 = vpop.f32.mrf.mxu0  ;;  %v10625_v22 = vpop.f32.mrf.mxu1  ;;  %18253 = vst [vmem:[#allocation7_spill] sm:$0xff] %v10770_v43 }
  0xd8   :  { %v1469_v0 = vrot.slane %v10623_v21, 7  ;;  %v1501_v8 = vrot.slane %v10625_v22, 7  ;;  %v1502_v21 = vrot.slane %v10621_v20, 7  ;;  %v10746_v22 = vsel %vm23_vm3, %v1553_v2, 0.0 }
  0xd9   :  { %v10627_v23 = vpop.f32.mrf.mxu0  ;;  %v10629_v24 = vpop.f32.mrf.mxu1  ;;  %18252 = vst [vmem:[#allocation6_spill] sm:$0xff] %v10746_v22  ;;  %v10761_v20 = vsel %vm23_vm3, %v1583_v9, 0.0 }
  0xda   :  { %v1581_v39 = vsel %vm1525_vm2, %v1468_v63, %v1469_v0  ;;  %v1472_v42 = vrot.slane %v10627_v23, 7  ;;  %v1549_v44 = vsel %vm1525_vm2, %v1500_v7, %v1501_v8  ;;  %v1504_v45 = vrot.slane %v10629_v24, 7 }
  0xdb   :  { %v10631_v25 = vpop.f32.mrf.mxu0  ;;  %v10633_v26 = vpop.f32.mrf.mxu1  ;;  %v10793_v24 = vsel %vm23_vm3, %v1581_v39, 0.0 }
  0xdc   :  { %v1471_v11 = vrot.slane %v10631_v25, 7  ;;  %v1551_v25 = vsel %vm1525_vm2, %v1498_v54, %v1499_v59  ;;  %v1503_v27 = vrot.slane %v10633_v26, 7  ;;  %v10789_v54 = vsel %vm1525_vm2, %v1469_v0, %v1470_v18 }
  0xdd   :  { %v10635_v28 = vpop.f32.mrf.mxu0  ;;  %v10637_v29 = vpop.f32.mrf.mxu1 }
  0xde   :  { %v1579_v23 = vsel %vm1525_vm2, %v1470_v18, %v1471_v11  ;;  %v1474_v58 = vrot.slane %v10635_v28, 7  ;;  %v1506_v59 = vrot.slane %v10637_v29, 7  ;;  %v1547_v0 = vsel %vm1525_vm2, %v1502_v21, %v1503_v27 }
  0xdf   :  { %v10639_v30 = vpop.f32.mrf.mxu0  ;;  %v10641_v31 = vpop.f32.mrf.mxu1  ;;  %v10814_v7 = vsel %vm1525_vm2, %v1471_v11, %v1472_v42  ;;  %v10818_v28 = vsel %vm23_vm3, %v1579_v23, 0.0 }
  0xe0   :  { %v1473_v26 = vrot.slane %v10639_v30, 7  ;;  %v1505_v48 = vrot.slane %v10641_v31, 7  ;;  %v10784_v30 = vsel %vm23_vm3, %v1551_v25, 0.0  ;;  %v10797_v31 = vsel %vm1525_vm2, %v1501_v8, %v1502_v21 }
  0xe1   :  { %v10645_v34 = vpop.f32.mrf.mxu0  ;;  %v10647_v35 = vpop.f32.mrf.mxu1  ;;  %18254 = vst [vmem:[#allocation8_spill] sm:$0xff] %v10784_v30  ;;  %18255 = vst [vmem:[#allocation9_spill] sm:$0xff] %v10797_v31 }
  0xe2   :  { %v1577_v29 = vsel %vm1525_vm2, %v1472_v42, %v1473_v26  ;;  %v1476_v8 = vrot.slane %v10645_v34, 7  ;;  %v1545_v11 = vsel %vm1525_vm2, %v1504_v45, %v1505_v48  ;;  %v1508_v21 = vrot.slane %v10647_v35, 7 }
  0xe3   :  { %v10651_v40 = vpop.f32.mrf.mxu0  ;;  %v10653_v41 = vpop.f32.mrf.mxu1  ;;  %v10853_v35 = vsel %vm23_vm3, %v1577_v29, 0.0  ;;  %v10863_v23 = vsel %vm23_vm3, %v1545_v11, 0.0 }
  0xe4   :  { %v1475_v53 = vrot.slane %v10651_v40, 7  ;;  %v10807_v40 = vsel %vm23_vm3, %v1549_v44, 0.0  ;;  %v1507_v2 = vrot.slane %v10653_v41, 7  ;;  %v10830_v41 = vsel %vm1525_vm2, %v1503_v27, %v1504_v45  ;;  %18260 = vst [vmem:[#allocation14_spill] sm:$0xff] %v10863_v23 }
  0xe5   :  { %v10658_v46 = vpop.f32.mrf.mxu0  ;;  %v10660_v47 = vpop.f32.mrf.mxu1  ;;  %18256 = vst [vmem:[#allocation10_spill] sm:$0xff] %v10807_v40  ;;  %18257 = vst [vmem:[#allocation11_spill] sm:$0xff] %v10830_v41  ;;  %v10849_v44 = vsel %vm1525_vm2, %v1473_v26, %v1474_v58 }
  0xe6   :  { %v1575_v34 = vsel %vm1525_vm2, %v1474_v58, %v1475_v53  ;;  %v1478_v45 = vrot.slane %v10658_v46, 7  ;;  %v1543_v26 = vsel %vm1525_vm2, %v1506_v59, %v1507_v2 }
  0xe7   :  { %v10678_v55 = vpop.f32.mrf.mxu0  ;;  %v10680_v56 = vpop.f32.mrf.mxu1  ;;  %v10878_v46 = vsel %vm23_vm3, %v1575_v34, 0.0 }
  0xe8   :  { %v1477_v9 = vrot.slane %v10678_v55, 7  ;;  %v1509_v25 = vrot.slane %v10680_v56, 7  ;;  %v10840_v55 = vsel %vm23_vm3, %v1547_v0, 0.0  ;;  %v10857_v56 = vsel %vm1525_vm2, %v1505_v48, %v1506_v59 }
  0xe9   :  { %v10703_v5 = vpop.f32.mrf.mxu0  ;;  %v10705_v6 = vpop.f32.mrf.mxu1  ;;  %18258 = vst [vmem:[#allocation12_spill] sm:$0xff] %v10840_v55  ;;  %18259 = vst [vmem:[#allocation13_spill] sm:$0xff] %v10857_v56  ;;  %v10874_v48 = vsel %vm1525_vm2, %v1475_v53, %v1476_v8 }
  0xea   :  { %v1480_v11 = vrot.slane %v10703_v5, 7  ;;  %v1541_v38 = vsel %vm1525_vm2, %v1508_v21, %v1509_v25  ;;  %v1512_v53 = vrot.slane %v10705_v6, 7 }
  0xeb   :  { %v10722_v12 = vpop.f32.mrf.mxu0  ;;  %v10724_v13 = vpop.f32.mrf.mxu1 }
  0xec   :  { %v1479_v39 = vrot.slane %v10722_v12, 7  ;;  %v1510_v12 = vrot.slane %v10660_v47, 7  ;;  %v1511_v58 = vrot.slane %v10724_v13, 7  ;;  %v1573_v47 = vsel %vm1525_vm2, %v1476_v8, %v1477_v9 }
  0xed   :  { %v10751_v33 = vpop.f32.mrf.mxu0  ;;  %v10753_v36 = vpop.f32.mrf.mxu1  ;;  %v10886_v13 = vsel %vm1525_vm2, %v1507_v2, %v1508_v21  ;;  %v10905_v8 = vsel %vm1525_vm2, %v1477_v9, %v1478_v45  ;;  %v10909_v6 = vsel %vm23_vm3, %v1573_v47, 0.0 }
  0xee   :  { %18261 = vst [vmem:[#allocation15_spill] sm:$0xff] %v10886_v13  ;;  %v1571_v5 = vsel %vm1525_vm2, %v1478_v45, %v1479_v39  ;;  %v1482_v21 = vrot.slane %v10751_v33, 7  ;;  %v1514_v13 = vrot.slane %v10753_v36, 7  ;;  %v1539_v9 = vsel %vm1525_vm2, %v1510_v12, %v1511_v58 }
  0xef   :  { %v10776_v49 = vpop.f32.mrf.mxu0  ;;  %v10778_v50 = vpop.f32.mrf.mxu1  ;;  %v10932_v33 = vsel %vm23_vm3, %v1571_v5, 0.0 }
  0xf0   :  { %v1481_v59 = vrot.slane %v10776_v49, 7  ;;  %v1513_v37 = vrot.slane %v10778_v50, 7  ;;  %v10900_v49 = vsel %vm23_vm3, %v1543_v26, 0.0  ;;  %v10913_v50 = vsel %vm1525_vm2, %v1509_v25, %v1510_v12 }
  0xf1   :  { %v10801_v62 = vpop.f32.mrf.mxu0  ;;  %v10803_v63 = vpop.f32.mrf.mxu1  ;;  %18262 = vst [vmem:[#allocation16_spill] sm:$0xff] %v10900_v49  ;;  %18263 = vst [vmem:[#allocation17_spill] sm:$0xff] %v10913_v50  ;;  %v10928_v25 = vsel %vm1525_vm2, %v1479_v39, %v1480_v11 }
  0xf2   :  { %v1569_v36 = vsel %vm1525_vm2, %v1480_v11, %v1481_v59  ;;  %v1484_v47 = vrot.slane %v10801_v62, 7  ;;  %v1537_v39 = vsel %vm1525_vm2, %v1512_v53, %v1513_v37  ;;  %v1516_v5 = vrot.slane %v10803_v63, 7 }
  0xf3   :  { %v10824_v16 = vpop.f32.mrf.mxu0  ;;  %v10826_v18 = vpop.f32.mrf.mxu1  ;;  %v10967_v63 = vsel %vm23_vm3, %v1569_v36, 0.0 }
  0xf4   :  { %v1483_v2 = vrot.slane %v10824_v16, 7  ;;  %v10921_v16 = vsel %vm23_vm3, %v1541_v38, 0.0  ;;  %v1515_v45 = vrot.slane %v10826_v18, 7  ;;  %v10944_v18 = vsel %vm1525_vm2, %v1511_v58, %v1512_v53 }
  0xf5   :  { %v10843_v42 = vpop.f32.mrf.mxu0  ;;  %v10845_v27 = vpop.f32.mrf.mxu1  ;;  %18264 = vst [vmem:[#allocation18_spill] sm:$0xff] %v10921_v16  ;;  %18265 = vst [vmem:[#allocation19_spill] sm:$0xff] %v10944_v18  ;;  %v10963_v58 = vsel %vm1525_vm2, %v1481_v59, %v1482_v21 }
  0xf6   :  { %v1567_v62 = vsel %vm1525_vm2, %v1482_v21, %v1483_v2  ;;  %v1486_v53 = vrot.slane %v10843_v42, 7  ;;  %v1535_v59 = vsel %vm1525_vm2, %v1514_v13, %v1515_v45  ;;  %v10987_v36 = vsel %vm1525_vm2, %v1483_v2, %v1484_v47 }
  0xf7   :  { %v10868_v0 = vpop.f32.mrf.mxu0  ;;  %v10870_v29 = vpop.f32.mrf.mxu1 }
  0xf8   :  { %v1485_v38 = vrot.slane %v10868_v0, 7  ;;  %v1517_v50 = vrot.slane %v10870_v29, 7  ;;  %v10954_v0 = vsel %vm23_vm3, %v1539_v9, 0.0  ;;  %v10971_v29 = vsel %vm1525_vm2, %v1513_v37, %v1514_v13 }
  0xf9   :  { %v10892_v34 = vpop.f32.mrf.mxu0  ;;  %v10894_v56 = vpop.f32.mrf.mxu1  ;;  %18266 = vst [vmem:[#allocation20_spill] sm:$0xff] %v10954_v0  ;;  %18267 = vst [vmem:[#allocation21_spill] sm:$0xff] %v10971_v29  ;;  %v10977_v9 = vsel %vm23_vm3, %v1537_v39, 0.0  ;;  %v10991_v37 = vsel %vm23_vm3, %v1567_v62, 0.0 }
  0xfa   :  { %18268 = vst [vmem:[#allocation22_spill] sm:$0xff] %v10977_v9  ;;  %v1565_v42 = vsel %vm1525_vm2, %v1484_v47, %v1485_v38  ;;  %v1488_v13 = vrot.slane %v10892_v34, 7  ;;  %v1533_v2 = vsel %vm1525_vm2, %v1516_v5, %v1517_v50  ;;  %v11012_v34 = vsel %vm23_vm3, %v1535_v59, 0.0 }
  0xfb   :  { %v485_v26 = vpop.f32.mrf.mxu0  ;;  %v10917_v49 = vpop.f32.mrf.mxu1  ;;  %18270 = vst [vmem:[#allocation24_spill] sm:$0xff] %v11012_v34 }
  0xfc   :  { %v1487_v11 = vrot.slane %v485_v26, 7  ;;  %v1518_v26 = vrot.slane %v10845_v27, 7  ;;  %v10997_v27 = vsel %vm1525_vm2, %v1515_v45, %v1516_v5  ;;  %v1519_v39 = vrot.slane %v10917_v49, 7 }
  0xfd   :  { %v10938_v16 = vpop.f32.mrf.mxu0  ;;  %v10940_v12 = vpop.f32.mrf.mxu1  ;;  %18269 = vst [vmem:[#allocation23_spill] sm:$0xff] %v10997_v27  ;;  %v1520_v49 = vrot.slane %v10894_v56, 7 }
  0xfe   :  { %v1563_v45 = vsel %vm1525_vm2, %v1486_v53, %v1487_v11  ;;  %v1490_v5 = vrot.slane %v10938_v16, 7  ;;  %v1522_v29 = vrot.slane %v10940_v12, 7  ;;  %v11029_v56 = vsel %vm1525_vm2, %v1517_v50, %v1518_v26  ;;  %v11044_v16 = vld [vmem:[%s18119_s2] ss:$0 sm:$0xff] }
  0xff   :  { %v10956_v23 = vpop.f32.mrf.mxu0  ;;  %v10958_v55 = vpop.f32.mrf.mxu1  ;;  %18271 = vst [vmem:[#allocation25_spill] sm:$0xff] %v11029_v56  ;;  %v11048_v50 = vsel %vm1525_vm2, %v1487_v11, %v1488_v13  ;;  %v11052_v12 = vsel %vm23_vm3, %v1563_v45, 0.0  ;;  %v11062_v56 = vsel %vm1525_vm2, %v1519_v39, %v1520_v49  ;;  %v18277_v45 = vrot.slane %v10599_v4, 7 }
 0x100   :  { %v1489_v9 = vrot.slane %v10956_v23, 7  ;;  %v1521_v62 = vrot.slane %v10958_v55, 7  ;;  %v11019_v23 = vsel %vm1525_vm2, %v1485_v38, %v1486_v53  ;;  %v11023_v55 = vsel %vm23_vm3, %v1565_v42, 0.0  ;;  %18276 = vst [vmem:[#allocation28_spill] sm:$0xff] %v11062_v56 }
 0x101   :  { %v10981_v21 = vpop.f32.mrf.mxu0  ;;  %v10983_v0 = vpop.f32.mrf.mxu1  ;;  %v18273_v38 = vrot.slane %v10597_v3, 7  ;;  %v1531_v3 = vsel %vm1525_vm2, %v1518_v26, %v1519_v39 }
 0x102   :  { %v1492_v47 = vrot.slane %v10981_v21, 7  ;;  %v11033_v21 = vsel %vm23_vm3, %v1533_v2, 0.0  ;;  %v18274_v53 = vrot.slane %v10983_v0, 7  ;;  %v1529_v11 = vsel %vm1525_vm2, %v1520_v49, %v1521_v62 }
 0x103   :  { %v505_v18 = vpop.f32.mrf.mxu0  ;;  %v11006_v41 = vpop.f32.mrf.mxu1  ;;  %18272 = vst [vmem:[#allocation26_spill] sm:$0xff] %v11033_v21  ;;  %v11078_v4 = vsel %vm23_vm3, %v1531_v3, 0.0 }
 0x104   :  { %v1589_v42 = vsel %vm1525_vm2, %v18274_v53, %v18273_v38  ;;  %v1491_v2 = vrot.slane %v505_v18, 7  ;;  %v1561_v53 = vsel %vm1525_vm2, %v1488_v13, %v1489_v9  ;;  %v1557_v34 = vsel %vm1525_vm2, %v1492_v47, %v18277_v45  ;;  %18278 = vst [vmem:[#allocation29_spill] sm:$0xff] %v11078_v4 }
 0x105   :  { %v8991_v59 = vpop.f32.mrf.mxu1  ;;  %v9089_v27 = vpop.f32.mrf.mxu0  ;;  %v1523_v31 = vrot.slane %v11006_v41, 7  ;;  %v1590_v39 = vsel %vm23_vm3, %v1589_v42, 0.0  ;;  %v11086_v41 = vsel %vm1525_vm2, %v1489_v9, %v1490_v5  ;;  %v11096_v45 = vsel %vm23_vm3, %v1557_v34, 0.0 }
 0x106   :  { %v1719_v26 = vrot.slane %v8991_v59, 1  ;;  %v1148_v13 = vadd.f32 %v9089_v27, %v11044_v16  ;;  %v11090_v27 = vsel %vm23_vm3, %v1561_v53, 0.0  ;;  %v1559_v3 = vsel %vm1525_vm2, %v1490_v5, %v1491_v2 }
 0x107   :  { %v11056_v21 = vpop.f32.mrf.mxu1  ;;  %v1142_v38 = vpop.f32.mrf.mxu0  ;;  %v11104_v9 = vsel %vm23_vm3, %v1529_v11, 0.0  ;;  %v11111_v22 = vsel %vm1525_vm2, %v1491_v2, %v1492_v47  ;;  %v11125_v2 = vsel %vm23_vm3, %v1559_v3, 0.0 }
 0x108   :  { %18275 = vst [vmem:[#allocation27_spill] sm:$0xff] %v11056_v21  ;;  %v18125_v18 = vrot.slane %v11056_v21, 1  ;;  %v1143_v40 = vadd.f32 %v11044_v16, %v1142_v38  ;;  %18280 = vst [vmem:[#allocation31_spill] sm:$0xff] %v11104_v9  ;;  %v1655_v4 = vadd.f32 %v10671_v51, %v1148_v13 }
 0x109   :  { %v8994_v56 = vpop.f32.mrf.mxu1  ;;  %v9092_v43 = vpop.f32.mrf.mxu0 }
 0x10a   :  { %v1845_v49 = vsel %vm1782_vm4, %v18125_v18, %v1719_v26  ;;  %v1654_v59 = vadd.f32 %v1590_v39, %v1143_v40  ;;  %v11100_v40 = vsel %vm1525_vm2, %v1521_v62, %v1522_v29  ;;  %v1721_v53 = vrot.slane %v8994_v56, 1 }
 0x10b   :  { %v757_v42 = vpop.f32.mrf.mxu1  ;;  %v1152_v38 = vpop.f32.mrf.mxu0  ;;  %18279 = vst [vmem:[#allocation30_spill] sm:$0xff] %v11100_v40  ;;  %v1158_v5 = vadd.f32 %v9092_v43, %v11044_v16  ;;  %v1527_v62 = vsel %vm1525_vm2, %v1522_v29, %v1523_v31  ;;  %v18281_v29 = vrot.slane %v10983_v0, 7 }
 0x10c   :  { %v1911_v39 = vadd.f32 %v1845_v49, %v1654_v59  ;;  %v1720_v18 = vrot.slane %v757_v42, 1  ;;  %v1153_v21 = vadd.f32 %v11044_v16, %v1152_v38  ;;  %v11141_v0 = vsel %vm23_vm3, %v1527_v62, 0.0 }
 0x10d   :  { %v8997_v30 = vpop.f32.mrf.mxu1  ;;  %v9095_v34 = vpop.f32.mrf.mxu0  ;;  %v11131_v42 = vsel %vm1525_vm2, %v1523_v31, %v18281_v29  ;;  %v1657_v38 = vadd.f32 %v10693_v60, %v1158_v5  ;;  %18284 = vst [vmem:[#allocation34_spill] sm:$0xff] %v11141_v0 }
 0x10e   :  { %v1975_v11 = vmul.f32 0.01, %v1911_v39  ;;  %v1843_v56 = vsel %vm1782_vm4, %v1720_v18, %v1721_v53  ;;  %v1844_v49 = vsel %vm1782_vm4, %v1719_v26, %v1720_v18  ;;  %v1656_v51 = vadd.f32 %v10697_v61, %v1153_v21  ;;  %18282 = vst [vmem:[#allocation32_spill] sm:$0xff] %v11131_v42 }
 0x10f   :  { %v1848_v43 = vsel %vm26_vm5, %v1844_v49, 0.0  ;;  %v1168_v13 = vadd.f32 %v9095_v34, %v11044_v16  ;;  %v767_v59 = vpop.f32.mrf.mxu1  ;;  %v1162_v47 = vpop.f32.mrf.mxu0  ;;  %v1723_v34 = vrot.slane %v8997_v30, 1 }
 0x110   :  { %v11133_v26 = vmax.f32 %v1911_v39, %v1975_v11  ;;  %v1912_v61 = vadd.f32 %v1848_v43, %v1655_v4  ;;  %v1913_v21 = vadd.f32 %v1843_v56, %v1656_v51  ;;  %v1722_v18 = vrot.slane %v767_v59, 1 }
 0x111   :  { %v1163_v49 = vadd.f32 %v11044_v16, %v1162_v47  ;;  %v11137_v40 = vpop.f32.mrf.mxu1  ;;  %v9098_v3 = vpop.f32.mrf.mxu0  ;;  %v1659_v4 = vadd.f32 %v10728_v14, %v1168_v13 }
 0x112   :  { %18283 = vst [vmem:[#allocation33_spill] sm:$0xff] %v11133_v26  ;;  %v2237_v31 = vmul.f32 %v11133_v26, %v11133_v26  ;;  %v1976_v39 = vmul.f32 0.01, %v1912_v61  ;;  %v1977_v11 = vmul.f32 0.01, %v1913_v21  ;;  %v2103_v60 = vsel %vm92_vm1, %v11133_v26, 0.0 }
 0x113   :  { %v1841_v30 = vsel %vm1782_vm4, %v1722_v18, %v1723_v34  ;;  %v1842_v5 = vsel %vm1782_vm4, %v1721_v53, %v1722_v18  ;;  %v1658_v56 = vadd.f32 %v10732_v15, %v1163_v49  ;;  %v777_v62 = vpop.f32.mrf.mxu1  ;;  %v1172_v51 = vpop.f32.mrf.mxu0  ;;  %v1725_v13 = vrot.slane %v11137_v40, 1 }
 0x114   :  { %v11153_v43 = vmax.f32 %v1912_v61, %v1976_v39  ;;  %v11155_v59 = vmax.f32 %v1913_v21, %v1977_v11  ;;  %v1850_v14 = vsel %vm26_vm5, %v1842_v5, 0.0  ;;  %v1178_v26 = vadd.f32 %v9098_v3, %v11044_v16 }
 0x115   :  { %v1914_v47 = vadd.f32 %v1850_v14, %v1657_v38  ;;  %v1915_v29 = vadd.f32 %v1841_v30, %v1658_v56  ;;  %v1724_v0 = vrot.slane %v777_v62, 1  ;;  %v11161_v42 = vpop.f32.mrf.mxu1  ;;  %v9101_v53 = vpop.f32.mrf.mxu0  ;;  %v2301_v15 = vsel %vm92_vm1, %v2237_v31, 0.0 }
 0x116   :  { %18285 = vst [vmem:[#allocation35_spill] sm:$0xff] %v11153_v43  ;;  %18286 = vst [vmem:[#allocation36_spill] sm:$0xff] %v11155_v59  ;;  %v2104_v61 = vsel %vm92_vm1, %v11153_v43, 0.0  ;;  %v2238_v21 = vmul.f32 %v11153_v43, %v11153_v43  ;;  %v2239_v18 = vmul.f32 %v11155_v59, %v11155_v59  ;;  %v2106_v38 = vsel %vm92_vm1, %v11155_v59, 0.0 }
 0x117   :  { %v2105_v40 = vadd.f32 %v2104_v61, %v2103_v60  ;;  %v1978_v49 = vmul.f32 0.01, %v1914_v47  ;;  %v1979_v3 = vmul.f32 0.01, %v1915_v29  ;;  %v787_v39 = vpop.f32.mrf.mxu1  ;;  %v1182_v11 = vpop.f32.mrf.mxu0  ;;  %v1661_v5 = vadd.f32 %v10757_v19, %v1178_v26 }
 0x118   :  { %v2302_v30 = vsel %vm92_vm1, %v2238_v21, 0.0  ;;  %v2304_v31 = vsel %vm92_vm1, %v2239_v18, 0.0  ;;  %v1840_v56 = vsel %vm1782_vm4, %v1723_v34, %v1724_v0  ;;  %v1839_v9 = vsel %vm1782_vm4, %v1724_v0, %v1725_v13 }
 0x119   :  { %v2303_v62 = vadd.f32 %v2302_v30, %v2301_v15  ;;  %v2107_v14 = vadd.f32 %v2106_v38, %v2105_v40  ;;  %v11177_v43 = vmax.f32 %v1914_v47, %v1978_v49  ;;  %v11179_v60 = vmax.f32 %v1915_v29, %v1979_v3  ;;  %v11181_v61 = vpop.f32.mrf.mxu1  ;;  %v9104_v59 = vpop.f32.mrf.mxu0 }
 0x11a   :  { %v1852_v21 = vsel %vm26_vm5, %v1840_v56, 0.0  ;;  %v1173_v19 = vadd.f32 %v11044_v16, %v1172_v51  ;;  %v1727_v26 = vrot.slane %v11161_v42, 1  ;;  %v1188_v15 = vadd.f32 %v9101_v53, %v11044_v16 }
 0x11b   :  { %18287 = vst [vmem:[#allocation37_spill] sm:$0xff] %v11177_v43  ;;  %18288 = vst [vmem:[#allocation38_spill] sm:$0xff] %v11179_v60  ;;  %v2305_v34 = vadd.f32 %v2304_v31, %v2303_v62  ;;  %v2108_v47 = vsel %vm92_vm1, %v11177_v43, 0.0  ;;  %v2240_v29 = vmul.f32 %v11177_v43, %v11177_v43  ;;  %v797_v18 = vpop.f32.mrf.mxu1  ;;  %v1192_v40 = vpop.f32.mrf.mxu0  ;;  %v2241_v0 = vmul.f32 %v11179_v60, %v11179_v60 }
 0x11c   :  { %v2109_v38 = vadd.f32 %v2108_v47, %v2107_v14  ;;  %v1916_v49 = vadd.f32 %v1852_v21, %v1659_v4  ;;  %v1660_v51 = vadd.f32 %v10761_v20, %v1173_v19  ;;  %v2110_v3 = vsel %vm92_vm1, %v11179_v60, 0.0 }
 0x11d   :  { %v2306_v42 = vsel %vm92_vm1, %v2240_v29, 0.0  ;;  %v1726_v30 = vrot.slane %v787_v39, 1  ;;  %v1183_v31 = vadd.f32 %v11044_v16, %v1182_v11  ;;  %v11201_v56 = vpop.f32.mrf.mxu1  ;;  %v11203_v53 = vpop.f32.mrf.mxu0  ;;  %v2308_v47 = vsel %vm92_vm1, %v2241_v0, 0.0 }
 0x11e   :  { %v2307_v62 = vadd.f32 %v2306_v42, %v2305_v34  ;;  %v2111_v14 = vadd.f32 %v2110_v3, %v2109_v38  ;;  %v1980_v43 = vmul.f32 0.01, %v1916_v49  ;;  %v1917_v4 = vadd.f32 %v1839_v9, %v1660_v51 }
 0x11f   :  { %v1837_v20 = vsel %vm1782_vm4, %v1726_v30, %v1727_v26  ;;  %v1838_v21 = vsel %vm1782_vm4, %v1725_v13, %v1726_v30  ;;  %v1662_v39 = vadd.f32 %v10793_v24, %v1183_v31  ;;  %v11211_v19 = vpop.f32.mrf.mxu1  ;;  %v1202_v11 = vpop.f32.mrf.mxu0  ;;  %v1663_v34 = vadd.f32 %v10789_v54, %v1188_v15 }
 0x120   :  { %v2309_v29 = vadd.f32 %v2308_v47, %v2307_v62  ;;  %v11213_v60 = vmax.f32 %v1916_v49, %v1980_v43  ;;  %v1854_v38 = vsel %vm26_vm5, %v1838_v21, 0.0  ;;  %v1981_v9 = vmul.f32 0.01, %v1917_v4 }
 0x121   :  { %v1918_v0 = vadd.f32 %v1854_v38, %v1661_v5  ;;  %v1919_v51 = vadd.f32 %v1837_v20, %v1662_v39  ;;  %v18132_v42 = vrot.slane %v11181_v61, 1  ;;  %v11219_v3 = vpop.f32.mrf.mxu1  ;;  %v9110_v13 = vpop.f32.mrf.mxu0  ;;  %v1728_v49 = vrot.slane %v797_v18, 1 }
 0x122   :  { %18289 = vst [vmem:[#allocation39_spill] sm:$0xff] %v11213_v60  ;;  %v2112_v24 = vsel %vm92_vm1, %v11213_v60, 0.0  ;;  %v2242_v43 = vmul.f32 %v11213_v60, %v11213_v60  ;;  %v1193_v54 = vadd.f32 %v11044_v16, %v1192_v40  ;;  %v11226_v15 = vmax.f32 %v1917_v4, %v1981_v9 }
 0x123   :  { %v2113_v30 = vadd.f32 %v2112_v24, %v2111_v14  ;;  %v1982_v31 = vmul.f32 0.01, %v1918_v0  ;;  %v1983_v5 = vmul.f32 0.01, %v1919_v51  ;;  %v11228_v62 = vpop.f32.mrf.mxu1  ;;  %v11230_v47 = vpop.f32.mrf.mxu0  ;;  %v1198_v21 = vadd.f32 %v9104_v59, %v11044_v16 }
 0x124   :  { %18290 = vst [vmem:[#allocation40_spill] sm:$0xff] %v11226_v15  ;;  %v2310_v20 = vsel %vm92_vm1, %v2242_v43, 0.0  ;;  %v1835_v18 = vsel %vm1782_vm4, %v1728_v49, %v18132_v42  ;;  %v1836_v40 = vsel %vm1782_vm4, %v1727_v26, %v1728_v49  ;;  %v2114_v14 = vsel %vm92_vm1, %v11226_v15, 0.0 }
 0x125   :  { %v2243_v4 = vmul.f32 %v11226_v15, %v11226_v15  ;;  %v2311_v39 = vadd.f32 %v2310_v20, %v2309_v29  ;;  %v11244_v38 = vmax.f32 %v1918_v0, %v1982_v31  ;;  %v11246_v9 = vpop.f32.mrf.mxu1  ;;  %v11248_v59 = vpop.f32.mrf.mxu0  ;;  %v2115_v24 = vadd.f32 %v2114_v14, %v2113_v30 }
 0x126   :  { %v11250_v43 = vmax.f32 %v1919_v51, %v1983_v5  ;;  %v1856_v42 = vsel %vm26_vm5, %v1836_v40, 0.0  ;;  %v1664_v26 = vadd.f32 %v10818_v28, %v1193_v54 }
 0x127   :  { %18291 = vst [vmem:[#allocation41_spill] sm:$0xff] %v11244_v38  ;;  %v2312_v49 = vsel %vm92_vm1, %v2243_v4, 0.0  ;;  %v2116_v15 = vsel %vm92_vm1, %v11244_v38, 0.0  ;;  %v2244_v29 = vmul.f32 %v11244_v38, %v11244_v38  ;;  %v1920_v0 = vadd.f32 %v1856_v42, %v1663_v34  ;;  %v11260_v31 = vpop.f32.mrf.mxu1  ;;  %v11262_v20 = vpop.f32.mrf.mxu0 }
 0x128   :  { %18292 = vst [vmem:[#allocation42_spill] sm:$0xff] %v11250_v43  ;;  %v2313_v51 = vadd.f32 %v2312_v49, %v2311_v39  ;;  %v2117_v30 = vadd.f32 %v2116_v15, %v2115_v24  ;;  %v2118_v5 = vsel %vm92_vm1, %v11250_v43, 0.0  ;;  %v2245_v28 = vmul.f32 %v11250_v43, %v11250_v43 }
 0x129   :  { %v2314_v54 = vsel %vm92_vm1, %v2244_v29, 0.0  ;;  %v1984_v40 = vmul.f32 0.01, %v1920_v0  ;;  %v1921_v14 = vadd.f32 %v1835_v18, %v1664_v26  ;;  %v1731_v4 = vrot.slane %v11201_v56, 1  ;;  %v11270_v38 = vpop.f32.mrf.mxu1  ;;  %v11272_v34 = vpop.f32.mrf.mxu0 }
 0x12a   :  { %v2119_v42 = vadd.f32 %v2118_v5, %v2117_v30  ;;  %v2315_v60 = vadd.f32 %v2314_v54, %v2313_v51  ;;  %v2316_v15 = vsel %vm92_vm1, %v2245_v28, 0.0  ;;  %v1208_v39 = vadd.f32 %v11203_v53, %v11044_v16 }
 0x12b   :  { %v11277_v24 = vmax.f32 %v1920_v0, %v1984_v40  ;;  %v1985_v49 = vmul.f32 0.01, %v1921_v14  ;;  %v1730_v29 = vrot.slane %v11211_v19, 1  ;;  %v1203_v18 = vadd.f32 %v11044_v16, %v1202_v11  ;;  %v11281_v26 = vpop.f32.mrf.mxu1  ;;  %v11283_v56 = vpop.f32.mrf.mxu0 }
 0x12c   :  { %v2317_v43 = vadd.f32 %v2316_v15, %v2315_v60  ;;  %v1665_v30 = vadd.f32 %v10814_v7, %v1198_v21  ;;  %v1667_v51 = vadd.f32 %v10849_v44, %v1208_v39  ;;  %v1218_v5 = vadd.f32 %v9110_v13, %v11044_v16 }
 0x12d   :  { %18293 = vst [vmem:[#allocation43_spill] sm:$0xff] %v11277_v24  ;;  %v2120_v53 = vsel %vm92_vm1, %v11277_v24, 0.0  ;;  %v2246_v0 = vmul.f32 %v11277_v24, %v11277_v24  ;;  %v11292_v19 = vmax.f32 %v1921_v14, %v1985_v49  ;;  %v1833_v11 = vsel %vm1782_vm4, %v1730_v29, %v1731_v4  ;;  %v11296_v28 = vpop.f32.mrf.mxu1  ;;  %v11298_v60 = vpop.f32.mrf.mxu0 }
 0x12e   :  { %v2121_v7 = vadd.f32 %v2120_v53, %v2119_v42  ;;  %v18295_v44 = vrot.slane %v11181_v61, 1  ;;  %v1666_v21 = vadd.f32 %v10853_v35, %v1203_v18  ;;  %v1733_v54 = vrot.slane %v11219_v3, 1 }
 0x12f   :  { %18294 = vst [vmem:[#allocation44_spill] sm:$0xff] %v11292_v19  ;;  %v2318_v40 = vsel %vm92_vm1, %v2246_v0, 0.0  ;;  %v2247_v14 = vmul.f32 %v11292_v19, %v11292_v19  ;;  %v1669_v39 = vadd.f32 %v10874_v48, %v1218_v5  ;;  %v11312_v42 = vpop.f32.mrf.mxu1  ;;  %v11314_v61 = vpop.f32.mrf.mxu0  ;;  %v2122_v49 = vsel %vm92_vm1, %v11292_v19, 0.0 }
 0x130   :  { %v1834_v13 = vsel %vm1782_vm4, %v18295_v44, %v1730_v29  ;;  %v2319_v35 = vadd.f32 %v2318_v40, %v2317_v43  ;;  %v1923_v3 = vadd.f32 %v1833_v11, %v1666_v21  ;;  %v2123_v18 = vadd.f32 %v2122_v49, %v2121_v7 }
 0x131   :  { %v1858_v15 = vsel %vm26_vm5, %v1834_v13, 0.0  ;;  %v2320_v53 = vsel %vm92_vm1, %v2247_v14, 0.0  ;;  %v1732_v0 = vrot.slane %v11228_v62, 1  ;;  %v1213_v44 = vadd.f32 %v11044_v16, %v11230_v47  ;;  %v11322_v13 = vpop.f32.mrf.mxu1  ;;  %v11324_v48 = vpop.f32.mrf.mxu0 }
 0x132   :  { %v1922_v29 = vadd.f32 %v1858_v15, %v1665_v30  ;;  %v1987_v24 = vmul.f32 0.01, %v1923_v3  ;;  %v1228_v43 = vadd.f32 %v11248_v59, %v11044_v16  ;;  %v1734_v47 = vrot.slane %v11260_v31, 1 }
 0x133   :  { %v1831_v30 = vsel %vm1782_vm4, %v1732_v0, %v1733_v54  ;;  %v1832_v62 = vsel %vm1782_vm4, %v1731_v4, %v1732_v0  ;;  %v1668_v11 = vadd.f32 %v10878_v46, %v1213_v44  ;;  %v11335_v7 = vpop.f32.mrf.mxu1  ;;  %v11337_v21 = vpop.f32.mrf.mxu0  ;;  %v2321_v40 = vadd.f32 %v2320_v53, %v2319_v35 }
 0x134   :  { %v1986_v5 = vmul.f32 0.01, %v1922_v29  ;;  %v11341_v15 = vmax.f32 %v1923_v3, %v1987_v24  ;;  %v1860_v59 = vsel %vm26_vm5, %v1832_v62, 0.0  ;;  %v1671_v4 = vadd.f32 %v10905_v8, %v1228_v43 }
 0x135   :  { %v1924_v49 = vadd.f32 %v1860_v59, %v1667_v51  ;;  %v1925_v17 = vadd.f32 %v1831_v30, %v1668_v11  ;;  %v1830_v46 = vsel %vm1782_vm4, %v1733_v54, %v1734_v47  ;;  %v11348_v31 = vpop.f32.mrf.mxu1  ;;  %v11350_v0 = vpop.f32.mrf.mxu0  ;;  %v18298_v51 = vrot.slane %v11246_v9, 1 }
 0x136   :  { %v11339_v14 = vmax.f32 %v1922_v29, %v1986_v5  ;;  %18297 = vst [vmem:[#allocation46_spill] sm:$0xff] %v11341_v15  ;;  %v2249_v29 = vmul.f32 %v11341_v15, %v11341_v15  ;;  %v1862_v44 = vsel %vm26_vm5, %v1830_v46, 0.0  ;;  %v2126_v62 = vsel %vm92_vm1, %v11341_v15, 0.0 }
 0x137   :  { %v1829_v8 = vsel %vm1782_vm4, %v1734_v47, %v18298_v51  ;;  %v1988_v54 = vmul.f32 0.01, %v1924_v49  ;;  %v1989_v53 = vmul.f32 0.01, %v1925_v17  ;;  %v11364_v5 = vpop.f32.mrf.mxu1  ;;  %v11366_v43 = vpop.f32.mrf.mxu0  ;;  %v1926_v11 = vadd.f32 %v1862_v44, %v1669_v39 }
 0x138   :  { %18296 = vst [vmem:[#allocation45_spill] sm:$0xff] %v11339_v14  ;;  %v2124_v35 = vsel %vm92_vm1, %v11339_v14, 0.0  ;;  %v2248_v24 = vmul.f32 %v11339_v14, %v11339_v14  ;;  %v1223_v59 = vadd.f32 %v11044_v16, %v11262_v20  ;;  %v2324_v19 = vsel %vm92_vm1, %v2249_v29, 0.0 }
 0x139   :  { %v2125_v3 = vadd.f32 %v2124_v35, %v2123_v18  ;;  %v11373_v35 = vmax.f32 %v1924_v49, %v1988_v54  ;;  %v11375_v51 = vmax.f32 %v1925_v17, %v1989_v53  ;;  %v11377_v46 = vpop.f32.mrf.mxu1  ;;  %v11379_v14 = vpop.f32.mrf.mxu0  ;;  %v1737_v39 = vrot.slane %v11270_v38, 1 }
 0x13a   :  { %v2322_v30 = vsel %vm92_vm1, %v2248_v24, 0.0  ;;  %v1990_v24 = vmul.f32 0.01, %v1926_v11  ;;  %v1670_v10 = vadd.f32 %v10909_v6, %v1223_v59  ;;  %v1238_v17 = vadd.f32 %v11272_v34, %v11044_v16 }
 0x13b   :  { %v2127_v47 = vadd.f32 %v2126_v62, %v2125_v3  ;;  %v2323_v18 = vadd.f32 %v2322_v30, %v2321_v40  ;;  %18299 = vst [vmem:[#allocation47_spill] sm:$0xff] %v11373_v35  ;;  %18300 = vst [vmem:[#allocation48_spill] sm:$0xff] %v11375_v51  ;;  %v2128_v20 = vsel %vm92_vm1, %v11373_v35, 0.0  ;;  %v2250_v40 = vmul.f32 %v11373_v35, %v11373_v35  ;;  %v11390_v49 = vpop.f32.mrf.mxu1  ;;  %v11392_v3 = vpop.f32.mrf.mxu0 }
 0x13c   :  { %v2251_v6 = vmul.f32 %v11375_v51, %v11375_v51  ;;  %v11396_v54 = vmax.f32 %v1926_v11, %v1990_v24  ;;  %v1927_v38 = vadd.f32 %v1829_v8, %v1670_v10  ;;  %v2130_v53 = vsel %vm92_vm1, %v11375_v51, 0.0 }
 0x13d   :  { %v2325_v44 = vadd.f32 %v2324_v19, %v2323_v18  ;;  %v2129_v29 = vadd.f32 %v2128_v20, %v2127_v47  ;;  %v2326_v19 = vsel %vm92_vm1, %v2250_v40, 0.0  ;;  %v1736_v30 = vrot.slane %v11281_v26, 1  ;;  %v11404_v62 = vpop.f32.mrf.mxu1  ;;  %v11406_v59 = vpop.f32.mrf.mxu0 }
 0x13e   :  { %18301 = vst [vmem:[#allocation49_spill] sm:$0xff] %v11396_v54  ;;  %v1233_v34 = vadd.f32 %v11044_v16, %v11283_v56  ;;  %v2328_v11 = vsel %vm92_vm1, %v2251_v6, 0.0  ;;  %v2132_v10 = vsel %vm92_vm1, %v11396_v54, 0.0  ;;  %v2252_v8 = vmul.f32 %v11396_v54, %v11396_v54 }
 0x13f   :  { %v2131_v47 = vadd.f32 %v2130_v53, %v2129_v29  ;;  %v2327_v18 = vadd.f32 %v2326_v19, %v2325_v44  ;;  %v1991_v24 = vmul.f32 0.01, %v1927_v38  ;;  %v1827_v26 = vsel %vm1782_vm4, %v1736_v30, %v1737_v39  ;;  %v11419_v40 = vpop.f32.mrf.mxu1  ;;  %v11421_v44 = vpop.f32.mrf.mxu0 }
 0x140   :  { %v18302_v56 = vrot.slane %v11246_v9, 1  ;;  %v1672_v53 = vadd.f32 %v10932_v33, %v1233_v34  ;;  %v2330_v54 = vsel %vm92_vm1, %v2252_v8, 0.0  ;;  %v1739_v9 = vrot.slane %v11296_v28, 1 }
 0x141   :  { %v2329_v29 = vadd.f32 %v2328_v11, %v2327_v18  ;;  %v2133_v6 = vadd.f32 %v2132_v10, %v2131_v47  ;;  %v11427_v51 = vmax.f32 %v1927_v38, %v1991_v24  ;;  %v11430_v15 = vpop.f32.mrf.mxu1  ;;  %v1248_v18 = vadd.f32 %v11298_v60, %v11044_v16  ;;  %v11435_v11 = vpop.f32.mrf.mxu0 }
 0x142   :  { %v1828_v20 = vsel %vm1782_vm4, %v18302_v56, %v1736_v30  ;;  %v1929_v56 = vadd.f32 %v1827_v26, %v1672_v53  ;;  %v1738_v47 = vrot.slane %v11312_v42, 1  ;;  %v1243_v28 = vadd.f32 %v11044_v16, %v11314_v61 }
 0x143   :  { %v1864_v19 = vsel %vm26_vm5, %v1828_v20, 0.0  ;;  %v2331_v30 = vadd.f32 %v2330_v54, %v2329_v29  ;;  %v2134_v33 = vsel %vm92_vm1, %v11427_v51, 0.0  ;;  %v2253_v38 = vmul.f32 %v11427_v51, %v11427_v51  ;;  %v11443_v34 = vpop.f32.mrf.mxu1 }
 0x144   :  { %v1928_v35 = vadd.f32 %v1864_v19, %v1671_v4  ;;  %v2135_v54 = vadd.f32 %v2134_v33, %v2133_v6  ;;  %v1673_v10 = vadd.f32 %v10928_v25, %v1238_v17  ;;  %v1993_v60 = vmul.f32 0.01, %v1929_v56  ;;  %v11459_v17 = vpop.f32.mrf.mxu0 }
 0x145   :  { %v1825_v42 = vsel %vm1782_vm4, %v1738_v47, %v1739_v9  ;;  %v2332_v8 = vsel %vm92_vm1, %v2253_v38, 0.0  ;;  %v1826_v26 = vsel %vm1782_vm4, %v1737_v39, %v1738_v47  ;;  %v1674_v20 = vadd.f32 %v10967_v63, %v1243_v28  ;;  %v11461_v19 = vpop.f32.mrf.mxu1 }
 0x146   :  { %v1992_v4 = vmul.f32 0.01, %v1928_v35  ;;  %v2333_v29 = vadd.f32 %v2332_v8, %v2331_v30  ;;  %v11454_v61 = vmax.f32 %v1929_v56, %v1993_v60  ;;  %v1675_v6 = vadd.f32 %v10963_v58, %v1248_v18 }
 0x147   :  { %v1866_v25 = vsel %vm26_vm5, %v1826_v26, 0.0  ;;  %v1931_v63 = vadd.f32 %v1825_v42, %v1674_v20  ;;  %v1258_v18 = vadd.f32 %v11324_v48, %v11044_v16  ;;  %v11477_v42 = vpop.f32.mrf.mxu0  ;;  %v11479_v8 = vpop.f32.mrf.mxu1 }
 0x148   :  { %v11449_v24 = vmax.f32 %v1928_v35, %v1992_v4  ;;  %v1930_v53 = vadd.f32 %v1866_v25, %v1673_v10  ;;  %v2138_v56 = vsel %vm92_vm1, %v11454_v61, 0.0  ;;  %v2255_v58 = vmul.f32 %v11454_v61, %v11454_v61 }
 0x149   :  { %v1995_v38 = vmul.f32 0.01, %v1931_v63  ;;  %v1740_v4 = vrot.slane %v11335_v7, 1  ;;  %v1677_v48 = vadd.f32 %v10987_v36, %v1258_v18  ;;  %v11504_v18 = vpop.f32.mrf.mxu0 }
 0x14a   :  { %v2136_v35 = vsel %vm92_vm1, %v11449_v24, 0.0  ;;  %v2254_v39 = vmul.f32 %v11449_v24, %v11449_v24  ;;  %v1994_v33 = vmul.f32 0.01, %v1930_v53  ;;  %v2336_v10 = vsel %vm92_vm1, %v2255_v58, 0.0 }
 0x14b   :  { %v2137_v30 = vadd.f32 %v2136_v35, %v2135_v54  ;;  %v1741_v54 = vrot.slane %v11322_v13, 1  ;;  %v11483_v20 = vmax.f32 %v1931_v63, %v1995_v38  ;;  %v1824_v25 = vsel %vm1782_vm4, %v1739_v9, %v1740_v4 }
 0x14c   :  { %v2334_v47 = vsel %vm92_vm1, %v2254_v39, 0.0  ;;  %v11481_v26 = vmax.f32 %v1930_v53, %v1994_v33  ;;  %v1868_v13 = vsel %vm26_vm5, %v1824_v25, 0.0  ;;  %v1253_v35 = vadd.f32 %v11044_v16, %v11337_v21  ;;  %v11506_v21 = vpop.f32.mrf.mxu1 }
 0x14d   :  { %v2139_v28 = vadd.f32 %v2138_v56, %v2137_v30  ;;  %v2335_v60 = vadd.f32 %v2334_v47, %v2333_v29  ;;  %v1823_v29 = vsel %vm1782_vm4, %v1740_v4, %v1741_v54  ;;  %v2257_v36 = vmul.f32 %v11483_v20, %v11483_v20 }
 0x14e   :  { %v2140_v39 = vsel %vm92_vm1, %v11481_v26, 0.0  ;;  %v2256_v53 = vmul.f32 %v11481_v26, %v11481_v26  ;;  %v1743_v9 = vrot.slane %v11348_v31, 1  ;;  %v1932_v30 = vadd.f32 %v1868_v13, %v1675_v6 }
 0x14f   :  { %v2337_v7 = vadd.f32 %v2336_v10, %v2335_v60  ;;  %v2141_v63 = vadd.f32 %v2140_v39, %v2139_v28  ;;  %v1676_v56 = vadd.f32 %v10991_v37, %v1253_v35  ;;  %v1268_v58 = vadd.f32 %v11350_v0, %v11044_v16 }
 0x150   :  { %v2338_v47 = vsel %vm92_vm1, %v2256_v53, 0.0  ;;  %v2142_v33 = vsel %vm92_vm1, %v11483_v20, 0.0  ;;  %v1742_v38 = vrot.slane %v11364_v5, 1  ;;  %v1263_v31 = vadd.f32 %v11044_v16, %v11366_v43 }
 0x151   :  { %v2339_v6 = vadd.f32 %v2338_v47, %v2337_v7  ;;  %v2340_v37 = vsel %vm92_vm1, %v2257_v36, 0.0  ;;  %v1996_v4 = vmul.f32 0.01, %v1932_v30  ;;  %v1933_v28 = vadd.f32 %v1823_v29, %v1676_v56  ;;  %v11525_v7 = vpop.f32.mrf.mxu0  ;;  %v11527_v29 = vpop.f32.mrf.mxu1 }
 0x152   :  { %v2143_v0 = vadd.f32 %v2142_v33, %v2141_v63  ;;  %v1821_v60 = vsel %vm1782_vm4, %v1742_v38, %v1743_v9  ;;  %v1822_v10 = vsel %vm1782_vm4, %v1741_v54, %v1742_v38  ;;  %v1678_v25 = vadd.f32 %v11023_v55, %v1263_v31 }
 0x153   :  { %v11520_v13 = vmax.f32 %v1932_v30, %v1996_v4  ;;  %v1997_v5 = vmul.f32 0.01, %v1933_v28  ;;  %v1679_v35 = vadd.f32 %v11019_v23, %v1268_v58  ;;  %v1870_v43 = vsel %vm26_vm5, %v1822_v10, 0.0 }
 0x154   :  { %v2341_v39 = vadd.f32 %v2340_v37, %v2339_v6  ;;  %v1934_v53 = vadd.f32 %v1870_v43, %v1677_v48  ;;  %v1935_v36 = vadd.f32 %v1821_v60, %v1678_v25  ;;  %v1278_v54 = vadd.f32 %v11379_v14, %v11044_v16  ;;  %v11545_v6 = vpop.f32.mrf.mxu0  ;;  %v11547_v37 = vpop.f32.mrf.mxu1 }
 0x155   :  { %v2144_v55 = vsel %vm92_vm1, %v11520_v13, 0.0  ;;  %v2258_v63 = vmul.f32 %v11520_v13, %v11520_v13  ;;  %v11535_v23 = vmax.f32 %v1933_v28, %v1997_v5  ;;  %v1744_v30 = vrot.slane %v11390_v49, 1 }
 0x156   :  { %v2145_v56 = vadd.f32 %v2144_v55, %v2143_v0  ;;  %v1998_v58 = vmul.f32 0.01, %v1934_v53  ;;  %v1999_v47 = vmul.f32 0.01, %v1935_v36  ;;  %v1745_v33 = vrot.slane %v11377_v46, 1  ;;  %v11573_v55 = vpop.f32.mrf.mxu1 }
 0x157   :  { %18303 = vst [vmem:[#allocation50_spill] sm:$0xff] %v11535_v23  ;;  %v2342_v48 = vsel %vm92_vm1, %v2258_v63, 0.0  ;;  %v2146_v14 = vsel %vm92_vm1, %v11535_v23, 0.0  ;;  %v2259_v38 = vmul.f32 %v11535_v23, %v11535_v23  ;;  %v1681_v31 = vadd.f32 %v11048_v50, %v1278_v54 }
 0x158   :  { %v2147_v49 = vadd.f32 %v2146_v14, %v2145_v56  ;;  %v2343_v4 = vadd.f32 %v2342_v48, %v2341_v39  ;;  %v11549_v28 = vmax.f32 %v1934_v53, %v1998_v58  ;;  %v11551_v0 = vmax.f32 %v1935_v36, %v1999_v47 }
 0x159   :  { %v2344_v46 = vsel %vm92_vm1, %v2259_v38, 0.0  ;;  %v1819_v60 = vsel %vm1782_vm4, %v1744_v30, %v1745_v33  ;;  %v1820_v10 = vsel %vm1782_vm4, %v1743_v9, %v1744_v30  ;;  %v1273_v50 = vadd.f32 %v11044_v16, %v11392_v3  ;;  %v11571_v3 = vpop.f32.mrf.mxu0 }
 0x15a   :  { %18304 = vst [vmem:[#allocation51_spill] sm:$0xff] %v11549_v28  ;;  %18305 = vst [vmem:[#allocation52_spill] sm:$0xff] %v11551_v0  ;;  %v2345_v25 = vadd.f32 %v2344_v46, %v2343_v4  ;;  %v2148_v5 = vsel %vm92_vm1, %v11549_v28, 0.0  ;;  %v2260_v43 = vmul.f32 %v11549_v28, %v11549_v28  ;;  %v2150_v39 = vsel %vm92_vm1, %v11551_v0, 0.0 }
 0x15b   :  { %v2149_v53 = vadd.f32 %v2148_v5, %v2147_v49  ;;  %v2261_v36 = vmul.f32 %v11551_v0, %v11551_v0  ;;  %v1872_v9 = vsel %vm26_vm5, %v1820_v10, 0.0  ;;  %v1680_v54 = vadd.f32 %v11052_v12, %v1273_v50  ;;  %v18337_v0 = vld [vmem:[#allocation28_spill] sm:$0xff] }
 0x15c   :  { %v2346_v63 = vsel %vm92_vm1, %v2260_v43, 0.0  ;;  %v1936_v30 = vadd.f32 %v1872_v9, %v1679_v35  ;;  %v1288_v56 = vadd.f32 %v11406_v59, %v11044_v16  ;;  %v1746_v58 = vrot.slane %v11419_v40, 1 }
 0x15d   :  { %v2151_v47 = vadd.f32 %v2150_v39, %v2149_v53  ;;  %v2347_v48 = vadd.f32 %v2346_v63, %v2345_v25  ;;  %v1937_v14 = vadd.f32 %v1819_v60, %v1680_v54  ;;  %v1747_v38 = vrot.slane %v11404_v62, 1  ;;  %v11590_v60 = vpop.f32.mrf.mxu0  ;;  %v11592_v62 = vpop.f32.mrf.mxu1 }
 0x15e   :  { %v2348_v49 = vsel %vm92_vm1, %v2261_v36, 0.0  ;;  %v2000_v12 = vmul.f32 0.01, %v1936_v30  ;;  %v1683_v4 = vadd.f32 %v11086_v41, %v1288_v56  ;;  %v1818_v46 = vsel %vm1782_vm4, %v1745_v33, %v1746_v58 }
 0x15f   :  { %v2001_v10 = vmul.f32 0.01, %v1937_v14  ;;  %v1817_v35 = vsel %vm1782_vm4, %v1746_v58, %v1747_v38  ;;  %v1874_v59 = vsel %vm26_vm5, %v1818_v46, 0.0  ;;  %v1283_v40 = vadd.f32 %v11044_v16, %v11421_v44  ;;  %v11613_v63 = vpop.f32.mrf.mxu0 }
 0x160   :  { %v2349_v50 = vadd.f32 %v2348_v49, %v2347_v48  ;;  %v11594_v25 = vmax.f32 %v1936_v30, %v2000_v12  ;;  %v1938_v41 = vadd.f32 %v1874_v59, %v1681_v31  ;;  %v1749_v33 = vrot.slane %v11430_v15, 1 }
 0x161   :  { %v11597_v5 = vmax.f32 %v1937_v14, %v2001_v10  ;;  %v1682_v43 = vadd.f32 %v11090_v27, %v1283_v40  ;;  %v1298_v39 = vadd.f32 %v11435_v11, %v11044_v16  ;;  %v1748_v53 = vrot.slane %v11443_v34, 1  ;;  %v11615_v34 = vpop.f32.mrf.mxu1 }
 0x162   :  { %18306 = vst [vmem:[#allocation53_spill] sm:$0xff] %v11594_v25  ;;  %v2152_v44 = vsel %vm92_vm1, %v11594_v25, 0.0  ;;  %v2262_v36 = vmul.f32 %v11594_v25, %v11594_v25  ;;  %v2002_v9 = vmul.f32 0.01, %v1938_v41  ;;  %v1293_v31 = vadd.f32 %v11044_v16, %v11459_v17 }
 0x163   :  { %18307 = vst [vmem:[#allocation54_spill] sm:$0xff] %v11597_v5  ;;  %v2153_v15 = vadd.f32 %v2152_v44, %v2151_v47  ;;  %v2154_v54 = vsel %vm92_vm1, %v11597_v5, 0.0  ;;  %v2263_v27 = vmul.f32 %v11597_v5, %v11597_v5  ;;  %v1939_v11 = vadd.f32 %v1817_v35, %v1682_v43  ;;  %v11636_v43 = vpop.f32.mrf.mxu1 }
 0x164   :  { %v2350_v30 = vsel %vm92_vm1, %v2262_v36, 0.0  ;;  %v11618_v56 = vmax.f32 %v1938_v41, %v2002_v9  ;;  %v1815_v58 = vsel %vm1782_vm4, %v1748_v53, %v1749_v33  ;;  %v1816_v17 = vsel %vm1782_vm4, %v1747_v38, %v1748_v53 }
 0x165   :  { %v2155_v47 = vadd.f32 %v2154_v54, %v2153_v15  ;;  %v2351_v48 = vadd.f32 %v2350_v30, %v2349_v50  ;;  %v2352_v14 = vsel %vm92_vm1, %v2263_v27, 0.0  ;;  %v2003_v49 = vmul.f32 0.01, %v1939_v11  ;;  %v11634_v50 = vpop.f32.mrf.mxu0 }
 0x166   :  { %18308 = vst [vmem:[#allocation55_spill] sm:$0xff] %v11618_v56  ;;  %v2156_v12 = vsel %vm92_vm1, %v11618_v56, 0.0  ;;  %v2264_v46 = vmul.f32 %v11618_v56, %v11618_v56  ;;  %v1876_v10 = vsel %vm26_vm5, %v1816_v17, 0.0  ;;  %v1684_v35 = vadd.f32 %v11125_v2, %v1293_v31 }
 0x167   :  { %v2353_v59 = vadd.f32 %v2352_v14, %v2351_v48  ;;  %v11632_v40 = vmax.f32 %v1939_v11, %v2003_v49  ;;  %v2157_v38 = vadd.f32 %v2156_v12, %v2155_v47  ;;  %v1940_v41 = vadd.f32 %v1876_v10, %v1683_v4  ;;  %v11654_v17 = vpop.f32.mrf.mxu0  ;;  %v11656_v47 = vpop.f32.mrf.mxu1 }
 0x168   :  { %v2354_v53 = vsel %vm92_vm1, %v2264_v46, 0.0  ;;  %v1685_v44 = vadd.f32 %v11111_v22, %v1298_v39  ;;  %v1941_v36 = vadd.f32 %v1815_v58, %v1684_v35  ;;  %v1308_v9 = vadd.f32 %v11477_v42, %v11044_v16 }
 0x169   :  { %18309 = vst [vmem:[#allocation56_spill] sm:$0xff] %v11632_v40  ;;  %v2158_v2 = vsel %vm92_vm1, %v11632_v40, 0.0  ;;  %v2265_v31 = vmul.f32 %v11632_v40, %v11632_v40  ;;  %v2355_v15 = vadd.f32 %v2354_v53, %v2353_v59  ;;  %v2004_v4 = vmul.f32 0.01, %v1940_v41 }
 0x16a   :  { %v2159_v54 = vadd.f32 %v2158_v2, %v2157_v38  ;;  %v2005_v27 = vmul.f32 0.01, %v1941_v36  ;;  %v1751_v11 = vrot.slane %v11461_v19, 1  ;;  %v1750_v30 = vrot.slane %v11479_v8, 1 }
 0x16b   :  { %v2356_v22 = vsel %vm92_vm1, %v2265_v31, 0.0  ;;  %v11649_v39 = vmax.f32 %v1940_v41, %v2004_v4  ;;  %v1687_v42 = vadd.f32 %v10686_v57, %v1308_v9  ;;  %v1303_v58 = vadd.f32 %v11044_v16, %v11504_v18  ;;  %v11681_v9 = vpop.f32.mrf.mxu1 }
 0x16c   :  { %v2357_v48 = vadd.f32 %v2356_v22, %v2355_v15  ;;  %v11658_v14 = vmax.f32 %v1941_v36, %v2005_v27  ;;  %v1813_v19 = vsel %vm1782_vm4, %v1750_v30, %v1751_v11  ;;  %v1814_v8 = vsel %vm1782_vm4, %v1749_v33, %v1750_v30  ;;  %v11679_v36 = vpop.f32.mrf.mxu0 }
 0x16d   :  { %18310 = vst [vmem:[#allocation57_spill] sm:$0xff] %v11649_v39  ;;  %v2160_v49 = vsel %vm92_vm1, %v11649_v39, 0.0  ;;  %v2266_v57 = vmul.f32 %v11649_v39, %v11649_v39  ;;  %v1878_v18 = vsel %vm26_vm5, %v1814_v8, 0.0  ;;  %v1686_v12 = vadd.f32 %v11096_v45, %v1303_v58 }
 0x16e   :  { %18311 = vst [vmem:[#allocation58_spill] sm:$0xff] %v11658_v14  ;;  %v2161_v46 = vadd.f32 %v2160_v49, %v2159_v54  ;;  %v2162_v10 = vsel %vm92_vm1, %v11658_v14, 0.0  ;;  %v2267_v35 = vmul.f32 %v11658_v14, %v11658_v14  ;;  %v1942_v59 = vadd.f32 %v1878_v18, %v1685_v44 }
 0x16f   :  { %v2358_v33 = vsel %vm92_vm1, %v2266_v57, 0.0  ;;  %v1943_v38 = vadd.f32 %v1813_v19, %v1686_v12  ;;  %v1318_v41 = vadd.f32 %v11525_v7, %v11044_v16  ;;  %v1752_v53 = vrot.slane %v11527_v29, 1  ;;  %v11707_v19 = vpop.f32.mrf.mxu1  ;;  %v18314_v57 = vld [vmem:[#allocation4_spill] sm:$0xff] }
 0x170   :  { %v2163_v45 = vadd.f32 %v2162_v10, %v2161_v46  ;;  %v2359_v2 = vadd.f32 %v2358_v33, %v2357_v48  ;;  %v2006_v31 = vmul.f32 0.01, %v1942_v59  ;;  %v1753_v15 = vrot.slane %v11506_v21, 1  ;;  %v11697_v21 = vld [vmem:[%s18119_s2] ss:$0 sm:$0xff]  ;;  %v11705_v48 = vpop.f32.mrf.mxu0  ;;  %v18315_v33 = vld [vmem:[#allocation5_spill] sm:$0xff] }
 0x171   :  { %v2360_v4 = vsel %vm92_vm1, %v2267_v35, 0.0  ;;  %v2007_v44 = vmul.f32 0.01, %v1943_v38  ;;  %v1689_v54 = vadd.f32 %v10709_v1, %v1318_v41  ;;  %v1812_v27 = vsel %vm1782_vm4, %v1751_v11, %v1752_v53 }
 0x172   :  { %v11688_v16 = vmax.f32 %v1942_v59, %v2006_v31  ;;  %v1811_v7 = vsel %vm1782_vm4, %v1752_v53, %v1753_v15  ;;  %v1880_v29 = vsel %vm26_vm5, %v1812_v27, 0.0  ;;  %v1313_v30 = vadd.f32 %v11697_v21, %v11545_v6  ;;  %v11728_v31 = vpop.f32.mrf.mxu1 }
 0x173   :  { %v2361_v1 = vadd.f32 %v2360_v4, %v2359_v2  ;;  %v11701_v22 = vmax.f32 %v1943_v38, %v2007_v44  ;;  %v1944_v11 = vadd.f32 %v1880_v29, %v1687_v42  ;;  %v1328_v58 = vadd.f32 %v11697_v21, %v11571_v3 }
 0x174   :  { %18312 = vst [vmem:[#allocation59_spill] sm:$0xff] %v11688_v16  ;;  %v2164_v8 = vsel %vm92_vm1, %v11688_v16, 0.0  ;;  %v2268_v49 = vmul.f32 %v11688_v16, %v11688_v16  ;;  %v1688_v18 = vadd.f32 %v18314_v57, %v1313_v30  ;;  %v1754_v6 = vrot.slane %v11573_v55, 1 }
 0x175   :  { %18313 = vst [vmem:[#allocation60_spill] sm:$0xff] %v11701_v22  ;;  %v2165_v12 = vadd.f32 %v2164_v8, %v2163_v45  ;;  %v2269_v42 = vmul.f32 %v11701_v22, %v11701_v22  ;;  %v2008_v46 = vmul.f32 0.01, %v1944_v11  ;;  %v1755_v3 = vrot.slane %v11547_v37, 1  ;;  %v11726_v45 = vpop.f32.mrf.mxu0 }
 0x176   :  { %v2362_v10 = vsel %vm92_vm1, %v2268_v49, 0.0  ;;  %v2166_v35 = vsel %vm92_vm1, %v11701_v22, 0.0  ;;  %v1945_v59 = vadd.f32 %v1811_v7, %v1688_v18  ;;  %v1691_v38 = vadd.f32 %v18315_v33, %v1328_v58  ;;  %v18316_v49 = vld [vmem:[#allocation6_spill] sm:$0xff] }
 0x177   :  { %v2167_v41 = vadd.f32 %v2166_v35, %v2165_v12  ;;  %v2363_v53 = vadd.f32 %v2362_v10, %v2361_v1  ;;  %v11722_v2 = vmax.f32 %v1944_v11, %v2008_v46  ;;  %v1809_v55 = vsel %vm1782_vm4, %v1754_v6, %v1755_v3  ;;  %v11749_v12 = vpop.f32.mrf.mxu0 }
 0x178   :  { %v2364_v37 = vsel %vm92_vm1, %v2269_v42, 0.0  ;;  %v2009_v4 = vmul.f32 0.01, %v1945_v59  ;;  %v1810_v44 = vsel %vm1782_vm4, %v1753_v15, %v1754_v6  ;;  %v1323_v27 = vadd.f32 %v11697_v21, %v11590_v60  ;;  %v11751_v42 = vpop.f32.mrf.mxu1 }
 0x179   :  { %v2365_v7 = vadd.f32 %v2364_v37, %v2363_v53  ;;  %v2168_v29 = vsel %vm92_vm1, %v11722_v2, 0.0  ;;  %v2270_v30 = vmul.f32 %v11722_v2, %v11722_v2  ;;  %v1882_v1 = vsel %vm26_vm5, %v1810_v44, 0.0  ;;  %v18317_v37 = vld [vmem:[#allocation8_spill] sm:$0xff] }
 0x17a   :  { %v11741_v11 = vmax.f32 %v1945_v59, %v2009_v4  ;;  %v2169_v58 = vadd.f32 %v2168_v29, %v2167_v41  ;;  %v1946_v8 = vadd.f32 %v1882_v1, %v1689_v54  ;;  %v1690_v57 = vadd.f32 %v18316_v49, %v1323_v27  ;;  %v11772_v29 = vpop.f32.mrf.mxu1 }
 0x17b   :  { %v2366_v15 = vsel %vm92_vm1, %v2270_v30, 0.0  ;;  %v1757_v60 = vrot.slane %v11592_v62, 1  ;;  %v1756_v18 = vrot.slane %v11615_v34, 1  ;;  %v1333_v6 = vadd.f32 %v11697_v21, %v11634_v50 }
 0x17c   :  { %v2170_v46 = vsel %vm92_vm1, %v11741_v11, 0.0  ;;  %v2271_v54 = vmul.f32 %v11741_v11, %v11741_v11  ;;  %v2367_v10 = vadd.f32 %v2366_v15, %v2365_v7  ;;  %v2010_v35 = vmul.f32 0.01, %v1946_v8 }
 0x17d   :  { %v2171_v59 = vadd.f32 %v2170_v46, %v2169_v58  ;;  %v1947_v33 = vadd.f32 %v1809_v55, %v1690_v57  ;;  %v1338_v62 = vadd.f32 %v11697_v21, %v11613_v63  ;;  %v1807_v34 = vsel %vm1782_vm4, %v1756_v18, %v1757_v60  ;;  %v11770_v63 = vpop.f32.mrf.mxu0 }
 0x17e   :  { %v2368_v50 = vsel %vm92_vm1, %v2271_v54, 0.0  ;;  %v11762_v41 = vmax.f32 %v1946_v8, %v2010_v35  ;;  %v1808_v53 = vsel %vm1782_vm4, %v1755_v3, %v1756_v18  ;;  %v1692_v4 = vadd.f32 %v18317_v37, %v1333_v6  ;;  %v18318_v35 = vld [vmem:[#allocation7_spill] sm:$0xff]  ;;  %v18319_v37 = vld [vmem:[#allocation9_spill] sm:$0xff] }
 0x17f   :  { %v2369_v44 = vadd.f32 %v2368_v50, %v2367_v10  ;;  %v2011_v27 = vmul.f32 0.01, %v1947_v33  ;;  %v1884_v55 = vsel %vm26_vm5, %v1808_v53, 0.0  ;;  %v1759_v7 = vrot.slane %v11636_v43, 1 }
 0x180   :  { %v2172_v30 = vsel %vm92_vm1, %v11762_v41, 0.0  ;;  %v2272_v1 = vmul.f32 %v11762_v41, %v11762_v41  ;;  %v1948_v3 = vadd.f32 %v1884_v55, %v1691_v38  ;;  %v1949_v58 = vadd.f32 %v1807_v34, %v1692_v4 }
 0x181   :  { %v11778_v8 = vmax.f32 %v1947_v33, %v2011_v27  ;;  %v2173_v49 = vadd.f32 %v2172_v30, %v2171_v59  ;;  %v1348_v57 = vadd.f32 %v11697_v21, %v11654_v17  ;;  %v1758_v43 = vrot.slane %v11656_v47, 1  ;;  %v11791_v33 = vpop.f32.mrf.mxu0  ;;  %v11793_v17 = vpop.f32.mrf.mxu1  ;;  %v7967_v47 = vld [vmem:[%s18117_s1 + $0x14] sm:$0xf]  ;;  %v18320_v27 = vld [vmem:[#allocation10_spill] sm:$0xff] }
 0x182   :  { %v2370_v15 = vsel %vm92_vm1, %v2272_v1, 0.0  ;;  %v2012_v18 = vmul.f32 0.01, %v1948_v3  ;;  %v2013_v6 = vmul.f32 0.01, %v1949_v58  ;;  %v1343_v46 = vadd.f32 %v11697_v21, %v11679_v36  ;;  %9281 = vmatprep.subr.msk.mxu0 %vm285_vm0, %v7967_v47 }
 0x183   :  { %v2174_v54 = vsel %vm92_vm1, %v11778_v8, 0.0  ;;  %v2273_v38 = vmul.f32 %v11778_v8, %v11778_v8  ;;  %v2371_v10 = vadd.f32 %v2370_v15, %v2369_v44  ;;  %v1693_v59 = vadd.f32 %v18318_v35, %v1338_v62  ;;  %9282 = vmatpush3.msk.msra.mxu0 %vm285_vm0, %v7967_v47  ;;  %v11821_v15 = vpop.f32.mrf.mxu0 }
 0x184   :  { %v2175_v34 = vadd.f32 %v2174_v54, %v2173_v49  ;;  %v11798_v50 = vmax.f32 %v1948_v3, %v2012_v18  ;;  %v11800_v36 = vmax.f32 %v1949_v58, %v2013_v6  ;;  %v1805_v53 = vsel %vm1782_vm4, %v1758_v43, %v1759_v7  ;;  %v11823_v18 = vpop.f32.mrf.mxu1  ;;  %v11828_v6 = vld [vmem:[%s18117_s1 + $0x10] sm:$0xf] }
 0x185   :  { %v2372_v62 = vsel %vm92_vm1, %v2273_v38, 0.0  ;;  %v1695_v4 = vadd.f32 %v18319_v37, %v1348_v57  ;;  %v1806_v44 = vsel %vm1782_vm4, %v1757_v60, %v1758_v43  ;;  %v1694_v55 = vadd.f32 %v18320_v27, %v1343_v46  ;;  %9379 = vmatprep.subr.msk.mxu1 %vm285_vm0, %v11828_v6 }
 0x186   :  { %v2373_v30 = vadd.f32 %v2372_v62, %v2371_v10  ;;  %v2176_v1 = vsel %vm92_vm1, %v11798_v50, 0.0  ;;  %v2274_v3 = vmul.f32 %v11798_v50, %v11798_v50  ;;  %v2178_v58 = vsel %vm92_vm1, %v11800_v36, 0.0 }
 0x187   :  { %v2177_v49 = vadd.f32 %v2176_v1, %v2175_v34  ;;  %v2275_v57 = vmul.f32 %v11800_v36, %v11800_v36  ;;  %v1886_v60 = vsel %vm26_vm5, %v1806_v44, 0.0  ;;  %v1951_v43 = vadd.f32 %v1805_v53, %v1694_v55  ;;  %v18321_v44 = vld [vmem:[#allocation11_spill] sm:$0xff]  ;;  %v11851_v1 = vpop.f32.mrf.mxu1 }
 0x188   :  { %v2374_v46 = vsel %vm92_vm1, %v2274_v3, 0.0  ;;  %v1950_v54 = vadd.f32 %v1886_v60, %v1693_v59  ;;  %v1358_v38 = vadd.f32 %v11697_v21, %v11705_v48  ;;  %v1760_v10 = vrot.slane %v11707_v19, 1  ;;  %v18322_v60 = vld [vmem:[#allocation12_spill] sm:$0xff] }
 0x189   :  { %v2179_v35 = vadd.f32 %v2178_v58, %v2177_v49  ;;  %v2375_v47 = vadd.f32 %v2374_v46, %v2373_v30  ;;  %v2015_v34 = vmul.f32 0.01, %v1951_v43  ;;  %v1761_v53 = vrot.slane %v11681_v9, 1  ;;  %v11849_v9 = vpop.f32.mrf.mxu0 }
 0x18a   :  { %v2376_v62 = vsel %vm92_vm1, %v2275_v57, 0.0  ;;  %v2014_v37 = vmul.f32 0.01, %v1950_v54  ;;  %v1697_v27 = vadd.f32 %v18321_v44, %v1358_v38  ;;  %v1804_v59 = vsel %vm1782_vm4, %v1759_v7, %v1760_v10 }
 0x18b   :  { %v11841_v55 = vmax.f32 %v1951_v43, %v2015_v34  ;;  %v1803_v48 = vsel %vm1782_vm4, %v1760_v10, %v1761_v53  ;;  %v1888_v19 = vsel %vm26_vm5, %v1804_v59, 0.0  ;;  %v1353_v30 = vadd.f32 %v11697_v21, %v11726_v45 }
 0x18c   :  { %v2377_v3 = vadd.f32 %v2376_v62, %v2375_v47  ;;  %v11853_v58 = vmax.f32 %v1950_v54, %v2014_v37  ;;  %v1952_v49 = vadd.f32 %v1888_v19, %v1695_v4  ;;  %v1763_v7 = vrot.slane %v11728_v31, 1  ;;  %v11871_v37 = vpop.f32.mrf.mxu1 }
 0x18d   :  { %v2277_v57 = vmul.f32 %v11841_v55, %v11841_v55  ;;  %v1696_v43 = vadd.f32 %v18322_v60, %v1353_v30  ;;  %v1368_v46 = vadd.f32 %v11697_v21, %v11749_v12  ;;  %v1762_v45 = vrot.slane %v11751_v42, 1  ;;  %v1382_v12 = vpop.f32.mrf.mxu0 }
 0x18e   :  { %v2180_v38 = vsel %vm92_vm1, %v11853_v58, 0.0  ;;  %v2276_v54 = vmul.f32 %v11853_v58, %v11853_v58  ;;  %v2182_v4 = vsel %vm92_vm1, %v11841_v55, 0.0  ;;  %v2016_v31 = vmul.f32 0.01, %v1952_v49 }
 0x18f   :  { %v2181_v10 = vadd.f32 %v2180_v38, %v2179_v35  ;;  %v2380_v47 = vsel %vm92_vm1, %v2277_v57, 0.0  ;;  %v1953_v34 = vadd.f32 %v1803_v48, %v1696_v43  ;;  %v1801_v62 = vsel %vm1782_vm4, %v1762_v45, %v1763_v7  ;;  %v18323_v38 = vld [vmem:[#allocation14_spill] sm:$0xff] }
 0x190   :  { %v2378_v42 = vsel %vm92_vm1, %v2276_v54, 0.0  ;;  %v11874_v44 = vmax.f32 %v1952_v49, %v2016_v31  ;;  %v1802_v59 = vsel %vm1782_vm4, %v1761_v53, %v1762_v45  ;;  %v1363_v19 = vadd.f32 %v11697_v21, %v11770_v63 }
 0x191   :  { %v2183_v35 = vadd.f32 %v2182_v4, %v2181_v10  ;;  %v2379_v30 = vadd.f32 %v2378_v42, %v2377_v3  ;;  %v2017_v57 = vmul.f32 0.01, %v1953_v34  ;;  %v1890_v48 = vsel %vm26_vm5, %v1802_v59, 0.0  ;;  %v9164_v3 = vpop.f32.mrf.mxu0  ;;  %v11890_v4 = vpop.f32.mrf.mxu1 }
 0x192   :  { %v2184_v60 = vsel %vm92_vm1, %v11874_v44, 0.0  ;;  %v2278_v43 = vmul.f32 %v11874_v44, %v11874_v44  ;;  %v1954_v49 = vadd.f32 %v1890_v48, %v1697_v27  ;;  %v1698_v54 = vadd.f32 %v18323_v38, %v1363_v19 }
 0x193   :  { %v2381_v31 = vadd.f32 %v2380_v47, %v2379_v30  ;;  %v11887_v53 = vmax.f32 %v1953_v34, %v2017_v57  ;;  %v2185_v45 = vadd.f32 %v2184_v60, %v2183_v35  ;;  %v1765_v63 = vrot.slane %v11772_v29, 1  ;;  %v18324_v35 = vld [vmem:[#allocation13_spill] sm:$0xff]  ;;  %v1392_v38 = vpop.f32.mrf.mxu0 }
 0x194   :  { %v2382_v10 = vsel %vm92_vm1, %v2278_v43, 0.0  ;;  %v2018_v42 = vmul.f32 0.01, %v1954_v49  ;;  %v1955_v59 = vadd.f32 %v1801_v62, %v1698_v54  ;;  %v1378_v22 = vadd.f32 %v11697_v21, %v11791_v33  ;;  %v11910_v54 = vpop.f32.mrf.mxu1 }
 0x195   :  { %v2186_v27 = vsel %vm92_vm1, %v11887_v53, 0.0  ;;  %v2279_v47 = vmul.f32 %v11887_v53, %v11887_v53  ;;  %v2383_v34 = vadd.f32 %v2382_v10, %v2381_v31  ;;  %v1764_v19 = vrot.slane %v11793_v17, 1  ;;  %v18325_v10 = vld [vmem:[#allocation15_spill] sm:$0xff] }
 0x196   :  { %v2187_v29 = vadd.f32 %v2186_v27, %v2185_v45  ;;  %v1699_v30 = vadd.f32 %v18324_v35, %v1368_v46  ;;  %v11901_v57 = vmax.f32 %v1954_v49, %v2018_v42  ;;  %v2019_v48 = vmul.f32 0.01, %v1955_v59  ;;  %v18326_v27 = vld [vmem:[#allocation16_spill] sm:$0xff] }
 0x197   :  { %v2384_v62 = vsel %vm92_vm1, %v2279_v47, 0.0  ;;  %v1799_v33 = vsel %vm1782_vm4, %v1764_v19, %v1765_v63  ;;  %v1800_v60 = vsel %vm1782_vm4, %v1763_v7, %v1764_v19  ;;  %v1373_v43 = vadd.f32 %v11697_v21, %v11821_v15 }
 0x198   :  { %v2385_v17 = vadd.f32 %v2384_v62, %v2383_v34  ;;  %v2188_v46 = vsel %vm92_vm1, %v11901_v57, 0.0  ;;  %v2280_v49 = vmul.f32 %v11901_v57, %v11901_v57  ;;  %v11916_v31 = vmax.f32 %v1955_v59, %v2019_v48  ;;  %v9167_v62 = vpop.f32.mrf.mxu0 }
 0x199   :  { %v2189_v45 = vadd.f32 %v2188_v46, %v2187_v29  ;;  %v1701_v42 = vadd.f32 %v18325_v10, %v1378_v22  ;;  %v1892_v7 = vsel %vm26_vm5, %v1800_v60, 0.0  ;;  %v1700_v15 = vadd.f32 %v18326_v27, %v1373_v43  ;;  %v11930_v60 = vpop.f32.mrf.mxu1  ;;  %v18327_v27 = vld [vmem:[#allocation17_spill] sm:$0xff] }
 0x19a   :  { %v2386_v47 = vsel %vm92_vm1, %v2280_v49, 0.0  ;;  %v2281_v34 = vmul.f32 %v11916_v31, %v11916_v31  ;;  %v1956_v19 = vadd.f32 %v1892_v7, %v1699_v30  ;;  %v1767_v35 = vrot.slane %v11823_v18, 1 }
 0x19b   :  { %v2190_v59 = vsel %vm92_vm1, %v11916_v31, 0.0  ;;  %v2387_v48 = vadd.f32 %v2386_v47, %v2385_v17  ;;  %v1957_v29 = vadd.f32 %v1799_v33, %v1700_v15  ;;  %v1388_v22 = vadd.f32 %v11697_v21, %v11849_v9  ;;  %v18328_v15 = vld [vmem:[#allocation18_spill] sm:$0xff] }
 0x19c   :  { %v2388_v43 = vsel %vm92_vm1, %v2281_v34, 0.0  ;;  %v2020_v46 = vmul.f32 0.01, %v1956_v19  ;;  %v1766_v49 = vrot.slane %v11851_v1, 1  ;;  %v1383_v30 = vadd.f32 %v11697_v21, %v1382_v12 }
 0x19d   :  { %v2191_v10 = vadd.f32 %v2190_v59, %v2189_v45  ;;  %v2389_v18 = vadd.f32 %v2388_v43, %v2387_v48  ;;  %v2021_v7 = vmul.f32 0.01, %v1957_v29  ;;  %v1703_v16 = vadd.f32 %v18327_v27, %v1388_v22  ;;  %v1402_v59 = vpop.f32.mrf.mxu0  ;;  %v18329_v27 = vld [vmem:[#allocation19_spill] sm:$0xff] }
 0x19e   :  { %v11936_v17 = vmax.f32 %v1956_v19, %v2020_v46  ;;  %v1797_v9 = vsel %vm1782_vm4, %v1766_v49, %v1767_v35  ;;  %v1798_v33 = vsel %vm1782_vm4, %v1765_v63, %v1766_v49  ;;  %v1702_v47 = vadd.f32 %v18328_v15, %v1383_v30  ;;  %v11949_v19 = vpop.f32.mrf.mxu1 }
 0x19f   :  { %v11943_v34 = vmax.f32 %v1957_v29, %v2021_v7  ;;  %v1894_v1 = vsel %vm26_vm5, %v1798_v33, 0.0  ;;  %v1398_v12 = vadd.f32 %v11697_v21, %v9164_v3  ;;  %v1768_v45 = vrot.slane %v11890_v4, 1 }
 0x1a0   :  { %v2192_v48 = vsel %vm92_vm1, %v11936_v17, 0.0  ;;  %v2282_v63 = vmul.f32 %v11936_v17, %v11936_v17  ;;  %v1958_v22 = vadd.f32 %v1894_v1, %v1701_v42  ;;  %v1959_v43 = vadd.f32 %v1797_v9, %v1702_v47  ;;  %v9170_v9 = vpop.f32.mrf.mxu0  ;;  %v1017_v47 = vpop.f32.mrf.mxu1 }
 0x1a1   :  { %v2193_v29 = vadd.f32 %v2192_v48, %v2191_v10  ;;  %v2194_v46 = vsel %vm92_vm1, %v11943_v34, 0.0  ;;  %v2283_v3 = vmul.f32 %v11943_v34, %v11943_v34  ;;  %v1769_v4 = vrot.slane %v11871_v37, 1 }
 0x1a2   :  { %v2390_v49 = vsel %vm92_vm1, %v2282_v63, 0.0  ;;  %v2022_v30 = vmul.f32 0.01, %v1958_v22  ;;  %v2023_v7 = vmul.f32 0.01, %v1959_v43  ;;  %v1705_v33 = vadd.f32 %v18329_v27, %v1398_v12 }
 0x1a3   :  { %v2195_v15 = vadd.f32 %v2194_v46, %v2193_v29  ;;  %v2391_v14 = vadd.f32 %v2390_v49, %v2389_v18  ;;  %v2392_v42 = vsel %vm92_vm1, %v2283_v3, 0.0  ;;  %v1796_v10 = vsel %vm1782_vm4, %v1767_v35, %v1768_v45  ;;  %v1412_v49 = vpop.f32.mrf.mxu0 }
 0x1a4   :  { %v11965_v1 = vmax.f32 %v1958_v22, %v2022_v30  ;;  %v11967_v48 = vmax.f32 %v1959_v43, %v2023_v7  ;;  %v1896_v37 = vsel %vm26_vm5, %v1796_v10, 0.0  ;;  %v1393_v63 = vadd.f32 %v11697_v21, %v1392_v38 }
 0x1a5   :  { %v2393_v39 = vadd.f32 %v2392_v42, %v2391_v14  ;;  %v1795_v18 = vsel %vm1782_vm4, %v1768_v45, %v1769_v4  ;;  %v1960_v12 = vadd.f32 %v1896_v37, %v1703_v16  ;;  %v1771_v29 = vrot.slane %v11910_v54, 1  ;;  %v18330_v45 = vld [vmem:[#allocation20_spill] sm:$0xff]  ;;  %v11985_v54 = vpop.f32.mrf.mxu1 }
 0x1a6   :  { %v2196_v35 = vsel %vm92_vm1, %v11965_v1, 0.0  ;;  %v2284_v22 = vmul.f32 %v11965_v1, %v11965_v1  ;;  %v2285_v43 = vmul.f32 %v11967_v48, %v11967_v48  ;;  %v1408_v46 = vadd.f32 %v11697_v21, %v9167_v62 }
 0x1a7   :  { %v2197_v3 = vadd.f32 %v2196_v35, %v2195_v15  ;;  %v2198_v14 = vsel %vm92_vm1, %v11967_v48, 0.0  ;;  %v2024_v38 = vmul.f32 0.01, %v1960_v12  ;;  %v1704_v16 = vadd.f32 %v18330_v45, %v1393_v63  ;;  %v18331_v45 = vld [vmem:[#allocation22_spill] sm:$0xff] }
 0x1a8   :  { %v2394_v30 = vsel %vm92_vm1, %v2284_v22, 0.0  ;;  %v2396_v7 = vsel %vm92_vm1, %v2285_v43, 0.0  ;;  %v1770_v27 = vrot.slane %v11930_v60, 1  ;;  %v1403_v42 = vadd.f32 %v11697_v21, %v1402_v59 }
 0x1a9   :  { %v2199_v10 = vadd.f32 %v2198_v14, %v2197_v3  ;;  %v2395_v62 = vadd.f32 %v2394_v30, %v2393_v39  ;;  %v11991_v15 = vmax.f32 %v1960_v12, %v2024_v38  ;;  %v1961_v37 = vadd.f32 %v1795_v18, %v1704_v16  ;;  %v9173_v12 = vpop.f32.mrf.mxu0  ;;  %v1027_v18 = vpop.f32.mrf.mxu1 }
 0x1aa   :  { %v1793_v35 = vsel %vm1782_vm4, %v1770_v27, %v1771_v29  ;;  %v1794_v63 = vsel %vm1782_vm4, %v1769_v4, %v1770_v27  ;;  %v1706_v40 = vadd.f32 %v18331_v45, %v1403_v42  ;;  %v1773_v22 = vrot.slane %v11949_v19, 1  ;;  %v18332_v42 = vld [vmem:[#allocation21_spill] sm:$0xff] }
 0x1ab   :  { %v2397_v43 = vadd.f32 %v2396_v7, %v2395_v62  ;;  %v2200_v60 = vsel %vm92_vm1, %v11991_v15, 0.0  ;;  %v2286_v39 = vmul.f32 %v11991_v15, %v11991_v15  ;;  %v2025_v59 = vmul.f32 0.01, %v1961_v37 }
 0x1ac   :  { %v2201_v3 = vadd.f32 %v2200_v60, %v2199_v10  ;;  %v1898_v14 = vsel %vm26_vm5, %v1794_v63, 0.0  ;;  %v1963_v38 = vadd.f32 %v1793_v35, %v1706_v40  ;;  %v1418_v4 = vadd.f32 %v11697_v21, %v9170_v9  ;;  %v12017_v63 = vpop.f32.mrf.mxu1 }
 0x1ad   :  { %v2398_v16 = vsel %vm92_vm1, %v2286_v39, 0.0  ;;  %v12007_v19 = vmax.f32 %v1961_v37, %v2025_v59  ;;  %v1962_v30 = vadd.f32 %v1898_v14, %v1705_v33  ;;  %v1772_v7 = vrot.slane %v1017_v47, 1  ;;  %v1422_v37 = vpop.f32.mrf.mxu0  ;;  %v18334_v59 = vld [vmem:[#allocation23_spill] sm:$0xff] }
 0x1ae   :  { %v2399_v27 = vadd.f32 %v2398_v16, %v2397_v43  ;;  %v1707_v62 = vadd.f32 %v18332_v42, %v1408_v46  ;;  %v2027_v45 = vmul.f32 0.01, %v1963_v38  ;;  %v1413_v56 = vadd.f32 %v11697_v21, %v1412_v49  ;;  %v18333_v49 = vld [vmem:[#allocation24_spill] sm:$0xff] }
 0x1af   :  { %v2202_v10 = vsel %vm92_vm1, %v12007_v19, 0.0  ;;  %v2287_v40 = vmul.f32 %v12007_v19, %v12007_v19  ;;  %v2026_v35 = vmul.f32 0.01, %v1962_v30  ;;  %v1791_v9 = vsel %vm1782_vm4, %v1772_v7, %v1773_v22 }
 0x1b0   :  { %v2203_v33 = vadd.f32 %v2202_v10, %v2201_v3  ;;  %v12019_v47 = vmax.f32 %v1963_v38, %v2027_v45  ;;  %v1792_v46 = vsel %vm1782_vm4, %v1771_v29, %v1772_v7  ;;  %v1708_v43 = vadd.f32 %v18333_v49, %v1413_v56  ;;  %v1037_v10 = vpop.f32.mrf.mxu1 }
 0x1b1   :  { %v2400_v60 = vsel %vm92_vm1, %v2287_v40, 0.0  ;;  %v12025_v39 = vmax.f32 %v1962_v30, %v2026_v35  ;;  %v1709_v14 = vadd.f32 %v18334_v59, %v1418_v4  ;;  %v1900_v16 = vsel %vm26_vm5, %v1792_v46, 0.0  ;;  %v9176_v4 = vpop.f32.mrf.mxu0 }
 0x1b2   :  { %v2401_v42 = vadd.f32 %v2400_v60, %v2399_v27  ;;  %v2289_v3 = vmul.f32 %v12019_v47, %v12019_v47  ;;  %v1964_v38 = vadd.f32 %v1900_v16, %v1707_v62  ;;  %v1775_v45 = vrot.slane %v11985_v54, 1  ;;  %v12053_v25 = vpop.f32.mrf.mxu1 }
 0x1b3   :  { %v2204_v29 = vsel %vm92_vm1, %v12025_v39, 0.0  ;;  %v2288_v56 = vmul.f32 %v12025_v39, %v12025_v39  ;;  %v1965_v30 = vadd.f32 %v1791_v9, %v1708_v43  ;;  %v1428_v7 = vadd.f32 %v11697_v21, %v9173_v12  ;;  %v18335_v12 = vld [vmem:[#allocation25_spill] sm:$0xff] }
 0x1b4   :  { %v2205_v40 = vadd.f32 %v2204_v29, %v2203_v33  ;;  %v2206_v27 = vsel %vm92_vm1, %v12019_v47, 0.0  ;;  %v2028_v35 = vmul.f32 0.01, %v1964_v38  ;;  %v1774_v46 = vrot.slane %v1027_v18, 1  ;;  %v18336_v29 = vld [vmem:[#allocation26_spill] sm:$0xff] }
 0x1b5   :  { %v2402_v62 = vsel %vm92_vm1, %v2288_v56, 0.0  ;;  %v2404_v54 = vsel %vm92_vm1, %v2289_v3, 0.0  ;;  %v2029_v49 = vmul.f32 0.01, %v1965_v30  ;;  %v1423_v60 = vadd.f32 %v11697_v21, %v1422_v37  ;;  %v1432_v3 = vpop.f32.mrf.mxu0 }
 0x1b6   :  { %v2207_v59 = vadd.f32 %v2206_v27, %v2205_v40  ;;  %v2403_v16 = vadd.f32 %v2402_v62, %v2401_v42  ;;  %v12043_v9 = vmax.f32 %v1964_v38, %v2028_v35  ;;  %v1711_v43 = vadd.f32 %v18335_v12, %v1428_v7 }
 0x1b7   :  { %v12046_v5 = vmax.f32 %v1965_v30, %v2029_v49  ;;  %v1789_v33 = vsel %vm1782_vm4, %v1774_v46, %v1775_v45  ;;  %v1790_v18 = vsel %vm1782_vm4, %v1773_v22, %v1774_v46  ;;  %v1710_v56 = vadd.f32 %v18336_v29, %v1423_v60 }
 0x1b8   :  { %v2405_v37 = vadd.f32 %v2404_v54, %v2403_v16  ;;  %v2208_v42 = vsel %vm92_vm1, %v12043_v9, 0.0  ;;  %v2290_v38 = vmul.f32 %v12043_v9, %v12043_v9  ;;  %v1902_v30 = vsel %vm26_vm5, %v1790_v18, 0.0  ;;  %v9179_v18 = vpop.f32.mrf.mxu0 }
 0x1b9   :  { %v2209_v7 = vadd.f32 %v2208_v42, %v2207_v59  ;;  %v2210_v40 = vsel %vm92_vm1, %v12046_v5, 0.0  ;;  %v2291_v22 = vmul.f32 %v12046_v5, %v12046_v5  ;;  %v1966_v27 = vadd.f32 %v1902_v30, %v1709_v14  ;;  %v1047_v59 = vpop.f32.mrf.mxu1 }
 0x1ba   :  { %v2406_v35 = vsel %vm92_vm1, %v2290_v38, 0.0  ;;  %v1967_v46 = vadd.f32 %v1789_v33, %v1710_v56  ;;  %v1438_v62 = vadd.f32 %v11697_v21, %v9176_v4  ;;  %v1776_v54 = vrot.slane %v1037_v10, 1 }
 0x1bb   :  { %v2211_v49 = vadd.f32 %v2210_v40, %v2209_v7  ;;  %v2407_v60 = vadd.f32 %v2406_v35, %v2405_v37  ;;  %v2030_v16 = vmul.f32 0.01, %v1966_v27  ;;  %v1777_v12 = vrot.slane %v12017_v63, 1  ;;  %v18338_v7 = vld [vmem:[#allocation29_spill] sm:$0xff]  ;;  %v9084_v35 = vpop.f32.mrf.mxu1 }
 0x1bc   :  { %v2408_v29 = vsel %vm92_vm1, %v2291_v22, 0.0  ;;  %v2031_v42 = vmul.f32 0.01, %v1967_v46  ;;  %v1713_v28 = vadd.f32 %v18337_v0, %v1438_v62  ;;  %v1788_v14 = vsel %vm1782_vm4, %v1775_v45, %v1776_v54 }
 0x1bd   :  { %v12072_v38 = vmax.f32 %v1966_v27, %v2030_v16  ;;  %v1787_v4 = vsel %vm1782_vm4, %v1776_v54, %v1777_v12  ;;  %v1904_v10 = vsel %vm26_vm5, %v1788_v14, 0.0  ;;  %v1433_v63 = vadd.f32 %v11697_v21, %v1432_v3  ;;  %v1442_v27 = vpop.f32.mrf.mxu0 }
 0x1be   :  { %v2409_v33 = vadd.f32 %v2408_v29, %v2407_v60  ;;  %v12079_v56 = vmax.f32 %v1967_v46, %v2031_v42  ;;  %v1968_v37 = vadd.f32 %v1904_v10, %v1711_v43  ;;  %v1779_v30 = vrot.slane %v12053_v25, 1 }
 0x1bf   :  { %v2212_v0 = vsel %vm92_vm1, %v12072_v38, 0.0  ;;  %v2292_v45 = vmul.f32 %v12072_v38, %v12072_v38  ;;  %v1712_v40 = vadd.f32 %v18338_v7, %v1433_v63  ;;  %v1778_v22 = vrot.slane %v1047_v59, 1 }
 0x1c0   :  { %v2213_v62 = vadd.f32 %v2212_v0, %v2211_v49  ;;  %v2293_v3 = vmul.f32 %v12079_v56, %v12079_v56  ;;  %v2032_v46 = vmul.f32 0.01, %v1968_v37  ;;  %v1448_v43 = vadd.f32 %v11697_v21, %v9179_v18  ;;  %v9182_v0 = vpop.f32.mrf.mxu0 }
 0x1c1   :  { %v2410_v25 = vsel %vm92_vm1, %v2292_v45, 0.0  ;;  %v2214_v54 = vsel %vm92_vm1, %v12079_v56, 0.0  ;;  %v1969_v60 = vadd.f32 %v1787_v4, %v1712_v40  ;;  %v1785_v16 = vsel %vm1782_vm4, %v1778_v22, %v1779_v30  ;;  %v1057_v45 = vpop.f32.mrf.mxu1 }
 0x1c2   :  { %v2215_v29 = vadd.f32 %v2214_v54, %v2213_v62  ;;  %v2411_v59 = vadd.f32 %v2410_v25, %v2409_v33  ;;  %v2412_v42 = vsel %vm92_vm1, %v2293_v3, 0.0  ;;  %v12096_v49 = vmax.f32 %v1968_v37, %v2032_v46 }
 0x1c3   :  { %v2033_v14 = vmul.f32 0.01, %v1969_v60  ;;  %v1786_v10 = vsel %vm1782_vm4, %v1777_v12, %v1778_v22  ;;  %v1443_v18 = vadd.f32 %v11697_v21, %v1442_v27  ;;  %v1781_v63 = vrot.slane %v9084_v35, 1  ;;  %v18339_v12 = vld [vmem:[#allocation31_spill] sm:$0xff] }
 0x1c4   :  { %v2413_v7 = vadd.f32 %v2412_v42, %v2411_v59  ;;  %v2216_v4 = vsel %vm92_vm1, %v12096_v49, 0.0  ;;  %v2294_v33 = vmul.f32 %v12096_v49, %v12096_v49  ;;  %v1906_v37 = vsel %vm26_vm5, %v1786_v10, 0.0  ;;  %v18340_v35 = vld [vmem:[#allocation27_spill] sm:$0xff] }
 0x1c5   :  { %v12107_v40 = vmax.f32 %v1969_v60, %v2033_v14  ;;  %v2217_v62 = vadd.f32 %v2216_v4, %v2215_v29  ;;  %v1970_v3 = vadd.f32 %v1906_v37, %v1713_v28  ;;  %v1714_v22 = vadd.f32 %v18339_v12, %v1443_v18  ;;  %v18342_v18 = vld [vmem:[#allocation32_spill] sm:$0xff]  ;;  %v1452_v37 = vpop.f32.mrf.mxu0 }
 0x1c6   :  { %v2414_v27 = vsel %vm92_vm1, %v2294_v33, 0.0  ;;  %v18341_v46 = vrot.slane %v18340_v35, 1  ;;  %v1458_v54 = vadd.f32 %v11697_v21, %v9182_v0  ;;  %v1780_v59 = vrot.slane %v1057_v45, 1  ;;  %v18343_v0 = vld [vmem:[#allocation30_spill] sm:$0xff] }
 0x1c7   :  { %v2218_v42 = vsel %vm92_vm1, %v12107_v40, 0.0  ;;  %v2295_v60 = vmul.f32 %v12107_v40, %v12107_v40  ;;  %v2415_v29 = vadd.f32 %v2414_v27, %v2413_v7  ;;  %v2034_v28 = vmul.f32 0.01, %v1970_v3 }
 0x1c8   :  { %v1846_v25 = vsel %vm1782_vm4, %v1781_v63, %v18341_v46  ;;  %v2219_v14 = vadd.f32 %v2218_v42, %v2217_v62  ;;  %v1971_v10 = vadd.f32 %v1785_v16, %v1714_v22  ;;  %v1717_v4 = vadd.f32 %v18342_v18, %v1458_v54 }
 0x1c9   :  { %v1910_v33 = vsel %vm26_vm5, %v1846_v25, 0.0  ;;  %v2416_v12 = vsel %vm92_vm1, %v2295_v60, 0.0  ;;  %v1715_v45 = vadd.f32 %v18343_v0, %v1448_v43  ;;  %v12125_v35 = vmax.f32 %v1970_v3, %v2034_v28  ;;  %v18344_v28 = vld [vmem:[#allocation34_spill] sm:$0xff] }
 0x1ca   :  { %v1784_v46 = vsel %vm1782_vm4, %v1779_v30, %v1780_v59  ;;  %v2417_v23 = vadd.f32 %v2416_v12, %v2415_v29  ;;  %v2035_v7 = vmul.f32 0.01, %v1971_v10  ;;  %v1974_v27 = vadd.f32 %v1910_v33, %v1717_v4 }
 0x1cb   :  { %v1908_v16 = vsel %vm26_vm5, %v1784_v46, 0.0  ;;  %v2220_v62 = vsel %vm92_vm1, %v12125_v35, 0.0  ;;  %v2296_v22 = vmul.f32 %v12125_v35, %v12125_v35  ;;  %v1453_v43 = vadd.f32 %v11697_v21, %v1452_v37 }
 0x1cc   :  { %v1972_v25 = vadd.f32 %v1908_v16, %v1715_v45  ;;  %v12136_v3 = vmax.f32 %v1971_v10, %v2035_v7  ;;  %v2221_v54 = vadd.f32 %v2220_v62, %v2219_v14  ;;  %v2038_v42 = vmul.f32 0.01, %v1974_v27 }
 0x1cd   :  { %v1783_v30 = vsel %vm1782_vm4, %v1780_v59, %v1781_v63  ;;  %v2418_v60 = vsel %vm92_vm1, %v2296_v22, 0.0  ;;  %v1716_v18 = vadd.f32 %v18344_v28, %v1453_v43 }
 0x1ce   :  { %v2036_v29 = vmul.f32 0.01, %v1972_v25  ;;  %v2222_v4 = vsel %vm92_vm1, %v12136_v3, 0.0  ;;  %v2297_v33 = vmul.f32 %v12136_v3, %v12136_v3  ;;  %v2419_v12 = vadd.f32 %v2418_v60, %v2417_v23 }
 0x1cf   :  { %v2223_v21 = vadd.f32 %v2222_v4, %v2221_v54  ;;  %v1973_v14 = vadd.f32 %v1783_v30, %v1716_v18  ;;  %v2102_v0 = vmax.f32 %v1974_v27, %v2038_v42 }
 0x1d0   :  { %v12146_v10 = vmax.f32 %v1972_v25, %v2036_v29  ;;  %v2420_v37 = vsel %vm92_vm1, %v2297_v33, 0.0 }
 0x1d1   :  { %v2421_v63 = vadd.f32 %v2420_v37, %v2419_v12  ;;  %v2037_v46 = vmul.f32 0.01, %v1973_v14  ;;  %v2300_v22 = vmul.f32 %v2102_v0, %v2102_v0  ;;  %v2228_v54 = vsel %vm92_vm1, %v2102_v0, 0.0 }
 0x1d2   :  { %v2224_v59 = vsel %vm92_vm1, %v12146_v10, 0.0  ;;  %v2298_v45 = vmul.f32 %v12146_v10, %v12146_v10 }
 0x1d3   :  { %v2225_v7 = vadd.f32 %v2224_v59, %v2223_v21  ;;  %v12154_v62 = vmax.f32 %v1973_v14, %v2037_v46  ;;  %v2426_v29 = vsel %vm92_vm1, %v2300_v22, 0.0  ;;  %v2437_v22 = vld [vmem:[%s18120_s3] sm:$0x1] }
 0x1d4   :  { %v2422_v16 = vsel %vm92_vm1, %v2298_v45, 0.0 }
 0x1d5   :  { %v2423_v23 = vadd.f32 %v2422_v16, %v2421_v63  ;;  %v2226_v25 = vsel %vm92_vm1, %v12154_v62, 0.0  ;;  %v2299_v27 = vmul.f32 %v12154_v62, %v12154_v62 }
 0x1d6   :  { %v2227_v43 = vadd.f32 %v2226_v25, %v2225_v7 }
 0x1d7   :  { %v2424_v42 = vsel %vm92_vm1, %v2299_v27, 0.0 }
 0x1d8   :  { %v2229_v30 = vadd.f32 %v2228_v54, %v2227_v43  ;;  %v2425_v60 = vadd.f32 %v2424_v42, %v2423_v23  ;;  %v12167_v54 = vsub.s32 0, %v10643_v32 }
 0x1da   :  { %v2230_v28 = vrot.slane %v2229_v30, 4  ;;  %v2427_v18 = vadd.f32 %v2426_v29, %v2425_v60  ;;  %18345 = vst [vmem:[#allocation4_spill] sm:$0xff] %v12167_v54  ;;  %v2441_v60 = vld [vmem:[%s18121_s4] sm:$0x1] }
 0x1dc   :  { %v2231_v4 = vadd.f32 %v2230_v28, %v2229_v30  ;;  %v2428_v33 = vrot.slane %v2427_v18, 4 }
 0x1de   :  { %v2232_v12 = vrot.slane %v2231_v4, 2  ;;  %v2429_v21 = vadd.f32 %v2428_v33, %v2427_v18 }
 0x1e0   :  { %v2233_v14 = vadd.f32 %v2232_v12, %v2231_v4  ;;  %v2430_v37 = vrot.slane %v2429_v21, 2  ;;  %v18346_v12 = vld [vmem:[#allocation35_spill] sm:$0xff] }
 0x1e2   :  { %v2234_v63 = vrot.slane %v2233_v14, 1  ;;  %v2431_v59 = vadd.f32 %v2430_v37, %v2429_v21 }
 0x1e4   :  { %v2235_v45 = vadd.f32 %v2234_v63, %v2233_v14  ;;  %v2432_v46 = vrot.slane %v2431_v59, 1  ;;  %v18347_v14 = vld [vmem:[#allocation33_spill] sm:$0xff] }
 0x1e6   :  { %v2236_v7 = vmul.f32 0.001953125, %v2235_v45  ;;  %v2433_v16 = vadd.f32 %v2432_v46, %v2431_v59  ;;  %v18348_v45 = vld [vmem:[#allocation36_spill] sm:$0xff] }
 0x1e8   :  { %v2434_v25 = vmul.f32 0.001953125, %v2433_v16  ;;  %v2435_v27 = vmul.f32 %v2236_v7, %v2236_v7 }
 0x1ea   :  { %v2436_v43 = vsub.f32 %v2434_v25, %v2435_v27  ;;  %v18350_v25 = vld [vmem:[#allocation38_spill] sm:$0xff] }
 0x1ec   :  { %v2438_v23 = vadd.f32 1e-05, %v2436_v43 }
 0x1ee   :  { %9773 = vrsqrt.f32 %v2438_v23 }
 0x1fb   :  { %v9774_v42 = vpop.eup %9773 }
 0x1fc   :  { %v2440_v30 = vmul.f32 %v9774_v42, %v2437_v22  ;;  %v18351_v22 = vld [vmem:[#allocation39_spill] sm:$0xff] }
 0x1fe   :  { %v2442_v29 = vmul.f32 %v2440_v30, %v2236_v7  ;;  %v12173_v28 = vrot.slane %v2440_v30, %v12167_v54  ;;  %v18349_v7 = vld [vmem:[#allocation37_spill] sm:$0xff] }
 0x200   :  { %v2443_v18 = vsub.f32 %v2441_v60, %v2442_v29  ;;  %v12176_v4 = vmul.f32 %v12173_v28, %v2102_v0  ;;  %v2451_v21 = vmul.f32 %v12173_v28, %v18346_v12  ;;  %v2450_v37 = vmul.f32 %v12173_v28, %v18347_v14  ;;  %v18353_v60 = vld [vmem:[#allocation41_spill] sm:$0xff]  ;;  %v18354_v12 = vld [vmem:[#allocation42_spill] sm:$0xff]  ;;  %v18355_v14 = vld [vmem:[#allocation43_spill] sm:$0xff] }
 0x201   :  { %v2452_v46 = vmul.f32 %v12173_v28, %v18348_v45  ;;  %v2453_v16 = vmul.f32 %v12173_v28, %v18349_v7  ;;  %v2454_v27 = vmul.f32 %v12173_v28, %v18350_v25  ;;  %v2455_v42 = vmul.f32 %v12173_v28, %v18351_v22  ;;  %v18356_v45 = vld [vmem:[#allocation44_spill] sm:$0xff]  ;;  %v18357_v25 = vld [vmem:[#allocation45_spill] sm:$0xff]  ;;  %v18358_v22 = vld [vmem:[#allocation46_spill] sm:$0xff] }
 0x202   :  { %v12179_v33 = vrot.slane %v2443_v18, %v12167_v54  ;;  %v2457_v29 = vmul.f32 %v12173_v28, %v18353_v60  ;;  %v18359_v60 = vld [vmem:[#allocation47_spill] sm:$0xff]  ;;  %v2466_v54 = vmul.f32 %v12173_v28, %v11427_v51 }
 0x204   :  { %v12186_v63 = vadd.f32 %v12179_v33, %v2451_v21  ;;  %v12189_v59 = vadd.f32 %v12179_v33, %v2450_v37  ;;  %v12198_v0 = vadd.f32 %v12179_v33, %v2452_v46  ;;  %v12215_v43 = vadd.f32 %v12179_v33, %v2453_v16 }
 0x205   :  { %v12218_v23 = vadd.f32 %v12179_v33, %v2454_v27  ;;  %v12235_v18 = vadd.f32 %v12179_v33, %v2455_v42  ;;  %v2458_v21 = vmul.f32 %v12173_v28, %v18354_v12  ;;  %v2459_v37 = vmul.f32 %v12173_v28, %v18355_v14 }
 0x206   :  { %9185 = vmatprep.mubr.msk.f32.mxu1 %vm92_vm1, %v12189_v59  ;;  %9283 = vmatprep.mubr.msk.f32.mxu0 %vm92_vm1, %v12189_v59  ;;  %v2460_v46 = vmul.f32 %v12173_v28, %v18356_v45  ;;  %v12247_v16 = vadd.f32 %v12179_v33, %v2457_v29  ;;  %v2461_v27 = vmul.f32 %v12173_v28, %v18357_v25 }
 0x207   :  { %9186 = vmatmul.mubr.msk.f32.vlgmr.msra.gmra.mxu1 %vm92_vm1, %v12186_v63  ;;  %9284 = vmatmul.mubr.msk.f32.vlgmr.msra.gmra.mxu0 %vm92_vm1, %v12186_v63  ;;  %v2462_v42 = vmul.f32 %v12173_v28, %v18358_v22  ;;  %v2463_v29 = vmul.f32 %v12173_v28, %v18359_v60  ;;  %v18361_v22 = vld [vmem:[#allocation49_spill] sm:$0xff] }
 0x208   :  { %9188 = vmatprep.mubr.msk.f32.mxu1 %vm92_vm1, %v12198_v0  ;;  %9286 = vmatprep.mubr.msk.f32.mxu0 %vm92_vm1, %v12198_v0  ;;  %v12270_v12 = vadd.f32 %v12179_v33, %v2460_v46  ;;  %v12273_v14 = vadd.f32 %v12179_v33, %v2461_v27  ;;  %v2465_v60 = vmul.f32 %v12173_v28, %v18361_v22 }
 0x209   :  { %9380 = vmatpush3.msk.msra.mxu1 %vm285_vm0, %v11828_v6  ;;  %v18352_v6 = vld [vmem:[#allocation40_spill] sm:$0xff]  ;;  %v12281_v25 = vadd.f32 %v12179_v33, %v2463_v29  ;;  %v12292_v27 = vmul.f32 %v12173_v28, %v11449_v24  ;;  %v2484_v29 = vmul.f32 %v12173_v28, %v11741_v11  ;;  %v2486_v24 = vmul.f32 %v12173_v28, %v11778_v8 }
 0x20a   :  { %v2456_v30 = vmul.f32 %v12173_v28, %v18352_v6  ;;  %v12258_v6 = vadd.f32 %v12179_v33, %v2458_v21  ;;  %v18360_v21 = vld [vmem:[#allocation48_spill] sm:$0xff]  ;;  %v12303_v51 = vadd.f32 %v12179_v33, %v2465_v60  ;;  %v2487_v22 = vmul.f32 %v12173_v28, %v11798_v50 }
 0x20b   :  { %9189 = vmatmul.mubr.msk.f32.gmra.mxu1 %vm92_vm1, %v12215_v43  ;;  %9287 = vmatmul.mubr.msk.f32.gmra.mxu0 %vm92_vm1, %v12215_v43  ;;  %v2464_v45 = vmul.f32 %v12173_v28, %v18360_v21  ;;  %v2485_v21 = vmul.f32 %v12173_v28, %v11762_v41  ;;  %v12326_v8 = vadd.f32 %v12179_v33, %v2486_v24 }
 0x20c   :  { %9191 = vmatprep.mubr.msk.f32.mxu1 %vm92_vm1, %v12218_v23  ;;  %9289 = vmatprep.mubr.msk.f32.mxu0 %vm92_vm1, %v12218_v23  ;;  %v12244_v7 = vadd.f32 %v12179_v33, %v2456_v30  ;;  %v12261_v30 = vadd.f32 %v12179_v33, %v2459_v37  ;;  %v12278_v37 = vadd.f32 %v12179_v33, %v2462_v42 }
 0x20d   :  { %v12288_v46 = vadd.f32 %v12179_v33, %v2464_v45  ;;  %v2483_v42 = vmul.f32 %v12173_v28, %v11722_v2  ;;  %v12314_v2 = vadd.f32 %v12179_v33, %v2466_v54  ;;  %v12320_v45 = vadd.f32 %v12179_v33, %v2484_v29 }
 0x20e   :  { %v12323_v41 = vadd.f32 %v12179_v33, %v2485_v21  ;;  %v2488_v60 = vmul.f32 %v12173_v28, %v11800_v36  ;;  %v2489_v54 = vmul.f32 %v12173_v28, %v11853_v58  ;;  %v2491_v29 = vmul.f32 %v12173_v28, %v11874_v44 }
 0x20f   :  { %9192 = vmatmul.mubr.msk.f32.gmra.mxu1 %vm92_vm1, %v12235_v18  ;;  %9290 = vmatmul.mubr.msk.f32.gmra.mxu0 %vm92_vm1, %v12235_v18  ;;  %v12317_v11 = vadd.f32 %v12179_v33, %v2483_v42  ;;  %v2490_v42 = vmul.f32 %v12173_v28, %v11841_v55  ;;  %v2492_v21 = vmul.f32 %v12173_v28, %v11887_v53 }
 0x210   :  { %9194 = vmatprep.mubr.msk.f32.mxu1 %vm92_vm1, %v12244_v7  ;;  %9292 = vmatprep.mubr.msk.f32.mxu0 %vm92_vm1, %v12244_v7  ;;  %v12345_v50 = vadd.f32 %v12179_v33, %v2487_v22  ;;  %v12348_v36 = vadd.f32 %v12179_v33, %v2488_v60  ;;  %v2493_v55 = vmul.f32 %v12173_v28, %v11901_v57 }
 0x211   :  { %v12357_v58 = vadd.f32 %v12179_v33, %v2489_v54  ;;  %v12360_v44 = vadd.f32 %v12179_v33, %v2490_v42  ;;  %v12363_v53 = vadd.f32 %v12179_v33, %v2491_v29  ;;  %v12366_v24 = vadd.f32 %v12179_v33, %v2492_v21 }
 0x212   :  { %v12369_v57 = vadd.f32 %v12179_v33, %v2493_v55  ;;  %v2494_v22 = vmul.f32 %v12173_v28, %v11916_v31  ;;  %v2495_v60 = vmul.f32 %v12173_v28, %v11936_v17  ;;  %v2496_v54 = vmul.f32 %v12173_v28, %v11943_v34 }
 0x213   :  { %9195 = vmatmul.mubr.msk.f32.gmra.mxu1 %vm92_vm1, %v12247_v16  ;;  %9293 = vmatmul.mubr.msk.f32.gmra.mxu0 %vm92_vm1, %v12247_v16  ;;  %v2497_v42 = vmul.f32 %v12173_v28, %v11965_v1  ;;  %v2498_v29 = vmul.f32 %v12173_v28, %v11967_v48  ;;  %v2499_v21 = vmul.f32 %v12173_v28, %v11991_v15 }
 0x214   :  { %9197 = vmatprep.mubr.msk.f32.mxu1 %vm92_vm1, %v12258_v6  ;;  %9295 = vmatprep.mubr.msk.f32.mxu0 %vm92_vm1, %v12258_v6  ;;  %v12388_v31 = vadd.f32 %v12179_v33, %v2494_v22  ;;  %v12391_v17 = vadd.f32 %v12179_v33, %v2495_v60  ;;  %v2500_v34 = vmul.f32 %v12173_v28, %v12007_v19 }
 0x215   :  { %v12400_v1 = vadd.f32 %v12179_v33, %v2496_v54  ;;  %v12403_v48 = vadd.f32 %v12179_v33, %v2497_v42  ;;  %v12406_v15 = vadd.f32 %v12179_v33, %v2498_v29  ;;  %v12409_v55 = vadd.f32 %v12179_v33, %v2499_v21 }
 0x216   :  { %v12412_v19 = vadd.f32 %v12179_v33, %v2500_v34  ;;  %v2501_v22 = vmul.f32 %v12173_v28, %v12025_v39  ;;  %v2502_v60 = vmul.f32 %v12173_v28, %v12019_v47  ;;  %v2503_v54 = vmul.f32 %v12173_v28, %v12043_v9 }
 0x217   :  { %9198 = vmatmul.mubr.msk.f32.gmra.mxu1 %vm92_vm1, %v12261_v30  ;;  %9296 = vmatmul.mubr.msk.f32.gmra.mxu0 %vm92_vm1, %v12261_v30  ;;  %v2504_v42 = vmul.f32 %v12173_v28, %v12046_v5  ;;  %v2505_v29 = vmul.f32 %v12173_v28, %v12072_v38  ;;  %v2506_v21 = vmul.f32 %v12173_v28, %v12079_v56 }
 0x218   :  { %9200 = vmatprep.mubr.msk.f32.mxu1 %vm92_vm1, %v12270_v12  ;;  %9298 = vmatprep.mubr.msk.f32.mxu0 %vm92_vm1, %v12270_v12  ;;  %v12431_v47 = vadd.f32 %v12179_v33, %v2501_v22  ;;  %v12434_v39 = vadd.f32 %v12179_v33, %v2502_v60  ;;  %v2507_v5 = vmul.f32 %v12173_v28, %v12096_v49 }
 0x219   :  { %v12443_v9 = vadd.f32 %v12179_v33, %v2503_v54  ;;  %v12446_v38 = vadd.f32 %v12179_v33, %v2504_v42  ;;  %v12449_v56 = vadd.f32 %v12179_v33, %v2505_v29  ;;  %v12452_v34 = vadd.f32 %v12179_v33, %v2506_v21 }
 0x21a   :  { %v12455_v49 = vadd.f32 %v12179_v33, %v2507_v5  ;;  %v2508_v22 = vmul.f32 %v12173_v28, %v12107_v40  ;;  %v2509_v60 = vmul.f32 %v12173_v28, %v12125_v35  ;;  %v2510_v54 = vmul.f32 %v12173_v28, %v12136_v3 }
 0x21b   :  { %9201 = vmatmul.mubr.msk.f32.gmra.mxu1 %vm92_vm1, %v12273_v14  ;;  %9299 = vmatmul.mubr.msk.f32.gmra.mxu0 %vm92_vm1, %v12273_v14  ;;  %v2511_v42 = vmul.f32 %v12173_v28, %v12146_v10  ;;  %v2512_v29 = vmul.f32 %v12173_v28, %v12154_v62  ;;  %v12469_v21 = vadd.f32 %v12179_v33, %v12176_v4 }
 0x21c   :  { %9203 = vmatprep.mubr.msk.f32.mxu1 %vm92_vm1, %v12278_v37  ;;  %9301 = vmatprep.mubr.msk.f32.mxu0 %vm92_vm1, %v12278_v37  ;;  %v2468_v40 = vmul.f32 %v12173_v28, %v11454_v61  ;;  %v12478_v35 = vadd.f32 %v12179_v33, %v2508_v22  ;;  %v12481_v3 = vadd.f32 %v12179_v33, %v2509_v60 }
 0x21d   :  { %v12488_v10 = vadd.f32 %v12179_v33, %v2510_v54  ;;  %v12491_v62 = vadd.f32 %v12179_v33, %v2511_v42  ;;  %v12494_v61 = vadd.f32 %v12179_v33, %v2512_v29  ;;  %v12498_v4 = vadd.f32 %v12179_v33, %v12292_v27 }
 0x21e   :  { %v12501_v5 = vadd.f32 %v12179_v33, %v2468_v40  ;;  %v2469_v22 = vmul.f32 %v12173_v28, %v11481_v26  ;;  %v2470_v27 = vmul.f32 %v12173_v28, %v11483_v20  ;;  %v2471_v26 = vmul.f32 %v12173_v28, %v11520_v13  ;;  %v18362_v20 = vld [vmem:[#allocation50_spill] sm:$0xff]  ;;  %v18363_v13 = vld [vmem:[#allocation51_spill] sm:$0xff] }
 0x21f   :  { %9204 = vmatmul.mubr.msk.f32.gmra.mxu1 %vm92_vm1, %v12281_v25  ;;  %9302 = vmatmul.mubr.msk.f32.gmra.mxu0 %vm92_vm1, %v12281_v25  ;;  %v2472_v42 = vmul.f32 %v12173_v28, %v18362_v20 }
 0x220   :  { %9206 = vmatprep.mubr.msk.f32.mxu1 %vm92_vm1, %v12288_v46  ;;  %9304 = vmatprep.mubr.msk.f32.mxu0 %vm92_vm1, %v12288_v46  ;;  %v12516_v60 = vadd.f32 %v12179_v33, %v2469_v22  ;;  %v12519_v54 = vadd.f32 %v12179_v33, %v2470_v27  ;;  %v12534_v29 = vadd.f32 %v12179_v33, %v2471_v26  ;;  %v18364_v27 = vld [vmem:[#allocation52_spill] sm:$0xff] }
 0x221   :  { %v12537_v40 = vadd.f32 %v12179_v33, %v2472_v42  ;;  %v2473_v22 = vmul.f32 %v12173_v28, %v18363_v13  ;;  %v2474_v26 = vmul.f32 %v12173_v28, %v18364_v27  ;;  %v18367_v13 = vld [vmem:[#allocation53_spill] sm:$0xff] }
 0x222   :  { %v2475_v52 = vmul.f32 %v12173_v28, %v18367_v13  ;;  %v18371_v13 = vld [vmem:[#allocation55_spill] sm:$0xff] }
 0x223   :  { %9207 = vmatmul.mubr.msk.f32.gmra.mxu1 %vm92_vm1, %v12303_v51  ;;  %9305 = vmatmul.mubr.msk.f32.gmra.mxu0 %vm92_vm1, %v12303_v51  ;;  %v12552_v20 = vadd.f32 %v12179_v33, %v2473_v22  ;;  %v12555_v42 = vadd.f32 %v12179_v33, %v2474_v26  ;;  %v18368_v22 = vld [vmem:[#allocation54_spill] sm:$0xff] }
 0x224   :  { %9209 = vmatprep.mubr.msk.f32.mxu1 %vm92_vm1, %v12314_v2  ;;  %9307 = vmatprep.mubr.msk.f32.mxu0 %vm92_vm1, %v12314_v2  ;;  %v2476_v27 = vmul.f32 %v12173_v28, %v18368_v22  ;;  %v12570_v26 = vadd.f32 %v12179_v33, %v2475_v52  ;;  %v18372_v52 = vld [vmem:[#allocation56_spill] sm:$0xff] }
 0x225   :  { %18365 = vst [vmem:[#allocation5_spill] sm:$0xff] %v12552_v20  ;;  %18366 = vst [vmem:[#allocation6_spill] sm:$0xff] %v12555_v42  ;;  %v2478_v22 = vmul.f32 %v12173_v28, %v18372_v52 }
 0x226   :  { %18369 = vst [vmem:[#allocation8_spill] sm:$0xff] %v12570_v26  ;;  %v12573_v32 = vadd.f32 %v12179_v33, %v2476_v27 }
 0x227   :  { %9210 = vmatmul.mubr.msk.f32.gmra.mxu1 %vm92_vm1, %v12498_v4  ;;  %9308 = vmatmul.mubr.msk.f32.gmra.mxu0 %vm92_vm1, %v12498_v4 }
 0x228   :  { %9212 = vmatprep.mubr.msk.f32.mxu1 %vm92_vm1, %v12501_v5  ;;  %9310 = vmatprep.mubr.msk.f32.mxu0 %vm92_vm1, %v12501_v5  ;;  %18370 = vst [vmem:[#allocation7_spill] sm:$0xff] %v12573_v32 }
 0x22b   :  { %9213 = vmatmul.mubr.msk.f32.gmra.mxu1 %vm92_vm1, %v12516_v60  ;;  %9311 = vmatmul.mubr.msk.f32.gmra.mxu0 %vm92_vm1, %v12516_v60 }
 0x22c   :  { %9215 = vmatprep.mubr.msk.f32.mxu1 %vm92_vm1, %v12519_v54  ;;  %9313 = vmatprep.mubr.msk.f32.mxu0 %vm92_vm1, %v12519_v54 }
 0x22f   :  { %9216 = vmatmul.mubr.msk.f32.gmra.mxu1 %vm92_vm1, %v12534_v29  ;;  %9314 = vmatmul.mubr.msk.f32.gmra.mxu0 %vm92_vm1, %v12534_v29 }
 0x230   :  { %9218 = vmatprep.mubr.msk.f32.mxu1 %vm92_vm1, %v12537_v40  ;;  %9316 = vmatprep.mubr.msk.f32.mxu0 %vm92_vm1, %v12537_v40 }
 0x233   :  { %9219 = vmatmul.mubr.msk.f32.gmra.mxu1 %vm92_vm1, %v12552_v20  ;;  %9317 = vmatmul.mubr.msk.f32.gmra.mxu0 %vm92_vm1, %v12552_v20  ;;  %v2477_v20 = vmul.f32 %v12173_v28, %v18371_v13  ;;  %v18375_v13 = vld [vmem:[#allocation57_spill] sm:$0xff] }
 0x234   :  { %9221 = vmatprep.mubr.msk.f32.mxu1 %vm92_vm1, %v12555_v42  ;;  %9319 = vmatprep.mubr.msk.f32.mxu0 %vm92_vm1, %v12555_v42  ;;  %v12591_v42 = vadd.f32 %v12179_v33, %v2478_v22 }
 0x235   :  { %v12588_v27 = vadd.f32 %v12179_v33, %v2477_v20  ;;  %v18376_v20 = vld [vmem:[#allocation58_spill] sm:$0xff] }
 0x236   :  { %18374 = vst [vmem:[#allocation10_spill] sm:$0xff] %v12591_v42  ;;  %v2480_v52 = vmul.f32 %v12173_v28, %v18376_v20 }
 0x237   :  { %9222 = vmatmul.mubr.msk.f32.gmra.mxu1 %vm92_vm1, %v12570_v26  ;;  %9320 = vmatmul.mubr.msk.f32.gmra.mxu0 %vm92_vm1, %v12570_v26  ;;  %18373 = vst [vmem:[#allocation9_spill] sm:$0xff] %v12588_v27  ;;  %v2479_v26 = vmul.f32 %v12173_v28, %v18375_v13  ;;  %v18377_v13 = vld [vmem:[#allocation59_spill] sm:$0xff] }
 0x238   :  { %9224 = vmatprep.mubr.msk.f32.mxu1 %vm92_vm1, %v12573_v32  ;;  %9322 = vmatprep.mubr.msk.f32.mxu0 %vm92_vm1, %v12573_v32  ;;  %v12609_v32 = vadd.f32 %v12179_v33, %v2480_v52 }
 0x239   :  { %v12606_v22 = vadd.f32 %v12179_v33, %v2479_v26  ;;  %v18378_v26 = vld [vmem:[#allocation60_spill] sm:$0xff] }
 0x23a   :  { %v2482_v20 = vmul.f32 %v12173_v28, %v18378_v26 }
 0x23b   :  { %9225 = vmatmul.mubr.msk.f32.gmra.mxu1 %vm92_vm1, %v12588_v27  ;;  %9323 = vmatmul.mubr.msk.f32.gmra.mxu0 %vm92_vm1, %v12588_v27  ;;  %v2481_v27 = vmul.f32 %v12173_v28, %v18377_v13  ;;  %v18379_v28 = vld [vmem:[#allocation5_spill] sm:$0xff] }
 0x23c   :  { %9227 = vmatprep.mubr.msk.f32.mxu1 %vm92_vm1, %v12591_v42  ;;  %9325 = vmatprep.mubr.msk.f32.mxu0 %vm92_vm1, %v12591_v42  ;;  %v12627_v42 = vadd.f32 %v12179_v33, %v2482_v20 }
 0x23d   :  { %v12624_v52 = vadd.f32 %v12179_v33, %v2481_v27  ;;  %v18380_v33 = vld [vmem:[#allocation6_spill] sm:$0xff] }
 0x23f   :  { %9228 = vmatmul.mubr.msk.f32.gmra.mxu1 %vm92_vm1, %v12606_v22  ;;  %9326 = vmatmul.mubr.msk.f32.gmra.mxu0 %vm92_vm1, %v12606_v22 }
 0x240   :  { %9230 = vmatprep.mubr.msk.f32.mxu1 %vm92_vm1, %v12609_v32  ;;  %9328 = vmatprep.mubr.msk.f32.mxu0 %vm92_vm1, %v12609_v32 }
 0x243   :  { %9231 = vmatmul.mubr.msk.f32.gmra.mxu1 %vm92_vm1, %v12624_v52  ;;  %9329 = vmatmul.mubr.msk.f32.gmra.mxu0 %vm92_vm1, %v12624_v52 }
 0x244   :  { %9233 = vmatprep.mubr.msk.f32.mxu1 %vm92_vm1, %v12627_v42  ;;  %9331 = vmatprep.mubr.msk.f32.mxu0 %vm92_vm1, %v12627_v42 }
 0x247   :  { %9234 = vmatmul.mubr.msk.f32.gmra.mxu1 %vm92_vm1, %v12317_v11  ;;  %9332 = vmatmul.mubr.msk.f32.gmra.mxu0 %vm92_vm1, %v12317_v11 }
 0x248   :  { %9236 = vmatprep.mubr.msk.f32.mxu1 %vm92_vm1, %v12320_v45  ;;  %9334 = vmatprep.mubr.msk.f32.mxu0 %vm92_vm1, %v12320_v45 }
 0x24b   :  { %9237 = vmatmul.mubr.msk.f32.gmra.mxu1 %vm92_vm1, %v12323_v41  ;;  %9335 = vmatmul.mubr.msk.f32.gmra.mxu0 %vm92_vm1, %v12323_v41 }
 0x24c   :  { %9239 = vmatprep.mubr.msk.f32.mxu1 %vm92_vm1, %v12326_v8  ;;  %9337 = vmatprep.mubr.msk.f32.mxu0 %vm92_vm1, %v12326_v8 }
 0x24f   :  { %9240 = vmatmul.mubr.msk.f32.gmra.mxu1 %vm92_vm1, %v12345_v50  ;;  %9338 = vmatmul.mubr.msk.f32.gmra.mxu0 %vm92_vm1, %v12345_v50 }
 0x250   :  { %9242 = vmatprep.mubr.msk.f32.mxu1 %vm92_vm1, %v12348_v36  ;;  %9340 = vmatprep.mubr.msk.f32.mxu0 %vm92_vm1, %v12348_v36 }
 0x253   :  { %9243 = vmatmul.mubr.msk.f32.gmra.mxu1 %vm92_vm1, %v12357_v58  ;;  %9341 = vmatmul.mubr.msk.f32.gmra.mxu0 %vm92_vm1, %v12357_v58 }
 0x254   :  { %9245 = vmatprep.mubr.msk.f32.mxu1 %vm92_vm1, %v12360_v44  ;;  %9343 = vmatprep.mubr.msk.f32.mxu0 %vm92_vm1, %v12360_v44 }
 0x257   :  { %9246 = vmatmul.mubr.msk.f32.gmra.mxu1 %vm92_vm1, %v12363_v53  ;;  %9344 = vmatmul.mubr.msk.f32.gmra.mxu0 %vm92_vm1, %v12363_v53 }
 0x258   :  { %9248 = vmatprep.mubr.msk.f32.mxu1 %vm92_vm1, %v12366_v24  ;;  %9346 = vmatprep.mubr.msk.f32.mxu0 %vm92_vm1, %v12366_v24 }
 0x25b   :  { %9249 = vmatmul.mubr.msk.f32.gmra.mxu1 %vm92_vm1, %v12369_v57  ;;  %9347 = vmatmul.mubr.msk.f32.gmra.mxu0 %vm92_vm1, %v12369_v57 }
 0x25c   :  { %9251 = vmatprep.mubr.msk.f32.mxu1 %vm92_vm1, %v12388_v31  ;;  %9349 = vmatprep.mubr.msk.f32.mxu0 %vm92_vm1, %v12388_v31 }
 0x25f   :  { %9252 = vmatmul.mubr.msk.f32.gmra.mxu1 %vm92_vm1, %v12391_v17  ;;  %9350 = vmatmul.mubr.msk.f32.gmra.mxu0 %vm92_vm1, %v12391_v17 }
 0x260   :  { %9254 = vmatprep.mubr.msk.f32.mxu1 %vm92_vm1, %v12400_v1  ;;  %9352 = vmatprep.mubr.msk.f32.mxu0 %vm92_vm1, %v12400_v1 }
 0x263   :  { %9255 = vmatmul.mubr.msk.f32.gmra.mxu1 %vm92_vm1, %v12403_v48  ;;  %9353 = vmatmul.mubr.msk.f32.gmra.mxu0 %vm92_vm1, %v12403_v48 }
 0x264   :  { %9257 = vmatprep.mubr.msk.f32.mxu1 %vm92_vm1, %v12406_v15  ;;  %9355 = vmatprep.mubr.msk.f32.mxu0 %vm92_vm1, %v12406_v15 }
 0x267   :  { %9258 = vmatmul.mubr.msk.f32.gmra.mxu1 %vm92_vm1, %v12409_v55  ;;  %9356 = vmatmul.mubr.msk.f32.gmra.mxu0 %vm92_vm1, %v12409_v55 }
 0x268   :  { %9260 = vmatprep.mubr.msk.f32.mxu1 %vm92_vm1, %v12412_v19  ;;  %9358 = vmatprep.mubr.msk.f32.mxu0 %vm92_vm1, %v12412_v19 }
 0x26b   :  { %9261 = vmatmul.mubr.msk.f32.gmra.mxu1 %vm92_vm1, %v12431_v47  ;;  %9359 = vmatmul.mubr.msk.f32.gmra.mxu0 %vm92_vm1, %v12431_v47 }
 0x26c   :  { %9263 = vmatprep.mubr.msk.f32.mxu1 %vm92_vm1, %v12434_v39  ;;  %9361 = vmatprep.mubr.msk.f32.mxu0 %vm92_vm1, %v12434_v39 }
 0x26f   :  { %9264 = vmatmul.mubr.msk.f32.gmra.mxu1 %vm92_vm1, %v12443_v9  ;;  %9362 = vmatmul.mubr.msk.f32.gmra.mxu0 %vm92_vm1, %v12443_v9 }
 0x270   :  { %9266 = vmatprep.mubr.msk.f32.mxu1 %vm92_vm1, %v12446_v38  ;;  %9364 = vmatprep.mubr.msk.f32.mxu0 %vm92_vm1, %v12446_v38 }
 0x273   :  { %9267 = vmatmul.mubr.msk.f32.gmra.mxu1 %vm92_vm1, %v12449_v56  ;;  %9365 = vmatmul.mubr.msk.f32.gmra.mxu0 %vm92_vm1, %v12449_v56 }
 0x274   :  { %9269 = vmatprep.mubr.msk.f32.mxu1 %vm92_vm1, %v12452_v34  ;;  %9367 = vmatprep.mubr.msk.f32.mxu0 %vm92_vm1, %v12452_v34 }
 0x277   :  { %9270 = vmatmul.mubr.msk.f32.gmra.mxu1 %vm92_vm1, %v12455_v49  ;;  %9368 = vmatmul.mubr.msk.f32.gmra.mxu0 %vm92_vm1, %v12455_v49 }
 0x278   :  { %9272 = vmatprep.mubr.msk.f32.mxu1 %vm92_vm1, %v12478_v35  ;;  %9370 = vmatprep.mubr.msk.f32.mxu0 %vm92_vm1, %v12478_v35 }
 0x27b   :  { %9273 = vmatmul.mubr.msk.f32.gmra.mxu1 %vm92_vm1, %v12481_v3  ;;  %9371 = vmatmul.mubr.msk.f32.gmra.mxu0 %vm92_vm1, %v12481_v3 }
 0x27c   :  { %9275 = vmatprep.mubr.msk.f32.mxu1 %vm92_vm1, %v12488_v10  ;;  %9373 = vmatprep.mubr.msk.f32.mxu0 %vm92_vm1, %v12488_v10 }
 0x27f   :  { %9276 = vmatmul.mubr.msk.f32.gmra.mxu1 %vm92_vm1, %v12491_v62  ;;  %9374 = vmatmul.mubr.msk.f32.gmra.mxu0 %vm92_vm1, %v12491_v62 }
 0x280   :  { %9278 = vmatprep.mubr.msk.f32.mxu1 %vm92_vm1, %v12494_v61  ;;  %9376 = vmatprep.mubr.msk.f32.mxu0 %vm92_vm1, %v12494_v61 }
 0x283   :  { %9279 = vmatmul.mubr.msk.f32.gmra.mxu1 %vm92_vm1, %v12469_v21  ;;  %9377 = vmatmul.mubr.msk.f32.gmra.mxu0 %vm92_vm1, %v12469_v21 }
 0x284   :  { %9381 = vmatprep.mubr.msk.f32.mxu1 %vm92_vm1, %v12189_v59  ;;  %v18382_v59 = vld [vmem:[#allocation7_spill] sm:$0xff] }
 0x287   :  { %9382 = vmatmul.mubr.msk.f32.vlgmr.msra.gmra.mxu1 %vm92_vm1, %v12186_v63  ;;  %v18381_v63 = vld [vmem:[#allocation8_spill] sm:$0xff] }
 0x288   :  { %9384 = vmatprep.mubr.msk.f32.mxu1 %vm92_vm1, %v12198_v0  ;;  %v18383_v0 = vld [vmem:[#allocation9_spill] sm:$0xff] }
 0x28b   :  { %9385 = vmatmul.mubr.msk.f32.gmra.mxu1 %vm92_vm1, %v12215_v43  ;;  %v18384_v43 = vld [vmem:[#allocation10_spill] sm:$0xff] }
 0x28c   :  { %9387 = vmatprep.mubr.msk.f32.mxu1 %vm92_vm1, %v12218_v23 }
 0x28f   :  { %9388 = vmatmul.mubr.msk.f32.gmra.mxu1 %vm92_vm1, %v12235_v18 }
 0x290   :  { %9390 = vmatprep.mubr.msk.f32.mxu1 %vm92_vm1, %v12244_v7 }
 0x293   :  { %9391 = vmatmul.mubr.msk.f32.gmra.mxu1 %vm92_vm1, %v12247_v16 }
 0x294   :  { %9393 = vmatprep.mubr.msk.f32.mxu1 %vm92_vm1, %v12258_v6 }
 0x297   :  { %9394 = vmatmul.mubr.msk.f32.gmra.mxu1 %vm92_vm1, %v12261_v30 }
 0x298   :  { %9396 = vmatprep.mubr.msk.f32.mxu1 %vm92_vm1, %v12270_v12 }
 0x29b   :  { %9397 = vmatmul.mubr.msk.f32.gmra.mxu1 %vm92_vm1, %v12273_v14 }
 0x29c   :  { %9399 = vmatprep.mubr.msk.f32.mxu1 %vm92_vm1, %v12278_v37 }
 0x29f   :  { %9400 = vmatmul.mubr.msk.f32.gmra.mxu1 %vm92_vm1, %v12281_v25 }
 0x2a0   :  { %9402 = vmatprep.mubr.msk.f32.mxu1 %vm92_vm1, %v12288_v46 }
 0x2a3   :  { %9403 = vmatmul.mubr.msk.f32.gmra.mxu1 %vm92_vm1, %v12303_v51 }
 0x2a4   :  { %9405 = vmatprep.mubr.msk.f32.mxu1 %vm92_vm1, %v12314_v2 }
 0x2a7   :  { %9406 = vmatmul.mubr.msk.f32.gmra.mxu1 %vm92_vm1, %v12498_v4 }
 0x2a8   :  { %9408 = vmatprep.mubr.msk.f32.mxu1 %vm92_vm1, %v12501_v5 }
 0x2ab   :  { %9409 = vmatmul.mubr.msk.f32.gmra.mxu1 %vm92_vm1, %v12516_v60 }
 0x2ac   :  { %9411 = vmatprep.mubr.msk.f32.mxu1 %vm92_vm1, %v12519_v54 }
 0x2af   :  { %9412 = vmatmul.mubr.msk.f32.gmra.mxu1 %vm92_vm1, %v12534_v29 }
 0x2b0   :  { %9414 = vmatprep.mubr.msk.f32.mxu1 %vm92_vm1, %v12537_v40 }
 0x2b3   :  { %9415 = vmatmul.mubr.msk.f32.gmra.mxu1 %vm92_vm1, %v18379_v28 }
 0x2b4   :  { %9417 = vmatprep.mubr.msk.f32.mxu1 %vm92_vm1, %v18380_v33 }
 0x2b7   :  { %9418 = vmatmul.mubr.msk.f32.gmra.mxu1 %vm92_vm1, %v18381_v63 }
 0x2b8   :  { %9420 = vmatprep.mubr.msk.f32.mxu1 %vm92_vm1, %v18382_v59 }
 0x2bb   :  { %9421 = vmatmul.mubr.msk.f32.gmra.mxu1 %vm92_vm1, %v18383_v0 }
 0x2bc   :  { %9423 = vmatprep.mubr.msk.f32.mxu1 %vm92_vm1, %v18384_v43 }
 0x2bf   :  { %9424 = vmatmul.mubr.msk.f32.gmra.mxu1 %vm92_vm1, %v12606_v22 }
 0x2c0   :  { %9426 = vmatprep.mubr.msk.f32.mxu1 %vm92_vm1, %v12609_v32 }
 0x2c3   :  { %9427 = vmatmul.mubr.msk.f32.gmra.mxu1 %vm92_vm1, %v12624_v52 }
 0x2c4   :  { %9429 = vmatprep.mubr.msk.f32.mxu1 %vm92_vm1, %v12627_v42 }
 0x2c7   :  { %v9187_v23 = vpop.f32.mrf.mxu1  ;;  %v12827_v18 = vpop.f32.mrf.mxu0  ;;  %9430 = vmatmul.mubr.msk.f32.gmra.mxu1 %vm92_vm1, %v12317_v11 }
 0x2c8   :  { %9432 = vmatprep.mubr.msk.f32.mxu1 %vm92_vm1, %v12320_v45  ;;  %v3955_v32 = vrot.slane %v9187_v23, 7 }
 0x2c9   :  { %v12833_v7 = vpop.f32.mrf.mxu1  ;;  %v12835_v16 = vpop.f32.mrf.mxu0 }
 0x2ca   :  { %18385 = vst [vmem:[#allocation11_spill] sm:$0xff] %v12833_v7  ;;  %18386 = vst [vmem:[#allocation12_spill] sm:$0xff] %v12835_v16  ;;  %v18167_v6 = vrot.slane %v12833_v7, 7 }
 0x2cb   :  { %v9190_v30 = vpop.f32.mrf.mxu1  ;;  %v12838_v12 = vpop.f32.mrf.mxu0  ;;  %9433 = vmatmul.mubr.msk.f32.gmra.mxu1 %vm92_vm1, %v12323_v41 }
 0x2cc   :  { %9435 = vmatprep.mubr.msk.f32.mxu1 %vm92_vm1, %v12326_v8  ;;  %v12848_v37 = vsel %vm1525_vm2, %v18167_v6, %v3955_v32  ;;  %v3957_v2 = vrot.slane %v9190_v30, 7  ;;  %v4213_v7 = vrot.slane %v12838_v12, 1 }
 0x2cd   :  { %18388 = vst [vmem:[#allocation14_spill] sm:$0xff] %v12848_v37  ;;  %v2857_v25 = vpop.f32.mrf.mxu1  ;;  %v12850_v46 = vpop.f32.mrf.mxu0 }
 0x2ce   :  { %v3956_v51 = vrot.slane %v2857_v25, 7 }
 0x2cf   :  { %v9193_v11 = vpop.f32.mrf.mxu1  ;;  %v12852_v45 = vpop.f32.mrf.mxu0  ;;  %9436 = vmatmul.mubr.msk.f32.gmra.mxu1 %vm92_vm1, %v12345_v50 }
 0x2d0   :  { %9438 = vmatprep.mubr.msk.f32.mxu1 %vm92_vm1, %v12348_v36  ;;  %v12862_v4 = vsel %vm1525_vm2, %v3956_v51, %v3957_v2  ;;  %v12866_v5 = vsel %vm1525_vm2, %v3955_v32, %v3956_v51  ;;  %v3959_v54 = vrot.slane %v9193_v11, 7 }
 0x2d1   :  { %v2867_v41 = vpop.f32.mrf.mxu1  ;;  %v12858_v8 = vpop.f32.mrf.mxu0  ;;  %18389 = vst [vmem:[#allocation13_spill] sm:$0xff] %v12862_v4  ;;  %v4211_v4 = vrot.slane %v12827_v18, 1 }
 0x2d2   :  { %v3958_v60 = vrot.slane %v2867_v41, 7 }
 0x2d3   :  { %v9196_v29 = vpop.f32.mrf.mxu1  ;;  %v12868_v40 = vpop.f32.mrf.mxu0  ;;  %9439 = vmatmul.mubr.msk.f32.gmra.mxu1 %vm92_vm1, %v12357_v58 }
 0x2d4   :  { %9441 = vmatprep.mubr.msk.f32.mxu1 %vm92_vm1, %v12360_v44  ;;  %v12878_v42 = vsel %vm1525_vm2, %v3958_v60, %v3959_v54  ;;  %v12882_v27 = vsel %vm1525_vm2, %v3957_v2, %v3958_v60  ;;  %v3961_v13 = vrot.slane %v9196_v29, 7 }
 0x2d5   :  { %v2877_v50 = vpop.f32.mrf.mxu1  ;;  %v12874_v36 = vpop.f32.mrf.mxu0  ;;  %18390 = vst [vmem:[#allocation15_spill] sm:$0xff] %v12878_v42 }
 0x2d6   :  { %v3960_v22 = vrot.slane %v2877_v50, 7  ;;  %v4216_v37 = vrot.slane %v12874_v36, 1 }
 0x2d7   :  { %v9199_v26 = vpop.f32.mrf.mxu1  ;;  %v12884_v20 = vpop.f32.mrf.mxu0  ;;  %9442 = vmatmul.mubr.msk.f32.gmra.mxu1 %vm92_vm1, %v12363_v53 }
 0x2d8   :  { %9444 = vmatprep.mubr.msk.f32.mxu1 %vm92_vm1, %v12366_v24  ;;  %v12894_v52 = vsel %vm1525_vm2, %v3960_v22, %v3961_v13  ;;  %v12898_v28 = vsel %vm1525_vm2, %v3959_v54, %v3960_v22  ;;  %v3963_v63 = vrot.slane %v9199_v26, 7 }
 0x2d9   :  { %v2887_v58 = vpop.f32.mrf.mxu1  ;;  %v12890_v44 = vpop.f32.mrf.mxu0  ;;  %18391 = vst [vmem:[#allocation16_spill] sm:$0xff] %v12894_v52  ;;  %v18171_v52 = vrot.slane %v12835_v16, 1 }
 0x2da   :  { %v3962_v33 = vrot.slane %v2887_v58, 7 }
 0x2db   :  { %v9202_v59 = vpop.f32.mrf.mxu1  ;;  %v12900_v0 = vpop.f32.mrf.mxu0  ;;  %9445 = vmatmul.mubr.msk.f32.gmra.mxu1 %vm92_vm1, %v12369_v57  ;;  %v13073_v18 = vsel %vm1782_vm4, %v18171_v52, %v4211_v4 }
 0x2dc   :  { %9447 = vmatprep.mubr.msk.f32.mxu1 %vm92_vm1, %v12388_v31  ;;  %v12910_v43 = vsel %vm1525_vm2, %v3962_v33, %v3963_v63  ;;  %v12914_v23 = vsel %vm1525_vm2, %v3961_v13, %v3962_v33  ;;  %v3965_v30 = vrot.slane %v9202_v59, 7  ;;  %18400 = vst [vmem:[#allocation25_spill] sm:$0xff] %v13073_v18 }
 0x2dd   :  { %v2897_v53 = vpop.f32.mrf.mxu1  ;;  %v12906_v24 = vpop.f32.mrf.mxu0  ;;  %18392 = vst [vmem:[#allocation17_spill] sm:$0xff] %v12910_v43  ;;  %v4212_v43 = vrot.slane %v12850_v46, 1  ;;  %v4215_v46 = vrot.slane %v12852_v45, 1 }
 0x2de   :  { %v3964_v32 = vrot.slane %v2897_v53, 7 }
 0x2df   :  { %v9205_v25 = vpop.f32.mrf.mxu1  ;;  %v12916_v51 = vpop.f32.mrf.mxu0  ;;  %9448 = vmatmul.mubr.msk.f32.gmra.mxu1 %vm92_vm1, %v12391_v17  ;;  %v4331_v45 = vsel %vm1782_vm4, %v4215_v46, %v4216_v37 }
 0x2e0   :  { %9450 = vmatprep.mubr.msk.f32.mxu1 %vm92_vm1, %v12400_v1  ;;  %v12926_v2 = vsel %vm1525_vm2, %v3964_v32, %v3965_v30  ;;  %v12930_v11 = vsel %vm1525_vm2, %v3963_v63, %v3964_v32  ;;  %v3967_v60 = vrot.slane %v9205_v25, 7 }
 0x2e1   :  { %v2907_v57 = vpop.f32.mrf.mxu1  ;;  %v12922_v31 = vpop.f32.mrf.mxu0  ;;  %18393 = vst [vmem:[#allocation18_spill] sm:$0xff] %v12926_v2 }
 0x2e2   :  { %v3966_v41 = vrot.slane %v2907_v57, 7  ;;  %v4222_v16 = vrot.slane %v12922_v31, 1  ;;  %v4221_v31 = vrot.slane %v12900_v0, 1  ;;  %v13131_v0 = vsel %vm23_vm3, %v12882_v27, 0.0 }
 0x2e3   :  { %v12932_v54 = vpop.f32.mrf.mxu1  ;;  %v12934_v29 = vpop.f32.mrf.mxu0  ;;  %9451 = vmatmul.mubr.msk.f32.gmra.mxu1 %vm92_vm1, %v12403_v48 }
 0x2e4   :  { %9453 = vmatprep.mubr.msk.f32.mxu1 %vm92_vm1, %v12406_v15  ;;  %v12944_v50 = vsel %vm1525_vm2, %v3966_v41, %v3967_v60  ;;  %v12948_v22 = vsel %vm1525_vm2, %v3965_v30, %v3966_v41  ;;  %v18168_v26 = vrot.slane %v12932_v54, 7 }
 0x2e5   :  { %v2917_v17 = vpop.f32.mrf.mxu1  ;;  %v12940_v1 = vpop.f32.mrf.mxu0  ;;  %18394 = vst [vmem:[#allocation19_spill] sm:$0xff] %v12944_v50 }
 0x2e6   :  { %v3968_v13 = vrot.slane %v2917_v17, 7 }
 0x2e7   :  { %v12951_v58 = vpop.f32.mrf.mxu1  ;;  %v12953_v48 = vpop.f32.mrf.mxu0  ;;  %9454 = vmatmul.mubr.msk.f32.gmra.mxu1 %vm92_vm1, %v12409_v55 }
 0x2e8   :  { %9456 = vmatprep.mubr.msk.f32.mxu1 %vm92_vm1, %v12412_v19  ;;  %v12967_v63 = vsel %vm1525_vm2, %v3968_v13, %v18168_v26  ;;  %v12971_v59 = vsel %vm1525_vm2, %v3967_v60, %v3968_v13 }
 0x2e9   :  { %v12959_v15 = vpop.f32.mrf.mxu1  ;;  %v12961_v33 = vpop.f32.mrf.mxu0  ;;  %18395 = vst [vmem:[#allocation20_spill] sm:$0xff] %v12967_v63 }
 0x2eb   :  { %v12973_v53 = vpop.f32.mrf.mxu1  ;;  %v12975_v55 = vpop.f32.mrf.mxu0  ;;  %9457 = vmatmul.mubr.msk.f32.gmra.mxu1 %vm92_vm1, %v12431_v47 }
 0x2ec   :  { %9459 = vmatprep.mubr.msk.f32.mxu1 %vm92_vm1, %v12434_v39 }
 0x2ed   :  { %v12981_v19 = vpop.f32.mrf.mxu1  ;;  %v12983_v32 = vpop.f32.mrf.mxu0 }
 0x2ef   :  { %v12985_v30 = vpop.f32.mrf.mxu1  ;;  %v12987_v25 = vpop.f32.mrf.mxu0  ;;  %9460 = vmatmul.mubr.msk.f32.gmra.mxu1 %vm92_vm1, %v12443_v9 }
 0x2f0   :  { %9462 = vmatprep.mubr.msk.f32.mxu1 %vm92_vm1, %v12446_v38 }
 0x2f1   :  { %v12993_v57 = vpop.f32.mrf.mxu1  ;;  %v12995_v47 = vpop.f32.mrf.mxu0 }
 0x2f3   :  { %v12997_v41 = vpop.f32.mrf.mxu1  ;;  %v12999_v39 = vpop.f32.mrf.mxu0  ;;  %9463 = vmatmul.mubr.msk.f32.gmra.mxu1 %vm92_vm1, %v12449_v56 }
 0x2f4   :  { %9465 = vmatprep.mubr.msk.f32.mxu1 %vm92_vm1, %v12452_v34 }
 0x2f5   :  { %v13005_v60 = vpop.f32.mrf.mxu1  ;;  %v13007_v9 = vpop.f32.mrf.mxu0 }
 0x2f7   :  { %v13009_v17 = vpop.f32.mrf.mxu1  ;;  %v13011_v38 = vpop.f32.mrf.mxu0  ;;  %9466 = vmatmul.mubr.msk.f32.gmra.mxu1 %vm92_vm1, %v12455_v49 }
 0x2f8   :  { %9468 = vmatprep.mubr.msk.f32.mxu1 %vm92_vm1, %v12478_v35 }
 0x2f9   :  { %v13017_v13 = vpop.f32.mrf.mxu1  ;;  %v13019_v56 = vpop.f32.mrf.mxu0 }
 0x2fb   :  { %v13021_v6 = vpop.f32.mrf.mxu1  ;;  %v13023_v34 = vpop.f32.mrf.mxu0  ;;  %9469 = vmatmul.mubr.msk.f32.gmra.mxu1 %vm92_vm1, %v12481_v3 }
 0x2fc   :  { %9471 = vmatprep.mubr.msk.f32.mxu1 %vm92_vm1, %v12488_v10 }
 0x2fd   :  { %v13029_v26 = vpop.f32.mrf.mxu1  ;;  %v13031_v49 = vpop.f32.mrf.mxu0 }
 0x2ff   :  { %v13033_v63 = vpop.f32.mrf.mxu1  ;;  %v13035_v35 = vpop.f32.mrf.mxu0  ;;  %9472 = vmatmul.mubr.msk.f32.gmra.mxu1 %vm92_vm1, %v12491_v62  ;;  %v4214_v62 = vrot.slane %v12858_v8, 1  ;;  %v4218_v8 = vrot.slane %v12890_v44, 1  ;;  %v4220_v44 = vrot.slane %v12906_v24, 1  ;;  %v13105_v24 = vsel %vm23_vm3, %v12866_v5, 0.0 }
 0x300   :  { %9474 = vmatprep.mubr.msk.f32.mxu1 %vm92_vm1, %v12494_v61 }
 0x301   :  { %v13041_v50 = vpop.f32.mrf.mxu1  ;;  %v13043_v3 = vpop.f32.mrf.mxu0  ;;  %v4333_v12 = vsel %vm1782_vm4, %v4213_v7, %v4214_v62  ;;  %v13092_v52 = vsel %vm1782_vm4, %v4214_v62, %v4215_v46  ;;  %v4224_v62 = vrot.slane %v12940_v1, 1  ;;  %v4325_v1 = vsel %vm1782_vm4, %v4221_v31, %v4222_v16 }
 0x302   :  { %18403 = vst [vmem:[#allocation29_spill] sm:$0xff] %v13092_v52  ;;  %v13122_v5 = vsel %vm26_vm5, %v4333_v12, 0.0  ;;  %v4226_v12 = vrot.slane %v12961_v33, 1  ;;  %v13159_v33 = vsel %vm23_vm3, %v12914_v23, 0.0 }
 0x303   :  { %v13045_v2 = vpop.f32.mrf.mxu1  ;;  %v13047_v10 = vpop.f32.mrf.mxu0  ;;  %9475 = vmatmul.mubr.msk.f32.gmra.mxu1 %vm92_vm1, %v12469_v21  ;;  %v4335_v21 = vsel %vm1782_vm4, %v4211_v4, %v4212_v43  ;;  %v13088_v4 = vsel %vm1782_vm4, %v4212_v43, %v4213_v7  ;;  %v4219_v7 = vrot.slane %v12884_v20, 1  ;;  %v13126_v20 = vsel %vm26_vm5, %v4331_v45, 0.0 }
 0x304   :  { %18396 = vst [vmem:[#allocation22_spill] sm:$0xff] %v13045_v2  ;;  %18397 = vst [vmem:[#allocation21_spill] sm:$0xff] %v13047_v10 }
 0x305   :  { %v13054_v42 = vpop.f32.mrf.mxu1  ;;  %v13056_v61 = vpop.f32.mrf.mxu0  ;;  %18406 = vst [vmem:[#allocation27_spill] sm:$0xff] %v13126_v20 }
 0x307   :  { %v13061_v10 = vpop.f32.mrf.mxu1  ;;  %v13063_v2 = vpop.f32.mrf.mxu0 }
 0x308   :  { %18398 = vst [vmem:[#allocation24_spill] sm:$0xff] %v13061_v10  ;;  %18399 = vst [vmem:[#allocation23_spill] sm:$0xff] %v13063_v2  ;;  %v4217_v2 = vrot.slane %v12868_v40, 1 }
 0x309   :  { %v13077_v36 = vpop.f32.mrf.mxu1  ;;  %v13079_v10 = vpop.f32.mrf.mxu0 }
 0x30a   :  { %18401 = vst [vmem:[#allocation26_spill] sm:$0xff] %v13077_v36  ;;  %18402 = vst [vmem:[#allocation28_spill] sm:$0xff] %v13079_v10  ;;  %v13100_v10 = vsel %vm26_vm5, %v4335_v21, 0.0  ;;  %v4329_v43 = vsel %vm1782_vm4, %v4217_v2, %v4218_v8  ;;  %v13114_v46 = vsel %vm1782_vm4, %v4216_v37, %v4217_v2  ;;  %v4327_v37 = vsel %vm1782_vm4, %v4219_v7, %v4220_v44 }
 0x30b   :  { %v13094_v18 = vpop.f32.mrf.mxu1  ;;  %v13096_v36 = vpop.f32.mrf.mxu0  ;;  %18405 = vst [vmem:[#allocation31_spill] sm:$0xff] %v13114_v46  ;;  %v4223_v2 = vrot.slane %v12916_v51, 1  ;;  %v13141_v46 = vsel %vm1782_vm4, %v4218_v8, %v4219_v7  ;;  %v13149_v27 = vsel %vm26_vm5, %v4329_v43, 0.0  ;;  %v13154_v51 = vsel %vm23_vm3, %v12898_v28, 0.0 }
 0x30c   :  { %18407 = vst [vmem:[#allocation32_spill] sm:$0xff] %v13141_v46  ;;  %18408 = vst [vmem:[#allocation30_spill] sm:$0xff] %v13149_v27  ;;  %v13163_v8 = vsel %vm1782_vm4, %v4220_v44, %v4221_v31  ;;  %v4225_v7 = vrot.slane %v12934_v29, 1  ;;  %v3970_v46 = vrot.slane %v12959_v15, 7  ;;  %v13179_v23 = vsel %vm26_vm5, %v4327_v37, 0.0 }
 0x30d   :  { %v13116_v21 = vpop.f32.mrf.mxu1  ;;  %v13118_v52 = vpop.f32.mrf.mxu0  ;;  %18409 = vst [vmem:[#allocation34_spill] sm:$0xff] %v13154_v51  ;;  %18410 = vst [vmem:[#allocation35_spill] sm:$0xff] %v13163_v8  ;;  %v4323_v43 = vsel %vm1782_vm4, %v4223_v2, %v4224_v62  ;;  %v13171_v28 = vsel %vm1782_vm4, %v4222_v16, %v4223_v2  ;;  %v13183_v29 = vsel %vm26_vm5, %v4325_v1, 0.0  ;;  %v13188_v15 = vsel %vm23_vm3, %v12930_v11, 0.0 }
 0x30e   :  { %18411 = vst [vmem:[#allocation33_spill] sm:$0xff] %v13171_v28  ;;  %v4321_v16 = vsel %vm1782_vm4, %v4225_v7, %v4226_v12  ;;  %v3972_v44 = vrot.slane %v12981_v19, 7  ;;  %v4228_v31 = vrot.slane %v12983_v32, 1  ;;  %v13197_v37 = vsel %vm23_vm3, %v12948_v22, 0.0 }
 0x30f   :  { %v13143_v45 = vpop.f32.mrf.mxu1  ;;  %v13145_v20 = vpop.f32.mrf.mxu0  ;;  %18412 = vst [vmem:[#allocation36_spill] sm:$0xff] %v13197_v37  ;;  %v13201_v2 = vsel %vm1782_vm4, %v4224_v62, %v4225_v7  ;;  %v3971_v1 = vrot.slane %v12951_v58, 7  ;;  %v4227_v11 = vrot.slane %v12953_v48, 1  ;;  %v13211_v19 = vsel %vm26_vm5, %v4323_v43, 0.0 }
 0x310   :  { %18413 = vst [vmem:[#allocation37_spill] sm:$0xff] %v13201_v2  ;;  %v3974_v32 = vrot.slane %v12993_v57, 7  ;;  %v4230_v22 = vrot.slane %v12995_v47, 1  ;;  %v13218_v62 = vsel %vm23_vm3, %v12971_v59, 0.0  ;;  %v18414_v58 = vrot.slane %v12932_v54, 7 }
 0x311   :  { %v13173_v51 = vpop.f32.mrf.mxu1  ;;  %v13175_v27 = vpop.f32.mrf.mxu0  ;;  %v3973_v7 = vrot.slane %v12973_v53, 7  ;;  %v4229_v2 = vrot.slane %v12975_v55, 1  ;;  %v13232_v57 = vsel %vm26_vm5, %v4321_v16, 0.0  ;;  %v13236_v59 = vsel %vm1525_vm2, %v3970_v46, %v3971_v1 }
 0x312   :  { %v4065_v48 = vsel %vm1525_vm2, %v18414_v58, %v3970_v46  ;;  %18415 = vst [vmem:[#allocation38_spill] sm:$0xff] %v13232_v57  ;;  %18416 = vst [vmem:[#allocation39_spill] sm:$0xff] %v13236_v59  ;;  %v4319_v54 = vsel %vm1782_vm4, %v4227_v11, %v4228_v31  ;;  %v4232_v47 = vrot.slane %v13007_v9, 1  ;;  %v13243_v53 = vsel %vm1782_vm4, %v4226_v12, %v4227_v11 }
 0x313   :  { %v13205_v28 = vpop.f32.mrf.mxu1  ;;  %v13207_v8 = vpop.f32.mrf.mxu0  ;;  %18417 = vst [vmem:[#allocation40_spill] sm:$0xff] %v13243_v53  ;;  %v4063_v55 = vsel %vm1525_vm2, %v3971_v1, %v3972_v44  ;;  %v3975_v58 = vrot.slane %v12985_v30, 7  ;;  %v4231_v16 = vrot.slane %v12987_v25, 1  ;;  %v3976_v57 = vrot.slane %v13005_v60, 7 }
 0x314   :  { %v13256_v9 = vsel %vm23_vm3, %v4065_v48, 0.0  ;;  %v4317_v12 = vsel %vm1782_vm4, %v4229_v2, %v4230_v22  ;;  %v4234_v11 = vrot.slane %v13019_v56, 1  ;;  %v13263_v30 = vsel %vm1525_vm2, %v3972_v44, %v3973_v7 }
 0x315   :  { %v13226_v43 = vpop.f32.mrf.mxu1  ;;  %v13228_v37 = vpop.f32.mrf.mxu0  ;;  %18418 = vst [vmem:[#allocation41_spill] sm:$0xff] %v13256_v9  ;;  %18419 = vst [vmem:[#allocation42_spill] sm:$0xff] %v13263_v30  ;;  %v4061_v25 = vsel %vm1525_vm2, %v3973_v7, %v3974_v32  ;;  %v3977_v60 = vrot.slane %v12997_v41, 7  ;;  %v13274_v48 = vsel %vm26_vm5, %v4319_v54, 0.0  ;;  %v13278_v56 = vsel %vm23_vm3, %v4063_v55, 0.0 }
 0x316   :  { %18420 = vst [vmem:[#allocation43_spill] sm:$0xff] %v13274_v48  ;;  %v13282_v44 = vsel %vm1782_vm4, %v4228_v31, %v4229_v2  ;;  %v4233_v7 = vrot.slane %v12999_v39, 1  ;;  %v4315_v41 = vsel %vm1782_vm4, %v4231_v16, %v4232_v47  ;;  %v3978_v30 = vrot.slane %v13017_v13, 7  ;;  %v8102_v2 = vld [vmem:[%s18117_s1 + $0x18] sm:$0xf] }
 0x317   :  { %v13250_v46 = vpop.f32.mrf.mxu1  ;;  %v13252_v59 = vpop.f32.mrf.mxu0  ;;  %18421 = vst [vmem:[#allocation44_spill] sm:$0xff] %v13282_v44  ;;  %v13290_v9 = vsel %vm1525_vm2, %v3974_v32, %v3975_v58  ;;  %v13298_v55 = vsel %vm26_vm5, %v4317_v12, 0.0  ;;  %v13302_v39 = vsel %vm23_vm3, %v4061_v25, 0.0  ;;  %v13306_v31 = vsel %vm1782_vm4, %v4230_v22, %v4231_v16  ;;  %9477 = vmatprep.subr.msk.mxu0 %vm285_vm0, %v8102_v2 }
 0x318   :  { %18422 = vst [vmem:[#allocation45_spill] sm:$0xff] %v13298_v55  ;;  %18423 = vst [vmem:[#allocation46_spill] sm:$0xff] %v13302_v39  ;;  %v4059_v13 = vsel %vm1525_vm2, %v3975_v58, %v3976_v57  ;;  %v3979_v32 = vrot.slane %v13009_v17, 7  ;;  %v4313_v12 = vsel %vm1782_vm4, %v4233_v7, %v4234_v11  ;;  %v3980_v44 = vrot.slane %v13029_v26, 7  ;;  %9478 = vmatpush3.msk.msra.mxu0 %vm285_vm0, %v8102_v2 }
 0x319   :  { %v13268_v1 = vpop.f32.mrf.mxu1  ;;  %v13270_v53 = vpop.f32.mrf.mxu0  ;;  %18424 = vst [vmem:[#allocation47_spill] sm:$0xff] %v13306_v31  ;;  %v4236_v25 = vrot.slane %v13031_v49, 1  ;;  %v4235_v22 = vrot.slane %v13011_v38, 1  ;;  %v13326_v31 = vsel %vm26_vm5, %v4315_v41, 0.0  ;;  %v13330_v17 = vsel %vm1525_vm2, %v3976_v57, %v3977_v60 }
 0x31a   :  { %18425 = vst [vmem:[#allocation48_spill] sm:$0xff] %v13326_v31  ;;  %18426 = vst [vmem:[#allocation49_spill] sm:$0xff] %v13330_v17  ;;  %v13334_v26 = vsel %vm1782_vm4, %v4232_v47, %v4233_v7  ;;  %v3982_v38 = vrot.slane %v13041_v50, 7  ;;  %v4238_v49 = vrot.slane %v13043_v3, 1  ;;  %v13341_v39 = vsel %vm23_vm3, %v4059_v13, 0.0 }
 0x31b   :  { %v13292_v54 = vpop.f32.mrf.mxu1  ;;  %v13294_v48 = vpop.f32.mrf.mxu0  ;;  %18427 = vst [vmem:[#allocation50_spill] sm:$0xff] %v13334_v26  ;;  %18428 = vst [vmem:[#allocation51_spill] sm:$0xff] %v13341_v39  ;;  %v4057_v41 = vsel %vm1525_vm2, %v3977_v60, %v3978_v30  ;;  %v3981_v57 = vrot.slane %v13021_v6, 7  ;;  %v4237_v17 = vrot.slane %v13023_v34, 1  ;;  %v13353_v50 = vsel %vm26_vm5, %v4313_v12, 0.0 }
 0x31c   :  { %18429 = vst [vmem:[#allocation52_spill] sm:$0xff] %v13353_v50  ;;  %v13357_v3 = vsel %vm1525_vm2, %v3978_v30, %v3979_v32  ;;  %v4311_v7 = vsel %vm1782_vm4, %v4235_v22, %v4236_v25  ;;  %v4240_v60 = vrot.slane %v13056_v61, 1  ;;  %v13364_v6 = vsel %vm1782_vm4, %v4234_v11, %v4235_v22  ;;  %v18433_v22 = vld [vmem:[#allocation28_spill] sm:$0xff] }
 0x31d   :  { %v13320_v16 = vpop.f32.mrf.mxu1  ;;  %v13322_v58 = vpop.f32.mrf.mxu0  ;;  %18430 = vst [vmem:[#allocation53_spill] sm:$0xff] %v13357_v3  ;;  %18431 = vst [vmem:[#allocation54_spill] sm:$0xff] %v13364_v6  ;;  %v4055_v34 = vsel %vm1525_vm2, %v3979_v32, %v3980_v44  ;;  %v3983_v13 = vrot.slane %v13033_v63, 7  ;;  %v4239_v2 = vrot.slane %v13035_v35, 1  ;;  %v3984_v12 = vrot.slane %v13054_v42, 7  ;;  %v18435_v35 = vld [vmem:[#allocation22_spill] sm:$0xff] }
 0x31e   :  { %v13377_v61 = vsel %vm23_vm3, %v4057_v41, 0.0  ;;  %v4309_v11 = vsel %vm1782_vm4, %v4237_v17, %v4238_v49  ;;  %v4242_v6 = vrot.slane %v18433_v22, 1  ;;  %v13384_v63 = vsel %vm1525_vm2, %v3980_v44, %v3981_v57 }
 0x31f   :  { %v13347_v31 = vpop.f32.mrf.mxu1  ;;  %v13349_v47 = vpop.f32.mrf.mxu0  ;;  %18432 = vst [vmem:[#allocation55_spill] sm:$0xff] %v13377_v61  ;;  %18434 = vst [vmem:[#allocation56_spill] sm:$0xff] %v13384_v63  ;;  %v4053_v42 = vsel %vm1525_vm2, %v3981_v57, %v3982_v38  ;;  %v3985_v32 = vrot.slane %v18435_v35, 7  ;;  %v13395_v41 = vsel %vm26_vm5, %v4311_v7, 0.0  ;;  %v13399_v22 = vsel %vm23_vm3, %v4055_v34, 0.0  ;;  %v18439_v63 = vld [vmem:[#allocation21_spill] sm:$0xff] }
 0x320   :  { %18436 = vst [vmem:[#allocation57_spill] sm:$0xff] %v13395_v41  ;;  %18437 = vst [vmem:[#allocation58_spill] sm:$0xff] %v13399_v22  ;;  %v13403_v44 = vsel %vm1782_vm4, %v4236_v25, %v4237_v17  ;;  %v4241_v57 = vrot.slane %v18439_v63, 1  ;;  %v4307_v35 = vsel %vm1782_vm4, %v4239_v2, %v4240_v60  ;;  %v18440_v61 = vld [vmem:[#allocation26_spill] sm:$0xff]  ;;  %v13411_v55 = vsel %vm1525_vm2, %v3982_v38, %v3983_v13  ;;  %v18446_v22 = vld [vmem:[#allocation23_spill] sm:$0xff] }
 0x321   :  { %v13371_v30 = vpop.f32.mrf.mxu1  ;;  %v13373_v3 = vpop.f32.mrf.mxu0  ;;  %18438 = vst [vmem:[#allocation59_spill] sm:$0xff] %v13403_v44  ;;  %v3986_v39 = vrot.slane %v18440_v61, 7  ;;  %18441 = vst [vmem:[#allocation60_spill] sm:$0xff] %v13411_v55  ;;  %v13419_v34 = vsel %vm26_vm5, %v4309_v11, 0.0  ;;  %v13423_v25 = vsel %vm23_vm3, %v4053_v42, 0.0  ;;  %v13427_v17 = vsel %vm1782_vm4, %v4238_v49, %v4239_v2  ;;  %v18445_v61 = vld [vmem:[#allocation24_spill] sm:$0xff] }
 0x322   :  { %18442 = vst [vmem:[#allocation5_spill] sm:$0xff] %v13419_v34  ;;  %18443 = vst [vmem:[#allocation6_spill] sm:$0xff] %v13423_v25  ;;  %v4051_v38 = vsel %vm1525_vm2, %v3983_v13, %v3984_v12  ;;  %v3987_v63 = vrot.slane %v18445_v61, 7  ;;  %v4305_v55 = vsel %vm1782_vm4, %v4241_v57, %v4242_v6  ;;  %v3988_v44 = vrot.slane %v13116_v21, 7 }
 0x323   :  { %v13389_v26 = vpop.f32.mrf.mxu1  ;;  %v13391_v50 = vpop.f32.mrf.mxu0  ;;  %18444 = vst [vmem:[#allocation8_spill] sm:$0xff] %v13427_v17  ;;  %v4244_v11 = vrot.slane %v13118_v52, 1  ;;  %v4243_v34 = vrot.slane %v18446_v22, 1  ;;  %v13443_v49 = vsel %vm26_vm5, %v4307_v35, 0.0  ;;  %v13447_v13 = vsel %vm1525_vm2, %v3984_v12, %v3985_v32 }
 0x324   :  { %18447 = vst [vmem:[#allocation7_spill] sm:$0xff] %v13447_v13  ;;  %v13451_v2 = vsel %vm1782_vm4, %v4240_v60, %v4241_v57  ;;  %v3990_v52 = vrot.slane %v13173_v51, 7  ;;  %v4246_v21 = vrot.slane %v13175_v27, 1  ;;  %v13457_v22 = vsel %vm23_vm3, %v4051_v38, 0.0 }
 0x325   :  { %v13413_v7 = vpop.f32.mrf.mxu1  ;;  %v13415_v41 = vpop.f32.mrf.mxu0  ;;  %18448 = vst [vmem:[#allocation9_spill] sm:$0xff] %v13451_v2  ;;  %v4049_v35 = vsel %vm1525_vm2, %v3985_v32, %v3986_v39  ;;  %v3989_v61 = vrot.slane %v13094_v18, 7  ;;  %v4245_v12 = vrot.slane %v13096_v36, 1  ;;  %v13469_v51 = vsel %vm26_vm5, %v4305_v55, 0.0 }
 0x326   :  { %v13473_v27 = vsel %vm1525_vm2, %v3986_v39, %v3987_v63  ;;  %v4303_v60 = vsel %vm1782_vm4, %v4243_v34, %v4244_v11  ;;  %v4248_v32 = vrot.slane %v13228_v37, 1  ;;  %v13480_v18 = vsel %vm1782_vm4, %v4242_v6, %v4243_v34 }
 0x327   :  { %v13437_v42 = vpop.f32.mrf.mxu1  ;;  %v13439_v25 = vpop.f32.mrf.mxu0  ;;  %18449 = vst [vmem:[#allocation10_spill] sm:$0xff] %v13480_v18  ;;  %v4047_v36 = vsel %vm1525_vm2, %v3987_v63, %v3988_v44  ;;  %v3991_v57 = vrot.slane %v13143_v45, 7  ;;  %v4247_v55 = vrot.slane %v13145_v20, 1  ;;  %v3992_v38 = vrot.slane %v13226_v43, 7 }
 0x328   :  { %v13493_v37 = vsel %vm23_vm3, %v4049_v35, 0.0  ;;  %v4301_v6 = vsel %vm1782_vm4, %v4245_v12, %v4246_v21  ;;  %v4250_v34 = vrot.slane %v13270_v53, 1  ;;  %v13500_v45 = vsel %vm1525_vm2, %v3988_v44, %v3989_v61 }
 0x329   :  { %v13463_v13 = vpop.f32.mrf.mxu1  ;;  %v13465_v17 = vpop.f32.mrf.mxu0  ;;  %18450 = vst [vmem:[#allocation28_spill] sm:$0xff] %v13493_v37  ;;  %18451 = vst [vmem:[#allocation22_spill] sm:$0xff] %v13500_v45  ;;  %v4045_v20 = vsel %vm1525_vm2, %v3989_v61, %v3990_v52  ;;  %v3993_v43 = vrot.slane %v13205_v28, 7  ;;  %v13511_v35 = vsel %vm26_vm5, %v4303_v60, 0.0  ;;  %v13515_v53 = vsel %vm23_vm3, %v4047_v36, 0.0 }
 0x32a   :  { %18452 = vst [vmem:[#allocation21_spill] sm:$0xff] %v13511_v35  ;;  %v13519_v44 = vsel %vm1782_vm4, %v4244_v11, %v4245_v12  ;;  %v4249_v61 = vrot.slane %v13207_v8, 1  ;;  %v4299_v28 = vsel %vm1782_vm4, %v4247_v55, %v4248_v32  ;;  %v3994_v45 = vrot.slane %v13268_v1, 7 }
 0x32b   :  { %v13487_v39 = vpop.f32.mrf.mxu1  ;;  %v13489_v2 = vpop.f32.mrf.mxu0  ;;  %18453 = vst [vmem:[#allocation26_spill] sm:$0xff] %v13519_v44  ;;  %v13527_v37 = vsel %vm1525_vm2, %v3990_v52, %v3991_v57  ;;  %v13535_v36 = vsel %vm26_vm5, %v4301_v6, 0.0  ;;  %v13539_v8 = vsel %vm23_vm3, %v4045_v20, 0.0  ;;  %v13543_v11 = vsel %vm1782_vm4, %v4246_v21, %v4247_v55 }
 0x32c   :  { %18454 = vst [vmem:[#allocation24_spill] sm:$0xff] %v13527_v37  ;;  %18455 = vst [vmem:[#allocation23_spill] sm:$0xff] %v13539_v8  ;;  %v4043_v1 = vsel %vm1525_vm2, %v3991_v57, %v3992_v38  ;;  %v3995_v52 = vrot.slane %v13250_v46, 7  ;;  %v4297_v12 = vsel %vm1782_vm4, %v4249_v61, %v4250_v34  ;;  %v3996_v37 = vrot.slane %v13320_v16, 7 }
 0x32d   :  { %v13505_v63 = vpop.f32.mrf.mxu1  ;;  %v13507_v18 = vpop.f32.mrf.mxu0  ;;  %18456 = vst [vmem:[#allocation61_spill] sm:$0xff] %v13543_v11  ;;  %v4252_v6 = vrot.slane %v13322_v58, 1  ;;  %v4251_v44 = vrot.slane %v13252_v59, 1  ;;  %v13559_v21 = vsel %vm26_vm5, %v4299_v28, 0.0  ;;  %v13563_v46 = vsel %vm1525_vm2, %v3992_v38, %v3993_v43 }
 0x32e   :  { %18457 = vst [vmem:[#allocation62_spill] sm:$0xff] %v13563_v46  ;;  %v13567_v57 = vsel %vm1782_vm4, %v4248_v32, %v4249_v61  ;;  %v3998_v16 = vrot.slane %v13371_v30, 7  ;;  %v4254_v59 = vrot.slane %v13373_v3, 1  ;;  %v13573_v58 = vsel %vm23_vm3, %v4043_v1, 0.0 }
 0x32f   :  { %v13529_v60 = vpop.f32.mrf.mxu1  ;;  %v13531_v35 = vpop.f32.mrf.mxu0  ;;  %v4041_v55 = vsel %vm1525_vm2, %v3993_v43, %v3994_v45  ;;  %v3997_v28 = vrot.slane %v13292_v54, 7  ;;  %v4253_v38 = vrot.slane %v13294_v48, 1  ;;  %v13585_v30 = vsel %vm26_vm5, %v4297_v12, 0.0 }
 0x330   :  { %v13589_v3 = vsel %vm1525_vm2, %v3994_v45, %v3995_v52  ;;  %v4295_v32 = vsel %vm1782_vm4, %v4251_v44, %v4252_v6  ;;  %v4256_v43 = vrot.slane %v13415_v41, 1  ;;  %v13596_v48 = vsel %vm1782_vm4, %v4250_v34, %v4251_v44 }
 0x331   :  { %v13553_v20 = vpop.f32.mrf.mxu1  ;;  %v13555_v8 = vpop.f32.mrf.mxu0  ;;  %18458 = vst [vmem:[#allocation63_spill] sm:$0xff] %v13589_v3  ;;  %18459 = vst [vmem:[#allocation64_spill] sm:$0xff] %v13596_v48  ;;  %v4039_v54 = vsel %vm1525_vm2, %v3995_v52, %v3996_v37  ;;  %v3999_v61 = vrot.slane %v13347_v31, 7  ;;  %v4255_v1 = vrot.slane %v13349_v47, 1  ;;  %v4000_v12 = vrot.slane %v13413_v7, 7 }
 0x332   :  { %v13609_v41 = vsel %vm23_vm3, %v4041_v55, 0.0  ;;  %v4293_v34 = vsel %vm1782_vm4, %v4253_v38, %v4254_v59  ;;  %v4258_v44 = vrot.slane %v13465_v17, 1  ;;  %v13616_v31 = vsel %vm1525_vm2, %v3996_v37, %v3997_v28 }
 0x333   :  { %v13579_v11 = vpop.f32.mrf.mxu1  ;;  %v13581_v46 = vpop.f32.mrf.mxu0  ;;  %18460 = vst [vmem:[#allocation65_spill] sm:$0xff] %v13609_v41  ;;  %18461 = vst [vmem:[#allocation66_spill] sm:$0xff] %v13616_v31  ;;  %v4037_v47 = vsel %vm1525_vm2, %v3997_v28, %v3998_v16  ;;  %v4001_v7 = vrot.slane %v13389_v26, 7  ;;  %v13627_v55 = vsel %vm26_vm5, %v4295_v32, 0.0  ;;  %v13631_v17 = vsel %vm23_vm3, %v4039_v54, 0.0 }
 0x334   :  { %18462 = vst [vmem:[#allocation67_spill] sm:$0xff] %v13627_v55  ;;  %v13635_v37 = vsel %vm1782_vm4, %v4252_v6, %v4253_v38  ;;  %v4257_v28 = vrot.slane %v13391_v50, 1  ;;  %v4291_v26 = vsel %vm1782_vm4, %v4255_v1, %v4256_v43  ;;  %v4002_v31 = vrot.slane %v13463_v13, 7 }
 0x335   :  { %v13603_v45 = vpop.f32.mrf.mxu1  ;;  %v13605_v3 = vpop.f32.mrf.mxu0  ;;  %18463 = vst [vmem:[#allocation68_spill] sm:$0xff] %v13635_v37  ;;  %v13643_v41 = vsel %vm1525_vm2, %v3998_v16, %v3999_v61  ;;  %v13651_v54 = vsel %vm26_vm5, %v4293_v34, 0.0  ;;  %v13655_v50 = vsel %vm23_vm3, %v4037_v47, 0.0  ;;  %v13659_v6 = vsel %vm1782_vm4, %v4254_v59, %v4255_v1 }
 0x336   :  { %18464 = vst [vmem:[#allocation69_spill] sm:$0xff] %v13643_v41  ;;  %18465 = vst [vmem:[#allocation70_spill] sm:$0xff] %v13655_v50  ;;  %v4035_v13 = vsel %vm1525_vm2, %v3999_v61, %v4000_v12  ;;  %v4003_v16 = vrot.slane %v13437_v42, 7  ;;  %v4289_v38 = vsel %vm1782_vm4, %v4257_v28, %v4258_v44  ;;  %v4004_v37 = vrot.slane %v13505_v63, 7 }
 0x337   :  { %v13621_v52 = vpop.f32.mrf.mxu1  ;;  %v13623_v48 = vpop.f32.mrf.mxu0  ;;  %18466 = vst [vmem:[#allocation71_spill] sm:$0xff] %v13659_v6  ;;  %v4260_v34 = vrot.slane %v13507_v18, 1  ;;  %v4259_v41 = vrot.slane %v13439_v25, 1  ;;  %v13675_v59 = vsel %vm26_vm5, %v4291_v26, 0.0  ;;  %v13679_v42 = vsel %vm1525_vm2, %v4000_v12, %v4001_v7 }
 0x338   :  { %18467 = vst [vmem:[#allocation72_spill] sm:$0xff] %v13679_v42  ;;  %v13683_v61 = vsel %vm1782_vm4, %v4256_v43, %v4257_v28  ;;  %v4006_v18 = vrot.slane %v13553_v20, 7  ;;  %v4262_v25 = vrot.slane %v13555_v8, 1  ;;  %v13689_v63 = vsel %vm23_vm3, %v4035_v13, 0.0 }
 0x339   :  { %v13645_v32 = vpop.f32.mrf.mxu1  ;;  %v13647_v55 = vpop.f32.mrf.mxu0  ;;  %v4033_v1 = vsel %vm1525_vm2, %v4001_v7, %v4002_v31  ;;  %v4005_v26 = vrot.slane %v13487_v39, 7  ;;  %v4261_v12 = vrot.slane %v13489_v2, 1  ;;  %v13701_v20 = vsel %vm26_vm5, %v4289_v38, 0.0 }
 0x33a   :  { %v13705_v8 = vsel %vm1525_vm2, %v4002_v31, %v4003_v16  ;;  %v4287_v43 = vsel %vm1782_vm4, %v4259_v41, %v4260_v34  ;;  %v4264_v7 = vrot.slane %v13605_v3, 1  ;;  %v13712_v2 = vsel %vm1782_vm4, %v4258_v44, %v4259_v41 }
 0x33b   :  { %v13669_v47 = vpop.f32.mrf.mxu1  ;;  %v13671_v50 = vpop.f32.mrf.mxu0  ;;  %18468 = vst [vmem:[#allocation73_spill] sm:$0xff] %v13705_v8  ;;  %18469 = vst [vmem:[#allocation74_spill] sm:$0xff] %v13712_v2  ;;  %v4031_v39 = vsel %vm1525_vm2, %v4003_v16, %v4004_v37  ;;  %v4007_v28 = vrot.slane %v13529_v60, 7  ;;  %v4263_v13 = vrot.slane %v13531_v35, 1  ;;  %v4008_v38 = vrot.slane %v13603_v45, 7 }
 0x33c   :  { %v13725_v3 = vsel %vm23_vm3, %v4033_v1, 0.0  ;;  %v4285_v41 = vsel %vm1782_vm4, %v4261_v12, %v4262_v25  ;;  %v4266_v44 = vrot.slane %v13647_v55, 1  ;;  %v13732_v60 = vsel %vm1525_vm2, %v4004_v37, %v4005_v26 }
 0x33d   :  { %v13695_v42 = vpop.f32.mrf.mxu1  ;;  %v13697_v6 = vpop.f32.mrf.mxu0  ;;  %18470 = vst [vmem:[#allocation75_spill] sm:$0xff] %v13725_v3  ;;  %18471 = vst [vmem:[#allocation76_spill] sm:$0xff] %v13732_v60  ;;  %v4029_v35 = vsel %vm1525_vm2, %v4005_v26, %v4006_v18  ;;  %v4009_v45 = vrot.slane %v13579_v11, 7  ;;  %v13741_v1 = vsel %vm26_vm5, %v4287_v43, 0.0  ;;  %v13745_v2 = vsel %vm23_vm3, %v4031_v39, 0.0 }
 0x33e   :  { %v13749_v55 = vsel %vm1782_vm4, %v4260_v34, %v4261_v12  ;;  %v4265_v37 = vrot.slane %v13581_v46, 1  ;;  %v4283_v26 = vsel %vm1782_vm4, %v4263_v13, %v4264_v7  ;;  %v4010_v11 = vrot.slane %v13645_v32, 7 }
 0x33f   :  { %v13719_v31 = vpop.f32.mrf.mxu1  ;;  %v13721_v8 = vpop.f32.mrf.mxu0  ;;  %18472 = vst [vmem:[#allocation77_spill] sm:$0xff] %v13749_v55  ;;  %v13759_v43 = vsel %vm1525_vm2, %v4006_v18, %v4007_v28  ;;  %v13765_v39 = vsel %vm26_vm5, %v4285_v41, 0.0  ;;  %v13769_v46 = vsel %vm23_vm3, %v4029_v35, 0.0  ;;  %v13773_v34 = vsel %vm1782_vm4, %v4262_v25, %v4263_v13  ;;  %v13788_v25 = vld [vmem:[%s18119_s2 + $0x1] ss:$0 sm:$0xff] }
 0x340   :  { %18473 = vst [vmem:[#allocation78_spill] sm:$0xff] %v13759_v43  ;;  %18474 = vst [vmem:[#allocation79_spill] sm:$0xff] %v13773_v34  ;;  %v4027_v32 = vsel %vm1525_vm2, %v4007_v28, %v4008_v38  ;;  %v4011_v18 = vrot.slane %v13621_v52, 7  ;;  %v4281_v12 = vsel %vm1782_vm4, %v4265_v37, %v4266_v44  ;;  %v4268_v43 = vrot.slane %v13697_v6, 1 }
 0x341   :  { %v13737_v16 = vpop.f32.mrf.mxu1  ;;  %v13755_v60 = vpop.f32.mrf.mxu0  ;;  %v4267_v55 = vrot.slane %v13623_v48, 1  ;;  %v13792_v28 = vsel %vm26_vm5, %v4283_v26, 0.0  ;;  %v13796_v52 = vsel %vm1525_vm2, %v4008_v38, %v4009_v45  ;;  %v13800_v6 = vsel %vm1782_vm4, %v4264_v7, %v4265_v37 }
 0x342   :  { %18475 = vst [vmem:[#allocation80_spill] sm:$0xff] %v13792_v28  ;;  %18476 = vst [vmem:[#allocation81_spill] sm:$0xff] %v13796_v52  ;;  %v4013_v48 = vrot.slane %v13669_v47, 7  ;;  %v4012_v13 = vrot.slane %v13695_v42, 7  ;;  %v13808_v34 = vsel %vm23_vm3, %v4027_v32, 0.0  ;;  %v4025_v26 = vsel %vm1525_vm2, %v4009_v45, %v4010_v11  ;;  %v18483_v32 = vld [vmem:[#allocation11_spill] sm:$0xff] }
 0x343   :  { %v13761_v3 = vpop.f32.mrf.mxu1  ;;  %18477 = vst [vmem:[#allocation82_spill] sm:$0xff] %v13800_v6  ;;  %v13804_v41 = vpop.f32.mrf.mxu0  ;;  %18479 = vst [vmem:[#allocation84_spill] sm:$0xff] %v13808_v34  ;;  %v4269_v38 = vrot.slane %v13671_v50, 1  ;;  %v13815_v7 = vsel %vm26_vm5, %v4281_v12, 0.0  ;;  %v13819_v47 = vsel %vm1525_vm2, %v4010_v11, %v4011_v18  ;;  %v13823_v42 = vsel %vm1782_vm4, %v4266_v44, %v4267_v55  ;;  %v18491_v44 = vld [vmem:[#allocation12_spill] sm:$0xff] }
 0x344   :  { %18478 = vst [vmem:[#allocation83_spill] sm:$0xff] %v13804_v41  ;;  %18480 = vst [vmem:[#allocation85_spill] sm:$0xff] %v13815_v7  ;;  %v4279_v37 = vsel %vm1782_vm4, %v4267_v55, %v4268_v43  ;;  %v4270_v45 = vrot.slane %v13755_v60, 1  ;;  %v18484_v50 = vrot.slane %v18483_v32, 7  ;;  %v18485_v6 = vrot.slane %v13761_v3, 7  ;;  %v18488_v7 = vld [vmem:[#allocation14_spill] sm:$0xff] }
 0x345   :  { %v13783_v35 = vpop.f32.mrf.mxu1  ;;  %18481 = vst [vmem:[#allocation86_spill] sm:$0xff] %v13819_v47  ;;  %18482 = vst [vmem:[#allocation87_spill] sm:$0xff] %v13823_v42  ;;  %v4014_v47 = vrot.slane %v13737_v16, 7  ;;  %v13840_v55 = vsel %vm23_vm3, %v4025_v26, 0.0  ;;  %v4271_v60 = vrot.slane %v13721_v8, 1  ;;  %v13843_v32 = vpop.f32.mrf.mxu0  ;;  %v13855_v26 = vsel %vm26_vm5, %v4279_v37, 0.0 }
 0x346   :  { %v4081_v12 = vsel %vm1525_vm2, %v18485_v6, %v18484_v50  ;;  %18486 = vst [vmem:[#allocation11_spill] sm:$0xff] %v13840_v55  ;;  %18487 = vst [vmem:[#allocation88_spill] sm:$0xff] %v13843_v32  ;;  %v4023_v8 = vsel %vm1525_vm2, %v4011_v18, %v4012_v13  ;;  %v18493_v37 = vrot.slane %v13804_v41, 1  ;;  %v18174_v18 = vrot.slane %v13783_v35, 7 }
 0x347   :  { %v9383_v52 = vpop.f32.mrf.mxu1  ;;  %v4082_v16 = vsel %vm23_vm3, %v4081_v12, 0.0 }
 0x348   :  { %v3641_v34 = vadd.f32 %v9383_v52, %v13788_v25  ;;  %v13849_v52 = vsel %vm1525_vm2, %v4012_v13, %v4013_v48 }
 0x349   :  { %v3635_v42 = vpop.f32.mrf.mxu1  ;;  %18489 = vst [vmem:[#allocation14_spill] sm:$0xff] %v13849_v52  ;;  %v18492_v52 = vrot.slane %v18491_v44, 1 }
 0x34a   :  { %v4147_v28 = vadd.f32 %v18488_v7, %v3641_v34  ;;  %v3636_v6 = vadd.f32 %v13788_v25, %v3635_v42  ;;  %v13861_v34 = vsel %vm1782_vm4, %v4268_v43, %v4269_v38  ;;  %v4277_v7 = vsel %vm1782_vm4, %v4269_v38, %v4270_v45 }
 0x34b   :  { %v9386_v50 = vpop.f32.mrf.mxu1  ;;  %18490 = vst [vmem:[#allocation89_spill] sm:$0xff] %v13861_v34  ;;  %v4337_v55 = vsel %vm1782_vm4, %v18493_v37, %v18492_v52  ;;  %v18173_v43 = vrot.slane %v13843_v32, 1  ;;  %v4021_v38 = vsel %vm1525_vm2, %v4013_v48, %v4014_v47  ;;  %v13882_v41 = vsel %vm26_vm5, %v4277_v7, 0.0 }
 0x34c   :  { %v4403_v42 = vadd.f32 %v13100_v10, %v4147_v28  ;;  %v4146_v11 = vadd.f32 %v4082_v16, %v3636_v6  ;;  %v3651_v12 = vadd.f32 %v9386_v50, %v13788_v25  ;;  %v18494_v10 = vld [vmem:[#allocation25_spill] sm:$0xff]  ;;  %v13886_v52 = vsel %vm23_vm3, %v4023_v8, 0.0 }
 0x34d   :  { %v3645_v13 = vpop.f32.mrf.mxu1  ;;  %v18495_v6 = vld [vmem:[#allocation13_spill] sm:$0xff]  ;;  %v18496_v37 = vrot.slane %v13719_v31, 7  ;;  %v13906_v8 = vsel %vm1782_vm4, %v4271_v60, %v18173_v43 }
 0x34e   :  { %v4467_v34 = vmul.f32 0.01, %v4403_v42  ;;  %v4402_v28 = vadd.f32 %v18494_v10, %v4146_v11  ;;  %v4149_v16 = vadd.f32 %v18495_v6, %v3651_v12  ;;  %v3646_v44 = vadd.f32 %v13788_v25, %v3645_v13 }
 0x34f   :  { %v9389_v50 = vpop.f32.mrf.mxu1  ;;  %v13892_v48 = vsel %vm1525_vm2, %v4014_v47, %v18496_v37  ;;  %v13896_v11 = vsel %vm1782_vm4, %v4270_v45, %v4271_v60  ;;  %v13911_v45 = vsel %vm23_vm3, %v4021_v38, 0.0  ;;  %v18503_v60 = vrot.slane %v13761_v3, 7 }
 0x350   :  { %18497 = vst [vmem:[#allocation12_spill] sm:$0xff] %v13892_v48  ;;  %18498 = vst [vmem:[#allocation25_spill] sm:$0xff] %v13896_v11  ;;  %v13898_v12 = vmax.f32 %v4403_v42, %v4467_v34  ;;  %v4466_v13 = vmul.f32 0.01, %v4402_v28  ;;  %v4405_v7 = vadd.f32 %v13122_v5, %v4149_v16  ;;  %v4148_v10 = vadd.f32 %v13105_v24, %v3646_v44  ;;  %v18505_v44 = vld [vmem:[#allocation15_spill] sm:$0xff] }
 0x351   :  { %v3661_v47 = vadd.f32 %v9389_v50, %v13788_v25  ;;  %v3655_v6 = vpop.f32.mrf.mxu1  ;;  %18500 = vst [vmem:[#allocation90_spill] sm:$0xff] %v13911_v45  ;;  %v13915_v34 = vsel %vm26_vm5, %v4337_v55, 0.0  ;;  %v13927_v16 = vsel %vm1525_vm2, %v18174_v18, %v18503_v60 }
 0x352   :  { %18499 = vst [vmem:[#allocation13_spill] sm:$0xff] %v13898_v12  ;;  %18501 = vst [vmem:[#allocation91_spill] sm:$0xff] %v13915_v34  ;;  %v4729_v24 = vmul.f32 %v13898_v12, %v13898_v12  ;;  %v13919_v5 = vmax.f32 %v4402_v28, %v4466_v13  ;;  %v4469_v42 = vmul.f32 0.01, %v4405_v7  ;;  %v4595_v38 = vsel %vm92_vm1, %v13898_v12, 0.0  ;;  %v18507_v12 = vld [vmem:[#allocation27_spill] sm:$0xff] }
 0x353   :  { %18504 = vst [vmem:[#allocation93_spill] sm:$0xff] %v13927_v16  ;;  %v4404_v55 = vadd.f32 %v13088_v4, %v4148_v10  ;;  %v4151_v50 = vadd.f32 %v18505_v44, %v3661_v47  ;;  %v3656_v37 = vadd.f32 %v13788_v25, %v3655_v6  ;;  %v9392_v28 = vpop.f32.mrf.mxu1 }
 0x354   :  { %18502 = vst [vmem:[#allocation92_spill] sm:$0xff] %v13919_v5  ;;  %v4793_v13 = vsel %vm92_vm1, %v4729_v24, 0.0  ;;  %v4594_v3 = vsel %vm92_vm1, %v13919_v5, 0.0  ;;  %v4728_v43 = vmul.f32 %v13919_v5, %v13919_v5  ;;  %v13939_v60 = vmax.f32 %v4405_v7, %v4469_v42 }
 0x355   :  { %v4596_v18 = vadd.f32 %v4595_v38, %v4594_v3  ;;  %v4468_v32 = vmul.f32 0.01, %v4404_v55  ;;  %v4407_v34 = vadd.f32 %v18507_v12, %v4151_v50  ;;  %v4150_v4 = vadd.f32 %v13131_v0, %v3656_v37  ;;  %v3665_v10 = vpop.f32.mrf.mxu1  ;;  %v18509_v38 = vld [vmem:[#allocation29_spill] sm:$0xff]  ;;  %v18510_v50 = vld [vmem:[#allocation16_spill] sm:$0xff] }
 0x356   :  { %18506 = vst [vmem:[#allocation15_spill] sm:$0xff] %v13939_v60  ;;  %v4792_v47 = vsel %vm92_vm1, %v4728_v43, 0.0  ;;  %v4599_v6 = vsel %vm92_vm1, %v13939_v60, 0.0  ;;  %v4731_v24 = vmul.f32 %v13939_v60, %v13939_v60  ;;  %v3671_v44 = vadd.f32 %v9392_v28, %v13788_v25 }
 0x357   :  { %v4794_v5 = vadd.f32 %v4793_v13, %v4792_v47  ;;  %v13949_v7 = vmax.f32 %v4404_v55, %v4468_v32  ;;  %v4471_v42 = vmul.f32 0.01, %v4407_v34  ;;  %v4406_v3 = vadd.f32 %v18509_v38, %v4150_v4  ;;  %v9395_v12 = vpop.f32.mrf.mxu1  ;;  %v18511_v47 = vld [vmem:[#allocation30_spill] sm:$0xff] }
 0x358   :  { %v4797_v0 = vsel %vm92_vm1, %v4731_v24, 0.0  ;;  %v4153_v37 = vadd.f32 %v18510_v50, %v3671_v44  ;;  %v3666_v43 = vadd.f32 %v13788_v25, %v3665_v10  ;;  %v3681_v11 = vadd.f32 %v9395_v12, %v13788_v25  ;;  %v18512_v24 = vld [vmem:[#allocation34_spill] sm:$0xff]  ;;  %v18513_v44 = vld [vmem:[#allocation17_spill] sm:$0xff] }
 0x359   :  { %18508 = vst [vmem:[#allocation27_spill] sm:$0xff] %v13949_v7  ;;  %v4597_v60 = vsel %vm92_vm1, %v13949_v7, 0.0  ;;  %v4730_v28 = vmul.f32 %v13949_v7, %v13949_v7  ;;  %v13960_v32 = vmax.f32 %v4407_v34, %v4471_v42  ;;  %v4470_v55 = vmul.f32 0.01, %v4406_v3  ;;  %v3675_v13 = vpop.f32.mrf.mxu1 }
 0x35a   :  { %v4598_v4 = vadd.f32 %v4597_v60, %v4596_v18  ;;  %v4409_v38 = vadd.f32 %v18511_v47, %v4153_v37  ;;  %v4152_v16 = vadd.f32 %v18512_v24, %v3666_v43  ;;  %v4155_v50 = vadd.f32 %v18513_v44, %v3681_v11  ;;  %v18515_v60 = vld [vmem:[#allocation31_spill] sm:$0xff] }
 0x35b   :  { %v4795_v10 = vsel %vm92_vm1, %v4730_v28, 0.0  ;;  %v4603_v12 = vsel %vm92_vm1, %v13960_v32, 0.0  ;;  %v4733_v45 = vmul.f32 %v13960_v32, %v13960_v32  ;;  %v13970_v7 = vmax.f32 %v4406_v3, %v4470_v55  ;;  %v9398_v34 = vpop.f32.mrf.mxu1 }
 0x35c   :  { %v4600_v42 = vadd.f32 %v4599_v6, %v4598_v4  ;;  %v4796_v48 = vadd.f32 %v4795_v10, %v4794_v5  ;;  %v4473_v18 = vmul.f32 0.01, %v4409_v38  ;;  %v4408_v37 = vadd.f32 %v18515_v60, %v4152_v16 }
 0x35d   :  { %18514 = vst [vmem:[#allocation29_spill] sm:$0xff] %v13970_v7  ;;  %v4801_v43 = vsel %vm92_vm1, %v4733_v45, 0.0  ;;  %v4601_v11 = vsel %vm92_vm1, %v13970_v7, 0.0  ;;  %v4732_v28 = vmul.f32 %v13970_v7, %v13970_v7  ;;  %v4411_v47 = vadd.f32 %v13179_v23, %v4155_v50  ;;  %v3685_v24 = vpop.f32.mrf.mxu1 }
 0x35e   :  { %v4798_v44 = vadd.f32 %v4797_v0, %v4796_v48  ;;  %v4602_v3 = vadd.f32 %v4601_v11, %v4600_v42  ;;  %v13979_v55 = vmax.f32 %v4409_v38, %v4473_v18  ;;  %v4472_v6 = vmul.f32 0.01, %v4408_v37  ;;  %v18519_v42 = vld [vmem:[#allocation18_spill] sm:$0xff] }
 0x35f   :  { %v4799_v5 = vsel %vm92_vm1, %v4732_v28, 0.0  ;;  %v4475_v4 = vmul.f32 0.01, %v4411_v47  ;;  %v3676_v16 = vadd.f32 %v13788_v25, %v3675_v13  ;;  %v3691_v45 = vadd.f32 %v9398_v34, %v13788_v25  ;;  %v9401_v10 = vpop.f32.mrf.mxu1 }
 0x360   :  { %18516 = vst [vmem:[#allocation16_spill] sm:$0xff] %v13979_v55  ;;  %v4800_v60 = vadd.f32 %v4799_v5, %v4798_v44  ;;  %v4607_v7 = vsel %vm92_vm1, %v13979_v55, 0.0  ;;  %v4735_v23 = vmul.f32 %v13979_v55, %v13979_v55  ;;  %v13988_v48 = vmax.f32 %v4408_v37, %v4472_v6 }
 0x361   :  { %v4604_v0 = vadd.f32 %v4603_v12, %v4602_v3  ;;  %v13990_v38 = vmax.f32 %v4411_v47, %v4475_v4  ;;  %v4154_v50 = vadd.f32 %v13159_v33, %v3676_v16  ;;  %v4157_v18 = vadd.f32 %v18519_v42, %v3691_v45  ;;  %v3695_v13 = vpop.f32.mrf.mxu1  ;;  %v18520_v33 = vld [vmem:[#allocation32_spill] sm:$0xff] }
 0x362   :  { %18517 = vst [vmem:[#allocation30_spill] sm:$0xff] %v13988_v48  ;;  %v4805_v34 = vsel %vm92_vm1, %v4735_v23, 0.0  ;;  %v4605_v11 = vsel %vm92_vm1, %v13988_v48, 0.0  ;;  %v4734_v28 = vmul.f32 %v13988_v48, %v13988_v48  ;;  %v4802_v44 = vadd.f32 %v4801_v43, %v4800_v60 }
 0x363   :  { %18518 = vst [vmem:[#allocation34_spill] sm:$0xff] %v13990_v38  ;;  %v4606_v5 = vadd.f32 %v4605_v11, %v4604_v0  ;;  %v4611_v12 = vsel %vm92_vm1, %v13990_v38, 0.0  ;;  %v4737_v37 = vmul.f32 %v13990_v38, %v13990_v38  ;;  %v4410_v47 = vadd.f32 %v18520_v33, %v4154_v50  ;;  %v9404_v3 = vpop.f32.mrf.mxu1  ;;  %v18521_v38 = vld [vmem:[#allocation19_spill] sm:$0xff] }
 0x364   :  { %v4803_v6 = vsel %vm92_vm1, %v4734_v28, 0.0  ;;  %v4413_v4 = vadd.f32 %v13183_v29, %v4157_v18  ;;  %v3686_v16 = vadd.f32 %v13788_v25, %v3685_v24  ;;  %v3701_v45 = vadd.f32 %v9401_v10, %v13788_v25 }
 0x365   :  { %v4804_v23 = vadd.f32 %v4803_v6, %v4802_v44  ;;  %v4809_v43 = vsel %vm92_vm1, %v4737_v37, 0.0  ;;  %v4474_v60 = vmul.f32 0.01, %v4410_v47  ;;  %v4608_v0 = vadd.f32 %v4607_v7, %v4606_v5  ;;  %v3705_v42 = vpop.f32.mrf.mxu1  ;;  %v18524_v37 = vld [vmem:[#allocation35_spill] sm:$0xff]  ;;  %v18525_v6 = vld [vmem:[#allocation36_spill] sm:$0xff] }
 0x366   :  { %v4477_v11 = vmul.f32 0.01, %v4413_v4  ;;  %v4156_v48 = vadd.f32 %v13188_v15, %v3686_v16  ;;  %v4159_v50 = vadd.f32 %v18521_v38, %v3701_v45  ;;  %v3696_v33 = vadd.f32 %v13788_v25, %v3695_v13 }
 0x367   :  { %v14012_v28 = vmax.f32 %v4410_v47, %v4474_v60  ;;  %v4806_v29 = vadd.f32 %v4805_v34, %v4804_v23  ;;  %v3711_v24 = vadd.f32 %v9404_v3, %v13788_v25  ;;  %v3706_v10 = vadd.f32 %v13788_v25, %v3705_v42  ;;  %v9407_v18 = vpop.f32.mrf.mxu1  ;;  %v18526_v34 = vld [vmem:[#allocation20_spill] sm:$0xff]  ;;  %v18527_v42 = vld [vmem:[#allocation33_spill] sm:$0xff] }
 0x368   :  { %v14016_v44 = vmax.f32 %v4413_v4, %v4477_v11  ;;  %v4412_v7 = vadd.f32 %v18524_v37, %v4156_v48  ;;  %v4415_v5 = vadd.f32 %v13211_v19, %v4159_v50  ;;  %v4158_v15 = vadd.f32 %v18525_v6, %v3696_v33  ;;  %v18528_v50 = vld [vmem:[#allocation38_spill] sm:$0xff] }
 0x369   :  { %18522 = vst [vmem:[#allocation17_spill] sm:$0xff] %v14012_v28  ;;  %v4609_v38 = vsel %vm92_vm1, %v14012_v28, 0.0  ;;  %v4736_v13 = vmul.f32 %v14012_v28, %v14012_v28  ;;  %v4161_v47 = vadd.f32 %v18526_v34, %v3711_v24  ;;  %v4160_v3 = vadd.f32 %v13218_v62, %v3706_v10  ;;  %v3715_v16 = vpop.f32.mrf.mxu1  ;;  %v18531_v28 = vld [vmem:[#allocation37_spill] sm:$0xff] }
 0x36a   :  { %18523 = vst [vmem:[#allocation31_spill] sm:$0xff] %v14016_v44  ;;  %v4610_v45 = vadd.f32 %v4609_v38, %v4608_v0  ;;  %v4615_v4 = vsel %vm92_vm1, %v14016_v44, 0.0  ;;  %v4739_v19 = vmul.f32 %v14016_v44, %v14016_v44  ;;  %v4476_v48 = vmul.f32 0.01, %v4412_v7 }
 0x36b   :  { %v4807_v23 = vsel %vm92_vm1, %v4736_v13, 0.0  ;;  %v4479_v60 = vmul.f32 0.01, %v4415_v5  ;;  %v4414_v11 = vadd.f32 %v18527_v42, %v4158_v15  ;;  %v4417_v33 = vadd.f32 %v18528_v50, %v4161_v47  ;;  %v9410_v37 = vpop.f32.mrf.mxu1 }
 0x36c   :  { %v4808_v24 = vadd.f32 %v4807_v23, %v4806_v29  ;;  %v4813_v62 = vsel %vm92_vm1, %v4739_v19, 0.0  ;;  %v14035_v10 = vmax.f32 %v4412_v7, %v4476_v48  ;;  %v4612_v0 = vadd.f32 %v4611_v12, %v4610_v45  ;;  %v18534_v23 = vld [vmem:[#allocation39_spill] sm:$0xff] }
 0x36d   :  { %v14037_v6 = vmax.f32 %v4415_v5, %v4479_v60  ;;  %v4478_v38 = vmul.f32 0.01, %v4414_v11  ;;  %v4481_v34 = vmul.f32 0.01, %v4417_v33  ;;  %v4416_v44 = vadd.f32 %v18531_v28, %v4160_v3  ;;  %v3725_v55 = vpop.f32.mrf.mxu1 }
 0x36e   :  { %18529 = vst [vmem:[#allocation18_spill] sm:$0xff] %v14035_v10  ;;  %v4613_v13 = vsel %vm92_vm1, %v14035_v10, 0.0  ;;  %v4738_v15 = vmul.f32 %v14035_v10, %v14035_v10  ;;  %v4810_v47 = vadd.f32 %v4809_v43, %v4808_v24  ;;  %v3721_v29 = vadd.f32 %v9407_v18, %v13788_v25 }
 0x36f   :  { %18530 = vst [vmem:[#allocation32_spill] sm:$0xff] %v14037_v6  ;;  %v4614_v19 = vadd.f32 %v4613_v13, %v4612_v0  ;;  %v4619_v12 = vsel %vm92_vm1, %v14037_v6, 0.0  ;;  %v4741_v7 = vmul.f32 %v14037_v6, %v14037_v6  ;;  %v14049_v5 = vmax.f32 %v4414_v11, %v4478_v38  ;;  %v9413_v28 = vpop.f32.mrf.mxu1 }
 0x370   :  { %v4811_v3 = vsel %vm92_vm1, %v4738_v15, 0.0  ;;  %v14052_v45 = vmax.f32 %v4417_v33, %v4481_v34  ;;  %v4480_v48 = vmul.f32 0.01, %v4416_v44  ;;  %v4163_v60 = vadd.f32 %v18534_v23, %v3721_v29  ;;  %v18536_v15 = vld [vmem:[#allocation43_spill] sm:$0xff] }
 0x371   :  { %18532 = vst [vmem:[#allocation19_spill] sm:$0xff] %v14049_v5  ;;  %v4812_v43 = vadd.f32 %v4811_v3, %v4810_v47  ;;  %v4817_v18 = vsel %vm92_vm1, %v4741_v7, 0.0  ;;  %v4616_v42 = vadd.f32 %v4615_v4, %v4614_v19  ;;  %v4617_v50 = vsel %vm92_vm1, %v14049_v5, 0.0  ;;  %v3735_v24 = vpop.f32.mrf.mxu1 }
 0x372   :  { %18533 = vst [vmem:[#allocation35_spill] sm:$0xff] %v14052_v45  ;;  %v4740_v11 = vmul.f32 %v14049_v5, %v14049_v5  ;;  %v4623_v0 = vsel %vm92_vm1, %v14052_v45, 0.0  ;;  %v4743_v33 = vmul.f32 %v14052_v45, %v14052_v45  ;;  %v14064_v38 = vmax.f32 %v4416_v44, %v4480_v48  ;;  %v18539_v45 = vld [vmem:[#allocation40_spill] sm:$0xff] }
 0x373   :  { %v4618_v34 = vadd.f32 %v4617_v50, %v4616_v42  ;;  %v4814_v13 = vadd.f32 %v4813_v62, %v4812_v43  ;;  %v4419_v47 = vadd.f32 %v18536_v15, %v4163_v60  ;;  %v3716_v4 = vadd.f32 %v13788_v25, %v3715_v16  ;;  %v9416_v29 = vpop.f32.mrf.mxu1  ;;  %v18537_v42 = vld [vmem:[#allocation41_spill] sm:$0xff] }
 0x374   :  { %18535 = vst [vmem:[#allocation36_spill] sm:$0xff] %v14064_v38  ;;  %v4815_v19 = vsel %vm92_vm1, %v4740_v11, 0.0  ;;  %v4821_v7 = vsel %vm92_vm1, %v4743_v33, 0.0  ;;  %v4621_v3 = vsel %vm92_vm1, %v14064_v38, 0.0  ;;  %v4742_v23 = vmul.f32 %v14064_v38, %v14064_v38 }
 0x375   :  { %v4816_v5 = vadd.f32 %v4815_v19, %v4814_v13  ;;  %v4620_v44 = vadd.f32 %v4619_v12, %v4618_v34  ;;  %v4483_v48 = vmul.f32 0.01, %v4419_v47  ;;  %v4162_v62 = vadd.f32 %v18537_v42, %v3716_v4  ;;  %v3745_v43 = vpop.f32.mrf.mxu1  ;;  %v18540_v12 = vld [vmem:[#allocation42_spill] sm:$0xff]  ;;  %v18543_v42 = vld [vmem:[#allocation48_spill] sm:$0xff] }
 0x376   :  { %v4819_v60 = vsel %vm92_vm1, %v4742_v23, 0.0  ;;  %v3731_v16 = vadd.f32 %v9410_v37, %v13788_v25  ;;  %v3726_v50 = vadd.f32 %v13788_v25, %v3725_v55  ;;  %v3741_v11 = vadd.f32 %v9413_v28, %v13788_v25 }
 0x377   :  { %v4622_v33 = vadd.f32 %v4621_v3, %v4620_v44  ;;  %v4818_v15 = vadd.f32 %v4817_v18, %v4816_v5  ;;  %v14079_v10 = vmax.f32 %v4419_v47, %v4483_v48  ;;  %v4418_v38 = vadd.f32 %v18539_v45, %v4162_v62  ;;  %v9419_v13 = vpop.f32.mrf.mxu1  ;;  %v18541_v45 = vld [vmem:[#allocation45_spill] sm:$0xff]  ;;  %v18542_v44 = vld [vmem:[#allocation44_spill] sm:$0xff] }
 0x378   :  { %v4165_v34 = vadd.f32 %v18540_v12, %v3731_v16  ;;  %v4164_v4 = vadd.f32 %v13278_v56, %v3726_v50  ;;  %v4167_v19 = vadd.f32 %v13290_v9, %v3741_v11  ;;  %v3736_v23 = vadd.f32 %v13788_v25, %v3735_v24 }
 0x379   :  { %18538 = vst [vmem:[#allocation20_spill] sm:$0xff] %v14079_v10  ;;  %v4820_v37 = vadd.f32 %v4819_v60, %v4818_v15  ;;  %v4627_v55 = vsel %vm92_vm1, %v14079_v10, 0.0  ;;  %v4745_v5 = vmul.f32 %v14079_v10, %v14079_v10  ;;  %v4482_v28 = vmul.f32 0.01, %v4418_v38  ;;  %v3755_v18 = vpop.f32.mrf.mxu1  ;;  %v18545_v60 = vld [vmem:[#allocation46_spill] sm:$0xff] }
 0x37a   :  { %v4624_v47 = vadd.f32 %v4623_v0, %v4622_v33  ;;  %v4421_v3 = vadd.f32 %v18541_v45, %v4165_v34  ;;  %v4420_v48 = vadd.f32 %v18542_v44, %v4164_v4  ;;  %v4423_v56 = vadd.f32 %v18543_v42, %v4167_v19  ;;  %v18546_v34 = vld [vmem:[#allocation47_spill] sm:$0xff]  ;;  %v18550_v45 = vld [vmem:[#allocation49_spill] sm:$0xff] }
 0x37b   :  { %v4825_v9 = vsel %vm92_vm1, %v4745_v5, 0.0  ;;  %v14094_v62 = vmax.f32 %v4418_v38, %v4482_v28  ;;  %v4822_v24 = vadd.f32 %v4821_v7, %v4820_v37  ;;  %v4166_v16 = vadd.f32 %v18545_v60, %v3736_v23  ;;  %v9422_v50 = vpop.f32.mrf.mxu1  ;;  %v18551_v42 = vld [vmem:[#allocation51_spill] sm:$0xff] }
 0x37c   :  { %v4485_v11 = vmul.f32 0.01, %v4421_v3  ;;  %v4484_v15 = vmul.f32 0.01, %v4420_v48  ;;  %v4487_v12 = vmul.f32 0.01, %v4423_v56  ;;  %v3751_v10 = vadd.f32 %v9416_v29, %v13788_v25 }
 0x37d   :  { %18544 = vst [vmem:[#allocation33_spill] sm:$0xff] %v14094_v62  ;;  %v4625_v0 = vsel %vm92_vm1, %v14094_v62, 0.0  ;;  %v4744_v33 = vmul.f32 %v14094_v62, %v14094_v62  ;;  %v4422_v4 = vadd.f32 %v18546_v34, %v4166_v16  ;;  %v3746_v38 = vadd.f32 %v13788_v25, %v3745_v43  ;;  %v3765_v19 = vpop.f32.mrf.mxu1  ;;  %v18553_v34 = vld [vmem:[#allocation52_spill] sm:$0xff] }
 0x37e   :  { %v4626_v7 = vadd.f32 %v4625_v0, %v4624_v47  ;;  %v14104_v37 = vmax.f32 %v4421_v3, %v4485_v11  ;;  %v14106_v23 = vmax.f32 %v4420_v48, %v4484_v15  ;;  %v14108_v5 = vmax.f32 %v4423_v56, %v4487_v12 }
 0x37f   :  { %v4823_v29 = vsel %vm92_vm1, %v4744_v33, 0.0  ;;  %v4486_v28 = vmul.f32 0.01, %v4422_v4  ;;  %v4169_v44 = vadd.f32 %v18550_v45, %v3751_v10  ;;  %v4168_v60 = vadd.f32 %v18551_v42, %v3746_v38  ;;  %v9425_v62 = vpop.f32.mrf.mxu1 }
 0x380   :  { %18547 = vst [vmem:[#allocation38_spill] sm:$0xff] %v14104_v37  ;;  %18548 = vst [vmem:[#allocation37_spill] sm:$0xff] %v14106_v23  ;;  %v4824_v6 = vadd.f32 %v4823_v29, %v4822_v24  ;;  %v4631_v43 = vsel %vm92_vm1, %v14104_v37, 0.0  ;;  %v4747_v47 = vmul.f32 %v14104_v37, %v14104_v37  ;;  %v4628_v3 = vadd.f32 %v4627_v55, %v4626_v7  ;;  %v18554_v7 = vld [vmem:[#allocation50_spill] sm:$0xff] }
 0x381   :  { %18549 = vst [vmem:[#allocation39_spill] sm:$0xff] %v14108_v5  ;;  %v4629_v48 = vsel %vm92_vm1, %v14106_v23, 0.0  ;;  %v4746_v56 = vmul.f32 %v14106_v23, %v14106_v23  ;;  %v4635_v10 = vsel %vm92_vm1, %v14108_v5, 0.0  ;;  %v4749_v16 = vmul.f32 %v14108_v5, %v14108_v5  ;;  %v3775_v24 = vpop.f32.mrf.mxu1 }
 0x382   :  { %v4829_v11 = vsel %vm92_vm1, %v4747_v47, 0.0  ;;  %v4630_v15 = vadd.f32 %v4629_v48, %v4628_v3  ;;  %v4826_v12 = vadd.f32 %v4825_v9, %v4824_v6  ;;  %v14126_v0 = vmax.f32 %v4422_v4, %v4486_v28 }
 0x383   :  { %v4827_v55 = vsel %vm92_vm1, %v4746_v56, 0.0  ;;  %v4833_v33 = vsel %vm92_vm1, %v4749_v16, 0.0  ;;  %v4425_v38 = vadd.f32 %v18553_v34, %v4169_v44  ;;  %v4424_v29 = vadd.f32 %v18554_v7, %v4168_v60  ;;  %v9428_v45 = vpop.f32.mrf.mxu1 }
 0x384   :  { %18552 = vst [vmem:[#allocation43_spill] sm:$0xff] %v14126_v0  ;;  %v4828_v42 = vadd.f32 %v4827_v55, %v4826_v12  ;;  %v4632_v23 = vadd.f32 %v4631_v43, %v4630_v15  ;;  %v4633_v5 = vsel %vm92_vm1, %v14126_v0, 0.0  ;;  %v4748_v47 = vmul.f32 %v14126_v0, %v14126_v0  ;;  %v18557_v15 = vld [vmem:[#allocation53_spill] sm:$0xff]  ;;  %v18558_v55 = vld [vmem:[#allocation55_spill] sm:$0xff] }
 0x385   :  { %v4489_v6 = vmul.f32 0.01, %v4425_v38  ;;  %v4488_v9 = vmul.f32 0.01, %v4424_v29  ;;  %v3761_v4 = vadd.f32 %v9419_v13, %v13788_v25  ;;  %v3756_v28 = vadd.f32 %v13788_v25, %v3755_v18  ;;  %v14138_v3 = vpop.f32.mrf.mxu1  ;;  %v18559_v18 = vld [vmem:[#allocation56_spill] sm:$0xff] }
 0x386   :  { %v4634_v44 = vadd.f32 %v4633_v5, %v4632_v23  ;;  %v4830_v48 = vadd.f32 %v4829_v11, %v4828_v42  ;;  %v4831_v60 = vsel %vm92_vm1, %v4748_v47, 0.0  ;;  %v3771_v43 = vadd.f32 %v9422_v50, %v13788_v25  ;;  %v18560_v47 = vld [vmem:[#allocation57_spill] sm:$0xff] }
 0x387   :  { %v14142_v56 = vmax.f32 %v4425_v38, %v4489_v6  ;;  %v14144_v16 = vmax.f32 %v4424_v29, %v4488_v9  ;;  %v4171_v12 = vadd.f32 %v18557_v15, %v3761_v4  ;;  %v4170_v34 = vadd.f32 %v18558_v55, %v3756_v28  ;;  %v9431_v7 = vpop.f32.mrf.mxu1  ;;  %v18561_v9 = vld [vmem:[#allocation54_spill] sm:$0xff] }
 0x388   :  { %v4832_v13 = vadd.f32 %v4831_v60, %v4830_v48  ;;  %v4636_v0 = vadd.f32 %v4635_v10, %v4634_v44  ;;  %v4173_v37 = vadd.f32 %v18559_v18, %v3771_v43  ;;  %v3766_v23 = vadd.f32 %v13788_v25, %v3765_v19  ;;  %v18562_v44 = vld [vmem:[#allocation5_spill] sm:$0xff]  ;;  %v18563_v60 = vld [vmem:[#allocation58_spill] sm:$0xff] }
 0x389   :  { %18555 = vst [vmem:[#allocation41_spill] sm:$0xff] %v14142_v56  ;;  %18556 = vst [vmem:[#allocation40_spill] sm:$0xff] %v14144_v16  ;;  %v4639_v5 = vsel %vm92_vm1, %v14142_v56, 0.0  ;;  %v4751_v50 = vmul.f32 %v14142_v56, %v14142_v56  ;;  %v4637_v11 = vsel %vm92_vm1, %v14144_v16, 0.0  ;;  %v4750_v38 = vmul.f32 %v14144_v16, %v14144_v16  ;;  %v14158_v29 = vpop.f32.mrf.mxu1 }
 0x38a   :  { %v4638_v42 = vadd.f32 %v4637_v11, %v4636_v0  ;;  %v4834_v10 = vadd.f32 %v4833_v33, %v4832_v13  ;;  %v4427_v6 = vadd.f32 %v18560_v47, %v4171_v12  ;;  %v4426_v19 = vadd.f32 %v18561_v9, %v4170_v34  ;;  %v18564_v33 = vld [vmem:[#allocation59_spill] sm:$0xff]  ;;  %v18567_v9 = vld [vmem:[#allocation6_spill] sm:$0xff] }
 0x38b   :  { %v4837_v4 = vsel %vm92_vm1, %v4751_v50, 0.0  ;;  %v4835_v28 = vsel %vm92_vm1, %v4750_v38, 0.0  ;;  %v4429_v48 = vadd.f32 %v18562_v44, %v4173_v37  ;;  %v4172_v43 = vadd.f32 %v18563_v60, %v3766_v23  ;;  %v14166_v15 = vpop.f32.mrf.mxu1 }
 0x38c   :  { %v4836_v55 = vadd.f32 %v4835_v28, %v4834_v10  ;;  %v4491_v18 = vmul.f32 0.01, %v4427_v6  ;;  %v4490_v16 = vmul.f32 0.01, %v4426_v19  ;;  %v4640_v56 = vadd.f32 %v4639_v5, %v4638_v42  ;;  %v18566_v5 = vld [vmem:[#allocation60_spill] sm:$0xff] }
 0x38d   :  { %v4493_v0 = vmul.f32 0.01, %v4429_v48  ;;  %v4428_v13 = vadd.f32 %v18564_v33, %v4172_v43  ;;  %v3781_v12 = vadd.f32 %v9425_v62, %v13788_v25  ;;  %v3776_v34 = vadd.f32 %v13788_v25, %v3775_v24  ;;  %v14171_v50 = vpop.f32.mrf.mxu1 }
 0x38e   :  { %v14173_v11 = vmax.f32 %v4427_v6, %v4491_v18  ;;  %v14175_v37 = vmax.f32 %v4426_v19, %v4490_v16  ;;  %v4838_v23 = vadd.f32 %v4837_v4, %v4836_v55  ;;  %v3791_v38 = vadd.f32 %v9428_v45, %v13788_v25 }
 0x38f   :  { %v14178_v10 = vmax.f32 %v4429_v48, %v4493_v0  ;;  %v4492_v47 = vmul.f32 0.01, %v4428_v13  ;;  %v4175_v42 = vadd.f32 %v18566_v5, %v3781_v12  ;;  %v4174_v28 = vadd.f32 %v18567_v9, %v3776_v34  ;;  %v14182_v44 = vpop.f32.mrf.mxu1  ;;  %v18569_v0 = vld [vmem:[#allocation8_spill] sm:$0xff] }
 0x390   :  { %18565 = vst [vmem:[#allocation42_spill] sm:$0xff] %v14175_v37  ;;  %v4643_v62 = vsel %vm92_vm1, %v14173_v11, 0.0  ;;  %v4753_v24 = vmul.f32 %v14173_v11, %v14173_v11  ;;  %v4641_v16 = vsel %vm92_vm1, %v14175_v37, 0.0  ;;  %v4752_v45 = vmul.f32 %v14175_v37, %v14175_v37 }
 0x391   :  { %v4642_v6 = vadd.f32 %v4641_v16, %v4640_v56  ;;  %v4647_v19 = vsel %vm92_vm1, %v14178_v10, 0.0  ;;  %v4755_v4 = vmul.f32 %v14178_v10, %v14178_v10  ;;  %v14196_v48 = vmax.f32 %v4428_v13, %v4492_v47  ;;  %v14198_v60 = vpop.f32.mrf.mxu1  ;;  %v18570_v16 = vld [vmem:[#allocation7_spill] sm:$0xff] }
 0x392   :  { %v4841_v43 = vsel %vm92_vm1, %v4753_v24, 0.0  ;;  %v4839_v55 = vsel %vm92_vm1, %v4752_v45, 0.0  ;;  %v4431_v18 = vadd.f32 %v13443_v49, %v4175_v42  ;;  %v4430_v33 = vadd.f32 %v18569_v0, %v4174_v28 }
 0x393   :  { %18568 = vst [vmem:[#allocation45_spill] sm:$0xff] %v14196_v48  ;;  %v4840_v12 = vadd.f32 %v4839_v55, %v4838_v23  ;;  %v4845_v56 = vsel %vm92_vm1, %v4755_v4, 0.0  ;;  %v4644_v34 = vadd.f32 %v4643_v62, %v4642_v6  ;;  %v4645_v5 = vsel %vm92_vm1, %v14196_v48, 0.0  ;;  %v14207_v9 = vpop.f32.mrf.mxu1 }
 0x394   :  { %v4754_v13 = vmul.f32 %v14196_v48, %v14196_v48  ;;  %v4495_v47 = vmul.f32 0.01, %v4431_v18  ;;  %v4494_v24 = vmul.f32 0.01, %v4430_v33  ;;  %v4177_v45 = vadd.f32 %v18570_v16, %v3791_v38 }
 0x395   :  { %v4646_v37 = vadd.f32 %v4645_v5, %v4644_v34  ;;  %v4842_v49 = vadd.f32 %v4841_v43, %v4840_v12  ;;  %v3786_v23 = vadd.f32 %v13788_v25, %v14138_v3  ;;  %v3801_v42 = vadd.f32 %v9431_v7, %v13788_v25  ;;  %v14215_v28 = vpop.f32.mrf.mxu1 }
 0x396   :  { %v4843_v62 = vsel %vm92_vm1, %v4754_v13, 0.0  ;;  %v14218_v6 = vmax.f32 %v4431_v18, %v4495_v47  ;;  %v14220_v4 = vmax.f32 %v4430_v33, %v4494_v24  ;;  %v4433_v55 = vadd.f32 %v13469_v51, %v4177_v45  ;;  %v18572_v47 = vld [vmem:[#allocation21_spill] sm:$0xff] }
 0x397   :  { %v4844_v0 = vadd.f32 %v4843_v62, %v4842_v49  ;;  %v4648_v48 = vadd.f32 %v4647_v19, %v4646_v37  ;;  %v4176_v38 = vadd.f32 %v13457_v22, %v3786_v23  ;;  %v4179_v43 = vadd.f32 %v13473_v27, %v3801_v42  ;;  %v14225_v12 = vpop.f32.mrf.mxu1  ;;  %v18571_v22 = vld [vmem:[#allocation9_spill] sm:$0xff]  ;;  %v18573_v62 = vld [vmem:[#allocation28_spill] sm:$0xff] }
 0x398   :  { %v4651_v3 = vsel %vm92_vm1, %v14218_v6, 0.0  ;;  %v4757_v7 = vmul.f32 %v14218_v6, %v14218_v6  ;;  %v4649_v18 = vsel %vm92_vm1, %v14220_v4, 0.0  ;;  %v4756_v51 = vmul.f32 %v14220_v4, %v14220_v4 }
 0x399   :  { %v4650_v33 = vadd.f32 %v4649_v18, %v4648_v48  ;;  %v4846_v37 = vadd.f32 %v4845_v56, %v4844_v0  ;;  %v4497_v19 = vmul.f32 0.01, %v4433_v55  ;;  %v4432_v34 = vadd.f32 %v18571_v22, %v4176_v38  ;;  %v14236_v27 = vpop.f32.mrf.mxu1 }
 0x39a   :  { %v4849_v5 = vsel %vm92_vm1, %v4757_v7, 0.0  ;;  %v4847_v13 = vsel %vm92_vm1, %v4756_v51, 0.0  ;;  %v4435_v24 = vadd.f32 %v18572_v47, %v4179_v43  ;;  %v3796_v16 = vadd.f32 %v13788_v25, %v14158_v29 }
 0x39b   :  { %v4848_v45 = vadd.f32 %v4847_v13, %v4846_v37  ;;  %v14243_v49 = vmax.f32 %v4433_v55, %v4497_v19  ;;  %v4496_v23 = vmul.f32 0.01, %v4432_v34  ;;  %v4652_v48 = vadd.f32 %v4651_v3, %v4650_v33  ;;  %v14245_v56 = vpop.f32.mrf.mxu1  ;;  %v18576_v37 = vld [vmem:[#allocation10_spill] sm:$0xff] }
 0x39c   :  { %v4499_v42 = vmul.f32 0.01, %v4435_v24  ;;  %v4178_v0 = vadd.f32 %v18573_v62, %v3796_v16  ;;  %v3811_v38 = vadd.f32 %v14166_v15, %v13788_v25  ;;  %v3806_v7 = vadd.f32 %v13788_v25, %v14171_v50  ;;  %v18577_v19 = vld [vmem:[#allocation22_spill] sm:$0xff] }
 0x39d   :  { %v4759_v43 = vmul.f32 %v14243_v49, %v14243_v49  ;;  %v14254_v29 = vmax.f32 %v4432_v34, %v4496_v23  ;;  %v4850_v55 = vadd.f32 %v4849_v5, %v4848_v45  ;;  %v14256_v18 = vpop.f32.mrf.mxu1  ;;  %v18574_v3 = vrot.slane %v13783_v35, 7  ;;  %v18578_v62 = vld [vmem:[#allocation26_spill] sm:$0xff] }
 0x39e   :  { %v18575_v51 = vrot.slane %v13719_v31, 7  ;;  %v14266_v15 = vmax.f32 %v4435_v24, %v4499_v42  ;;  %v4434_v50 = vadd.f32 %v18576_v37, %v4178_v0  ;;  %v4181_v22 = vadd.f32 %v18577_v19, %v3811_v38  ;;  %v18579_v38 = vld [vmem:[#allocation24_spill] sm:$0xff]  ;;  %v8169_v37 = vld [vmem:[%s18117_s1 + $0x20] sm:$0xf] }
 0x39f   :  { %v4180_v34 = vadd.f32 %v13515_v53, %v3806_v7  ;;  %v4655_v5 = vsel %vm92_vm1, %v14243_v49, 0.0  ;;  %v4653_v35 = vsel %vm92_vm1, %v14254_v29, 0.0  ;;  %v4758_v31 = vmul.f32 %v14254_v29, %v14254_v29  ;;  %v14279_v47 = vpop.f32.mrf.mxu1  ;;  %9575 = vmatprep.subr.msk.mxu1 %vm285_vm0, %v8169_v37 }
 0x3a0   :  { %v14264_v33 = vsel %vm1525_vm2, %v18575_v51, %v18574_v3  ;;  %v3821_v13 = vadd.f32 %v14182_v44, %v13788_v25  ;;  %v4853_v24 = vsel %vm92_vm1, %v4759_v43, 0.0  ;;  %v4654_v16 = vadd.f32 %v4653_v35, %v4652_v48  ;;  %9576 = vmatpush3.msk.msra.mxu1 %vm285_vm0, %v8169_v37 }
 0x3a1   :  { %v4659_v53 = vsel %vm92_vm1, %v14266_v15, 0.0  ;;  %v4498_v45 = vmul.f32 0.01, %v4434_v50  ;;  %v4851_v23 = vsel %vm92_vm1, %v4758_v31, 0.0  ;;  %v4437_v42 = vadd.f32 %v13535_v36, %v4181_v22  ;;  %v14288_v3 = vpop.f32.mrf.mxu1 }
 0x3a2   :  { %v4436_v0 = vadd.f32 %v18578_v62, %v4180_v34  ;;  %v4183_v7 = vadd.f32 %v18579_v38, %v3821_v13  ;;  %v4852_v44 = vadd.f32 %v4851_v23, %v4850_v55  ;;  %v4761_v51 = vmul.f32 %v14266_v15, %v14266_v15  ;;  %v18582_v38 = vld [vmem:[#allocation23_spill] sm:$0xff] }
 0x3a3   :  { %v14292_v43 = vmax.f32 %v4434_v50, %v4498_v45  ;;  %v4656_v48 = vadd.f32 %v4655_v5, %v4654_v16  ;;  %v4501_v19 = vmul.f32 0.01, %v4437_v42  ;;  %v3816_v22 = vadd.f32 %v13788_v25, %v14198_v60  ;;  %v14300_v34 = vpop.f32.mrf.mxu1 }
 0x3a4   :  { %v4500_v35 = vmul.f32 0.01, %v4436_v0  ;;  %v4439_v36 = vadd.f32 %v13559_v21, %v4183_v7  ;;  %v4854_v5 = vadd.f32 %v4853_v24, %v4852_v44  ;;  %v3831_v31 = vadd.f32 %v14207_v9, %v13788_v25  ;;  %v18583_v24 = vld [vmem:[#allocation62_spill] sm:$0xff] }
 0x3a5   :  { %18580 = vst [vmem:[#allocation44_spill] sm:$0xff] %v14292_v43  ;;  %v4657_v55 = vsel %vm92_vm1, %v14292_v43, 0.0  ;;  %v4760_v50 = vmul.f32 %v14292_v43, %v14292_v43  ;;  %v14310_v13 = vmax.f32 %v4437_v42, %v4501_v19  ;;  %v14314_v45 = vpop.f32.mrf.mxu1  ;;  %v4857_v23 = vsel %vm92_vm1, %v4761_v51, 0.0  ;;  %v14329_v51 = vld [vmem:[%s18117_s1 + $0x1c] sm:$0xf] }
 0x3a6   :  { %v4658_v21 = vadd.f32 %v4657_v55, %v4656_v48  ;;  %v14312_v60 = vmax.f32 %v4436_v0, %v4500_v35  ;;  %v4503_v16 = vmul.f32 0.01, %v4439_v36  ;;  %v4182_v7 = vadd.f32 %v18582_v38, %v3816_v22  ;;  %v18584_v22 = vld [vmem:[#allocation61_spill] sm:$0xff]  ;;  %9673 = vmatprep.subr.msk.mxu0 %vm285_vm0, %v14329_v51 }
 0x3a7   :  { %v4855_v62 = vsel %vm92_vm1, %v4760_v50, 0.0  ;;  %v4185_v44 = vadd.f32 %v18583_v24, %v3831_v31  ;;  %v4763_v9 = vmul.f32 %v14310_v13, %v14310_v13  ;;  %v3826_v42 = vadd.f32 %v13788_v25, %v14215_v28  ;;  %v14324_v0 = vpop.f32.mrf.mxu1 }
 0x3a8   :  { %18581 = vst [vmem:[#allocation48_spill] sm:$0xff] %v14312_v60  ;;  %v4856_v43 = vadd.f32 %v4855_v62, %v4854_v5  ;;  %v4660_v48 = vadd.f32 %v4659_v53, %v4658_v21  ;;  %v4661_v37 = vsel %vm92_vm1, %v14312_v60, 0.0  ;;  %v4762_v19 = vmul.f32 %v14312_v60, %v14312_v60 }
 0x3a9   :  { %v14335_v35 = vmax.f32 %v4439_v36, %v4503_v16  ;;  %v4438_v53 = vadd.f32 %v18584_v22, %v4182_v7  ;;  %v4663_v28 = vsel %vm92_vm1, %v14310_v13, 0.0  ;;  %v4441_v5 = vadd.f32 %v13585_v30, %v4185_v44  ;;  %v14343_v31 = vpop.f32.mrf.mxu1 }
 0x3aa   :  { %v4662_v55 = vadd.f32 %v4661_v37, %v4660_v48  ;;  %v4858_v50 = vadd.f32 %v4857_v23, %v4856_v43  ;;  %v4861_v21 = vsel %vm92_vm1, %v4763_v9, 0.0  ;;  %v4859_v62 = vsel %vm92_vm1, %v4762_v19, 0.0 }
 0x3ab   :  { %v4765_v36 = vmul.f32 %v14335_v35, %v14335_v35  ;;  %v4502_v16 = vmul.f32 0.01, %v4438_v53  ;;  %v4505_v24 = vmul.f32 0.01, %v4441_v5  ;;  %v4184_v22 = vadd.f32 %v13573_v58, %v3826_v42  ;;  %v14358_v9 = vpop.f32.mrf.mxu1 }
 0x3ac   :  { %v4860_v38 = vadd.f32 %v4859_v62, %v4858_v50  ;;  %v4664_v7 = vadd.f32 %v4663_v28, %v4662_v55  ;;  %v4667_v43 = vsel %vm92_vm1, %v14335_v35, 0.0  ;;  %v3841_v30 = vadd.f32 %v14225_v12, %v13788_v25  ;;  %v18586_v12 = vld [vmem:[#allocation63_spill] sm:$0xff]  ;;  %v18587_v55 = vld [vmem:[#allocation65_spill] sm:$0xff] }
 0x3ad   :  { %v14352_v23 = vmax.f32 %v4438_v53, %v4502_v16  ;;  %v3836_v44 = vadd.f32 %v13788_v25, %v14236_v27  ;;  %v14360_v37 = vmax.f32 %v4441_v5, %v4505_v24  ;;  %v4440_v19 = vadd.f32 %v13567_v57, %v4184_v22  ;;  %v18590_v22 = vld [vmem:[#allocation66_spill] sm:$0xff] }
 0x3ae   :  { %v4862_v48 = vadd.f32 %v4861_v21, %v4860_v38  ;;  %v3851_v58 = vadd.f32 %v14245_v56, %v13788_v25  ;;  %v4187_v28 = vadd.f32 %v18586_v12, %v3841_v30  ;;  %v4865_v50 = vsel %vm92_vm1, %v4765_v36, 0.0  ;;  %v18588_v56 = vld [vmem:[#allocation67_spill] sm:$0xff]  ;;  %v18589_v38 = vld [vmem:[#allocation64_spill] sm:$0xff] }
 0x3af   :  { %18585 = vst [vmem:[#allocation46_spill] sm:$0xff] %v14352_v23  ;;  %v4665_v42 = vsel %vm92_vm1, %v14352_v23, 0.0  ;;  %v4764_v53 = vmul.f32 %v14352_v23, %v14352_v23  ;;  %v4186_v27 = vadd.f32 %v18587_v55, %v3836_v44  ;;  %v4671_v5 = vsel %vm92_vm1, %v14360_v37, 0.0  ;;  %v14378_v23 = vpop.f32.mrf.mxu1 }
 0x3b0   :  { %v4666_v21 = vadd.f32 %v4665_v42, %v4664_v7  ;;  %v4504_v57 = vmul.f32 0.01, %v4440_v19  ;;  %v4443_v16 = vadd.f32 %v18588_v56, %v4187_v28  ;;  %v4189_v60 = vadd.f32 %v18590_v22, %v3851_v58  ;;  %v18591_v56 = vld [vmem:[#allocation69_spill] sm:$0xff] }
 0x3b1   :  { %v4863_v62 = vsel %vm92_vm1, %v4764_v53, 0.0  ;;  %v4442_v24 = vadd.f32 %v18589_v38, %v4186_v27  ;;  %v4767_v44 = vmul.f32 %v14360_v37, %v14360_v37  ;;  %v3846_v53 = vadd.f32 %v13788_v25, %v14256_v18 }
 0x3b2   :  { %v4864_v30 = vadd.f32 %v4863_v62, %v4862_v48  ;;  %v14382_v36 = vmax.f32 %v4440_v19, %v4504_v57  ;;  %v4668_v7 = vadd.f32 %v4667_v43, %v4666_v21  ;;  %v4507_v42 = vmul.f32 0.01, %v4443_v16 }
 0x3b3   :  { %v4506_v12 = vmul.f32 0.01, %v4442_v24  ;;  %v4445_v55 = vadd.f32 %v13651_v54, %v4189_v60  ;;  %v3861_v27 = vadd.f32 %v14279_v47, %v13788_v25  ;;  %v14397_v54 = vpop.f32.mrf.mxu1  ;;  %v4869_v18 = vsel %vm92_vm1, %v4767_v44, 0.0  ;;  %v18592_v44 = vld [vmem:[#allocation68_spill] sm:$0xff] }
 0x3b4   :  { %v4669_v28 = vsel %vm92_vm1, %v14382_v36, 0.0  ;;  %v4766_v58 = vmul.f32 %v14382_v36, %v14382_v36  ;;  %v4866_v48 = vadd.f32 %v4865_v50, %v4864_v30  ;;  %v14393_v57 = vmax.f32 %v4443_v16, %v4507_v42  ;;  %v14408_v16 = vld [vmem:[%s18119_s2 + $0x1] ss:$0 sm:$0xff] }
 0x3b5   :  { %v4670_v19 = vadd.f32 %v4669_v28, %v4668_v7  ;;  %v14395_v43 = vmax.f32 %v4442_v24, %v4506_v12  ;;  %v4509_v21 = vmul.f32 0.01, %v4445_v55  ;;  %v4188_v62 = vadd.f32 %v13631_v17, %v3846_v53  ;;  %v14422_v28 = vpop.f32.mrf.mxu1 }
 0x3b6   :  { %v4867_v60 = vsel %vm92_vm1, %v4766_v58, 0.0  ;;  %v4191_v38 = vadd.f32 %v18591_v56, %v3861_v27  ;;  %v4769_v25 = vmul.f32 %v14393_v57, %v14393_v57  ;;  %v3856_v24 = vadd.f32 %v14408_v16, %v14288_v3 }
 0x3b7   :  { %v4868_v50 = vadd.f32 %v4867_v60, %v4866_v48  ;;  %v4672_v47 = vadd.f32 %v4671_v5, %v4670_v19  ;;  %v4673_v22 = vsel %vm92_vm1, %v14395_v43, 0.0  ;;  %v4768_v17 = vmul.f32 %v14395_v43, %v14395_v43  ;;  %v18593_v60 = vld [vmem:[#allocation70_spill] sm:$0xff] }
 0x3b8   :  { %v14416_v30 = vmax.f32 %v4445_v55, %v4509_v21  ;;  %v4444_v7 = vadd.f32 %v18592_v44, %v4188_v62  ;;  %v4675_v5 = vsel %vm92_vm1, %v14393_v57, 0.0  ;;  %v4447_v53 = vadd.f32 %v13675_v59, %v4191_v38 }
 0x3b9   :  { %v4674_v42 = vadd.f32 %v4673_v22, %v4672_v47  ;;  %v4870_v12 = vadd.f32 %v4869_v18, %v4868_v50  ;;  %v4873_v3 = vsel %vm92_vm1, %v4769_v25, 0.0  ;;  %v4871_v58 = vsel %vm92_vm1, %v4768_v17, 0.0  ;;  %v18594_v47 = vld [vmem:[#allocation71_spill] sm:$0xff] }
 0x3ba   :  { %v4771_v48 = vmul.f32 %v14416_v30, %v14416_v30  ;;  %v4508_v55 = vmul.f32 0.01, %v4444_v7  ;;  %v4511_v21 = vmul.f32 0.01, %v4447_v53  ;;  %v4190_v62 = vadd.f32 %v18593_v60, %v3856_v24  ;;  %v14442_v24 = vpop.f32.mrf.mxu1 }
 0x3bb   :  { %v4872_v27 = vadd.f32 %v4871_v58, %v4870_v12  ;;  %v4676_v19 = vadd.f32 %v4675_v5, %v4674_v42  ;;  %v4679_v18 = vsel %vm92_vm1, %v14416_v30, 0.0  ;;  %v3871_v59 = vadd.f32 %v14408_v16, %v14300_v34  ;;  %v18595_v34 = vld [vmem:[#allocation72_spill] sm:$0xff] }
 0x3bc   :  { %v14431_v56 = vmax.f32 %v4444_v7, %v4508_v55  ;;  %v3866_v38 = vadd.f32 %v14408_v16, %v14314_v45  ;;  %v14437_v25 = vmax.f32 %v4447_v53, %v4511_v21  ;;  %v4446_v22 = vadd.f32 %v18594_v47, %v4190_v62 }
 0x3bd   :  { %v4874_v50 = vadd.f32 %v4873_v3, %v4872_v27  ;;  %v3881_v17 = vadd.f32 %v14408_v16, %v14324_v0  ;;  %v4193_v5 = vadd.f32 %v18595_v34, %v3871_v59  ;;  %v4877_v42 = vsel %vm92_vm1, %v4771_v48, 0.0  ;;  %v18596_v27 = vld [vmem:[#allocation73_spill] sm:$0xff] }
 0x3be   :  { %v4677_v44 = vsel %vm92_vm1, %v14431_v56, 0.0  ;;  %v4770_v7 = vmul.f32 %v14431_v56, %v14431_v56  ;;  %v4192_v45 = vadd.f32 %v13689_v63, %v3866_v38  ;;  %v4683_v53 = vsel %vm92_vm1, %v14437_v25, 0.0 }
 0x3bf   :  { %v4678_v12 = vadd.f32 %v4677_v44, %v4676_v19  ;;  %v4510_v3 = vmul.f32 0.01, %v4446_v22  ;;  %v4449_v58 = vadd.f32 %v13701_v20, %v4193_v5  ;;  %v4195_v21 = vadd.f32 %v18596_v27, %v3881_v17  ;;  %v14461_v19 = vpop.f32.mrf.mxu1  ;;  %v18597_v5 = vld [vmem:[#allocation75_spill] sm:$0xff] }
 0x3c0   :  { %v4875_v0 = vsel %vm92_vm1, %v4770_v7, 0.0  ;;  %v4448_v55 = vadd.f32 %v13683_v61, %v4192_v45  ;;  %v4773_v62 = vmul.f32 %v14437_v25, %v14437_v25  ;;  %v3876_v20 = vadd.f32 %v14408_v16, %v14343_v31 }
 0x3c1   :  { %v4876_v60 = vadd.f32 %v4875_v0, %v4874_v50  ;;  %v14459_v63 = vmax.f32 %v4446_v22, %v4510_v3  ;;  %v4680_v48 = vadd.f32 %v4679_v18, %v4678_v12  ;;  %v4513_v59 = vmul.f32 0.01, %v4449_v58  ;;  %v18598_v12 = vld [vmem:[#allocation76_spill] sm:$0xff]  ;;  %v9467_v0 = vpop.f32.mrf.mxu1 }
 0x3c2   :  { %v4512_v38 = vmul.f32 0.01, %v4448_v55  ;;  %v4451_v47 = vadd.f32 %v13741_v1, %v4195_v21  ;;  %v3891_v22 = vadd.f32 %v14408_v16, %v14358_v9  ;;  %v4881_v1 = vsel %vm92_vm1, %v4773_v62, 0.0  ;;  %v18599_v62 = vld [vmem:[#allocation74_spill] sm:$0xff] }
 0x3c3   :  { %v4681_v61 = vsel %vm92_vm1, %v14459_v63, 0.0  ;;  %v4772_v50 = vmul.f32 %v14459_v63, %v14459_v63  ;;  %v4878_v17 = vadd.f32 %v4877_v42, %v4876_v60  ;;  %v14472_v44 = vmax.f32 %v4449_v58, %v4513_v59 }
 0x3c4   :  { %v4682_v18 = vadd.f32 %v4681_v61, %v4680_v48  ;;  %v14474_v7 = vmax.f32 %v4448_v55, %v4512_v38  ;;  %v4515_v34 = vmul.f32 0.01, %v4451_v47  ;;  %v4194_v45 = vadd.f32 %v18597_v5, %v3876_v20 }
 0x3c5   :  { %v4879_v31 = vsel %vm92_vm1, %v4772_v50, 0.0  ;;  %v4197_v3 = vadd.f32 %v18598_v12, %v3891_v22  ;;  %v4775_v42 = vmul.f32 %v14472_v44, %v14472_v44  ;;  %v3886_v58 = vadd.f32 %v14408_v16, %v14378_v23  ;;  %v3915_v22 = vpop.f32.mrf.mxu1 }
 0x3c6   :  { %v4880_v27 = vadd.f32 %v4879_v31, %v4878_v17  ;;  %v4684_v9 = vadd.f32 %v4683_v53, %v4682_v18  ;;  %v4685_v55 = vsel %vm92_vm1, %v14474_v7, 0.0  ;;  %v4774_v21 = vmul.f32 %v14474_v7, %v14474_v7 }
 0x3c7   :  { %v14488_v60 = vmax.f32 %v4451_v47, %v4515_v34  ;;  %v4450_v48 = vadd.f32 %v18599_v62, %v4194_v45  ;;  %v4687_v59 = vsel %vm92_vm1, %v14472_v44, 0.0  ;;  %v4453_v53 = vadd.f32 %v13765_v39, %v4197_v3  ;;  %v9470_v62 = vpop.f32.mrf.mxu1 }
 0x3c8   :  { %v4686_v38 = vadd.f32 %v4685_v55, %v4684_v9  ;;  %v4882_v20 = vadd.f32 %v4881_v1, %v4880_v27  ;;  %v4885_v61 = vsel %vm92_vm1, %v4775_v42, 0.0  ;;  %v4883_v23 = vsel %vm92_vm1, %v4774_v21, 0.0  ;;  %v18600_v27 = vld [vmem:[#allocation77_spill] sm:$0xff]  ;;  %v18601_v55 = vld [vmem:[#allocation78_spill] sm:$0xff] }
 0x3c9   :  { %v4777_v50 = vmul.f32 %v14488_v60, %v14488_v60  ;;  %v4514_v17 = vmul.f32 0.01, %v4450_v48  ;;  %v4517_v34 = vmul.f32 0.01, %v4453_v53  ;;  %v4196_v31 = vadd.f32 %v13745_v2, %v3886_v58 }
 0x3ca   :  { %v4884_v47 = vadd.f32 %v4883_v23, %v4882_v20  ;;  %v4688_v18 = vadd.f32 %v4687_v59, %v4686_v38  ;;  %v4691_v5 = vsel %vm92_vm1, %v14488_v60, 0.0  ;;  %v3901_v39 = vadd.f32 %v14408_v16, %v14397_v54  ;;  %v18602_v20 = vld [vmem:[#allocation80_spill] sm:$0xff] }
 0x3cb   :  { %v14501_v1 = vmax.f32 %v4450_v48, %v4514_v17  ;;  %v3896_v45 = vadd.f32 %v14408_v16, %v14422_v28  ;;  %v14507_v3 = vmax.f32 %v4453_v53, %v4517_v34  ;;  %v4452_v42 = vadd.f32 %v18600_v27, %v4196_v31  ;;  %v18604_v17 = vld [vmem:[#allocation81_spill] sm:$0xff] }
 0x3cc   :  { %v4886_v12 = vadd.f32 %v4885_v61, %v4884_v47  ;;  %v3911_v9 = vadd.f32 %v14408_v16, %v14442_v24  ;;  %v4199_v21 = vadd.f32 %v18601_v55, %v3901_v39  ;;  %v4889_v28 = vsel %vm92_vm1, %v4777_v50, 0.0  ;;  %v18603_v61 = vld [vmem:[#allocation79_spill] sm:$0xff] }
 0x3cd   :  { %v4689_v2 = vsel %vm92_vm1, %v14501_v1, 0.0  ;;  %v4776_v58 = vmul.f32 %v14501_v1, %v14501_v1  ;;  %v4198_v54 = vadd.f32 %v13769_v46, %v3896_v45  ;;  %v4695_v59 = vsel %vm92_vm1, %v14507_v3, 0.0  ;;  %v18605_v45 = vld [vmem:[#allocation85_spill] sm:$0xff] }
 0x3ce   :  { %v4690_v48 = vadd.f32 %v4689_v2, %v4688_v18  ;;  %v4516_v38 = vmul.f32 0.01, %v4452_v42  ;;  %v4455_v53 = vadd.f32 %v18602_v20, %v4199_v21  ;;  %v4201_v47 = vadd.f32 %v18604_v17, %v3911_v9 }
 0x3cf   :  { %v4887_v24 = vsel %vm92_vm1, %v4776_v58, 0.0  ;;  %v4454_v23 = vadd.f32 %v18603_v61, %v4198_v54  ;;  %v4779_v46 = vmul.f32 %v14507_v3, %v14507_v3  ;;  %v3906_v2 = vadd.f32 %v14408_v16, %v14461_v19  ;;  %v3925_v58 = vpop.f32.mrf.mxu1  ;;  %v18607_v61 = vld [vmem:[#allocation86_spill] sm:$0xff] }
 0x3d0   :  { %v4888_v34 = vadd.f32 %v4887_v24, %v4886_v12  ;;  %v14527_v31 = vmax.f32 %v4452_v42, %v4516_v38  ;;  %v4692_v50 = vadd.f32 %v4691_v5, %v4690_v48  ;;  %v4519_v18 = vmul.f32 0.01, %v4455_v53  ;;  %v18606_v24 = vld [vmem:[#allocation84_spill] sm:$0xff] }
 0x3d1   :  { %v4518_v39 = vmul.f32 0.01, %v4454_v23  ;;  %v4457_v27 = vadd.f32 %v18605_v45, %v4201_v47  ;;  %v3921_v21 = vadd.f32 %v14408_v16, %v9467_v0  ;;  %v4893_v38 = vsel %vm92_vm1, %v4779_v46, 0.0 }
 0x3d2   :  { %v4693_v55 = vsel %vm92_vm1, %v14527_v31, 0.0  ;;  %v4778_v12 = vmul.f32 %v14527_v31, %v14527_v31  ;;  %v4890_v9 = vadd.f32 %v4889_v28, %v4888_v34  ;;  %v14537_v54 = vmax.f32 %v4455_v53, %v4519_v18  ;;  %v9473_v53 = vpop.f32.mrf.mxu1  ;;  %v18608_v18 = vld [vmem:[#allocation82_spill] sm:$0xff] }
 0x3d3   :  { %v4694_v42 = vadd.f32 %v4693_v55, %v4692_v50  ;;  %v14539_v5 = vmax.f32 %v4454_v23, %v4518_v39  ;;  %v4521_v48 = vmul.f32 0.01, %v4457_v27  ;;  %v4200_v20 = vadd.f32 %v18606_v24, %v3906_v2 }
 0x3d4   :  { %v4891_v19 = vsel %vm92_vm1, %v4778_v12, 0.0  ;;  %v4203_v17 = vadd.f32 %v18607_v61, %v3921_v21  ;;  %v4781_v28 = vmul.f32 %v14537_v54, %v14537_v54  ;;  %v3916_v0 = vadd.f32 %v14408_v16, %v3915_v22  ;;  %v3935_v24 = vpop.f32.mrf.mxu1 }
 0x3d5   :  { %v4892_v47 = vadd.f32 %v4891_v19, %v4890_v9  ;;  %v4696_v34 = vadd.f32 %v4695_v59, %v4694_v42  ;;  %v4697_v23 = vsel %vm92_vm1, %v14539_v5, 0.0  ;;  %v4780_v46 = vmul.f32 %v14539_v5, %v14539_v5  ;;  %v18609_v19 = vld [vmem:[#allocation11_spill] sm:$0xff] }
 0x3d6   :  { %v14552_v50 = vmax.f32 %v4457_v27, %v4521_v48  ;;  %v4456_v39 = vadd.f32 %v18608_v18, %v4200_v20  ;;  %v4459_v55 = vadd.f32 %v13855_v26, %v4203_v17  ;;  %v4399_v59 = vsel %vm26_vm5, %v13906_v8, 0.0 }
 0x3d7   :  { %v4698_v45 = vadd.f32 %v4697_v23, %v4696_v34  ;;  %v4894_v2 = vadd.f32 %v4893_v38, %v4892_v47  ;;  %v4699_v22 = vsel %vm92_vm1, %v14537_v54, 0.0  ;;  %v4895_v12 = vsel %vm92_vm1, %v4780_v46, 0.0  ;;  %v18610_v34 = vld [vmem:[#allocation87_spill] sm:$0xff] }
 0x3d8   :  { %v4783_v9 = vmul.f32 %v14552_v50, %v14552_v50  ;;  %v4520_v27 = vmul.f32 0.01, %v4456_v39  ;;  %v4523_v48 = vmul.f32 0.01, %v4459_v55  ;;  %v4202_v38 = vadd.f32 %v18609_v19, %v3916_v0 }
 0x3d9   :  { %v4896_v21 = vadd.f32 %v4895_v12, %v4894_v2  ;;  %v4700_v42 = vadd.f32 %v4699_v22, %v4698_v45  ;;  %v4897_v26 = vsel %vm92_vm1, %v4781_v28, 0.0  ;;  %v3931_v8 = vadd.f32 %v14408_v16, %v9470_v62  ;;  %v18611_v28 = vld [vmem:[#allocation14_spill] sm:$0xff]  ;;  %v9476_v22 = vpop.f32.mrf.mxu1 }
 0x3da   :  { %v14566_v20 = vmax.f32 %v4456_v39, %v4520_v27  ;;  %v3926_v61 = vadd.f32 %v14408_v16, %v3925_v58  ;;  %v14570_v47 = vmax.f32 %v4459_v55, %v4523_v48  ;;  %v4458_v23 = vadd.f32 %v18610_v34, %v4202_v38  ;;  %v18612_v27 = vld [vmem:[#allocation89_spill] sm:$0xff]  ;;  %v18613_v48 = vld [vmem:[#allocation12_spill] sm:$0xff] }
 0x3db   :  { %v4898_v17 = vadd.f32 %v4897_v26, %v4896_v21  ;;  %v3941_v46 = vadd.f32 %v14408_v16, %v9473_v53  ;;  %v4205_v39 = vadd.f32 %v18611_v28, %v3931_v8  ;;  %v4703_v62 = vsel %vm92_vm1, %v14552_v50, 0.0 }
 0x3dc   :  { %v4701_v18 = vsel %vm92_vm1, %v14566_v20, 0.0  ;;  %v4782_v0 = vmul.f32 %v14566_v20, %v14566_v20  ;;  %v4204_v45 = vadd.f32 %v13886_v52, %v3926_v61  ;;  %v4901_v58 = vsel %vm92_vm1, %v4783_v9, 0.0 }
 0x3dd   :  { %v4702_v2 = vadd.f32 %v4701_v18, %v4700_v42  ;;  %v4522_v55 = vmul.f32 0.01, %v4458_v23  ;;  %v4461_v12 = vadd.f32 %v13882_v41, %v4205_v39  ;;  %v4207_v19 = vadd.f32 %v18613_v48, %v3941_v46  ;;  %v3945_v46 = vpop.f32.mrf.mxu1 }
 0x3de   :  { %v4899_v53 = vsel %vm92_vm1, %v4782_v0, 0.0  ;;  %v4460_v21 = vadd.f32 %v18612_v27, %v4204_v45  ;;  %v4785_v52 = vmul.f32 %v14570_v47, %v14570_v47  ;;  %v3936_v34 = vadd.f32 %v14408_v16, %v3935_v24 }
 0x3df   :  { %v4900_v38 = vadd.f32 %v4899_v53, %v4898_v17  ;;  %v14589_v26 = vmax.f32 %v4458_v23, %v4522_v55  ;;  %v4704_v8 = vadd.f32 %v4703_v62, %v4702_v2  ;;  %v4525_v61 = vmul.f32 0.01, %v4461_v12  ;;  %v18614_v62 = vld [vmem:[#allocation90_spill] sm:$0xff]  ;;  %v18615_v55 = vld [vmem:[#allocation93_spill] sm:$0xff] }
 0x3e0   :  { %v4524_v9 = vmul.f32 0.01, %v4460_v21  ;;  %v4463_v42 = vadd.f32 %v4399_v59, %v4207_v19  ;;  %v3951_v17 = vadd.f32 %v14408_v16, %v9476_v22  ;;  %v4707_v23 = vsel %vm92_vm1, %v14570_v47, 0.0 }
 0x3e1   :  { %v4705_v18 = vsel %vm92_vm1, %v14589_v26, 0.0  ;;  %v4784_v41 = vmul.f32 %v14589_v26, %v14589_v26  ;;  %v4902_v0 = vadd.f32 %v4901_v58, %v4900_v38  ;;  %v14599_v39 = vmax.f32 %v4461_v12, %v4525_v61  ;;  %v18616_v38 = vld [vmem:[#allocation25_spill] sm:$0xff] }
 0x3e2   :  { %v4706_v28 = vadd.f32 %v4705_v18, %v4704_v8  ;;  %v14601_v45 = vmax.f32 %v4460_v21, %v4524_v9  ;;  %v4527_v24 = vmul.f32 0.01, %v4463_v42  ;;  %v4206_v2 = vadd.f32 %v18614_v62, %v3936_v34  ;;  %v18617_v34 = vld [vmem:[#allocation91_spill] sm:$0xff] }
 0x3e3   :  { %v4903_v59 = vsel %vm92_vm1, %v4784_v41, 0.0  ;;  %v4209_v53 = vadd.f32 %v18615_v55, %v3951_v17  ;;  %v4905_v58 = vsel %vm92_vm1, %v4785_v52, 0.0  ;;  %v3946_v48 = vadd.f32 %v14408_v16, %v3945_v46  ;;  %v18618_v55 = vld [vmem:[#allocation83_spill] sm:$0xff] }
 0x3e4   :  { %v4904_v27 = vadd.f32 %v4903_v59, %v4902_v0  ;;  %v4708_v22 = vadd.f32 %v4707_v23, %v4706_v28  ;;  %v4787_v19 = vmul.f32 %v14599_v39, %v14599_v39  ;;  %v4709_v12 = vsel %vm92_vm1, %v14601_v45, 0.0 }
 0x3e5   :  { %v4786_v21 = vmul.f32 %v14601_v45, %v14601_v45  ;;  %v4462_v8 = vadd.f32 %v18616_v38, %v4206_v2  ;;  %v4465_v18 = vadd.f32 %v18617_v34, %v4209_v53  ;;  %v4144_v52 = vsel %vm23_vm3, %v14264_v33, 0.0 }
 0x3e6   :  { %v4710_v61 = vadd.f32 %v4709_v12, %v4708_v22  ;;  %v4906_v9 = vadd.f32 %v4905_v58, %v4904_v27  ;;  %v4711_v16 = vsel %vm92_vm1, %v14599_v39, 0.0  ;;  %v14622_v0 = vmax.f32 %v4463_v42, %v4527_v24  ;;  %v18620_v58 = vld [vmem:[#allocation88_spill] sm:$0xff] }
 0x3e7   :  { %v4907_v41 = vsel %vm92_vm1, %v4786_v21, 0.0  ;;  %v4526_v17 = vmul.f32 0.01, %v4462_v8  ;;  %v4529_v28 = vmul.f32 0.01, %v4465_v18  ;;  %v4208_v59 = vadd.f32 %v4144_v52, %v3946_v48 }
 0x3e8   :  { %v4908_v46 = vadd.f32 %v4907_v41, %v4906_v9  ;;  %v4712_v23 = vadd.f32 %v4711_v16, %v4710_v61  ;;  %v4909_v62 = vsel %vm92_vm1, %v4787_v19, 0.0  ;;  %v18619_v53 = vrot.slane %v18618_v55, 1 }
 0x3e9   :  { %v14625_v2 = vmax.f32 %v4462_v8, %v4526_v17  ;;  %v18621_v33 = vrot.slane %v18620_v58, 1  ;;  %v4789_v42 = vmul.f32 %v14622_v0, %v14622_v0  ;;  %v14639_v21 = vmax.f32 %v4465_v18, %v4529_v28 }
 0x3ea   :  { %v4910_v22 = vadd.f32 %v4909_v62, %v4908_v46  ;;  %v4715_v8 = vsel %vm92_vm1, %v14622_v0, 0.0 }
 0x3eb   :  { %v4274_v27 = vsel %vm1782_vm4, %v18621_v33, %v18619_v53  ;;  %v4713_v24 = vsel %vm92_vm1, %v14625_v2, 0.0  ;;  %v4788_v48 = vmul.f32 %v14625_v2, %v14625_v2  ;;  %v4913_v16 = vsel %vm92_vm1, %v4789_v42, 0.0 }
 0x3ec   :  { %v4464_v12 = vadd.f32 %v4274_v27, %v4208_v59  ;;  %v4714_v19 = vadd.f32 %v4713_v24, %v4712_v23  ;;  %v4791_v41 = vmul.f32 %v14639_v21, %v14639_v21  ;;  %v4719_v28 = vsel %vm92_vm1, %v14639_v21, 0.0 }
 0x3ed   :  { %v4911_v61 = vsel %vm92_vm1, %v4788_v48, 0.0 }
 0x3ee   :  { %v4528_v38 = vmul.f32 0.01, %v4464_v12  ;;  %v4912_v9 = vadd.f32 %v4911_v61, %v4910_v22  ;;  %v4716_v52 = vadd.f32 %v4715_v8, %v4714_v19  ;;  %v4917_v53 = vsel %vm92_vm1, %v4791_v41, 0.0  ;;  %v8100_v41 = vld [vmem:[%s18120_s3 + $0x1] sm:$0x1] }
 0x3f0   :  { %v14644_v34 = vmax.f32 %v4464_v12, %v4528_v38  ;;  %v4914_v46 = vadd.f32 %v4913_v16, %v4912_v9 }
 0x3f2   :  { %v4717_v17 = vsel %vm92_vm1, %v14644_v34, 0.0  ;;  %v4790_v18 = vmul.f32 %v14644_v34, %v14644_v34 }
 0x3f3   :  { %v4718_v23 = vadd.f32 %v4717_v17, %v4716_v52 }
 0x3f4   :  { %v4915_v59 = vsel %vm92_vm1, %v4790_v18, 0.0 }
 0x3f5   :  { %v4720_v62 = vadd.f32 %v4719_v28, %v4718_v23  ;;  %v4916_v55 = vadd.f32 %v4915_v59, %v4914_v46  ;;  %v8101_v59 = vld [vmem:[%s18121_s4 + $0x1] sm:$0x1] }
 0x3f7   :  { %v4721_v58 = vrot.slane %v4720_v62, 4  ;;  %v4918_v33 = vadd.f32 %v4917_v53, %v4916_v55  ;;  %v18622_v55 = vld [vmem:[#allocation4_spill] sm:$0xff] }
 0x3f9   :  { %v4722_v27 = vadd.f32 %v4721_v58, %v4720_v62  ;;  %v4919_v22 = vrot.slane %v4918_v33, 4 }
 0x3fb   :  { %v4723_v12 = vrot.slane %v4722_v27, 2  ;;  %v4920_v42 = vadd.f32 %v4919_v22, %v4918_v33  ;;  %v18623_v33 = vld [vmem:[#allocation13_spill] sm:$0xff]  ;;  %v18624_v22 = vld [vmem:[#allocation15_spill] sm:$0xff] }
 0x3fd   :  { %v4724_v24 = vadd.f32 %v4723_v12, %v4722_v27  ;;  %v4921_v48 = vrot.slane %v4920_v42, 2 }
 0x3ff   :  { %v4725_v19 = vrot.slane %v4724_v24, 1  ;;  %v4922_v38 = vadd.f32 %v4921_v48, %v4920_v42 }
 0x401   :  { %v4726_v8 = vadd.f32 %v4725_v19, %v4724_v24  ;;  %v4923_v61 = vrot.slane %v4922_v38, 1  ;;  %v18625_v24 = vld [vmem:[#allocation16_spill] sm:$0xff]  ;;  %v18626_v19 = vld [vmem:[#allocation34_spill] sm:$0xff] }
 0x403   :  { %v4727_v9 = vmul.f32 0.001953125, %v4726_v8  ;;  %v4924_v52 = vadd.f32 %v4923_v61, %v4922_v38  ;;  %v18627_v8 = vld [vmem:[#allocation31_spill] sm:$0xff] }
 0x405   :  { %v4925_v16 = vmul.f32 0.001953125, %v4924_v52  ;;  %v4926_v17 = vmul.f32 %v4727_v9, %v4727_v9 }
 0x407   :  { %v4927_v18 = vsub.f32 %v4925_v16, %v4926_v17  ;;  %v18629_v17 = vld [vmem:[#allocation35_spill] sm:$0xff] }
 0x409   :  { %v4930_v46 = vadd.f32 1e-05, %v4927_v18 }
 0x40b   :  { %9775 = vrsqrt.f32 %v4930_v46  ;;  %v18630_v46 = vld [vmem:[#allocation20_spill] sm:$0xff] }
 0x418   :  { %v9776_v23 = vpop.eup %9775 }
 0x419   :  { %v4932_v28 = vmul.f32 %v9776_v23, %v8100_v41  ;;  %v18631_v41 = vld [vmem:[#allocation38_spill] sm:$0xff] }
 0x41b   :  { %v4935_v62 = vmul.f32 %v4932_v28, %v4727_v9  ;;  %v14664_v53 = vrot.slane %v4932_v28, %v18622_v55  ;;  %v18628_v9 = vld [vmem:[#allocation32_spill] sm:$0xff]  ;;  %v18632_v28 = vld [vmem:[#allocation39_spill] sm:$0xff] }
 0x41d   :  { %v4936_v58 = vsub.f32 %v8101_v59, %v4935_v62  ;;  %v4944_v27 = vmul.f32 %v14664_v53, %v18623_v33  ;;  %v4946_v12 = vmul.f32 %v14664_v53, %v18624_v22  ;;  %v4948_v42 = vmul.f32 %v14664_v53, %v13960_v32  ;;  %v18633_v62 = vld [vmem:[#allocation41_spill] sm:$0xff] }
 0x41e   :  { %v4950_v48 = vmul.f32 %v14664_v53, %v18625_v24  ;;  %v4952_v38 = vmul.f32 %v14664_v53, %v18626_v19  ;;  %v4954_v61 = vmul.f32 %v14664_v53, %v18627_v8  ;;  %v4956_v52 = vmul.f32 %v14664_v53, %v18628_v9 }
 0x41f   :  { %v14681_v16 = vrot.slane %v4936_v58, %v18622_v55  ;;  %v4958_v18 = vmul.f32 %v14664_v53, %v18629_v17  ;;  %v4960_v32 = vmul.f32 %v14664_v53, %v18630_v46  ;;  %v4962_v23 = vmul.f32 %v14664_v53, %v18631_v41  ;;  %v18638_v41 = vld [vmem:[#allocation29_spill] sm:$0xff] }
 0x420   :  { %v4964_v59 = vmul.f32 %v14664_v53, %v18632_v28  ;;  %v14693_v33 = vmul.f32 %v14664_v53, %v18633_v62  ;;  %v14697_v58 = vmul.f32 %v14664_v53, %v14173_v11  ;;  %v14701_v22 = vmul.f32 %v14664_v53, %v14178_v10  ;;  %v18642_v55 = vld [vmem:[#allocation17_spill] sm:$0xff] }
 0x421   :  { %v14705_v24 = vmul.f32 %v14664_v53, %v14218_v6  ;;  %v14709_v19 = vmul.f32 %v14664_v53, %v14243_v49  ;;  %v14713_v8 = vmul.f32 %v14664_v53, %v14266_v15  ;;  %v14717_v11 = vmul.f32 %v14664_v53, %v14310_v13 }
 0x422   :  { %v14721_v10 = vmul.f32 %v14664_v53, %v14335_v35  ;;  %v14725_v6 = vmul.f32 %v14664_v53, %v14360_v37  ;;  %v14729_v49 = vmul.f32 %v14664_v53, %v14393_v57  ;;  %v14733_v15 = vmul.f32 %v14664_v53, %v14416_v30 }
 0x423   :  { %v14737_v13 = vmul.f32 %v14664_v53, %v14437_v25  ;;  %v14741_v35 = vmul.f32 %v14664_v53, %v14472_v44  ;;  %v14745_v37 = vmul.f32 %v14664_v53, %v14488_v60  ;;  %v14749_v57 = vmul.f32 %v14664_v53, %v14507_v3 }
 0x424   :  { %v14753_v30 = vmul.f32 %v14664_v53, %v14537_v54  ;;  %v14757_v25 = vmul.f32 %v14664_v53, %v14552_v50  ;;  %v14761_v44 = vmul.f32 %v14664_v53, %v14570_v47  ;;  %v14765_v60 = vmul.f32 %v14664_v53, %v14599_v39  ;;  %v18635_v50 = vld [vmem:[#allocation92_spill] sm:$0xff]  ;;  %v18636_v47 = vld [vmem:[#allocation27_spill] sm:$0xff] }
 0x425   :  { %v14769_v3 = vmul.f32 %v14664_v53, %v14622_v0  ;;  %v14773_v54 = vmul.f32 %v14664_v53, %v14639_v21  ;;  %v14776_v9 = vadd.f32 %v14681_v16, %v4944_v27  ;;  %v4943_v17 = vmul.f32 %v14664_v53, %v18635_v50  ;;  %v18641_v27 = vld [vmem:[#allocation30_spill] sm:$0xff] }
 0x426   :  { %v4945_v46 = vmul.f32 %v14664_v53, %v18636_v47  ;;  %v14783_v39 = vadd.f32 %v14681_v16, %v4946_v12  ;;  %v4947_v0 = vmul.f32 %v14664_v53, %v18638_v41  ;;  %v14788_v28 = vadd.f32 %v14681_v16, %v4948_v42 }
 0x427   :  { %18634 = vst [vmem:[#allocation47_spill] sm:$0xff] %v14776_v9  ;;  %v14791_v21 = vadd.f32 %v14681_v16, %v4943_v17  ;;  %v4949_v62 = vmul.f32 %v14664_v53, %v18641_v27  ;;  %v14796_v50 = vadd.f32 %v14681_v16, %v4950_v48  ;;  %v4951_v47 = vmul.f32 %v14664_v53, %v18642_v55  ;;  %v18645_v17 = vld [vmem:[#allocation18_spill] sm:$0xff] }
 0x428   :  { %18637 = vst [vmem:[#allocation49_spill] sm:$0xff] %v14783_v39  ;;  %18639 = vst [vmem:[#allocation51_spill] sm:$0xff] %v14788_v28  ;;  %v14801_v12 = vadd.f32 %v14681_v16, %v4945_v46  ;;  %v14804_v41 = vadd.f32 %v14681_v16, %v4947_v0  ;;  %v14807_v42 = vadd.f32 %v14681_v16, %v4952_v38  ;;  %v18647_v0 = vld [vmem:[#allocation19_spill] sm:$0xff] }
 0x429   :  { %18640 = vst [vmem:[#allocation52_spill] sm:$0xff] %v14791_v21  ;;  %v4953_v40 = vmul.f32 %v14664_v53, %v18645_v17  ;;  %9479 = vmatprep.mubr.msk.f32.mxu0 %vm92_vm1, %v14791_v21  ;;  %9577 = vmatprep.mubr.msk.f32.mxu1 %vm92_vm1, %v14791_v21  ;;  %v14816_v55 = vadd.f32 %v14681_v16, %v4949_v62  ;;  %v18651_v21 = vld [vmem:[#allocation43_spill] sm:$0xff] }
 0x42a   :  { %18643 = vst [vmem:[#allocation50_spill] sm:$0xff] %v14801_v12  ;;  %18644 = vst [vmem:[#allocation53_spill] sm:$0xff] %v14804_v41  ;;  %v14819_v48 = vadd.f32 %v14681_v16, %v4951_v47  ;;  %v14822_v46 = vadd.f32 %v14681_v16, %v4954_v61  ;;  %9480 = vmatmul.mubr.msk.f32.vlgmr.msra.gmra.mxu0 %vm92_vm1, %v14776_v9  ;;  %9578 = vmatmul.mubr.msk.f32.vlgmr.msra.gmra.mxu1 %vm92_vm1, %v14776_v9  ;;  %v18648_v61 = vld [vmem:[#allocation36_spill] sm:$0xff]  ;;  %v18650_v9 = vld [vmem:[#allocation37_spill] sm:$0xff] }
 0x42b   :  { %18646 = vst [vmem:[#allocation55_spill] sm:$0xff] %v14816_v55  ;;  %v14829_v38 = vadd.f32 %v14681_v16, %v4953_v40  ;;  %v4955_v27 = vmul.f32 %v14664_v53, %v18647_v0  ;;  %v14834_v62 = vadd.f32 %v14681_v16, %v4956_v52  ;;  %9482 = vmatprep.mubr.msk.f32.mxu0 %vm92_vm1, %v14801_v12  ;;  %v18649_v40 = vld [vmem:[#allocation33_spill] sm:$0xff] }
 0x42c   :  { %9580 = vmatprep.mubr.msk.f32.mxu1 %vm92_vm1, %v14801_v12  ;;  %v4957_v47 = vmul.f32 %v14664_v53, %v18648_v61  ;;  %v14843_v17 = vadd.f32 %v14681_v16, %v4958_v18  ;;  %v4959_v14 = vmul.f32 %v14664_v53, %v18649_v40  ;;  %9674 = vmatpush3.msk.msra.mxu0 %vm285_vm0, %v14329_v51 }
 0x42d   :  { %v14850_v52 = vadd.f32 %v14681_v16, %v4955_v27  ;;  %v14853_v0 = vadd.f32 %v14681_v16, %v4960_v32  ;;  %v4961_v12 = vmul.f32 %v14664_v53, %v18650_v9  ;;  %v14858_v61 = vadd.f32 %v14681_v16, %v4962_v23  ;;  %v18652_v23 = vld [vmem:[#allocation40_spill] sm:$0xff] }
 0x42e   :  { %v14861_v18 = vadd.f32 %v14681_v16, %v4957_v47  ;;  %v14864_v40 = vadd.f32 %v14681_v16, %v4959_v14  ;;  %v4963_v51 = vmul.f32 %v14664_v53, %v18651_v21  ;;  %v14869_v27 = vadd.f32 %v14681_v16, %v4964_v59  ;;  %9483 = vmatmul.mubr.msk.f32.gmra.mxu0 %vm92_vm1, %v14783_v39  ;;  %v18654_v21 = vld [vmem:[#allocation42_spill] sm:$0xff] }
 0x42f   :  { %9581 = vmatmul.mubr.msk.f32.gmra.mxu1 %vm92_vm1, %v14783_v39  ;;  %v14876_v32 = vadd.f32 %v14681_v16, %v4961_v12  ;;  %v4965_v9 = vmul.f32 %v14664_v53, %v18652_v23  ;;  %v14882_v14 = vadd.f32 %v14681_v16, %v14693_v33  ;;  %9485 = vmatprep.mubr.msk.f32.mxu0 %vm92_vm1, %v14804_v41  ;;  %v18655_v33 = vld [vmem:[#allocation45_spill] sm:$0xff] }
 0x430   :  { %9583 = vmatprep.mubr.msk.f32.mxu1 %vm92_vm1, %v14804_v41  ;;  %v14889_v59 = vadd.f32 %v14681_v16, %v4963_v51  ;;  %v4967_v12 = vmul.f32 %v14664_v53, %v18654_v21  ;;  %v14895_v47 = vadd.f32 %v14681_v16, %v14697_v58  ;;  %v4969_v39 = vmul.f32 %v14664_v53, %v18655_v33 }
 0x431   :  { %18653 = vst [vmem:[#allocation56_spill] sm:$0xff] %v14882_v14  ;;  %v14898_v23 = vadd.f32 %v14681_v16, %v4965_v9  ;;  %v14904_v14 = vadd.f32 %v14681_v16, %v14701_v22  ;;  %v4971_v51 = vmul.f32 %v14664_v53, %v14220_v4  ;;  %v14913_v58 = vadd.f32 %v14681_v16, %v14705_v24  ;;  %v18656_v24 = vld [vmem:[#allocation44_spill] sm:$0xff] }
 0x432   :  { %v14909_v41 = vadd.f32 %v14681_v16, %v4967_v12  ;;  %v4973_v9 = vmul.f32 %v14664_v53, %v14254_v29  ;;  %v14919_v21 = vadd.f32 %v14681_v16, %v14709_v19  ;;  %9486 = vmatmul.mubr.msk.f32.gmra.mxu0 %vm92_vm1, %v14788_v28  ;;  %v14926_v4 = vadd.f32 %v14681_v16, %v4969_v39  ;;  %v18657_v39 = vld [vmem:[#allocation48_spill] sm:$0xff] }
 0x433   :  { %9584 = vmatmul.mubr.msk.f32.gmra.mxu1 %vm92_vm1, %v14788_v28  ;;  %v14929_v22 = vadd.f32 %v14681_v16, %v4971_v51  ;;  %v4975_v12 = vmul.f32 %v14664_v53, %v18656_v24  ;;  %9488 = vmatprep.mubr.msk.f32.mxu0 %vm92_vm1, %v14816_v55  ;;  %v14942_v19 = vadd.f32 %v14681_v16, %v14713_v8  ;;  %v18658_v28 = vld [vmem:[#allocation46_spill] sm:$0xff] }
 0x434   :  { %9586 = vmatprep.mubr.msk.f32.mxu1 %vm92_vm1, %v14816_v55  ;;  %v14938_v29 = vadd.f32 %v14681_v16, %v4973_v9  ;;  %v4977_v33 = vmul.f32 %v14664_v53, %v18657_v39  ;;  %v14951_v24 = vadd.f32 %v14681_v16, %v14717_v11  ;;  %v4979_v55 = vmul.f32 %v14664_v53, %v18658_v28 }
 0x435   :  { %v14947_v51 = vadd.f32 %v14681_v16, %v4975_v12  ;;  %v14957_v9 = vadd.f32 %v14681_v16, %v14721_v10  ;;  %v4981_v39 = vmul.f32 %v14664_v53, %v14382_v36  ;;  %v14966_v12 = vadd.f32 %v14681_v16, %v14725_v6 }
 0x436   :  { %v14960_v8 = vadd.f32 %v14681_v16, %v4977_v33  ;;  %v4983_v11 = vmul.f32 %v14664_v53, %v14395_v43  ;;  %9489 = vmatmul.mubr.msk.f32.gmra.mxu0 %vm92_vm1, %v14796_v50  ;;  %v14975_v10 = vadd.f32 %v14681_v16, %v4979_v55  ;;  %v14979_v28 = vadd.f32 %v14681_v16, %v14729_v49 }
 0x437   :  { %9587 = vmatmul.mubr.msk.f32.gmra.mxu1 %vm92_vm1, %v14796_v50  ;;  %v4985_v36 = vmul.f32 %v14664_v53, %v14431_v56  ;;  %9491 = vmatprep.mubr.msk.f32.mxu0 %vm92_vm1, %v14819_v48  ;;  %v14988_v43 = vadd.f32 %v14681_v16, %v4981_v39  ;;  %v14995_v55 = vadd.f32 %v14681_v16, %v14733_v15 }
 0x438   :  { %9589 = vmatprep.mubr.msk.f32.mxu1 %vm92_vm1, %v14819_v48  ;;  %v14991_v6 = vadd.f32 %v14681_v16, %v4983_v11  ;;  %v4987_v56 = vmul.f32 %v14664_v53, %v14459_v63  ;;  %v15004_v33 = vadd.f32 %v14681_v16, %v14737_v13  ;;  %v4989_v39 = vmul.f32 %v14664_v53, %v14474_v7 }
 0x439   :  { %v14998_v49 = vadd.f32 %v14681_v16, %v4985_v36  ;;  %v15010_v11 = vadd.f32 %v14681_v16, %v14741_v35  ;;  %v4991_v15 = vmul.f32 %v14664_v53, %v14501_v1  ;;  %v15016_v36 = vadd.f32 %v14681_v16, %v14745_v37 }
 0x43a   :  { %v4993_v63 = vmul.f32 %v14664_v53, %v14527_v31  ;;  %9492 = vmatmul.mubr.msk.f32.gmra.mxu0 %vm92_vm1, %v14807_v42  ;;  %v15025_v7 = vadd.f32 %v14681_v16, %v4987_v56  ;;  %v15028_v13 = vadd.f32 %v14681_v16, %v4989_v39  ;;  %v15032_v1 = vadd.f32 %v14681_v16, %v14749_v57 }
 0x43b   :  { %9590 = vmatmul.mubr.msk.f32.gmra.mxu1 %vm92_vm1, %v14807_v42  ;;  %9494 = vmatprep.mubr.msk.f32.mxu0 %vm92_vm1, %v14829_v38  ;;  %v15039_v31 = vadd.f32 %v14681_v16, %v4991_v15  ;;  %v4995_v37 = vmul.f32 %v14664_v53, %v14539_v5  ;;  %v15048_v56 = vadd.f32 %v14681_v16, %v14753_v30 }
 0x43c   :  { %9592 = vmatprep.mubr.msk.f32.mxu1 %vm92_vm1, %v14829_v38  ;;  %v15042_v35 = vadd.f32 %v14681_v16, %v4993_v63  ;;  %v4997_v57 = vmul.f32 %v14664_v53, %v14566_v20  ;;  %v15054_v39 = vadd.f32 %v14681_v16, %v14757_v25  ;;  %v4999_v15 = vmul.f32 %v14664_v53, %v14589_v26 }
 0x43d   :  { %v15059_v63 = vadd.f32 %v14681_v16, %v4995_v37  ;;  %v15063_v5 = vadd.f32 %v14681_v16, %v14761_v44  ;;  %v5001_v30 = vmul.f32 %v14664_v53, %v14601_v45  ;;  %v15069_v20 = vadd.f32 %v14681_v16, %v14765_v60 }
 0x43e   :  { %9495 = vmatmul.mubr.msk.f32.gmra.mxu0 %vm92_vm1, %v14822_v46  ;;  %v15076_v26 = vadd.f32 %v14681_v16, %v4997_v57  ;;  %v15079_v25 = vadd.f32 %v14681_v16, %v4999_v15  ;;  %v5003_v44 = vmul.f32 %v14664_v53, %v14625_v2  ;;  %v15092_v60 = vadd.f32 %v14681_v16, %v14769_v3  ;;  %v18662_v3 = vld [vmem:[#allocation50_spill] sm:$0xff] }
 0x43f   :  { %9593 = vmatmul.mubr.msk.f32.gmra.mxu1 %vm92_vm1, %v14822_v46  ;;  %9497 = vmatprep.mubr.msk.f32.mxu0 %vm92_vm1, %v14850_v52  ;;  %v15088_v45 = vadd.f32 %v14681_v16, %v5001_v30  ;;  %v5005_v37 = vmul.f32 %v14664_v53, %v14644_v34  ;;  %v15101_v2 = vadd.f32 %v14681_v16, %v14773_v54  ;;  %v18659_v34 = vld [vmem:[#allocation56_spill] sm:$0xff]  ;;  %v18663_v54 = vld [vmem:[#allocation49_spill] sm:$0xff] }
 0x440   :  { %9595 = vmatprep.mubr.msk.f32.mxu1 %vm92_vm1, %v14850_v52  ;;  %v15097_v57 = vadd.f32 %v14681_v16, %v5003_v44  ;;  %v18660_v53 = vld [vmem:[#allocation52_spill] sm:$0xff]  ;;  %v18664_v30 = vld [vmem:[#allocation53_spill] sm:$0xff]  ;;  %v18665_v44 = vld [vmem:[#allocation51_spill] sm:$0xff] }
 0x441   :  { %v15104_v15 = vadd.f32 %v14681_v16, %v5005_v37  ;;  %v18661_v16 = vld [vmem:[#allocation47_spill] sm:$0xff] }
 0x442   :  { %9498 = vmatmul.mubr.msk.f32.gmra.mxu0 %vm92_vm1, %v14834_v62  ;;  %v18666_v37 = vld [vmem:[#allocation55_spill] sm:$0xff] }
 0x443   :  { %9596 = vmatmul.mubr.msk.f32.gmra.mxu1 %vm92_vm1, %v14834_v62  ;;  %9500 = vmatprep.mubr.msk.f32.mxu0 %vm92_vm1, %v14861_v18 }
 0x444   :  { %9598 = vmatprep.mubr.msk.f32.mxu1 %vm92_vm1, %v14861_v18 }
 0x446   :  { %9501 = vmatmul.mubr.msk.f32.gmra.mxu0 %vm92_vm1, %v14843_v17 }
 0x447   :  { %9599 = vmatmul.mubr.msk.f32.gmra.mxu1 %vm92_vm1, %v14843_v17  ;;  %9503 = vmatprep.mubr.msk.f32.mxu0 %vm92_vm1, %v14864_v40 }
 0x448   :  { %9601 = vmatprep.mubr.msk.f32.mxu1 %vm92_vm1, %v14864_v40 }
 0x44a   :  { %9504 = vmatmul.mubr.msk.f32.gmra.mxu0 %vm92_vm1, %v14853_v0 }
 0x44b   :  { %9602 = vmatmul.mubr.msk.f32.gmra.mxu1 %vm92_vm1, %v14853_v0  ;;  %9506 = vmatprep.mubr.msk.f32.mxu0 %vm92_vm1, %v14876_v32 }
 0x44c   :  { %9604 = vmatprep.mubr.msk.f32.mxu1 %vm92_vm1, %v14876_v32 }
 0x44e   :  { %9507 = vmatmul.mubr.msk.f32.gmra.mxu0 %vm92_vm1, %v14858_v61 }
 0x44f   :  { %9605 = vmatmul.mubr.msk.f32.gmra.mxu1 %vm92_vm1, %v14858_v61  ;;  %9509 = vmatprep.mubr.msk.f32.mxu0 %vm92_vm1, %v14889_v59 }
 0x450   :  { %9607 = vmatprep.mubr.msk.f32.mxu1 %vm92_vm1, %v14889_v59 }
 0x452   :  { %9510 = vmatmul.mubr.msk.f32.gmra.mxu0 %vm92_vm1, %v14869_v27 }
 0x453   :  { %9608 = vmatmul.mubr.msk.f32.gmra.mxu1 %vm92_vm1, %v14869_v27  ;;  %9512 = vmatprep.mubr.msk.f32.mxu0 %vm92_vm1, %v14898_v23 }
 0x454   :  { %9610 = vmatprep.mubr.msk.f32.mxu1 %vm92_vm1, %v14898_v23 }
 0x456   :  { %9513 = vmatmul.mubr.msk.f32.gmra.mxu0 %vm92_vm1, %v18659_v34 }
 0x457   :  { %9611 = vmatmul.mubr.msk.f32.gmra.mxu1 %vm92_vm1, %v18659_v34  ;;  %9515 = vmatprep.mubr.msk.f32.mxu0 %vm92_vm1, %v14909_v41 }
 0x458   :  { %9613 = vmatprep.mubr.msk.f32.mxu1 %vm92_vm1, %v14909_v41 }
 0x45a   :  { %9516 = vmatmul.mubr.msk.f32.gmra.mxu0 %vm92_vm1, %v14895_v47 }
 0x45b   :  { %9614 = vmatmul.mubr.msk.f32.gmra.mxu1 %vm92_vm1, %v14895_v47  ;;  %9518 = vmatprep.mubr.msk.f32.mxu0 %vm92_vm1, %v14926_v4 }
 0x45c   :  { %9616 = vmatprep.mubr.msk.f32.mxu1 %vm92_vm1, %v14926_v4 }
 0x45e   :  { %9519 = vmatmul.mubr.msk.f32.gmra.mxu0 %vm92_vm1, %v14904_v14 }
 0x45f   :  { %9617 = vmatmul.mubr.msk.f32.gmra.mxu1 %vm92_vm1, %v14904_v14  ;;  %9521 = vmatprep.mubr.msk.f32.mxu0 %vm92_vm1, %v14929_v22 }
 0x460   :  { %9619 = vmatprep.mubr.msk.f32.mxu1 %vm92_vm1, %v14929_v22 }
 0x462   :  { %9522 = vmatmul.mubr.msk.f32.gmra.mxu0 %vm92_vm1, %v14913_v58 }
 0x463   :  { %9620 = vmatmul.mubr.msk.f32.gmra.mxu1 %vm92_vm1, %v14913_v58  ;;  %9524 = vmatprep.mubr.msk.f32.mxu0 %vm92_vm1, %v14938_v29 }
 0x464   :  { %9622 = vmatprep.mubr.msk.f32.mxu1 %vm92_vm1, %v14938_v29 }
 0x466   :  { %9525 = vmatmul.mubr.msk.f32.gmra.mxu0 %vm92_vm1, %v14919_v21 }
 0x467   :  { %9623 = vmatmul.mubr.msk.f32.gmra.mxu1 %vm92_vm1, %v14919_v21  ;;  %9527 = vmatprep.mubr.msk.f32.mxu0 %vm92_vm1, %v14947_v51 }
 0x468   :  { %9625 = vmatprep.mubr.msk.f32.mxu1 %vm92_vm1, %v14947_v51 }
 0x46a   :  { %9528 = vmatmul.mubr.msk.f32.gmra.mxu0 %vm92_vm1, %v14942_v19 }
 0x46b   :  { %9626 = vmatmul.mubr.msk.f32.gmra.mxu1 %vm92_vm1, %v14942_v19  ;;  %9530 = vmatprep.mubr.msk.f32.mxu0 %vm92_vm1, %v14960_v8 }
 0x46c   :  { %9628 = vmatprep.mubr.msk.f32.mxu1 %vm92_vm1, %v14960_v8 }
 0x46e   :  { %9531 = vmatmul.mubr.msk.f32.gmra.mxu0 %vm92_vm1, %v14951_v24 }
 0x46f   :  { %9629 = vmatmul.mubr.msk.f32.gmra.mxu1 %vm92_vm1, %v14951_v24  ;;  %9533 = vmatprep.mubr.msk.f32.mxu0 %vm92_vm1, %v14975_v10 }
 0x470   :  { %9631 = vmatprep.mubr.msk.f32.mxu1 %vm92_vm1, %v14975_v10 }
 0x472   :  { %9534 = vmatmul.mubr.msk.f32.gmra.mxu0 %vm92_vm1, %v14957_v9 }
 0x473   :  { %9632 = vmatmul.mubr.msk.f32.gmra.mxu1 %vm92_vm1, %v14957_v9  ;;  %9536 = vmatprep.mubr.msk.f32.mxu0 %vm92_vm1, %v14988_v43 }
 0x474   :  { %9634 = vmatprep.mubr.msk.f32.mxu1 %vm92_vm1, %v14988_v43 }
 0x476   :  { %9537 = vmatmul.mubr.msk.f32.gmra.mxu0 %vm92_vm1, %v14966_v12 }
 0x477   :  { %9635 = vmatmul.mubr.msk.f32.gmra.mxu1 %vm92_vm1, %v14966_v12  ;;  %9539 = vmatprep.mubr.msk.f32.mxu0 %vm92_vm1, %v14991_v6 }
 0x478   :  { %9637 = vmatprep.mubr.msk.f32.mxu1 %vm92_vm1, %v14991_v6 }
 0x47a   :  { %9540 = vmatmul.mubr.msk.f32.gmra.mxu0 %vm92_vm1, %v14979_v28 }
 0x47b   :  { %9638 = vmatmul.mubr.msk.f32.gmra.mxu1 %vm92_vm1, %v14979_v28  ;;  %9542 = vmatprep.mubr.msk.f32.mxu0 %vm92_vm1, %v14998_v49 }
 0x47c   :  { %9640 = vmatprep.mubr.msk.f32.mxu1 %vm92_vm1, %v14998_v49 }
 0x47e   :  { %9543 = vmatmul.mubr.msk.f32.gmra.mxu0 %vm92_vm1, %v14995_v55 }
 0x47f   :  { %9641 = vmatmul.mubr.msk.f32.gmra.mxu1 %vm92_vm1, %v14995_v55  ;;  %9545 = vmatprep.mubr.msk.f32.mxu0 %vm92_vm1, %v15025_v7 }
 0x480   :  { %9643 = vmatprep.mubr.msk.f32.mxu1 %vm92_vm1, %v15025_v7 }
 0x482   :  { %9546 = vmatmul.mubr.msk.f32.gmra.mxu0 %vm92_vm1, %v15004_v33 }
 0x483   :  { %9644 = vmatmul.mubr.msk.f32.gmra.mxu1 %vm92_vm1, %v15004_v33  ;;  %9548 = vmatprep.mubr.msk.f32.mxu0 %vm92_vm1, %v15028_v13 }
 0x484   :  { %9646 = vmatprep.mubr.msk.f32.mxu1 %vm92_vm1, %v15028_v13 }
 0x486   :  { %9549 = vmatmul.mubr.msk.f32.gmra.mxu0 %vm92_vm1, %v15010_v11 }
 0x487   :  { %9647 = vmatmul.mubr.msk.f32.gmra.mxu1 %vm92_vm1, %v15010_v11  ;;  %9551 = vmatprep.mubr.msk.f32.mxu0 %vm92_vm1, %v15039_v31 }
 0x488   :  { %9649 = vmatprep.mubr.msk.f32.mxu1 %vm92_vm1, %v15039_v31 }
 0x48a   :  { %9552 = vmatmul.mubr.msk.f32.gmra.mxu0 %vm92_vm1, %v15016_v36 }
 0x48b   :  { %9650 = vmatmul.mubr.msk.f32.gmra.mxu1 %vm92_vm1, %v15016_v36  ;;  %9554 = vmatprep.mubr.msk.f32.mxu0 %vm92_vm1, %v15042_v35 }
 0x48c   :  { %9652 = vmatprep.mubr.msk.f32.mxu1 %vm92_vm1, %v15042_v35 }
 0x48e   :  { %9555 = vmatmul.mubr.msk.f32.gmra.mxu0 %vm92_vm1, %v15032_v1 }
 0x48f   :  { %9653 = vmatmul.mubr.msk.f32.gmra.mxu1 %vm92_vm1, %v15032_v1  ;;  %9557 = vmatprep.mubr.msk.f32.mxu0 %vm92_vm1, %v15059_v63 }
 0x490   :  { %9655 = vmatprep.mubr.msk.f32.mxu1 %vm92_vm1, %v15059_v63 }
 0x492   :  { %9558 = vmatmul.mubr.msk.f32.gmra.mxu0 %vm92_vm1, %v15048_v56 }
 0x493   :  { %9656 = vmatmul.mubr.msk.f32.gmra.mxu1 %vm92_vm1, %v15048_v56  ;;  %9560 = vmatprep.mubr.msk.f32.mxu0 %vm92_vm1, %v15076_v26 }
 0x494   :  { %9658 = vmatprep.mubr.msk.f32.mxu1 %vm92_vm1, %v15076_v26 }
 0x496   :  { %9561 = vmatmul.mubr.msk.f32.gmra.mxu0 %vm92_vm1, %v15054_v39 }
 0x497   :  { %9659 = vmatmul.mubr.msk.f32.gmra.mxu1 %vm92_vm1, %v15054_v39  ;;  %9563 = vmatprep.mubr.msk.f32.mxu0 %vm92_vm1, %v15079_v25 }
 0x498   :  { %9661 = vmatprep.mubr.msk.f32.mxu1 %vm92_vm1, %v15079_v25 }
 0x49a   :  { %9564 = vmatmul.mubr.msk.f32.gmra.mxu0 %vm92_vm1, %v15063_v5 }
 0x49b   :  { %9662 = vmatmul.mubr.msk.f32.gmra.mxu1 %vm92_vm1, %v15063_v5  ;;  %9566 = vmatprep.mubr.msk.f32.mxu0 %vm92_vm1, %v15088_v45 }
 0x49c   :  { %9664 = vmatprep.mubr.msk.f32.mxu1 %vm92_vm1, %v15088_v45 }
 0x49e   :  { %9567 = vmatmul.mubr.msk.f32.gmra.mxu0 %vm92_vm1, %v15069_v20 }
 0x49f   :  { %9665 = vmatmul.mubr.msk.f32.gmra.mxu1 %vm92_vm1, %v15069_v20  ;;  %9569 = vmatprep.mubr.msk.f32.mxu0 %vm92_vm1, %v15097_v57 }
 0x4a0   :  { %9667 = vmatprep.mubr.msk.f32.mxu1 %vm92_vm1, %v15097_v57 }
 0x4a2   :  { %9570 = vmatmul.mubr.msk.f32.gmra.mxu0 %vm92_vm1, %v15092_v60 }
 0x4a3   :  { %9668 = vmatmul.mubr.msk.f32.gmra.mxu1 %vm92_vm1, %v15092_v60  ;;  %9572 = vmatprep.mubr.msk.f32.mxu0 %vm92_vm1, %v15104_v15 }
 0x4a4   :  { %9670 = vmatprep.mubr.msk.f32.mxu1 %vm92_vm1, %v15104_v15 }
 0x4a6   :  { %9573 = vmatmul.mubr.msk.f32.gmra.mxu0 %vm92_vm1, %v15101_v2 }
 0x4a7   :  { %9671 = vmatmul.mubr.msk.f32.gmra.mxu1 %vm92_vm1, %v15101_v2  ;;  %9675 = vmatprep.mubr.msk.f32.mxu0 %vm92_vm1, %v18660_v53 }
 0x4aa   :  { %9676 = vmatmul.mubr.msk.f32.vlgmr.msra.gmra.mxu0 %vm92_vm1, %v18661_v16 }
 0x4ab   :  { %9678 = vmatprep.mubr.msk.f32.mxu0 %vm92_vm1, %v18662_v3 }
 0x4ae   :  { %9679 = vmatmul.mubr.msk.f32.gmra.mxu0 %vm92_vm1, %v18663_v54 }
 0x4af   :  { %9681 = vmatprep.mubr.msk.f32.mxu0 %vm92_vm1, %v18664_v30 }
 0x4b2   :  { %9682 = vmatmul.mubr.msk.f32.gmra.mxu0 %vm92_vm1, %v18665_v44 }
 0x4b3   :  { %9684 = vmatprep.mubr.msk.f32.mxu0 %vm92_vm1, %v18666_v37 }
 0x4b6   :  { %9685 = vmatmul.mubr.msk.f32.gmra.mxu0 %vm92_vm1, %v14796_v50 }
 0x4b7   :  { %9687 = vmatprep.mubr.msk.f32.mxu0 %vm92_vm1, %v14819_v48 }
 0x4ba   :  { %9688 = vmatmul.mubr.msk.f32.gmra.mxu0 %vm92_vm1, %v14807_v42 }
 0x4bb   :  { %9690 = vmatprep.mubr.msk.f32.mxu0 %vm92_vm1, %v14829_v38 }
 0x4be   :  { %9691 = vmatmul.mubr.msk.f32.gmra.mxu0 %vm92_vm1, %v14822_v46 }
 0x4bf   :  { %9693 = vmatprep.mubr.msk.f32.mxu0 %vm92_vm1, %v14850_v52 }
 0x4c2   :  { %9694 = vmatmul.mubr.msk.f32.gmra.mxu0 %vm92_vm1, %v14834_v62 }
 0x4c3   :  { %9696 = vmatprep.mubr.msk.f32.mxu0 %vm92_vm1, %v14861_v18 }
 0x4c6   :  { %9697 = vmatmul.mubr.msk.f32.gmra.mxu0 %vm92_vm1, %v14843_v17 }
 0x4c7   :  { %9699 = vmatprep.mubr.msk.f32.mxu0 %vm92_vm1, %v14864_v40 }
 0x4ca   :  { %9700 = vmatmul.mubr.msk.f32.gmra.mxu0 %vm92_vm1, %v14853_v0 }
 0x4cb   :  { %9702 = vmatprep.mubr.msk.f32.mxu0 %vm92_vm1, %v14876_v32 }
 0x4ce   :  { %9703 = vmatmul.mubr.msk.f32.gmra.mxu0 %vm92_vm1, %v14858_v61 }
 0x4cf   :  { %9705 = vmatprep.mubr.msk.f32.mxu0 %vm92_vm1, %v14889_v59 }
 0x4d2   :  { %9706 = vmatmul.mubr.msk.f32.gmra.mxu0 %vm92_vm1, %v14869_v27 }
 0x4d3   :  { %9708 = vmatprep.mubr.msk.f32.mxu0 %vm92_vm1, %v14898_v23 }
 0x4d6   :  { %9709 = vmatmul.mubr.msk.f32.gmra.mxu0 %vm92_vm1, %v18659_v34 }
 0x4d7   :  { %9711 = vmatprep.mubr.msk.f32.mxu0 %vm92_vm1, %v14909_v41 }
 0x4da   :  { %9712 = vmatmul.mubr.msk.f32.gmra.mxu0 %vm92_vm1, %v14895_v47 }
 0x4db   :  { %9714 = vmatprep.mubr.msk.f32.mxu0 %vm92_vm1, %v14926_v4 }
 0x4de   :  { %9715 = vmatmul.mubr.msk.f32.gmra.mxu0 %vm92_vm1, %v14904_v14 }
 0x4df   :  { %9717 = vmatprep.mubr.msk.f32.mxu0 %vm92_vm1, %v14929_v22 }
 0x4e2   :  { %9718 = vmatmul.mubr.msk.f32.gmra.mxu0 %vm92_vm1, %v14913_v58 }
 0x4e3   :  { %9720 = vmatprep.mubr.msk.f32.mxu0 %vm92_vm1, %v14938_v29 }
 0x4e6   :  { %9721 = vmatmul.mubr.msk.f32.gmra.mxu0 %vm92_vm1, %v14919_v21 }
 0x4e7   :  { %9723 = vmatprep.mubr.msk.f32.mxu0 %vm92_vm1, %v14947_v51 }
 0x4ea   :  { %v9481_v50 = vpop.f32.mrf.mxu0  ;;  %v15376_v41 = vpop.f32.mrf.mxu1  ;;  %9724 = vmatmul.mubr.msk.f32.gmra.mxu0 %vm92_vm1, %v14942_v19 }
 0x4eb   :  { %9726 = vmatprep.mubr.msk.f32.mxu0 %vm92_vm1, %v14960_v8  ;;  %v6448_v46 = vrot.slane %v9481_v50, 7 }
 0x4ec   :  { %v15382_v42 = vpop.f32.mrf.mxu0  ;;  %v15384_v48 = vpop.f32.mrf.mxu1 }
 0x4ed   :  { %18667 = vst [vmem:[#allocation57_spill] sm:$0xff] %v15382_v42  ;;  %18668 = vst [vmem:[#allocation54_spill] sm:$0xff] %v15384_v48  ;;  %v18215_v38 = vrot.slane %v15382_v42, 7 }
 0x4ee   :  { %v9484_v62 = vpop.f32.mrf.mxu0  ;;  %9727 = vmatmul.mubr.msk.f32.gmra.mxu0 %vm92_vm1, %v14951_v24 }
 0x4ef   :  { %v15387_v17 = vpop.f32.mrf.mxu1  ;;  %9729 = vmatprep.mubr.msk.f32.mxu0 %vm92_vm1, %v14975_v10  ;;  %v15397_v0 = vsel %vm1525_vm2, %v18215_v38, %v6448_v46  ;;  %v6450_v27 = vrot.slane %v9484_v62, 7 }
 0x4f0   :  { %18670 = vst [vmem:[#allocation5_spill] sm:$0xff] %v15397_v0  ;;  %v5350_v61 = vpop.f32.mrf.mxu0 }
 0x4f1   :  { %v15399_v18 = vpop.f32.mrf.mxu1  ;;  %v6449_v40 = vrot.slane %v5350_v61, 7 }
 0x4f2   :  { %v9487_v32 = vpop.f32.mrf.mxu0  ;;  %9730 = vmatmul.mubr.msk.f32.gmra.mxu0 %vm92_vm1, %v14957_v9 }
 0x4f3   :  { %v15401_v14 = vpop.f32.mrf.mxu1  ;;  %9732 = vmatprep.mubr.msk.f32.mxu0 %vm92_vm1, %v14988_v43  ;;  %v15411_v23 = vsel %vm1525_vm2, %v6449_v40, %v6450_v27  ;;  %v15415_v58 = vsel %vm1525_vm2, %v6448_v46, %v6449_v40  ;;  %v6452_v4 = vrot.slane %v9487_v32, 7 }
 0x4f4   :  { %v5360_v59 = vpop.f32.mrf.mxu0  ;;  %18671 = vst [vmem:[#allocation58_spill] sm:$0xff] %v15411_v23 }
 0x4f5   :  { %v15407_v47 = vpop.f32.mrf.mxu1  ;;  %v6451_v21 = vrot.slane %v5360_v59, 7 }
 0x4f6   :  { %v9490_v22 = vpop.f32.mrf.mxu0  ;;  %9733 = vmatmul.mubr.msk.f32.gmra.mxu0 %vm92_vm1, %v14966_v12 }
 0x4f7   :  { %v15417_v29 = vpop.f32.mrf.mxu1  ;;  %9735 = vmatprep.mubr.msk.f32.mxu0 %vm92_vm1, %v14991_v6  ;;  %v15427_v24 = vsel %vm1525_vm2, %v6451_v21, %v6452_v4  ;;  %v15431_v9 = vsel %vm1525_vm2, %v6450_v27, %v6451_v21  ;;  %v6454_v10 = vrot.slane %v9490_v22, 7 }
 0x4f8   :  { %v5370_v19 = vpop.f32.mrf.mxu0  ;;  %18672 = vst [vmem:[#allocation59_spill] sm:$0xff] %v15427_v24 }
 0x4f9   :  { %v15423_v51 = vpop.f32.mrf.mxu1  ;;  %v6453_v8 = vrot.slane %v5370_v19, 7 }
 0x4fa   :  { %v9493_v43 = vpop.f32.mrf.mxu0  ;;  %9736 = vmatmul.mubr.msk.f32.gmra.mxu0 %vm92_vm1, %v14979_v28 }
 0x4fb   :  { %v15433_v34 = vpop.f32.mrf.mxu1  ;;  %9738 = vmatprep.mubr.msk.f32.mxu0 %vm92_vm1, %v14998_v49  ;;  %v15443_v53 = vsel %vm1525_vm2, %v6453_v8, %v6454_v10  ;;  %v15447_v16 = vsel %vm1525_vm2, %v6452_v4, %v6453_v8  ;;  %v6456_v54 = vrot.slane %v9493_v43, 7 }
 0x4fc   :  { %v5380_v12 = vpop.f32.mrf.mxu0  ;;  %18673 = vst [vmem:[#allocation60_spill] sm:$0xff] %v15443_v53 }
 0x4fd   :  { %v15439_v6 = vpop.f32.mrf.mxu1  ;;  %v6455_v3 = vrot.slane %v5380_v12, 7 }
 0x4fe   :  { %v9496_v30 = vpop.f32.mrf.mxu0  ;;  %9739 = vmatmul.mubr.msk.f32.gmra.mxu0 %vm92_vm1, %v14995_v55 }
 0x4ff   :  { %v15449_v44 = vpop.f32.mrf.mxu1  ;;  %9741 = vmatprep.mubr.msk.f32.mxu0 %vm92_vm1, %v15025_v7  ;;  %v15459_v37 = vsel %vm1525_vm2, %v6455_v3, %v6456_v54  ;;  %v15463_v50 = vsel %vm1525_vm2, %v6454_v10, %v6455_v3  ;;  %v6458_v62 = vrot.slane %v9496_v30, 7 }
 0x500   :  { %v5390_v28 = vpop.f32.mrf.mxu0  ;;  %18674 = vst [vmem:[#allocation6_spill] sm:$0xff] %v15459_v37 }
 0x501   :  { %v15455_v49 = vpop.f32.mrf.mxu1  ;;  %v6457_v46 = vrot.slane %v5390_v28, 7 }
 0x502   :  { %v9499_v61 = vpop.f32.mrf.mxu0  ;;  %9742 = vmatmul.mubr.msk.f32.gmra.mxu0 %vm92_vm1, %v15004_v33 }
 0x503   :  { %v15465_v40 = vpop.f32.mrf.mxu1  ;;  %9744 = vmatprep.mubr.msk.f32.mxu0 %vm92_vm1, %v15028_v13  ;;  %v15475_v27 = vsel %vm1525_vm2, %v6457_v46, %v6458_v62  ;;  %v15479_v32 = vsel %vm1525_vm2, %v6456_v54, %v6457_v46  ;;  %v6460_v21 = vrot.slane %v9499_v61, 7 }
 0x504   :  { %v5400_v55 = vpop.f32.mrf.mxu0  ;;  %18675 = vst [vmem:[#allocation8_spill] sm:$0xff] %v15475_v27 }
 0x505   :  { %v15471_v7 = vpop.f32.mrf.mxu1  ;;  %v6459_v59 = vrot.slane %v5400_v55, 7 }
 0x506   :  { %v9502_v4 = vpop.f32.mrf.mxu0  ;;  %9745 = vmatmul.mubr.msk.f32.gmra.mxu0 %vm92_vm1, %v15010_v11 }
 0x507   :  { %v15481_v22 = vpop.f32.mrf.mxu1  ;;  %9747 = vmatprep.mubr.msk.f32.mxu0 %vm92_vm1, %v15039_v31  ;;  %v15491_v19 = vsel %vm1525_vm2, %v6459_v59, %v6460_v21  ;;  %v15495_v8 = vsel %vm1525_vm2, %v6458_v62, %v6459_v59  ;;  %v6462_v43 = vrot.slane %v9502_v4, 7 }
 0x508   :  { %v5410_v33 = vpop.f32.mrf.mxu0  ;;  %18676 = vst [vmem:[#allocation7_spill] sm:$0xff] %v15491_v19 }
 0x509   :  { %v15487_v13 = vpop.f32.mrf.mxu1  ;;  %v6461_v10 = vrot.slane %v5410_v33, 7 }
 0x50a   :  { %v9505_v12 = vpop.f32.mrf.mxu0  ;;  %9748 = vmatmul.mubr.msk.f32.gmra.mxu0 %vm92_vm1, %v15016_v36 }
 0x50b   :  { %v15497_v3 = vpop.f32.mrf.mxu1  ;;  %9750 = vmatprep.mubr.msk.f32.mxu0 %vm92_vm1, %v15042_v35  ;;  %v15507_v54 = vsel %vm1525_vm2, %v6461_v10, %v6462_v43  ;;  %v15511_v30 = vsel %vm1525_vm2, %v6460_v21, %v6461_v10  ;;  %v6464_v46 = vrot.slane %v9505_v12, 7 }
 0x50c   :  { %v5420_v11 = vpop.f32.mrf.mxu0  ;;  %18677 = vst [vmem:[#allocation9_spill] sm:$0xff] %v15507_v54 }
 0x50d   :  { %v15503_v31 = vpop.f32.mrf.mxu1  ;;  %v6463_v28 = vrot.slane %v5420_v11, 7 }
 0x50e   :  { %v9508_v62 = vpop.f32.mrf.mxu0  ;;  %9751 = vmatmul.mubr.msk.f32.gmra.mxu0 %vm92_vm1, %v15032_v1 }
 0x50f   :  { %v15513_v61 = vpop.f32.mrf.mxu1  ;;  %9753 = vmatprep.mubr.msk.f32.mxu0 %vm92_vm1, %v15059_v63  ;;  %v15523_v55 = vsel %vm1525_vm2, %v6463_v28, %v6464_v46  ;;  %v15527_v59 = vsel %vm1525_vm2, %v6462_v43, %v6463_v28  ;;  %v6466_v4 = vrot.slane %v9508_v62, 7 }
 0x510   :  { %v5430_v36 = vpop.f32.mrf.mxu0  ;;  %18678 = vst [vmem:[#allocation21_spill] sm:$0xff] %v15523_v55 }
 0x511   :  { %v15519_v35 = vpop.f32.mrf.mxu1  ;;  %v6465_v21 = vrot.slane %v5430_v36, 7 }
 0x512   :  { %v9511_v33 = vpop.f32.mrf.mxu0  ;;  %9754 = vmatmul.mubr.msk.f32.gmra.mxu0 %vm92_vm1, %v15048_v56 }
 0x513   :  { %v15529_v10 = vpop.f32.mrf.mxu1  ;;  %9756 = vmatprep.mubr.msk.f32.mxu0 %vm92_vm1, %v15076_v26  ;;  %v15539_v12 = vsel %vm1525_vm2, %v6465_v21, %v6466_v4  ;;  %v15543_v43 = vsel %vm1525_vm2, %v6464_v46, %v6465_v21  ;;  %v6468_v28 = vrot.slane %v9511_v33, 7 }
 0x514   :  { %v5440_v1 = vpop.f32.mrf.mxu0  ;;  %18679 = vst [vmem:[#allocation28_spill] sm:$0xff] %v15539_v12 }
 0x515   :  { %v15535_v63 = vpop.f32.mrf.mxu1  ;;  %v6467_v11 = vrot.slane %v5440_v1, 7 }
 0x516   :  { %v9514_v62 = vpop.f32.mrf.mxu0  ;;  %9757 = vmatmul.mubr.msk.f32.gmra.mxu0 %vm92_vm1, %v15054_v39 }
 0x517   :  { %v15545_v36 = vpop.f32.mrf.mxu1  ;;  %9759 = vmatprep.mubr.msk.f32.mxu0 %vm92_vm1, %v15079_v25  ;;  %v15555_v38 = vsel %vm1525_vm2, %v6467_v11, %v6468_v28  ;;  %v15559_v46 = vsel %vm1525_vm2, %v6466_v4, %v6467_v11  ;;  %v6470_v33 = vrot.slane %v9514_v62, 7 }
 0x518   :  { %v5450_v56 = vpop.f32.mrf.mxu0  ;;  %18680 = vst [vmem:[#allocation10_spill] sm:$0xff] %v15555_v38 }
 0x519   :  { %v15551_v26 = vpop.f32.mrf.mxu1  ;;  %v6469_v21 = vrot.slane %v5450_v56, 7 }
 0x51a   :  { %v9517_v1 = vpop.f32.mrf.mxu0  ;;  %9760 = vmatmul.mubr.msk.f32.gmra.mxu0 %vm92_vm1, %v15063_v5 }
 0x51b   :  { %v15561_v12 = vpop.f32.mrf.mxu1  ;;  %9762 = vmatprep.mubr.msk.f32.mxu0 %vm92_vm1, %v15088_v45  ;;  %v15571_v38 = vsel %vm1525_vm2, %v6469_v21, %v6470_v33  ;;  %v15575_v4 = vsel %vm1525_vm2, %v6468_v28, %v6469_v21  ;;  %v6472_v62 = vrot.slane %v9517_v1, 7 }
 0x51c   :  { %v5460_v39 = vpop.f32.mrf.mxu0  ;;  %18681 = vst [vmem:[#allocation22_spill] sm:$0xff] %v15571_v38 }
 0x51d   :  { %v15567_v25 = vpop.f32.mrf.mxu1  ;;  %v6471_v11 = vrot.slane %v5460_v39, 7 }
 0x51e   :  { %v9520_v56 = vpop.f32.mrf.mxu0  ;;  %9763 = vmatmul.mubr.msk.f32.gmra.mxu0 %vm92_vm1, %v15069_v20 }
 0x51f   :  { %v15577_v55 = vpop.f32.mrf.mxu1  ;;  %9765 = vmatprep.mubr.msk.f32.mxu0 %vm92_vm1, %v15097_v57  ;;  %v15587_v38 = vsel %vm1525_vm2, %v6471_v11, %v6472_v62  ;;  %v15591_v28 = vsel %vm1525_vm2, %v6470_v33, %v6471_v11  ;;  %v6474_v1 = vrot.slane %v9520_v56, 7 }
 0x520   :  { %v5470_v5 = vpop.f32.mrf.mxu0  ;;  %18682 = vst [vmem:[#allocation26_spill] sm:$0xff] %v15587_v38 }
 0x521   :  { %v15583_v45 = vpop.f32.mrf.mxu1  ;;  %v6473_v21 = vrot.slane %v5470_v5, 7 }
 0x522   :  { %v9523_v39 = vpop.f32.mrf.mxu0  ;;  %9766 = vmatmul.mubr.msk.f32.gmra.mxu0 %vm92_vm1, %v15092_v60 }
 0x523   :  { %v15593_v54 = vpop.f32.mrf.mxu1  ;;  %9768 = vmatprep.mubr.msk.f32.mxu0 %vm92_vm1, %v15104_v15  ;;  %v15603_v38 = vsel %vm1525_vm2, %v6473_v21, %v6474_v1  ;;  %v15607_v33 = vsel %vm1525_vm2, %v6472_v62, %v6473_v21  ;;  %v6476_v56 = vrot.slane %v9523_v39, 7 }
 0x524   :  { %v5480_v20 = vpop.f32.mrf.mxu0  ;;  %18683 = vst [vmem:[#allocation24_spill] sm:$0xff] %v15603_v38  ;;  %18684 = vst [vmem:[#allocation23_spill] sm:$0xff] %v15607_v33 }
 0x525   :  { %v15599_v57 = vpop.f32.mrf.mxu1  ;;  %v6475_v11 = vrot.slane %v5480_v20, 7 }
 0x526   :  { %v9526_v5 = vpop.f32.mrf.mxu0  ;;  %9769 = vmatmul.mubr.msk.f32.gmra.mxu0 %vm92_vm1, %v15101_v2 }
 0x527   :  { %v15609_v19 = vpop.f32.mrf.mxu1  ;;  %v15617_v27 = vsel %vm1525_vm2, %v6475_v11, %v6476_v56  ;;  %v15621_v38 = vsel %vm1525_vm2, %v6474_v1, %v6475_v11  ;;  %v6478_v21 = vrot.slane %v9526_v5, 7  ;;  %v6705_v5 = vrot.slane %v15399_v18, 1 }
 0x528   :  { %v5490_v60 = vpop.f32.mrf.mxu0  ;;  %18685 = vst [vmem:[#allocation62_spill] sm:$0xff] %v15617_v27  ;;  %18686 = vst [vmem:[#allocation61_spill] sm:$0xff] %v15621_v38  ;;  %v6707_v18 = vrot.slane %v15407_v47, 1 }
 0x529   :  { %v15613_v15 = vpop.f32.mrf.mxu1  ;;  %v6477_v62 = vrot.slane %v5490_v60, 7 }
 0x52a   :  { %v9529_v39 = vpop.f32.mrf.mxu0 }
 0x52b   :  { %v15623_v20 = vpop.f32.mrf.mxu1  ;;  %v15629_v2 = vsel %vm1525_vm2, %v6477_v62, %v6478_v21  ;;  %v15633_v24 = vsel %vm1525_vm2, %v6476_v56, %v6477_v62  ;;  %v6480_v23 = vrot.slane %v9529_v39, 7  ;;  %v18217_v62 = vrot.slane %v15384_v48, 1 }
 0x52c   :  { %18687 = vst [vmem:[#allocation63_spill] sm:$0xff] %v15623_v20  ;;  %v5500_v37 = vpop.f32.mrf.mxu0  ;;  %18688 = vst [vmem:[#allocation65_spill] sm:$0xff] %v15629_v2  ;;  %v6712_v48 = vrot.slane %v15433_v34, 1  ;;  %v6715_v34 = vrot.slane %v15471_v7, 1 }
 0x52d   :  { %v15625_v53 = vpop.f32.mrf.mxu1  ;;  %18689 = vst [vmem:[#allocation67_spill] sm:$0xff] %v15633_v24  ;;  %v6479_v27 = vrot.slane %v5500_v37, 7  ;;  %v6704_v37 = vrot.slane %v15376_v41, 1 }
 0x52e   :  { %v9532_v1 = vpop.f32.mrf.mxu0 }
 0x52f   :  { %v15635_v11 = vpop.f32.mrf.mxu1  ;;  %v15642_v42 = vsel %vm1525_vm2, %v6479_v27, %v6480_v23  ;;  %v15646_v2 = vsel %vm1525_vm2, %v6478_v21, %v6479_v27  ;;  %v6482_v39 = vrot.slane %v9532_v1, 7  ;;  %v6828_v38 = vsel %vm1782_vm4, %v6704_v37, %v6705_v5 }
 0x530   :  { %18690 = vst [vmem:[#allocation64_spill] sm:$0xff] %v15635_v11  ;;  %v5510_v60 = vpop.f32.mrf.mxu0  ;;  %18691 = vst [vmem:[#allocation66_spill] sm:$0xff] %v15642_v42  ;;  %v6709_v42 = vrot.slane %v15423_v51, 1  ;;  %v6706_v21 = vrot.slane %v15387_v17, 1  ;;  %v15671_v47 = vsel %vm1782_vm4, %v18217_v62, %v6704_v37  ;;  %v6708_v51 = vrot.slane %v15401_v14, 1 }
 0x531   :  { %v15638_v0 = vpop.f32.mrf.mxu1  ;;  %18692 = vst [vmem:[#allocation69_spill] sm:$0xff] %v15646_v2  ;;  %v6481_v56 = vrot.slane %v5510_v60, 7  ;;  %18695 = vst [vmem:[#allocation71_spill] sm:$0xff] %v15671_v47 }
 0x532   :  { %v9535_v24 = vpop.f32.mrf.mxu0  ;;  %v6826_v17 = vsel %vm1782_vm4, %v6706_v21, %v6707_v18  ;;  %v6824_v14 = vsel %vm1782_vm4, %v6708_v51, %v6709_v42 }
 0x533   :  { %v15650_v11 = vpop.f32.mrf.mxu1  ;;  %v15660_v27 = vsel %vm1525_vm2, %v6481_v56, %v6482_v39  ;;  %v15664_v41 = vsel %vm1525_vm2, %v6480_v23, %v6481_v56  ;;  %v6484_v60 = vrot.slane %v9535_v24, 7  ;;  %v6711_v23 = vrot.slane %v15439_v6, 1 }
 0x534   :  { %18693 = vst [vmem:[#allocation68_spill] sm:$0xff] %v15650_v11  ;;  %v5520_v20 = vpop.f32.mrf.mxu0  ;;  %18694 = vst [vmem:[#allocation70_spill] sm:$0xff] %v15660_v27  ;;  %v15678_v27 = vsel %vm1782_vm4, %v6705_v5, %v6706_v21  ;;  %v15685_v56 = vsel %vm26_vm5, %v6828_v38, 0.0  ;;  %v6713_v24 = vrot.slane %v15455_v49, 1  ;;  %v15702_v38 = vsel %vm1782_vm4, %v6707_v18, %v6708_v51 }
 0x535   :  { %v15656_v33 = vpop.f32.mrf.mxu1  ;;  %v6483_v1 = vrot.slane %v5520_v20, 7  ;;  %18696 = vst [vmem:[#allocation72_spill] sm:$0xff] %v15678_v27  ;;  %18698 = vst [vmem:[#allocation73_spill] sm:$0xff] %v15685_v56  ;;  %v6710_v6 = vrot.slane %v15417_v29, 1  ;;  %v15708_v49 = vsel %vm23_vm3, %v15415_v58, 0.0  ;;  %v15720_v29 = vsel %vm23_vm3, %v15431_v9, 0.0 }
 0x536   :  { %v9538_v2 = vpop.f32.mrf.mxu0  ;;  %18700 = vst [vmem:[#allocation76_spill] sm:$0xff] %v15702_v38  ;;  %18701 = vst [vmem:[#allocation74_spill] sm:$0xff] %v15720_v29  ;;  %v6717_v51 = vrot.slane %v15487_v13, 1  ;;  %v15748_v7 = vsel %vm1782_vm4, %v6711_v23, %v6712_v48  ;;  %v15754_v13 = vsel %vm23_vm3, %v15447_v16, 0.0 }
 0x537   :  { %v15674_v11 = vpop.f32.mrf.mxu1  ;;  %v15694_v5 = vsel %vm1525_vm2, %v6483_v1, %v6484_v60  ;;  %v15698_v21 = vsel %vm1525_vm2, %v6482_v39, %v6483_v1  ;;  %v6486_v47 = vrot.slane %v9538_v2, 7  ;;  %v15715_v39 = vsel %vm26_vm5, %v6826_v17, 0.0  ;;  %18704 = vst [vmem:[#allocation80_spill] sm:$0xff] %v15748_v7 }
 0x538   :  { %v5530_v37 = vpop.f32.mrf.mxu0  ;;  %18699 = vst [vmem:[#allocation75_spill] sm:$0xff] %v15694_v5  ;;  %v15724_v18 = vsel %vm1782_vm4, %v6709_v42, %v6710_v6  ;;  %v6822_v58 = vsel %vm1782_vm4, %v6710_v6, %v6711_v23  ;;  %v15731_v2 = vsel %vm26_vm5, %v6824_v14, 0.0  ;;  %v6820_v1 = vsel %vm1782_vm4, %v6712_v48, %v6713_v24 }
 0x539   :  { %v15690_v62 = vpop.f32.mrf.mxu1  ;;  %v6485_v27 = vrot.slane %v5530_v37, 7  ;;  %18702 = vst [vmem:[#allocation77_spill] sm:$0xff] %v15724_v18  ;;  %v6714_v14 = vrot.slane %v15449_v44, 1  ;;  %v6716_v18 = vrot.slane %v15465_v40, 1  ;;  %v15766_v48 = vsel %vm23_vm3, %v15463_v50, 0.0 }
 0x53a   :  { %v9541_v5 = vpop.f32.mrf.mxu0  ;;  %18705 = vst [vmem:[#allocation79_spill] sm:$0xff] %v15766_v48  ;;  %v6719_v40 = vrot.slane %v15503_v31, 1 }
 0x53b   :  { %v15711_v56 = vpop.f32.mrf.mxu1  ;;  %v15740_v42 = vsel %vm1525_vm2, %v6485_v27, %v6486_v47  ;;  %v15744_v37 = vsel %vm1525_vm2, %v6484_v60, %v6485_v27  ;;  %v6488_v38 = vrot.slane %v9541_v5, 7  ;;  %v15761_v27 = vsel %vm26_vm5, %v6822_v58, 0.0 }
 0x53c   :  { %v5540_v9 = vpop.f32.mrf.mxu0  ;;  %18703 = vst [vmem:[#allocation78_spill] sm:$0xff] %v15740_v42  ;;  %v15770_v44 = vsel %vm1782_vm4, %v6713_v24, %v6714_v14  ;;  %v6818_v16 = vsel %vm1782_vm4, %v6714_v14, %v6715_v34  ;;  %v15777_v60 = vsel %vm26_vm5, %v6820_v1, 0.0  ;;  %v6816_v23 = vsel %vm1782_vm4, %v6716_v18, %v6717_v51 }
 0x53d   :  { %v15736_v17 = vpop.f32.mrf.mxu1  ;;  %v6487_v6 = vrot.slane %v5540_v9, 7  ;;  %18706 = vst [vmem:[#allocation81_spill] sm:$0xff] %v15770_v44  ;;  %v6721_v5 = vrot.slane %v15519_v35, 1  ;;  %v15794_v31 = vsel %vm1782_vm4, %v6715_v34, %v6716_v18  ;;  %v6718_v1 = vrot.slane %v15481_v22, 1 }
 0x53e   :  { %v9544_v42 = vpop.f32.mrf.mxu0  ;;  %18708 = vst [vmem:[#allocation84_spill] sm:$0xff] %v15794_v31  ;;  %v15800_v35 = vsel %vm23_vm3, %v15479_v32, 0.0  ;;  %v6720_v44 = vrot.slane %v15497_v3, 1  ;;  %v15812_v22 = vsel %vm23_vm3, %v15495_v8, 0.0  ;;  %v6723_v3 = vrot.slane %v15535_v63, 1 }
 0x53f   :  { %v15757_v29 = vpop.f32.mrf.mxu1  ;;  %v15786_v24 = vsel %vm1525_vm2, %v6487_v6, %v6488_v38  ;;  %v15790_v9 = vsel %vm1525_vm2, %v6486_v47, %v6487_v6  ;;  %v6490_v7 = vrot.slane %v9544_v42, 7  ;;  %v15807_v47 = vsel %vm26_vm5, %v6818_v16, 0.0  ;;  %18709 = vst [vmem:[#allocation86_spill] sm:$0xff] %v15812_v22 }
 0x540   :  { %v5550_v50 = vpop.f32.mrf.mxu0  ;;  %18707 = vst [vmem:[#allocation85_spill] sm:$0xff] %v15786_v24  ;;  %v15816_v18 = vsel %vm1782_vm4, %v6717_v51, %v6718_v1  ;;  %v6814_v32 = vsel %vm1782_vm4, %v6718_v1, %v6719_v40  ;;  %v15823_v34 = vsel %vm26_vm5, %v6816_v23, 0.0  ;;  %v6812_v42 = vsel %vm1782_vm4, %v6720_v44, %v6721_v5 }
 0x541   :  { %v15782_v58 = vpop.f32.mrf.mxu1  ;;  %v6489_v14 = vrot.slane %v5550_v50, 7  ;;  %18710 = vst [vmem:[#allocation82_spill] sm:$0xff] %v15816_v18  ;;  %v6725_v6 = vrot.slane %v15551_v26, 1  ;;  %v15840_v63 = vsel %vm1782_vm4, %v6719_v40, %v6720_v44  ;;  %v6722_v23 = vrot.slane %v15513_v61, 1 }
 0x542   :  { %v9547_v24 = vpop.f32.mrf.mxu0  ;;  %18712 = vst [vmem:[#allocation87_spill] sm:$0xff] %v15840_v63  ;;  %v15846_v26 = vsel %vm23_vm3, %v15511_v30, 0.0  ;;  %v6724_v18 = vrot.slane %v15529_v10, 1  ;;  %v15858_v61 = vsel %vm23_vm3, %v15527_v59, 0.0  ;;  %v6727_v10 = vrot.slane %v15567_v25, 1 }
 0x543   :  { %v15803_v48 = vpop.f32.mrf.mxu1  ;;  %v15832_v51 = vsel %vm1525_vm2, %v6489_v14, %v6490_v7  ;;  %v15836_v50 = vsel %vm1525_vm2, %v6488_v38, %v6489_v14  ;;  %v6492_v31 = vrot.slane %v9547_v24, 7  ;;  %v15853_v38 = vsel %vm26_vm5, %v6814_v32, 0.0  ;;  %18713 = vst [vmem:[#allocation14_spill] sm:$0xff] %v15858_v61 }
 0x544   :  { %v5560_v8 = vpop.f32.mrf.mxu0  ;;  %18711 = vst [vmem:[#allocation11_spill] sm:$0xff] %v15832_v51  ;;  %v15862_v44 = vsel %vm1782_vm4, %v6721_v5, %v6722_v23  ;;  %v6810_v30 = vsel %vm1782_vm4, %v6722_v23, %v6723_v3  ;;  %v15869_v40 = vsel %vm26_vm5, %v6812_v42, 0.0  ;;  %v6808_v24 = vsel %vm1782_vm4, %v6724_v18, %v6725_v6 }
 0x545   :  { %v15828_v16 = vpop.f32.mrf.mxu1  ;;  %v6491_v1 = vrot.slane %v5560_v8, 7  ;;  %18714 = vst [vmem:[#allocation89_spill] sm:$0xff] %v15862_v44  ;;  %v6729_v14 = vrot.slane %v15583_v45, 1  ;;  %v15886_v25 = vsel %vm1782_vm4, %v6723_v3, %v6724_v18  ;;  %v6726_v42 = vrot.slane %v15545_v36, 1 }
 0x546   :  { %v9550_v51 = vpop.f32.mrf.mxu0  ;;  %18716 = vst [vmem:[#allocation90_spill] sm:$0xff] %v15886_v25  ;;  %v15892_v45 = vsel %vm23_vm3, %v15543_v43, 0.0  ;;  %v6728_v44 = vrot.slane %v15561_v12, 1  ;;  %v15904_v36 = vsel %vm23_vm3, %v15559_v46, 0.0  ;;  %v6731_v43 = vrot.slane %v15599_v57, 1 }
 0x547   :  { %v15849_v22 = vpop.f32.mrf.mxu1  ;;  %v15878_v5 = vsel %vm1525_vm2, %v6491_v1, %v6492_v31  ;;  %v15882_v8 = vsel %vm1525_vm2, %v6490_v7, %v6491_v1  ;;  %v6494_v63 = vrot.slane %v9550_v51, 7  ;;  %v15899_v7 = vsel %vm26_vm5, %v6810_v30, 0.0  ;;  %18717 = vst [vmem:[#allocation93_spill] sm:$0xff] %v15904_v36 }
 0x548   :  { %v5570_v59 = vpop.f32.mrf.mxu0  ;;  %18715 = vst [vmem:[#allocation12_spill] sm:$0xff] %v15878_v5  ;;  %v15908_v18 = vsel %vm1782_vm4, %v6725_v6, %v6726_v42  ;;  %v6806_v12 = vsel %vm1782_vm4, %v6726_v42, %v6727_v10  ;;  %v15915_v3 = vsel %vm26_vm5, %v6808_v24, 0.0  ;;  %v6804_v51 = vsel %vm1782_vm4, %v6728_v44, %v6729_v14 }
 0x549   :  { %v15874_v32 = vpop.f32.mrf.mxu1  ;;  %v6493_v23 = vrot.slane %v5570_v59, 7  ;;  %18718 = vst [vmem:[#allocation25_spill] sm:$0xff] %v15908_v18  ;;  %v6733_v1 = vrot.slane %v15613_v15, 1  ;;  %v15932_v57 = vsel %vm1782_vm4, %v6727_v10, %v6728_v44  ;;  %v6730_v24 = vrot.slane %v15577_v55, 1 }
 0x54a   :  { %v9553_v5 = vpop.f32.mrf.mxu0  ;;  %18720 = vst [vmem:[#allocation83_spill] sm:$0xff] %v15932_v57  ;;  %v15938_v15 = vsel %vm23_vm3, %v15575_v4, 0.0  ;;  %v6732_v18 = vrot.slane %v15593_v54, 1  ;;  %v15950_v55 = vsel %vm23_vm3, %v15591_v28, 0.0  ;;  %v6735_v4 = vrot.slane %v15625_v53, 1  ;;  %v18730_v57 = vld [vmem:[#allocation63_spill] sm:$0xff] }
 0x54b   :  { %v15895_v61 = vpop.f32.mrf.mxu1  ;;  %v15924_v6 = vsel %vm1525_vm2, %v6493_v23, %v6494_v63  ;;  %v15928_v59 = vsel %vm1525_vm2, %v6492_v31, %v6493_v23  ;;  %18721 = vst [vmem:[#allocation88_spill] sm:$0xff] %v15938_v15  ;;  %v6496_v25 = vrot.slane %v9553_v5, 7  ;;  %v15945_v31 = vsel %vm26_vm5, %v6806_v12, 0.0  ;;  %18723 = vst [vmem:[#allocation15_spill] sm:$0xff] %v15950_v55 }
 0x54c   :  { %v5580_v46 = vpop.f32.mrf.mxu0  ;;  %18719 = vst [vmem:[#allocation91_spill] sm:$0xff] %v15924_v6  ;;  %18722 = vst [vmem:[#allocation13_spill] sm:$0xff] %v15945_v31  ;;  %v15954_v44 = vsel %vm1782_vm4, %v6729_v14, %v6730_v24  ;;  %v6802_v54 = vsel %vm1782_vm4, %v6730_v24, %v6731_v43  ;;  %v15961_v10 = vsel %vm26_vm5, %v6804_v51, 0.0  ;;  %v6800_v5 = vsel %vm1782_vm4, %v6732_v18, %v6733_v1 }
 0x54d   :  { %v15920_v30 = vpop.f32.mrf.mxu1  ;;  %v6495_v42 = vrot.slane %v5580_v46, 7  ;;  %18724 = vst [vmem:[#allocation16_spill] sm:$0xff] %v15954_v44  ;;  %18725 = vst [vmem:[#allocation34_spill] sm:$0xff] %v15961_v10  ;;  %v6737_v23 = vrot.slane %v15638_v0, 1  ;;  %v15978_v53 = vsel %vm1782_vm4, %v6731_v43, %v6732_v18  ;;  %v6734_v51 = vrot.slane %v15609_v19, 1  ;;  %v18728_v44 = vld [vmem:[#allocation23_spill] sm:$0xff] }
 0x54e   :  { %v9556_v6 = vpop.f32.mrf.mxu0  ;;  %18727 = vst [vmem:[#allocation32_spill] sm:$0xff] %v15978_v53  ;;  %v15984_v0 = vsel %vm23_vm3, %v18728_v44, 0.0  ;;  %v6736_v10 = vrot.slane %v18730_v57, 1  ;;  %v18732_v18 = vld [vmem:[#allocation61_spill] sm:$0xff] }
 0x54f   :  { %v15941_v36 = vpop.f32.mrf.mxu1  ;;  %v15970_v14 = vsel %vm1525_vm2, %v6495_v42, %v6496_v25  ;;  %v15974_v46 = vsel %vm1525_vm2, %v6494_v63, %v6495_v42  ;;  %18729 = vst [vmem:[#allocation35_spill] sm:$0xff] %v15984_v0  ;;  %v6498_v55 = vrot.slane %v9556_v6, 7  ;;  %v15991_v63 = vsel %vm26_vm5, %v6802_v54, 0.0 }
 0x550   :  { %v5590_v28 = vpop.f32.mrf.mxu0  ;;  %18726 = vst [vmem:[#allocation31_spill] sm:$0xff] %v15970_v14  ;;  %18731 = vst [vmem:[#allocation20_spill] sm:$0xff] %v15991_v63  ;;  %v15996_v19 = vsel %vm23_vm3, %v18732_v18, 0.0  ;;  %v16000_v43 = vsel %vm1782_vm4, %v6733_v1, %v6734_v51  ;;  %v6798_v57 = vsel %vm1782_vm4, %v6734_v51, %v6735_v4  ;;  %v6739_v6 = vrot.slane %v15656_v33, 1 }
 0x551   :  { %v15966_v12 = vpop.f32.mrf.mxu1  ;;  %v6497_v24 = vrot.slane %v5590_v28, 7  ;;  %18733 = vst [vmem:[#allocation38_spill] sm:$0xff] %v15996_v19  ;;  %18734 = vst [vmem:[#allocation39_spill] sm:$0xff] %v16000_v43  ;;  %v16007_v42 = vsel %vm26_vm5, %v6800_v5, 0.0  ;;  %v6796_v44 = vsel %vm1782_vm4, %v6736_v10, %v6737_v23  ;;  %v6741_v54 = vrot.slane %v15690_v62, 1  ;;  %v18738_v5 = vld [vmem:[#allocation64_spill] sm:$0xff] }
 0x552   :  { %v9559_v14 = vpop.f32.mrf.mxu0  ;;  %18735 = vst [vmem:[#allocation41_spill] sm:$0xff] %v16007_v42  ;;  %v16024_v33 = vsel %vm1782_vm4, %v6735_v4, %v6736_v10  ;;  %v6738_v43 = vrot.slane %v18738_v5, 1  ;;  %v18739_v42 = vld [vmem:[#allocation67_spill] sm:$0xff]  ;;  %v18740_v19 = vld [vmem:[#allocation68_spill] sm:$0xff]  ;;  %v18741_v4 = vld [vmem:[#allocation69_spill] sm:$0xff] }
 0x553   :  { %v15987_v31 = vpop.f32.mrf.mxu1  ;;  %v16016_v1 = vsel %vm1525_vm2, %v6497_v24, %v6498_v55  ;;  %v16020_v51 = vsel %vm1525_vm2, %v6496_v25, %v6497_v24  ;;  %18737 = vst [vmem:[#allocation27_spill] sm:$0xff] %v16024_v33  ;;  %v16030_v62 = vsel %vm23_vm3, %v18739_v42, 0.0  ;;  %v6740_v0 = vrot.slane %v18740_v19, 1 }
 0x554   :  { %v5600_v28 = vpop.f32.mrf.mxu0  ;;  %18736 = vst [vmem:[#allocation92_spill] sm:$0xff] %v16016_v1  ;;  %v6500_v63 = vrot.slane %v9559_v14, 7  ;;  %v16037_v25 = vsel %vm26_vm5, %v6798_v57, 0.0  ;;  %v16042_v10 = vsel %vm23_vm3, %v18741_v4, 0.0  ;;  %v16046_v24 = vsel %vm1782_vm4, %v6737_v23, %v6738_v43 }
 0x555   :  { %v16012_v18 = vpop.f32.mrf.mxu1  ;;  %v6499_v53 = vrot.slane %v5600_v28, 7  ;;  %18742 = vst [vmem:[#allocation29_spill] sm:$0xff] %v16042_v10  ;;  %18743 = vst [vmem:[#allocation30_spill] sm:$0xff] %v16046_v24  ;;  %v6794_v19 = vsel %vm1782_vm4, %v6738_v43, %v6739_v6  ;;  %v6743_v14 = vrot.slane %v15736_v17, 1  ;;  %v16053_v42 = vsel %vm26_vm5, %v6796_v44, 0.0 }
 0x556   :  { %v9562_v1 = vpop.f32.mrf.mxu0  ;;  %18744 = vst [vmem:[#allocation17_spill] sm:$0xff] %v16053_v42  ;;  %v6792_v57 = vsel %vm1782_vm4, %v6740_v0, %v6741_v54  ;;  %v6745_v28 = vrot.slane %v15782_v58, 1  ;;  %v16070_v17 = vsel %vm1782_vm4, %v6739_v6, %v6740_v0  ;;  %v6742_v44 = vrot.slane %v15674_v11, 1 }
 0x557   :  { %v16033_v15 = vpop.f32.mrf.mxu1  ;;  %v16062_v23 = vsel %vm1525_vm2, %v6499_v53, %v6500_v63  ;;  %v16066_v43 = vsel %vm1525_vm2, %v6498_v55, %v6499_v53  ;;  %18746 = vst [vmem:[#allocation19_spill] sm:$0xff] %v16070_v17  ;;  %v16076_v58 = vsel %vm23_vm3, %v15664_v41, 0.0  ;;  %v6744_v33 = vrot.slane %v15711_v56, 1 }
 0x558   :  { %v5610_v5 = vpop.f32.mrf.mxu0  ;;  %18745 = vst [vmem:[#allocation18_spill] sm:$0xff] %v16062_v23  ;;  %v6502_v10 = vrot.slane %v9562_v1, 7  ;;  %v16083_v55 = vsel %vm26_vm5, %v6794_v19, 0.0  ;;  %v16088_v11 = vsel %vm23_vm3, %v15698_v21, 0.0  ;;  %v16092_v53 = vsel %vm1782_vm4, %v6741_v54, %v6742_v44 }
 0x559   :  { %v16058_v4 = vpop.f32.mrf.mxu1  ;;  %v6501_v24 = vrot.slane %v5610_v5, 7  ;;  %18747 = vst [vmem:[#allocation36_spill] sm:$0xff] %v16088_v11  ;;  %18748 = vst [vmem:[#allocation33_spill] sm:$0xff] %v16092_v53  ;;  %v6790_v41 = vsel %vm1782_vm4, %v6742_v44, %v6743_v14  ;;  %v6747_v56 = vrot.slane %v15828_v16, 1  ;;  %v16099_v0 = vsel %vm26_vm5, %v6792_v57, 0.0 }
 0x55a   :  { %v9565_v23 = vpop.f32.mrf.mxu0  ;;  %v6788_v6 = vsel %vm1782_vm4, %v6744_v33, %v6745_v28  ;;  %v6749_v1 = vrot.slane %v15874_v32, 1  ;;  %v16116_v16 = vsel %vm1782_vm4, %v6743_v14, %v6744_v33  ;;  %v6746_v57 = vrot.slane %v15757_v29, 1 }
 0x55b   :  { %v16079_v42 = vpop.f32.mrf.mxu1  ;;  %v16108_v54 = vsel %vm1525_vm2, %v6501_v24, %v6502_v10  ;;  %v16112_v5 = vsel %vm1525_vm2, %v6500_v63, %v6501_v24  ;;  %18750 = vst [vmem:[#allocation43_spill] sm:$0xff] %v16116_v16  ;;  %v16122_v32 = vsel %vm23_vm3, %v15744_v37, 0.0  ;;  %v6748_v53 = vrot.slane %v15803_v48, 1 }
 0x55c   :  { %v5620_v21 = vpop.f32.mrf.mxu0  ;;  %18749 = vst [vmem:[#allocation37_spill] sm:$0xff] %v16108_v54  ;;  %v6504_v17 = vrot.slane %v9565_v23, 7  ;;  %v16129_v63 = vsel %vm26_vm5, %v6790_v41, 0.0  ;;  %v16134_v29 = vsel %vm23_vm3, %v15790_v9, 0.0  ;;  %v16138_v33 = vsel %vm1782_vm4, %v6745_v28, %v6746_v57 }
 0x55d   :  { %v16104_v19 = vpop.f32.mrf.mxu1  ;;  %v6503_v44 = vrot.slane %v5620_v21, 7  ;;  %18751 = vst [vmem:[#allocation40_spill] sm:$0xff] %v16138_v33  ;;  %v6786_v37 = vsel %vm1782_vm4, %v6746_v57, %v6747_v56  ;;  %v6751_v48 = vrot.slane %v15920_v30, 1  ;;  %v16145_v24 = vsel %vm26_vm5, %v6788_v6, 0.0 }
 0x55e   :  { %v9568_v54 = vpop.f32.mrf.mxu0  ;;  %v6784_v14 = vsel %vm1782_vm4, %v6748_v53, %v6749_v1  ;;  %v16154_v9 = vsel %vm23_vm3, %v15836_v50, 0.0  ;;  %v16166_v6 = vsel %vm1782_vm4, %v6747_v56, %v6748_v53  ;;  %v6750_v21 = vrot.slane %v15849_v22, 1 }
 0x55f   :  { %v16125_v11 = vpop.f32.mrf.mxu1  ;;  %18752 = vst [vmem:[#allocation42_spill] sm:$0xff] %v16154_v9  ;;  %v16158_v28 = vsel %vm1525_vm2, %v6503_v44, %v6504_v17  ;;  %v16162_v30 = vsel %vm1525_vm2, %v6502_v10, %v6503_v44  ;;  %v6753_v57 = vrot.slane %v15966_v12, 1  ;;  %v6752_v50 = vrot.slane %v15895_v61, 1 }
 0x560   :  { %v5630_v23 = vpop.f32.mrf.mxu0  ;;  %18753 = vst [vmem:[#allocation45_spill] sm:$0xff] %v16158_v28  ;;  %v6506_v9 = vrot.slane %v9568_v54, 7  ;;  %v16173_v28 = vsel %vm26_vm5, %v6786_v37, 0.0  ;;  %v16178_v10 = vsel %vm23_vm3, %v15882_v8, 0.0  ;;  %v16182_v53 = vsel %vm1782_vm4, %v6749_v1, %v6750_v21 }
 0x561   :  { %v16149_v41 = vpop.f32.mrf.mxu1  ;;  %v6505_v33 = vrot.slane %v5630_v23, 7  ;;  %18754 = vst [vmem:[#allocation44_spill] sm:$0xff] %v16182_v53  ;;  %v6782_v22 = vsel %vm1782_vm4, %v6750_v21, %v6751_v48  ;;  %v6755_v61 = vrot.slane %v16012_v18, 1  ;;  %v16191_v56 = vsel %vm26_vm5, %v6784_v14, 0.0 }
 0x562   :  { %v9571_v16 = vpop.f32.mrf.mxu0  ;;  %v16195_v54 = vsel %vm1782_vm4, %v6751_v48, %v6752_v50  ;;  %v16200_v1 = vsel %vm23_vm3, %v15928_v59, 0.0  ;;  %v6754_v37 = vrot.slane %v15941_v36, 1  ;;  %v6780_v48 = vsel %vm1782_vm4, %v6752_v50, %v6753_v57 }
 0x563   :  { %v16187_v12 = vpop.f32.mrf.mxu1  ;;  %18755 = vst [vmem:[#allocation48_spill] sm:$0xff] %v16195_v54  ;;  %v16204_v44 = vsel %vm1525_vm2, %v6505_v33, %v6506_v9  ;;  %v16208_v18 = vsel %vm1525_vm2, %v6504_v17, %v6505_v33  ;;  %v6757_v14 = vrot.slane %v16058_v4, 1  ;;  %v6759_v21 = vrot.slane %v16104_v19, 1 }
 0x564   :  { %v5640_v8 = vpop.f32.mrf.mxu0  ;;  %18756 = vst [vmem:[#allocation46_spill] sm:$0xff] %v16204_v44  ;;  %v6508_v59 = vrot.slane %v9571_v16, 7  ;;  %v16217_v53 = vsel %vm26_vm5, %v6782_v22, 0.0  ;;  %v16222_v17 = vsel %vm23_vm3, %v15974_v46, 0.0  ;;  %v16226_v36 = vsel %vm1782_vm4, %v6753_v57, %v6754_v37 }
 0x565   :  { %v6507_v23 = vrot.slane %v5640_v8, 7  ;;  %18757 = vst [vmem:[#allocation56_spill] sm:$0xff] %v16226_v36  ;;  %v6756_v4 = vrot.slane %v15987_v31, 1  ;;  %v6778_v19 = vsel %vm1782_vm4, %v6754_v37, %v6755_v61  ;;  %v6032_v16 = vpop.f32.mrf.mxu1  ;;  %v6758_v50 = vrot.slane %v16033_v15, 1  ;;  %v16235_v8 = vld [vmem:[%s18119_s2 + $0x2] ss:$0 sm:$0xff] }
 0x566   :  { %v9574_v54 = vpop.f32.mrf.mxu0  ;;  %v16239_v46 = vsel %vm26_vm5, %v6780_v48, 0.0  ;;  %v16256_v48 = vsel %vm23_vm3, %v16020_v51, 0.0  ;;  %v6760_v44 = vrot.slane %v16079_v42, 1  ;;  %v18763_v42 = vld [vmem:[#allocation57_spill] sm:$0xff] }
 0x567   :  { %v6510_v33 = vrot.slane %v9574_v54, 7  ;;  %v16243_v31 = vsel %vm1525_vm2, %v6507_v23, %v6508_v59  ;;  %v6514_v57 = vsel %vm1525_vm2, %v6506_v9, %v6507_v23  ;;  %v16249_v15 = vsel %vm1782_vm4, %v6755_v61, %v6756_v4  ;;  %18760 = vst [vmem:[#allocation50_spill] sm:$0xff] %v16256_v48 }
 0x568   :  { %v5650_v22 = vpop.f32.mrf.mxu0  ;;  %18758 = vst [vmem:[#allocation52_spill] sm:$0xff] %v16243_v31  ;;  %18759 = vst [vmem:[#allocation47_spill] sm:$0xff] %v16249_v15  ;;  %v6776_v54 = vsel %vm1782_vm4, %v6756_v4, %v6757_v14  ;;  %v6774_v31 = vsel %vm1782_vm4, %v6758_v50, %v6759_v21  ;;  %v16263_v9 = vsel %vm26_vm5, %v6778_v19, 0.0  ;;  %v16268_v61 = vsel %vm23_vm3, %v16066_v43, 0.0  ;;  %v16271_v4 = vpop.f32.mrf.mxu1 }
 0x569   :  { %v6509_v37 = vrot.slane %v5650_v22, 7  ;;  %18761 = vst [vmem:[#allocation49_spill] sm:$0xff] %v16268_v61  ;;  %v6761_v23 = vrot.slane %v16149_v41, 1  ;;  %18762 = vst [vmem:[#allocation53_spill] sm:$0xff] %v16271_v4  ;;  %v18764_v22 = vrot.slane %v18763_v42, 7  ;;  %v16284_v48 = vsel %vm1782_vm4, %v6757_v14, %v6758_v50 }
 0x56a   :  { %v9677_v36 = vpop.f32.mrf.mxu0  ;;  %18766 = vst [vmem:[#allocation55_spill] sm:$0xff] %v16284_v48  ;;  %v6763_v43 = vrot.slane %v6032_v16, 1  ;;  %v16288_v41 = vsel %vm26_vm5, %v6776_v54, 0.0  ;;  %v16296_v42 = vsel %vm1782_vm4, %v6759_v21, %v6760_v44  ;;  %v16303_v14 = vsel %vm23_vm3, %v16112_v5, 0.0 }
 0x56b   :  { %v6134_v51 = vadd.f32 %v9677_v36, %v16235_v8  ;;  %v6574_v15 = vsel %vm1525_vm2, %v6510_v33, %v18764_v22  ;;  %v16280_v19 = vsel %vm1525_vm2, %v6509_v37, %v6510_v33  ;;  %v16292_v36 = vsel %vm1525_vm2, %v6508_v59, %v6509_v37  ;;  %18768 = vst [vmem:[#allocation3_spill] sm:$0xff] %v16296_v42  ;;  %v18769_v33 = vld [vmem:[#allocation5_spill] sm:$0xff] }
 0x56c   :  { %18765 = vst [vmem:[#allocation51_spill] sm:$0xff] %v16280_v19  ;;  %v6128_v61 = vpop.f32.mrf.mxu0  ;;  %18767 = vst [vmem:[#allocation2_spill] sm:$0xff] %v16292_v36  ;;  %v6762_v16 = vrot.slane %v16125_v11, 1  ;;  %v6575_v59 = vsel %vm23_vm3, %v6574_v15, 0.0  ;;  %v16311_v21 = vsel %vm26_vm5, %v6774_v31, 0.0  ;;  %v6772_v37 = vsel %vm1782_vm4, %v6760_v44, %v6761_v23  ;;  %v16329_v44 = vpop.f32.mrf.mxu1 }
 0x56d   :  { %v6640_v22 = vadd.f32 %v18769_v33, %v6134_v51  ;;  %v6129_v19 = vadd.f32 %v16235_v8, %v6128_v61  ;;  %v18770_v61 = vld [vmem:[#allocation73_spill] sm:$0xff]  ;;  %v18219_v50 = vrot.slane %v16187_v12, 1  ;;  %v16327_v31 = vsel %vm23_vm3, %v16162_v30, 0.0 }
 0x56e   :  { %v9680_v54 = vpop.f32.mrf.mxu0  ;;  %v16319_v11 = vsel %vm1782_vm4, %v6761_v23, %v6762_v16  ;;  %v6770_v15 = vsel %vm1782_vm4, %v6762_v16, %v6763_v43  ;;  %18772 = vst [vmem:[#allocation63_spill] sm:$0xff] %v16327_v31  ;;  %v18778_v30 = vrot.slane %v16271_v4, 1 }
 0x56f   :  { %v6896_v51 = vadd.f32 %v18770_v61, %v6640_v22  ;;  %v6639_v33 = vadd.f32 %v6575_v59, %v6129_v19  ;;  %v6144_v5 = vadd.f32 %v9680_v54, %v16235_v8  ;;  %18771 = vst [vmem:[#allocation23_spill] sm:$0xff] %v16319_v11  ;;  %v18773_v22 = vld [vmem:[#allocation71_spill] sm:$0xff]  ;;  %v18774_v54 = vld [vmem:[#allocation58_spill] sm:$0xff]  ;;  %v16338_v16 = vsel %vm1782_vm4, %v6763_v43, %v18219_v50 }
 0x570   :  { %v6138_v36 = vpop.f32.mrf.mxu0  ;;  %18775 = vst [vmem:[#allocation61_spill] sm:$0xff] %v16338_v16  ;;  %v18776_v11 = vld [vmem:[#allocation54_spill] sm:$0xff] }
 0x571   :  { %v6960_v19 = vmul.f32 0.01, %v6896_v51  ;;  %v6895_v59 = vadd.f32 %v18773_v22, %v6639_v33  ;;  %v6642_v61 = vadd.f32 %v18774_v54, %v6144_v5  ;;  %v6139_v23 = vadd.f32 %v16235_v8, %v6138_v36 }
 0x572   :  { %v18777_v42 = vrot.slane %v18776_v11, 1  ;;  %v9683_v48 = vpop.f32.mrf.mxu0  ;;  %v16348_v33 = vsel %vm26_vm5, %v6772_v37, 0.0  ;;  %v16353_v36 = vsel %vm23_vm3, %v16208_v18, 0.0  ;;  %v16363_v37 = vsel %vm26_vm5, %v6770_v15, 0.0 }
 0x573   :  { %18779 = vst [vmem:[#allocation64_spill] sm:$0xff] %v16353_v36  ;;  %v16355_v5 = vmax.f32 %v6896_v51, %v6960_v19  ;;  %v6959_v43 = vmul.f32 0.01, %v6895_v59  ;;  %v6898_v11 = vadd.f32 %v15715_v39, %v6642_v61  ;;  %v6641_v22 = vadd.f32 %v15708_v49, %v6139_v23  ;;  %18781 = vst [vmem:[#allocation68_spill] sm:$0xff] %v16363_v37  ;;  %v18785_v61 = vld [vmem:[#allocation72_spill] sm:$0xff]  ;;  %v18786_v23 = vld [vmem:[#allocation59_spill] sm:$0xff] }
 0x574   :  { %v6830_v31 = vsel %vm1782_vm4, %v18778_v30, %v18777_v42  ;;  %v6154_v42 = vadd.f32 %v9683_v48, %v16235_v8  ;;  %v6148_v30 = vpop.f32.mrf.mxu0  ;;  %v16367_v18 = vsel %vm23_vm3, %v6514_v57, 0.0 }
 0x575   :  { %18780 = vst [vmem:[#allocation67_spill] sm:$0xff] %v16355_v5  ;;  %18782 = vst [vmem:[#allocation69_spill] sm:$0xff] %v16367_v18  ;;  %v7222_v51 = vmul.f32 %v16355_v5, %v16355_v5  ;;  %v16371_v19 = vmax.f32 %v6895_v59, %v6959_v43  ;;  %v6962_v39 = vmul.f32 0.01, %v6898_v11  ;;  %v16375_v49 = vsel %vm26_vm5, %v6830_v31, 0.0 }
 0x576   :  { %18784 = vst [vmem:[#allocation5_spill] sm:$0xff] %v16375_v49  ;;  %v7088_v48 = vsel %vm92_vm1, %v16355_v5, 0.0  ;;  %v6897_v15 = vadd.f32 %v18785_v61, %v6641_v22  ;;  %v6644_v50 = vadd.f32 %v18786_v23, %v6154_v42  ;;  %v6149_v57 = vadd.f32 %v16235_v8, %v6148_v30  ;;  %v9686_v54 = vpop.f32.mrf.mxu0  ;;  %v18788_v22 = vld [vmem:[#allocation74_spill] sm:$0xff] }
 0x577   :  { %18783 = vst [vmem:[#allocation57_spill] sm:$0xff] %v16371_v19  ;;  %v7286_v4 = vsel %vm92_vm1, %v7222_v51, 0.0  ;;  %v7087_v59 = vsel %vm92_vm1, %v16371_v19, 0.0  ;;  %v7221_v43 = vmul.f32 %v16371_v19, %v16371_v19  ;;  %v16387_v31 = vmax.f32 %v6898_v11, %v6962_v39 }
 0x578   :  { %v7089_v49 = vadd.f32 %v7088_v48, %v7087_v59  ;;  %v6961_v16 = vmul.f32 0.01, %v6897_v15  ;;  %v6900_v5 = vadd.f32 %v15731_v2, %v6644_v50  ;;  %v6643_v61 = vadd.f32 %v18788_v22, %v6149_v57  ;;  %v6158_v42 = vpop.f32.mrf.mxu0  ;;  %v18790_v48 = vld [vmem:[#allocation76_spill] sm:$0xff] }
 0x579   :  { %18787 = vst [vmem:[#allocation73_spill] sm:$0xff] %v16387_v31  ;;  %v7285_v30 = vsel %vm92_vm1, %v7221_v43, 0.0  ;;  %v7092_v51 = vsel %vm92_vm1, %v16387_v31, 0.0  ;;  %v7224_v23 = vmul.f32 %v16387_v31, %v16387_v31  ;;  %v6164_v18 = vadd.f32 %v9686_v54, %v16235_v8  ;;  %v18791_v57 = vld [vmem:[#allocation60_spill] sm:$0xff] }
 0x57a   :  { %v7287_v19 = vadd.f32 %v7286_v4, %v7285_v30  ;;  %v16397_v11 = vmax.f32 %v6897_v15, %v6961_v16  ;;  %v6964_v39 = vmul.f32 0.01, %v6900_v5  ;;  %v6899_v59 = vadd.f32 %v18790_v48, %v6643_v61  ;;  %v9689_v2 = vpop.f32.mrf.mxu0 }
 0x57b   :  { %v7290_v50 = vsel %vm92_vm1, %v7224_v23, 0.0  ;;  %v6646_v22 = vadd.f32 %v18791_v57, %v6164_v18  ;;  %v6159_v43 = vadd.f32 %v16235_v8, %v6158_v42  ;;  %v6174_v37 = vadd.f32 %v9689_v2, %v16235_v8  ;;  %v18793_v18 = vld [vmem:[#allocation6_spill] sm:$0xff] }
 0x57c   :  { %18789 = vst [vmem:[#allocation71_spill] sm:$0xff] %v16397_v11  ;;  %v7090_v31 = vsel %vm92_vm1, %v16397_v11, 0.0  ;;  %v7223_v4 = vmul.f32 %v16397_v11, %v16397_v11  ;;  %v16408_v16 = vmax.f32 %v6900_v5, %v6964_v39  ;;  %v6963_v54 = vmul.f32 0.01, %v6899_v59  ;;  %v6168_v15 = vpop.f32.mrf.mxu0 }
 0x57d   :  { %v7091_v61 = vadd.f32 %v7090_v31, %v7089_v49  ;;  %v6902_v30 = vadd.f32 %v15761_v27, %v6646_v22  ;;  %v6645_v23 = vadd.f32 %v15754_v13, %v6159_v43  ;;  %v6648_v48 = vadd.f32 %v18793_v18, %v6174_v37  ;;  %v18794_v31 = vld [vmem:[#allocation77_spill] sm:$0xff] }
 0x57e   :  { %18792 = vst [vmem:[#allocation58_spill] sm:$0xff] %v16408_v16  ;;  %v7288_v42 = vsel %vm92_vm1, %v7223_v4, 0.0  ;;  %v7096_v2 = vsel %vm92_vm1, %v16408_v16, 0.0  ;;  %v7226_v57 = vmul.f32 %v16408_v16, %v16408_v16  ;;  %v16418_v11 = vmax.f32 %v6899_v59, %v6963_v54  ;;  %v9692_v5 = vpop.f32.mrf.mxu0 }
 0x57f   :  { %v7093_v39 = vadd.f32 %v7092_v51, %v7091_v61  ;;  %v7289_v36 = vadd.f32 %v7288_v42, %v7287_v19  ;;  %v6966_v49 = vmul.f32 0.01, %v6902_v30  ;;  %v6901_v27 = vadd.f32 %v18794_v31, %v6645_v23 }
 0x580   :  { %v7294_v13 = vsel %vm92_vm1, %v7226_v57, 0.0  ;;  %v7094_v37 = vsel %vm92_vm1, %v16418_v11, 0.0  ;;  %v7225_v22 = vmul.f32 %v16418_v11, %v16418_v11  ;;  %v6904_v43 = vadd.f32 %v15777_v60, %v6648_v48  ;;  %v6178_v4 = vpop.f32.mrf.mxu0  ;;  %v18798_v48 = vld [vmem:[#allocation79_spill] sm:$0xff] }
 0x581   :  { %v7291_v18 = vadd.f32 %v7290_v50, %v7289_v36  ;;  %v7095_v59 = vadd.f32 %v7094_v37, %v7093_v39  ;;  %v16427_v54 = vmax.f32 %v6902_v30, %v6966_v49  ;;  %v6965_v51 = vmul.f32 0.01, %v6901_v27  ;;  %v18799_v49 = vld [vmem:[#allocation8_spill] sm:$0xff] }
 0x582   :  { %v7292_v19 = vsel %vm92_vm1, %v7225_v22, 0.0  ;;  %v6968_v61 = vmul.f32 0.01, %v6904_v43  ;;  %v6169_v23 = vadd.f32 %v16235_v8, %v6168_v15  ;;  %v6184_v42 = vadd.f32 %v9692_v5, %v16235_v8  ;;  %v9695_v57 = vpop.f32.mrf.mxu0 }
 0x583   :  { %18795 = vst [vmem:[#allocation54_spill] sm:$0xff] %v16427_v54  ;;  %v7293_v31 = vadd.f32 %v7292_v19, %v7291_v18  ;;  %v7100_v16 = vsel %vm92_vm1, %v16427_v54, 0.0  ;;  %v7228_v60 = vmul.f32 %v16427_v54, %v16427_v54  ;;  %v16436_v36 = vmax.f32 %v6901_v27, %v6965_v51 }
 0x584   :  { %v7097_v50 = vadd.f32 %v7096_v2, %v7095_v59  ;;  %v16438_v30 = vmax.f32 %v6904_v43, %v6968_v61  ;;  %v6647_v39 = vadd.f32 %v18798_v48, %v6169_v23  ;;  %v6650_v37 = vadd.f32 %v18799_v49, %v6184_v42  ;;  %v6188_v15 = vpop.f32.mrf.mxu0  ;;  %v18800_v43 = vld [vmem:[#allocation80_spill] sm:$0xff] }
 0x585   :  { %18796 = vst [vmem:[#allocation72_spill] sm:$0xff] %v16436_v36  ;;  %v7298_v5 = vsel %vm92_vm1, %v7228_v60, 0.0  ;;  %v7098_v22 = vsel %vm92_vm1, %v16436_v36, 0.0  ;;  %v7227_v18 = vmul.f32 %v16436_v36, %v16436_v36  ;;  %v7295_v19 = vadd.f32 %v7294_v13, %v7293_v31  ;;  %v18801_v36 = vld [vmem:[#allocation7_spill] sm:$0xff] }
 0x586   :  { %18797 = vst [vmem:[#allocation59_spill] sm:$0xff] %v16438_v30  ;;  %v7099_v54 = vadd.f32 %v7098_v22, %v7097_v50  ;;  %v7104_v2 = vsel %vm92_vm1, %v16438_v30, 0.0  ;;  %v7230_v27 = vmul.f32 %v16438_v30, %v16438_v30  ;;  %v6903_v59 = vadd.f32 %v18800_v43, %v6647_v39  ;;  %v9698_v51 = vpop.f32.mrf.mxu0 }
 0x587   :  { %v7296_v61 = vsel %vm92_vm1, %v7227_v18, 0.0  ;;  %v6906_v23 = vadd.f32 %v15807_v47, %v6650_v37  ;;  %v6179_v42 = vadd.f32 %v16235_v8, %v6178_v4  ;;  %v6194_v60 = vadd.f32 %v9695_v57, %v16235_v8 }
 0x588   :  { %v7297_v48 = vadd.f32 %v7296_v61, %v7295_v19  ;;  %v7302_v13 = vsel %vm92_vm1, %v7230_v27, 0.0  ;;  %v6967_v31 = vmul.f32 0.01, %v6903_v59  ;;  %v7101_v50 = vadd.f32 %v7100_v16, %v7099_v54  ;;  %v6198_v49 = vpop.f32.mrf.mxu0  ;;  %v18804_v27 = vld [vmem:[#allocation81_spill] sm:$0xff]  ;;  %v18805_v61 = vld [vmem:[#allocation86_spill] sm:$0xff] }
 0x589   :  { %v6970_v22 = vmul.f32 0.01, %v6906_v23  ;;  %v6649_v30 = vadd.f32 %v15800_v35, %v6179_v42  ;;  %v6652_v39 = vadd.f32 %v18801_v36, %v6194_v60  ;;  %v6189_v43 = vadd.f32 %v16235_v8, %v6188_v15 }
 0x58a   :  { %v16460_v18 = vmax.f32 %v6903_v59, %v6967_v31  ;;  %v7299_v47 = vadd.f32 %v7298_v5, %v7297_v48  ;;  %v6204_v4 = vadd.f32 %v9698_v51, %v16235_v8  ;;  %v6199_v57 = vadd.f32 %v16235_v8, %v6198_v49  ;;  %v9701_v37 = vpop.f32.mrf.mxu0  ;;  %v18806_v5 = vld [vmem:[#allocation9_spill] sm:$0xff]  ;;  %v18807_v49 = vld [vmem:[#allocation84_spill] sm:$0xff] }
 0x58b   :  { %v16464_v19 = vmax.f32 %v6906_v23, %v6970_v22  ;;  %v6905_v16 = vadd.f32 %v18804_v27, %v6649_v30  ;;  %v6908_v54 = vadd.f32 %v15823_v34, %v6652_v39  ;;  %v6651_v35 = vadd.f32 %v18805_v61, %v6189_v43 }
 0x58c   :  { %18802 = vst [vmem:[#allocation74_spill] sm:$0xff] %v16460_v18  ;;  %v7102_v36 = vsel %vm92_vm1, %v16460_v18, 0.0  ;;  %v7229_v15 = vmul.f32 %v16460_v18, %v16460_v18  ;;  %v6654_v59 = vadd.f32 %v18806_v5, %v6204_v4  ;;  %v6653_v51 = vadd.f32 %v15846_v26, %v6199_v57  ;;  %v6208_v42 = vpop.f32.mrf.mxu0  ;;  %v18809_v5 = vld [vmem:[#allocation82_spill] sm:$0xff] }
 0x58d   :  { %18803 = vst [vmem:[#allocation76_spill] sm:$0xff] %v16464_v19  ;;  %v7103_v60 = vadd.f32 %v7102_v36, %v7101_v50  ;;  %v7108_v23 = vsel %vm92_vm1, %v16464_v19, 0.0  ;;  %v7232_v34 = vmul.f32 %v16464_v19, %v16464_v19  ;;  %v6969_v30 = vmul.f32 0.01, %v6905_v16 }
 0x58e   :  { %v7300_v48 = vsel %vm92_vm1, %v7229_v15, 0.0  ;;  %v6972_v31 = vmul.f32 0.01, %v6908_v54  ;;  %v6907_v22 = vadd.f32 %v18807_v49, %v6651_v35  ;;  %v6910_v39 = vadd.f32 %v15853_v38, %v6654_v59  ;;  %v9704_v43 = vpop.f32.mrf.mxu0 }
 0x58f   :  { %v7301_v4 = vadd.f32 %v7300_v48, %v7299_v47  ;;  %v7306_v26 = vsel %vm92_vm1, %v7232_v34, 0.0  ;;  %v16483_v57 = vmax.f32 %v6905_v16, %v6969_v30  ;;  %v7105_v50 = vadd.f32 %v7104_v2, %v7103_v60  ;;  %v18811_v48 = vld [vmem:[#allocation21_spill] sm:$0xff] }
 0x590   :  { %v16485_v27 = vmax.f32 %v6908_v54, %v6972_v31  ;;  %v6971_v61 = vmul.f32 0.01, %v6907_v22  ;;  %v6974_v36 = vmul.f32 0.01, %v6910_v39  ;;  %v6909_v19 = vadd.f32 %v18809_v5, %v6653_v51  ;;  %v6218_v18 = vpop.f32.mrf.mxu0 }
 0x591   :  { %v7106_v15 = vsel %vm92_vm1, %v16483_v57, 0.0  ;;  %v7231_v38 = vmul.f32 %v16483_v57, %v16483_v57  ;;  %v7303_v35 = vadd.f32 %v7302_v13, %v7301_v4  ;;  %v6214_v47 = vadd.f32 %v9701_v37, %v16235_v8 }
 0x592   :  { %18808 = vst [vmem:[#allocation60_spill] sm:$0xff] %v16485_v27  ;;  %v7107_v59 = vadd.f32 %v7106_v15, %v7105_v50  ;;  %v7112_v2 = vsel %vm92_vm1, %v16485_v27, 0.0  ;;  %v7234_v16 = vmul.f32 %v16485_v27, %v16485_v27  ;;  %v16497_v54 = vmax.f32 %v6907_v22, %v6971_v61  ;;  %v9707_v51 = vpop.f32.mrf.mxu0  ;;  %v18815_v27 = vld [vmem:[#allocation87_spill] sm:$0xff] }
 0x593   :  { %v7304_v60 = vsel %vm92_vm1, %v7231_v38, 0.0  ;;  %v16500_v34 = vmax.f32 %v6910_v39, %v6974_v36  ;;  %v6973_v30 = vmul.f32 0.01, %v6909_v19  ;;  %v6656_v31 = vadd.f32 %v18811_v48, %v6214_v47 }
 0x594   :  { %v7305_v13 = vadd.f32 %v7304_v60, %v7303_v35  ;;  %v7310_v37 = vsel %vm92_vm1, %v7234_v16, 0.0  ;;  %v7109_v49 = vadd.f32 %v7108_v23, %v7107_v59  ;;  %v7110_v4 = vsel %vm92_vm1, %v16497_v54, 0.0  ;;  %v6228_v50 = vpop.f32.mrf.mxu0 }
 0x595   :  { %18810 = vst [vmem:[#allocation6_spill] sm:$0xff] %v16500_v34  ;;  %v7233_v22 = vmul.f32 %v16497_v54, %v16497_v54  ;;  %v7116_v61 = vsel %vm92_vm1, %v16500_v34, 0.0  ;;  %v7236_v39 = vmul.f32 %v16500_v34, %v16500_v34  ;;  %v16512_v36 = vmax.f32 %v6909_v19, %v6973_v30 }
 0x596   :  { %v7111_v5 = vadd.f32 %v7110_v4, %v7109_v49  ;;  %v7307_v15 = vadd.f32 %v7306_v26, %v7305_v13  ;;  %v6912_v38 = vadd.f32 %v15869_v40, %v6656_v31  ;;  %v6209_v23 = vadd.f32 %v16235_v8, %v6208_v42  ;;  %v9710_v35 = vpop.f32.mrf.mxu0  ;;  %v18813_v49 = vld [vmem:[#allocation14_spill] sm:$0xff] }
 0x597   :  { %18812 = vst [vmem:[#allocation77_spill] sm:$0xff] %v16512_v36  ;;  %v7308_v47 = vsel %vm92_vm1, %v7233_v22, 0.0  ;;  %v7314_v59 = vsel %vm92_vm1, %v7236_v39, 0.0  ;;  %v7114_v16 = vsel %vm92_vm1, %v16512_v36, 0.0  ;;  %v7235_v60 = vmul.f32 %v16512_v36, %v16512_v36 }
 0x598   :  { %v7309_v48 = vadd.f32 %v7308_v47, %v7307_v15  ;;  %v7113_v19 = vadd.f32 %v7112_v2, %v7111_v5  ;;  %v6976_v30 = vmul.f32 0.01, %v6912_v38  ;;  %v6655_v26 = vadd.f32 %v18813_v49, %v6209_v23  ;;  %v6238_v13 = vpop.f32.mrf.mxu0  ;;  %v18816_v2 = vld [vmem:[#allocation28_spill] sm:$0xff]  ;;  %v18817_v47 = vld [vmem:[#allocation10_spill] sm:$0xff] }
 0x599   :  { %v7312_v40 = vsel %vm92_vm1, %v7235_v60, 0.0  ;;  %v6224_v42 = vadd.f32 %v9704_v43, %v16235_v8  ;;  %v6219_v31 = vadd.f32 %v16235_v8, %v6218_v18  ;;  %v6234_v4 = vadd.f32 %v9707_v51, %v16235_v8 }
 0x59a   :  { %v7115_v22 = vadd.f32 %v7114_v16, %v7113_v19  ;;  %v7311_v39 = vadd.f32 %v7310_v37, %v7309_v48  ;;  %v16527_v34 = vmax.f32 %v6912_v38, %v6976_v30  ;;  %v6911_v36 = vadd.f32 %v18815_v27, %v6655_v26  ;;  %v9713_v15 = vpop.f32.mrf.mxu0  ;;  %v18818_v48 = vld [vmem:[#allocation89_spill] sm:$0xff] }
 0x59b   :  { %v6658_v5 = vadd.f32 %v18816_v2, %v6224_v42  ;;  %v6657_v23 = vadd.f32 %v15892_v45, %v6219_v31  ;;  %v6660_v49 = vadd.f32 %v18817_v47, %v6234_v4  ;;  %v6229_v60 = vadd.f32 %v16235_v8, %v6228_v50 }
 0x59c   :  { %18814 = vst [vmem:[#allocation79_spill] sm:$0xff] %v16527_v34  ;;  %v7313_v43 = vadd.f32 %v7312_v40, %v7311_v39  ;;  %v7120_v18 = vsel %vm92_vm1, %v16527_v34, 0.0  ;;  %v7238_v51 = vmul.f32 %v16527_v34, %v16527_v34  ;;  %v6975_v37 = vmul.f32 0.01, %v6911_v36  ;;  %v6248_v38 = vpop.f32.mrf.mxu0  ;;  %v18820_v40 = vld [vmem:[#allocation93_spill] sm:$0xff] }
 0x59d   :  { %v7117_v16 = vadd.f32 %v7116_v61, %v7115_v22  ;;  %v6914_v27 = vadd.f32 %v15899_v7, %v6658_v5  ;;  %v6913_v19 = vadd.f32 %v18818_v48, %v6657_v23  ;;  %v6916_v45 = vadd.f32 %v15915_v3, %v6660_v49  ;;  %v18821_v3 = vld [vmem:[#allocation90_spill] sm:$0xff]  ;;  %v18826_v48 = vld [vmem:[#allocation88_spill] sm:$0xff] }
 0x59e   :  { %v7318_v30 = vsel %vm92_vm1, %v7238_v51, 0.0  ;;  %v16542_v26 = vmax.f32 %v6911_v36, %v6975_v37  ;;  %v7315_v50 = vadd.f32 %v7314_v59, %v7313_v43  ;;  %v6659_v42 = vadd.f32 %v18820_v40, %v6229_v60  ;;  %v9716_v31 = vpop.f32.mrf.mxu0  ;;  %v18825_v51 = vld [vmem:[#allocation22_spill] sm:$0xff] }
 0x59f   :  { %v6978_v4 = vmul.f32 0.01, %v6914_v27  ;;  %v6977_v39 = vmul.f32 0.01, %v6913_v19  ;;  %v6980_v2 = vmul.f32 0.01, %v6916_v45  ;;  %v6244_v47 = vadd.f32 %v9710_v35, %v16235_v8 }
 0x5a0   :  { %18819 = vst [vmem:[#allocation8_spill] sm:$0xff] %v16542_v26  ;;  %v7118_v7 = vsel %vm92_vm1, %v16542_v26, 0.0  ;;  %v7237_v61 = vmul.f32 %v16542_v26, %v16542_v26  ;;  %v6915_v22 = vadd.f32 %v18821_v3, %v6659_v42  ;;  %v6239_v36 = vadd.f32 %v16235_v8, %v6238_v13  ;;  %v6258_v5 = vpop.f32.mrf.mxu0  ;;  %v18828_v3 = vld [vmem:[#allocation13_spill] sm:$0xff] }
 0x5a1   :  { %v7119_v59 = vadd.f32 %v7118_v7, %v7117_v16  ;;  %v16552_v23 = vmax.f32 %v6914_v27, %v6978_v4  ;;  %v16554_v49 = vmax.f32 %v6913_v19, %v6977_v39  ;;  %v16556_v60 = vmax.f32 %v6916_v45, %v6980_v2 }
 0x5a2   :  { %v7316_v35 = vsel %vm92_vm1, %v7237_v61, 0.0  ;;  %v6979_v43 = vmul.f32 0.01, %v6915_v22  ;;  %v6662_v37 = vadd.f32 %v18825_v51, %v6244_v47  ;;  %v6661_v40 = vadd.f32 %v18826_v48, %v6239_v36  ;;  %v9719_v34 = vpop.f32.mrf.mxu0 }
 0x5a3   :  { %18822 = vst [vmem:[#allocation80_spill] sm:$0xff] %v16552_v23  ;;  %18823 = vst [vmem:[#allocation7_spill] sm:$0xff] %v16554_v49  ;;  %v7317_v26 = vadd.f32 %v7316_v35, %v7315_v50  ;;  %v7124_v13 = vsel %vm92_vm1, %v16552_v23, 0.0  ;;  %v7240_v16 = vmul.f32 %v16552_v23, %v16552_v23  ;;  %v7121_v27 = vadd.f32 %v7120_v18, %v7119_v59  ;;  %v18829_v59 = vld [vmem:[#allocation25_spill] sm:$0xff] }
 0x5a4   :  { %18824 = vst [vmem:[#allocation81_spill] sm:$0xff] %v16556_v60  ;;  %v7122_v19 = vsel %vm92_vm1, %v16554_v49, 0.0  ;;  %v7239_v45 = vmul.f32 %v16554_v49, %v16554_v49  ;;  %v7128_v42 = vsel %vm92_vm1, %v16556_v60, 0.0  ;;  %v7242_v4 = vmul.f32 %v16556_v60, %v16556_v60  ;;  %v6268_v50 = vpop.f32.mrf.mxu0 }
 0x5a5   :  { %v7322_v39 = vsel %vm92_vm1, %v7240_v16, 0.0  ;;  %v7123_v2 = vadd.f32 %v7122_v19, %v7121_v27  ;;  %v7319_v47 = vadd.f32 %v7318_v30, %v7317_v26  ;;  %v16574_v7 = vmax.f32 %v6915_v22, %v6979_v43 }
 0x5a6   :  { %v7320_v18 = vsel %vm92_vm1, %v7239_v45, 0.0  ;;  %v7326_v61 = vsel %vm92_vm1, %v7242_v4, 0.0  ;;  %v6918_v36 = vadd.f32 %v18828_v3, %v6662_v37  ;;  %v6917_v35 = vadd.f32 %v18829_v59, %v6661_v40  ;;  %v9722_v51 = vpop.f32.mrf.mxu0 }
 0x5a7   :  { %18827 = vst [vmem:[#allocation86_spill] sm:$0xff] %v16574_v7  ;;  %v7321_v48 = vadd.f32 %v7320_v18, %v7319_v47  ;;  %v7125_v23 = vadd.f32 %v7124_v13, %v7123_v2  ;;  %v7126_v60 = vsel %vm92_vm1, %v16574_v7, 0.0  ;;  %v7241_v16 = vmul.f32 %v16574_v7, %v16574_v7  ;;  %v18832_v2 = vld [vmem:[#allocation26_spill] sm:$0xff]  ;;  %v18833_v18 = vld [vmem:[#allocation15_spill] sm:$0xff] }
 0x5a8   :  { %v6982_v30 = vmul.f32 0.01, %v6918_v36  ;;  %v6981_v26 = vmul.f32 0.01, %v6917_v35  ;;  %v6254_v22 = vadd.f32 %v9713_v15, %v16235_v8  ;;  %v6249_v43 = vadd.f32 %v16235_v8, %v6248_v38  ;;  %v16586_v27 = vpop.f32.mrf.mxu0  ;;  %v18834_v38 = vld [vmem:[#allocation24_spill] sm:$0xff] }
 0x5a9   :  { %v7127_v37 = vadd.f32 %v7126_v60, %v7125_v23  ;;  %v7323_v19 = vadd.f32 %v7322_v39, %v7321_v48  ;;  %v7324_v40 = vsel %vm92_vm1, %v7241_v16, 0.0  ;;  %v6264_v13 = vadd.f32 %v9716_v31, %v16235_v8  ;;  %v18835_v16 = vld [vmem:[#allocation34_spill] sm:$0xff] }
 0x5aa   :  { %v16590_v45 = vmax.f32 %v6918_v36, %v6982_v30  ;;  %v16592_v4 = vmax.f32 %v6917_v35, %v6981_v26  ;;  %v6664_v47 = vadd.f32 %v18832_v2, %v6254_v22  ;;  %v6663_v3 = vadd.f32 %v18833_v18, %v6249_v43  ;;  %v9725_v59 = vpop.f32.mrf.mxu0  ;;  %v18836_v26 = vld [vmem:[#allocation83_spill] sm:$0xff] }
 0x5ab   :  { %v7325_v15 = vadd.f32 %v7324_v40, %v7323_v19  ;;  %v7129_v7 = vadd.f32 %v7128_v42, %v7127_v37  ;;  %v6666_v49 = vadd.f32 %v18834_v38, %v6264_v13  ;;  %v6259_v23 = vadd.f32 %v16235_v8, %v6258_v5  ;;  %v18837_v37 = vld [vmem:[#allocation20_spill] sm:$0xff]  ;;  %v18838_v40 = vld [vmem:[#allocation35_spill] sm:$0xff] }
 0x5ac   :  { %18830 = vst [vmem:[#allocation9_spill] sm:$0xff] %v16590_v45  ;;  %18831 = vst [vmem:[#allocation84_spill] sm:$0xff] %v16592_v4  ;;  %v7132_v60 = vsel %vm92_vm1, %v16590_v45, 0.0  ;;  %v7244_v31 = vmul.f32 %v16590_v45, %v16590_v45  ;;  %v7130_v39 = vsel %vm92_vm1, %v16592_v4, 0.0  ;;  %v7243_v36 = vmul.f32 %v16592_v4, %v16592_v4  ;;  %v16606_v35 = vpop.f32.mrf.mxu0 }
 0x5ad   :  { %v7131_v48 = vadd.f32 %v7130_v39, %v7129_v7  ;;  %v7327_v42 = vadd.f32 %v7326_v61, %v7325_v15  ;;  %v6920_v30 = vadd.f32 %v18835_v16, %v6664_v47  ;;  %v6919_v5 = vadd.f32 %v18836_v26, %v6663_v3  ;;  %v18839_v61 = vld [vmem:[#allocation16_spill] sm:$0xff]  ;;  %v18843_v26 = vld [vmem:[#allocation38_spill] sm:$0xff] }
 0x5ae   :  { %v7330_v22 = vsel %vm92_vm1, %v7244_v31, 0.0  ;;  %v7328_v43 = vsel %vm92_vm1, %v7243_v36, 0.0  ;;  %v6922_v19 = vadd.f32 %v18837_v37, %v6666_v49  ;;  %v6665_v13 = vadd.f32 %v18838_v40, %v6259_v23  ;;  %v16614_v2 = vpop.f32.mrf.mxu0 }
 0x5af   :  { %v7329_v18 = vadd.f32 %v7328_v43, %v7327_v42  ;;  %v6984_v38 = vmul.f32 0.01, %v6920_v30  ;;  %v6983_v45 = vmul.f32 0.01, %v6919_v5  ;;  %v7133_v4 = vadd.f32 %v7132_v60, %v7131_v48  ;;  %v18842_v60 = vld [vmem:[#allocation62_spill] sm:$0xff] }
 0x5b0   :  { %v6986_v7 = vmul.f32 0.01, %v6922_v19  ;;  %v6921_v15 = vadd.f32 %v18839_v61, %v6665_v13  ;;  %v6274_v47 = vadd.f32 %v9719_v34, %v16235_v8  ;;  %v6269_v3 = vadd.f32 %v16235_v8, %v6268_v50  ;;  %v16619_v31 = vpop.f32.mrf.mxu0  ;;  %v18846_v61 = vld [vmem:[#allocation32_spill] sm:$0xff] }
 0x5b1   :  { %v16621_v39 = vmax.f32 %v6920_v30, %v6984_v38  ;;  %v16623_v49 = vmax.f32 %v6919_v5, %v6983_v45  ;;  %v7331_v23 = vadd.f32 %v7330_v22, %v7329_v18  ;;  %v6284_v36 = vadd.f32 %v9722_v51, %v16235_v8  ;;  %v18845_v38 = vld [vmem:[#allocation41_spill] sm:$0xff] }
 0x5b2   :  { %v16626_v42 = vmax.f32 %v6922_v19, %v6986_v7  ;;  %v6985_v16 = vmul.f32 0.01, %v6921_v15  ;;  %v6668_v48 = vadd.f32 %v18842_v60, %v6274_v47  ;;  %v6667_v43 = vadd.f32 %v18843_v26, %v6269_v3  ;;  %v16630_v37 = vpop.f32.mrf.mxu0 }
 0x5b3   :  { %18840 = vst [vmem:[#allocation82_spill] sm:$0xff] %v16621_v39  ;;  %v7136_v34 = vsel %vm92_vm1, %v16621_v39, 0.0  ;;  %v7246_v50 = vmul.f32 %v16621_v39, %v16621_v39  ;;  %v7134_v45 = vsel %vm92_vm1, %v16623_v49, 0.0  ;;  %v7245_v51 = vmul.f32 %v16623_v49, %v16623_v49 }
 0x5b4   :  { %18841 = vst [vmem:[#allocation21_spill] sm:$0xff] %v16626_v42  ;;  %v7135_v30 = vadd.f32 %v7134_v45, %v7133_v4  ;;  %v7140_v5 = vsel %vm92_vm1, %v16626_v42, 0.0  ;;  %v7248_v22 = vmul.f32 %v16626_v42, %v16626_v42  ;;  %v16644_v19 = vmax.f32 %v6921_v15, %v6985_v16  ;;  %v16646_v40 = vpop.f32.mrf.mxu0  ;;  %v18847_v42 = vld [vmem:[#allocation65_spill] sm:$0xff] }
 0x5b5   :  { %v7334_v13 = vsel %vm92_vm1, %v7246_v50, 0.0  ;;  %v7332_v18 = vsel %vm92_vm1, %v7245_v51, 0.0  ;;  %v6924_v7 = vadd.f32 %v18845_v38, %v6668_v48  ;;  %v6923_v47 = vadd.f32 %v18846_v61, %v6667_v43 }
 0x5b6   :  { %18844 = vst [vmem:[#allocation14_spill] sm:$0xff] %v16644_v19  ;;  %v7333_v3 = vadd.f32 %v7332_v18, %v7331_v23  ;;  %v7338_v4 = vsel %vm92_vm1, %v7248_v22, 0.0  ;;  %v7137_v60 = vadd.f32 %v7136_v34, %v7135_v30  ;;  %v7138_v26 = vsel %vm92_vm1, %v16644_v19, 0.0  ;;  %v16655_v45 = vpop.f32.mrf.mxu0 }
 0x5b7   :  { %v7247_v15 = vmul.f32 %v16644_v19, %v16644_v19  ;;  %v6988_v16 = vmul.f32 0.01, %v6924_v7  ;;  %v6987_v50 = vmul.f32 0.01, %v6923_v47  ;;  %v6670_v51 = vadd.f32 %v18847_v42, %v6284_v36  ;;  %v18848_v42 = vld [vmem:[#allocation66_spill] sm:$0xff] }
 0x5b8   :  { %v7139_v39 = vadd.f32 %v7138_v26, %v7137_v60  ;;  %v7335_v48 = vadd.f32 %v7334_v13, %v7333_v3  ;;  %v6279_v23 = vadd.f32 %v16235_v8, %v16586_v27  ;;  %v6294_v43 = vadd.f32 %v9725_v59, %v16235_v8  ;;  %v16663_v34 = vpop.f32.mrf.mxu0 }
 0x5b9   :  { %v7336_v30 = vsel %vm92_vm1, %v7247_v15, 0.0  ;;  %v16666_v22 = vmax.f32 %v6924_v7, %v6988_v16  ;;  %v16668_v18 = vmax.f32 %v6923_v47, %v6987_v50  ;;  %v6926_v38 = vadd.f32 %v16037_v25, %v6670_v51  ;;  %v18850_v50 = vld [vmem:[#allocation17_spill] sm:$0xff] }
 0x5ba   :  { %v7337_v61 = vadd.f32 %v7336_v30, %v7335_v48  ;;  %v7141_v19 = vadd.f32 %v7140_v5, %v7139_v39  ;;  %v6669_v36 = vadd.f32 %v16030_v62, %v6279_v23  ;;  %v6672_v13 = vadd.f32 %v18848_v42, %v6294_v43  ;;  %v16673_v3 = vpop.f32.mrf.mxu0  ;;  %v18849_v62 = vld [vmem:[#allocation39_spill] sm:$0xff] }
 0x5bb   :  { %v7144_v27 = vsel %vm92_vm1, %v16666_v22, 0.0  ;;  %v7250_v59 = vmul.f32 %v16666_v22, %v16666_v22  ;;  %v7142_v7 = vsel %vm92_vm1, %v16668_v18, 0.0  ;;  %v7249_v25 = vmul.f32 %v16668_v18, %v16668_v18 }
 0x5bc   :  { %v7143_v47 = vadd.f32 %v7142_v7, %v7141_v19  ;;  %v7339_v39 = vadd.f32 %v7338_v4, %v7337_v61  ;;  %v6990_v5 = vmul.f32 0.01, %v6926_v38  ;;  %v6925_v60 = vadd.f32 %v18849_v62, %v6669_v36  ;;  %v16684_v26 = vpop.f32.mrf.mxu0  ;;  %v18852_v36 = vld [vmem:[#allocation29_spill] sm:$0xff]  ;;  %v18858_v62 = vld [vmem:[#allocation70_spill] sm:$0xff] }
 0x5bd   :  { %v7342_v15 = vsel %vm92_vm1, %v7250_v59, 0.0  ;;  %v7340_v16 = vsel %vm92_vm1, %v7249_v25, 0.0  ;;  %v6928_v51 = vadd.f32 %v18850_v50, %v6672_v13  ;;  %v6289_v48 = vadd.f32 %v16235_v8, %v16606_v35 }
 0x5be   :  { %v7341_v23 = vadd.f32 %v7340_v16, %v7339_v39  ;;  %v16691_v43 = vmax.f32 %v6926_v38, %v6990_v5  ;;  %v6989_v30 = vmul.f32 0.01, %v6925_v60  ;;  %v7145_v19 = vadd.f32 %v7144_v27, %v7143_v47  ;;  %v16693_v4 = vpop.f32.mrf.mxu0  ;;  %v18857_v5 = vld [vmem:[#allocation27_spill] sm:$0xff] }
 0x5bf   :  { %v6992_v61 = vmul.f32 0.01, %v6928_v51  ;;  %v6671_v42 = vadd.f32 %v18852_v36, %v6289_v48  ;;  %v6304_v59 = vadd.f32 %v16614_v2, %v16235_v8  ;;  %v6299_v7 = vadd.f32 %v16235_v8, %v16619_v31 }
 0x5c0   :  { %18851 = vst [vmem:[#allocation87_spill] sm:$0xff] %v16691_v43  ;;  %v18853_v13 = vrot.slane %v16329_v44, 1  ;;  %v18854_v35 = vrot.slane %v16187_v12, 1  ;;  %v7252_v27 = vmul.f32 %v16691_v43, %v16691_v43  ;;  %v16710_v25 = vmax.f32 %v6925_v60, %v6989_v30  ;;  %v16712_v39 = vpop.f32.mrf.mxu0 }
 0x5c1   :  { %v7343_v47 = vadd.f32 %v7342_v15, %v7341_v23  ;;  %v16714_v2 = vmax.f32 %v6928_v51, %v6992_v61  ;;  %v6927_v31 = vadd.f32 %v18857_v5, %v6671_v42  ;;  %v6674_v16 = vadd.f32 %v18858_v62, %v6304_v59  ;;  %v18859_v59 = vld [vmem:[#allocation30_spill] sm:$0xff] }
 0x5c2   :  { %v16706_v38 = vsel %vm1782_vm4, %v18854_v35, %v18853_v13  ;;  %18855 = vst [vmem:[#allocation28_spill] sm:$0xff] %v16710_v25  ;;  %v6673_v12 = vadd.f32 %v16076_v58, %v6299_v7  ;;  %v7148_v50 = vsel %vm92_vm1, %v16691_v43, 0.0  ;;  %v7146_v48 = vsel %vm92_vm1, %v16710_v25, 0.0  ;;  %v16727_v51 = vpop.f32.mrf.mxu0  ;;  %v18860_v13 = vld [vmem:[#allocation75_spill] sm:$0xff] }
 0x5c3   :  { %18856 = vst [vmem:[#allocation10_spill] sm:$0xff] %v16714_v2  ;;  %v7251_v60 = vmul.f32 %v16710_v25, %v16710_v25  ;;  %v6314_v15 = vadd.f32 %v16630_v37, %v16235_v8  ;;  %v7346_v23 = vsel %vm92_vm1, %v7252_v27, 0.0  ;;  %v7147_v30 = vadd.f32 %v7146_v48, %v7145_v19 }
 0x5c4   :  { %v7152_v58 = vsel %vm92_vm1, %v16714_v2, 0.0  ;;  %v6991_v61 = vmul.f32 0.01, %v6927_v31  ;;  %v6930_v42 = vadd.f32 %v16083_v55, %v6674_v16  ;;  %v6929_v7 = vadd.f32 %v18859_v59, %v6673_v12  ;;  %v16736_v5 = vpop.f32.mrf.mxu0  ;;  %v18861_v59 = vld [vmem:[#allocation36_spill] sm:$0xff] }
 0x5c5   :  { %v7344_v36 = vsel %vm92_vm1, %v7251_v60, 0.0  ;;  %v6676_v35 = vadd.f32 %v18860_v13, %v6314_v15  ;;  %v7254_v62 = vmul.f32 %v16714_v2, %v16714_v2  ;;  %v7149_v19 = vadd.f32 %v7148_v50, %v7147_v30 }
 0x5c6   :  { %v7345_v37 = vadd.f32 %v7344_v36, %v7343_v47  ;;  %v16740_v27 = vmax.f32 %v6927_v31, %v6991_v61  ;;  %v6994_v48 = vmul.f32 0.01, %v6930_v42  ;;  %v6993_v43 = vmul.f32 0.01, %v6929_v7  ;;  %v16745_v16 = vpop.f32.mrf.mxu0 }
 0x5c7   :  { %v6932_v25 = vadd.f32 %v16099_v0, %v6676_v35  ;;  %v6309_v55 = vadd.f32 %v16235_v8, %v16646_v40  ;;  %v6324_v31 = vadd.f32 %v16655_v45, %v16235_v8  ;;  %v7350_v40 = vsel %vm92_vm1, %v7254_v62, 0.0  ;;  %v18862_v35 = vld [vmem:[#allocation78_spill] sm:$0xff] }
 0x5c8   :  { %v7150_v12 = vsel %vm92_vm1, %v16740_v27, 0.0  ;;  %v7253_v47 = vmul.f32 %v16740_v27, %v16740_v27  ;;  %v7347_v60 = vadd.f32 %v7346_v23, %v7345_v37  ;;  %v16753_v15 = vmax.f32 %v6930_v42, %v6994_v48  ;;  %v16757_v61 = vpop.f32.mrf.mxu0  ;;  %v18863_v48 = vld [vmem:[#allocation19_spill] sm:$0xff] }
 0x5c9   :  { %v7151_v50 = vadd.f32 %v7150_v12, %v7149_v19  ;;  %v16755_v30 = vmax.f32 %v6929_v7, %v6993_v43  ;;  %v6996_v0 = vmul.f32 0.01, %v6932_v25  ;;  %v6675_v13 = vadd.f32 %v18861_v59, %v6309_v55 }
 0x5ca   :  { %v7348_v36 = vsel %vm92_vm1, %v7253_v47, 0.0  ;;  %v6678_v2 = vadd.f32 %v18862_v35, %v6324_v31  ;;  %v7256_v45 = vmul.f32 %v16753_v15, %v16753_v15  ;;  %v6319_v43 = vadd.f32 %v16235_v8, %v16663_v34  ;;  %v16767_v42 = vpop.f32.mrf.mxu0 }
 0x5cb   :  { %v7349_v23 = vadd.f32 %v7348_v36, %v7347_v60  ;;  %v7153_v37 = vadd.f32 %v7152_v58, %v7151_v50  ;;  %v7154_v7 = vsel %vm92_vm1, %v16755_v30, 0.0  ;;  %v7255_v62 = vmul.f32 %v16755_v30, %v16755_v30 }
 0x5cc   :  { %v16773_v19 = vmax.f32 %v6932_v25, %v6996_v0  ;;  %v6931_v55 = vadd.f32 %v18863_v48, %v6675_v13  ;;  %v7156_v12 = vsel %vm92_vm1, %v16753_v15, 0.0  ;;  %v6934_v60 = vadd.f32 %v16129_v63, %v6678_v2  ;;  %v16779_v34 = vpop.f32.mrf.mxu0 }
 0x5cd   :  { %v7155_v47 = vadd.f32 %v7154_v7, %v7153_v37  ;;  %v7351_v58 = vadd.f32 %v7350_v40, %v7349_v23  ;;  %v7354_v31 = vsel %vm92_vm1, %v7256_v45, 0.0  ;;  %v7352_v50 = vsel %vm92_vm1, %v7255_v62, 0.0  ;;  %v18864_v62 = vld [vmem:[#allocation33_spill] sm:$0xff] }
 0x5ce   :  { %v7258_v36 = vmul.f32 %v16773_v19, %v16773_v19  ;;  %v6995_v25 = vmul.f32 0.01, %v6931_v55  ;;  %v6998_v13 = vmul.f32 0.01, %v6934_v60  ;;  %v6677_v35 = vadd.f32 %v16122_v32, %v6319_v43  ;;  %v16794_v45 = vpop.f32.mrf.mxu0 }
 0x5cf   :  { %v7353_v0 = vadd.f32 %v7352_v50, %v7351_v58  ;;  %v7157_v59 = vadd.f32 %v7156_v12, %v7155_v47  ;;  %v7160_v40 = vsel %vm92_vm1, %v16773_v19, 0.0  ;;  %v6334_v63 = vadd.f32 %v16673_v3, %v16235_v8  ;;  %v18865_v3 = vld [vmem:[#allocation85_spill] sm:$0xff] }
 0x5d0   :  { %v16788_v23 = vmax.f32 %v6931_v55, %v6995_v25  ;;  %v6329_v2 = vadd.f32 %v16235_v8, %v16684_v26  ;;  %v16796_v7 = vmax.f32 %v6934_v60, %v6998_v13  ;;  %v6933_v48 = vadd.f32 %v18864_v62, %v6677_v35  ;;  %v18866_v25 = vld [vmem:[#allocation43_spill] sm:$0xff]  ;;  %v16814_v62 = vpop.f32.mrf.mxu0 }
 0x5d1   :  { %v7355_v37 = vadd.f32 %v7354_v31, %v7353_v0  ;;  %v6344_v32 = vadd.f32 %v16693_v4, %v16235_v8  ;;  %v6680_v12 = vadd.f32 %v18865_v3, %v6334_v63  ;;  %v7358_v47 = vsel %vm92_vm1, %v7258_v36, 0.0  ;;  %v18867_v13 = vld [vmem:[#allocation11_spill] sm:$0xff] }
 0x5d2   :  { %v7158_v43 = vsel %vm92_vm1, %v16788_v23, 0.0  ;;  %v7257_v55 = vmul.f32 %v16788_v23, %v16788_v23  ;;  %v6679_v26 = vadd.f32 %v16134_v29, %v6329_v2  ;;  %v7164_v60 = vsel %vm92_vm1, %v16796_v7, 0.0 }
 0x5d3   :  { %v7159_v58 = vadd.f32 %v7158_v43, %v7157_v59  ;;  %v6997_v31 = vmul.f32 0.01, %v6933_v48  ;;  %v6936_v4 = vadd.f32 %v16145_v24, %v6680_v12  ;;  %v6682_v35 = vadd.f32 %v18867_v13, %v6344_v32  ;;  %v18869_v13 = vld [vmem:[#allocation12_spill] sm:$0xff] }
 0x5d4   :  { %v7356_v50 = vsel %vm92_vm1, %v7257_v55, 0.0  ;;  %v6935_v0 = vadd.f32 %v18866_v25, %v6679_v26  ;;  %v7260_v29 = vmul.f32 %v16796_v7, %v16796_v7  ;;  %v6339_v24 = vadd.f32 %v16235_v8, %v16712_v39 }
 0x5d5   :  { %v7357_v63 = vadd.f32 %v7356_v50, %v7355_v37  ;;  %v16818_v36 = vmax.f32 %v6933_v48, %v6997_v31  ;;  %v7161_v59 = vadd.f32 %v7160_v40, %v7159_v58  ;;  %v7000_v2 = vmul.f32 0.01, %v6936_v4  ;;  %v18868_v50 = vld [vmem:[#allocation42_spill] sm:$0xff] }
 0x5d6   :  { %v6999_v43 = vmul.f32 0.01, %v6935_v0  ;;  %v6938_v3 = vadd.f32 %v16173_v28, %v6682_v35  ;;  %v6354_v12 = vadd.f32 %v16727_v51, %v16235_v8  ;;  %v16833_v28 = vpop.f32.mrf.mxu0  ;;  %v7362_v39 = vsel %vm92_vm1, %v7260_v29, 0.0 }
 0x5d7   :  { %v7162_v55 = vsel %vm92_vm1, %v16818_v36, 0.0  ;;  %v7259_v32 = vmul.f32 %v16818_v36, %v16818_v36  ;;  %v7359_v37 = vadd.f32 %v7358_v47, %v7357_v63  ;;  %v16829_v26 = vmax.f32 %v6936_v4, %v7000_v2  ;;  %v18870_v2 = vld [vmem:[#allocation40_spill] sm:$0xff] }
 0x5d8   :  { %v7163_v48 = vadd.f32 %v7162_v55, %v7161_v59  ;;  %v16831_v40 = vmax.f32 %v6935_v0, %v6999_v43  ;;  %v7002_v58 = vmul.f32 0.01, %v6938_v3  ;;  %v6681_v25 = vadd.f32 %v18868_v50, %v6339_v24 }
 0x5d9   :  { %v7360_v31 = vsel %vm92_vm1, %v7259_v32, 0.0  ;;  %v6684_v35 = vadd.f32 %v18869_v13, %v6354_v12  ;;  %v7262_v51 = vmul.f32 %v16829_v26, %v16829_v26  ;;  %v6349_v4 = vadd.f32 %v16235_v8, %v16736_v5 }
 0x5da   :  { %v7361_v47 = vadd.f32 %v7360_v31, %v7359_v37  ;;  %v7165_v63 = vadd.f32 %v7164_v60, %v7163_v48  ;;  %v7166_v0 = vsel %vm92_vm1, %v16831_v40, 0.0  ;;  %v7261_v29 = vmul.f32 %v16831_v40, %v16831_v40  ;;  %v16853_v37 = vpop.f32.mrf.mxu0 }
 0x5db   :  { %v16847_v59 = vmax.f32 %v6938_v3, %v7002_v58  ;;  %v6937_v43 = vadd.f32 %v18870_v2, %v6681_v25  ;;  %v7168_v24 = vsel %vm92_vm1, %v16829_v26, 0.0  ;;  %v6940_v60 = vadd.f32 %v16191_v56, %v6684_v35  ;;  %v16867_v56 = vld [vmem:[%s18119_s2 + $0x2] ss:$0 sm:$0xff] }
 0x5dc   :  { %v7167_v55 = vadd.f32 %v7166_v0, %v7165_v63  ;;  %v7363_v32 = vadd.f32 %v7362_v39, %v7361_v47  ;;  %v7366_v8 = vsel %vm92_vm1, %v7262_v51, 0.0  ;;  %v7364_v5 = vsel %vm92_vm1, %v7261_v29, 0.0 }
 0x5dd   :  { %v7264_v12 = vmul.f32 %v16847_v59, %v16847_v59  ;;  %v7001_v3 = vmul.f32 0.01, %v6937_v43  ;;  %v7004_v31 = vmul.f32 0.01, %v6940_v60  ;;  %v6683_v50 = vadd.f32 %v16178_v10, %v6349_v4  ;;  %v16878_v4 = vpop.f32.mrf.mxu0 }
 0x5de   :  { %v7365_v48 = vadd.f32 %v7364_v5, %v7363_v32  ;;  %v7169_v58 = vadd.f32 %v7168_v24, %v7167_v55  ;;  %v7172_v39 = vsel %vm92_vm1, %v16847_v59, 0.0  ;;  %v6364_v13 = vadd.f32 %v16867_v56, %v16745_v16  ;;  %v18871_v16 = vld [vmem:[#allocation91_spill] sm:$0xff] }
 0x5df   :  { %v16862_v25 = vmax.f32 %v6937_v43, %v7001_v3  ;;  %v6359_v35 = vadd.f32 %v16867_v56, %v16757_v61  ;;  %v16873_v51 = vmax.f32 %v6940_v60, %v7004_v31  ;;  %v6939_v10 = vadd.f32 %v16166_v6, %v6683_v50  ;;  %v18872_v60 = vld [vmem:[#allocation44_spill] sm:$0xff]  ;;  %v18873_v5 = vld [vmem:[#allocation31_spill] sm:$0xff] }
 0x5e0   :  { %v7367_v47 = vadd.f32 %v7366_v8, %v7365_v48  ;;  %v6374_v63 = vadd.f32 %v16867_v56, %v16767_v42  ;;  %v6686_v2 = vadd.f32 %v18871_v16, %v6364_v13  ;;  %v7370_v43 = vsel %vm92_vm1, %v7264_v12, 0.0 }
 0x5e1   :  { %v7170_v0 = vsel %vm92_vm1, %v16862_v25, 0.0  ;;  %v7263_v29 = vmul.f32 %v16862_v25, %v16862_v25  ;;  %v6685_v61 = vadd.f32 %v16200_v1, %v6359_v35  ;;  %v7176_v6 = vsel %vm92_vm1, %v16873_v51, 0.0 }
 0x5e2   :  { %v7171_v24 = vadd.f32 %v7170_v0, %v7169_v58  ;;  %v7003_v55 = vmul.f32 0.01, %v6939_v10  ;;  %v6942_v32 = vadd.f32 %v16217_v53, %v6686_v2  ;;  %v6688_v3 = vadd.f32 %v18873_v5, %v6374_v63  ;;  %v16897_v58 = vpop.f32.mrf.mxu0 }
 0x5e3   :  { %v7368_v42 = vsel %vm92_vm1, %v7263_v29, 0.0  ;;  %v6941_v8 = vadd.f32 %v18872_v60, %v6685_v61  ;;  %v7266_v31 = vmul.f32 %v16873_v51, %v16873_v51  ;;  %v6369_v53 = vadd.f32 %v16867_v56, %v16779_v34 }
 0x5e4   :  { %v7369_v48 = vadd.f32 %v7368_v42, %v7367_v47  ;;  %v16895_v1 = vmax.f32 %v6939_v10, %v7003_v55  ;;  %v7173_v12 = vadd.f32 %v7172_v39, %v7171_v24  ;;  %v7006_v50 = vmul.f32 0.01, %v6942_v32  ;;  %v18874_v24 = vld [vmem:[#allocation92_spill] sm:$0xff]  ;;  %v9761_v42 = vpop.f32.mrf.mxu0 }
 0x5e5   :  { %v7005_v13 = vmul.f32 0.01, %v6941_v8  ;;  %v6944_v35 = vadd.f32 %v16239_v46, %v6688_v3  ;;  %v6384_v10 = vadd.f32 %v16867_v56, %v16794_v45  ;;  %v7374_v46 = vsel %vm92_vm1, %v7266_v31, 0.0 }
 0x5e6   :  { %v7174_v0 = vsel %vm92_vm1, %v16895_v1, 0.0  ;;  %v7265_v47 = vmul.f32 %v16895_v1, %v16895_v1  ;;  %v7371_v63 = vadd.f32 %v7370_v43, %v7369_v48  ;;  %v16908_v29 = vmax.f32 %v6942_v32, %v7006_v50 }
 0x5e7   :  { %v7175_v39 = vadd.f32 %v7174_v0, %v7173_v12  ;;  %v16910_v16 = vmax.f32 %v6941_v8, %v7005_v13  ;;  %v7008_v2 = vmul.f32 0.01, %v6944_v35  ;;  %v6687_v61 = vadd.f32 %v16222_v17, %v6369_v53  ;;  %v18875_v17 = vld [vmem:[#allocation48_spill] sm:$0xff] }
 0x5e8   :  { %v7372_v34 = vsel %vm92_vm1, %v7265_v47, 0.0  ;;  %v6690_v55 = vadd.f32 %v18874_v24, %v6384_v10  ;;  %v7268_v43 = vmul.f32 %v16908_v29, %v16908_v29  ;;  %v6379_v32 = vadd.f32 %v16867_v56, %v16814_v62  ;;  %v6408_v47 = vpop.f32.mrf.mxu0 }
 0x5e9   :  { %v7373_v60 = vadd.f32 %v7372_v34, %v7371_v63  ;;  %v7177_v45 = vadd.f32 %v7176_v6, %v7175_v39  ;;  %v7178_v8 = vsel %vm92_vm1, %v16910_v16, 0.0  ;;  %v7267_v5 = vmul.f32 %v16910_v16, %v16910_v16  ;;  %v18876_v39 = vld [vmem:[#allocation50_spill] sm:$0xff] }
 0x5ea   :  { %v16924_v3 = vmax.f32 %v6944_v35, %v7008_v2  ;;  %v6943_v48 = vadd.f32 %v18875_v17, %v6687_v61  ;;  %v7180_v31 = vsel %vm92_vm1, %v16908_v29, 0.0  ;;  %v6946_v6 = vadd.f32 %v16263_v9, %v6690_v55 }
 0x5eb   :  { %v7179_v12 = vadd.f32 %v7178_v8, %v7177_v45  ;;  %v7375_v50 = vadd.f32 %v7374_v46, %v7373_v60  ;;  %v7378_v13 = vsel %vm92_vm1, %v7268_v43, 0.0  ;;  %v7376_v62 = vsel %vm92_vm1, %v7267_v5, 0.0  ;;  %v18877_v60 = vld [vmem:[#allocation56_spill] sm:$0xff]  ;;  %v18878_v5 = vld [vmem:[#allocation18_spill] sm:$0xff] }
 0x5ec   :  { %v7270_v53 = vmul.f32 %v16924_v3, %v16924_v3  ;;  %v7007_v0 = vmul.f32 0.01, %v6943_v48  ;;  %v7010_v10 = vmul.f32 0.01, %v6946_v6  ;;  %v6689_v2 = vadd.f32 %v18876_v39, %v6379_v32 }
 0x5ed   :  { %v7377_v35 = vadd.f32 %v7376_v62, %v7375_v50  ;;  %v7181_v63 = vadd.f32 %v7180_v31, %v7179_v12  ;;  %v7184_v34 = vsel %vm92_vm1, %v16924_v3, 0.0  ;;  %v6394_v9 = vadd.f32 %v16867_v56, %v16833_v28  ;;  %v18879_v28 = vld [vmem:[#allocation49_spill] sm:$0xff]  ;;  %v9764_v31 = vpop.f32.mrf.mxu0  ;;  %v18880_v62 = vld [vmem:[#allocation47_spill] sm:$0xff] }
 0x5ee   :  { %v16937_v46 = vmax.f32 %v6943_v48, %v7007_v0  ;;  %v6389_v61 = vadd.f32 %v16867_v56, %v16853_v37  ;;  %v16943_v55 = vmax.f32 %v6946_v6, %v7010_v10  ;;  %v6945_v43 = vadd.f32 %v18877_v60, %v6689_v2 }
 0x5ef   :  { %v7379_v24 = vadd.f32 %v7378_v13, %v7377_v35  ;;  %v6404_v45 = vadd.f32 %v16867_v56, %v16878_v4  ;;  %v6692_v17 = vadd.f32 %v18878_v5, %v6394_v9  ;;  %v7382_v37 = vsel %vm92_vm1, %v7270_v53, 0.0  ;;  %v18881_v35 = vld [vmem:[#allocation37_spill] sm:$0xff] }
 0x5f0   :  { %v7182_v32 = vsel %vm92_vm1, %v16937_v46, 0.0  ;;  %v7269_v8 = vmul.f32 %v16937_v46, %v16937_v46  ;;  %v6691_v48 = vadd.f32 %v18879_v28, %v6389_v61  ;;  %v7188_v50 = vsel %vm92_vm1, %v16943_v55, 0.0 }
 0x5f1   :  { %v7183_v12 = vadd.f32 %v7182_v32, %v7181_v63  ;;  %v7009_v6 = vmul.f32 0.01, %v6945_v43  ;;  %v6948_v13 = vadd.f32 %v16288_v41, %v6692_v17  ;;  %v6694_v10 = vadd.f32 %v18881_v35, %v6404_v45 }
 0x5f2   :  { %v7380_v4 = vsel %vm92_vm1, %v7269_v8, 0.0  ;;  %v6947_v0 = vadd.f32 %v18880_v62, %v6691_v48  ;;  %v7272_v2 = vmul.f32 %v16943_v55, %v16943_v55  ;;  %v6399_v32 = vadd.f32 %v16867_v56, %v16897_v58  ;;  %v6418_v8 = vpop.f32.mrf.mxu0 }
 0x5f3   :  { %v7381_v39 = vadd.f32 %v7380_v4, %v7379_v24  ;;  %v16963_v9 = vmax.f32 %v6945_v43, %v7009_v6  ;;  %v7185_v53 = vadd.f32 %v7184_v34, %v7183_v12  ;;  %v7012_v63 = vmul.f32 0.01, %v6948_v13  ;;  %v18882_v12 = vld [vmem:[#allocation45_spill] sm:$0xff] }
 0x5f4   :  { %v7011_v61 = vmul.f32 0.01, %v6947_v0  ;;  %v6950_v60 = vadd.f32 %v16311_v21, %v6694_v10  ;;  %v6414_v5 = vadd.f32 %v16867_v56, %v9761_v42  ;;  %v7386_v21 = vsel %vm92_vm1, %v7272_v2, 0.0 }
 0x5f5   :  { %v7186_v41 = vsel %vm92_vm1, %v16963_v9, 0.0  ;;  %v7271_v24 = vmul.f32 %v16963_v9, %v16963_v9  ;;  %v7383_v45 = vadd.f32 %v7382_v37, %v7381_v39  ;;  %v16973_v17 = vmax.f32 %v6948_v13, %v7012_v63  ;;  %v9767_v13 = vpop.f32.mrf.mxu0  ;;  %v18883_v39 = vld [vmem:[#allocation55_spill] sm:$0xff] }
 0x5f6   :  { %v7187_v43 = vadd.f32 %v7186_v41, %v7185_v53  ;;  %v16975_v34 = vmax.f32 %v6947_v0, %v7011_v61  ;;  %v7014_v28 = vmul.f32 0.01, %v6950_v60  ;;  %v6693_v48 = vadd.f32 %v16303_v14, %v6399_v32 }
 0x5f7   :  { %v7384_v58 = vsel %vm92_vm1, %v7271_v24, 0.0  ;;  %v6696_v6 = vadd.f32 %v18882_v12, %v6414_v5  ;;  %v7274_v37 = vmul.f32 %v16973_v17, %v16973_v17  ;;  %v6409_v42 = vadd.f32 %v16867_v56, %v6408_v47  ;;  %v18884_v5 = vld [vmem:[#allocation63_spill] sm:$0xff]  ;;  %v6428_v20 = vpop.f32.mrf.mxu0 }
 0x5f8   :  { %v7385_v4 = vadd.f32 %v7384_v58, %v7383_v45  ;;  %v7189_v62 = vadd.f32 %v7188_v50, %v7187_v43  ;;  %v7190_v0 = vsel %vm92_vm1, %v16975_v34, 0.0  ;;  %v7273_v35 = vmul.f32 %v16975_v34, %v16975_v34  ;;  %v18885_v12 = vld [vmem:[#allocation3_spill] sm:$0xff] }
 0x5f9   :  { %v16988_v10 = vmax.f32 %v6950_v60, %v7014_v28  ;;  %v6949_v14 = vadd.f32 %v18883_v39, %v6693_v48  ;;  %v6892_v2 = vsel %vm26_vm5, %v16706_v38, 0.0  ;;  %v6952_v50 = vadd.f32 %v16348_v33, %v6696_v6 }
 0x5fa   :  { %v7191_v53 = vadd.f32 %v7190_v0, %v7189_v62  ;;  %v7387_v63 = vadd.f32 %v7386_v21, %v7385_v4  ;;  %v7192_v47 = vsel %vm92_vm1, %v16973_v17, 0.0  ;;  %v7388_v61 = vsel %vm92_vm1, %v7273_v35, 0.0  ;;  %v18887_v35 = vld [vmem:[#allocation64_spill] sm:$0xff] }
 0x5fb   :  { %v7276_v32 = vmul.f32 %v16988_v10, %v16988_v10  ;;  %v7013_v60 = vmul.f32 0.01, %v6949_v14  ;;  %v7016_v45 = vmul.f32 0.01, %v6952_v50  ;;  %v6695_v43 = vadd.f32 %v18884_v5, %v6409_v42 }
 0x5fc   :  { %v7389_v41 = vadd.f32 %v7388_v61, %v7387_v63  ;;  %v7193_v24 = vadd.f32 %v7192_v47, %v7191_v53  ;;  %v7390_v38 = vsel %vm92_vm1, %v7274_v37, 0.0  ;;  %v6424_v33 = vadd.f32 %v16867_v56, %v9764_v31  ;;  %v18886_v37 = vld [vmem:[#allocation46_spill] sm:$0xff]  ;;  %v9770_v63 = vpop.f32.mrf.mxu0  ;;  %v18889_v61 = vld [vmem:[#allocation23_spill] sm:$0xff] }
 0x5fd   :  { %v17002_v28 = vmax.f32 %v6949_v14, %v7013_v60  ;;  %v6419_v21 = vadd.f32 %v16867_v56, %v6418_v8  ;;  %v17006_v48 = vmax.f32 %v6952_v50, %v7016_v45  ;;  %v6951_v6 = vadd.f32 %v18885_v12, %v6695_v43  ;;  %v18888_v50 = vld [vmem:[#allocation68_spill] sm:$0xff] }
 0x5fe   :  { %v7391_v58 = vadd.f32 %v7390_v38, %v7389_v41  ;;  %v6434_v4 = vadd.f32 %v16867_v56, %v9767_v13  ;;  %v6698_v0 = vadd.f32 %v18886_v37, %v6424_v33  ;;  %v7196_v31 = vsel %vm92_vm1, %v16988_v10, 0.0  ;;  %v18890_v41 = vld [vmem:[#allocation52_spill] sm:$0xff] }
 0x5ff   :  { %v7194_v62 = vsel %vm92_vm1, %v17002_v28, 0.0  ;;  %v7275_v42 = vmul.f32 %v17002_v28, %v17002_v28  ;;  %v6697_v39 = vadd.f32 %v18887_v35, %v6419_v21  ;;  %v7394_v8 = vsel %vm92_vm1, %v7276_v32, 0.0 }
 0x600   :  { %v7195_v14 = vadd.f32 %v7194_v62, %v7193_v24  ;;  %v7015_v53 = vmul.f32 0.01, %v6951_v6  ;;  %v6954_v47 = vadd.f32 %v18888_v50, %v6698_v0  ;;  %v6700_v45 = vadd.f32 %v18890_v41, %v6434_v4  ;;  %v6438_v4 = vpop.f32.mrf.mxu0 }
 0x601   :  { %v7392_v13 = vsel %vm92_vm1, %v7275_v42, 0.0  ;;  %v6953_v60 = vadd.f32 %v18889_v61, %v6697_v39  ;;  %v7278_v43 = vmul.f32 %v17006_v48, %v17006_v48  ;;  %v6429_v12 = vadd.f32 %v16867_v56, %v6428_v20 }
 0x602   :  { %v7393_v5 = vadd.f32 %v7392_v13, %v7391_v58  ;;  %v17025_v38 = vmax.f32 %v6951_v6, %v7015_v53  ;;  %v7197_v33 = vadd.f32 %v7196_v31, %v7195_v14  ;;  %v7018_v21 = vmul.f32 0.01, %v6954_v47  ;;  %v18891_v31 = vld [vmem:[#allocation69_spill] sm:$0xff]  ;;  %v18892_v53 = vld [vmem:[#allocation51_spill] sm:$0xff] }
 0x603   :  { %v7017_v32 = vmul.f32 0.01, %v6953_v60  ;;  %v6956_v24 = vadd.f32 %v6892_v2, %v6700_v45  ;;  %v6444_v58 = vadd.f32 %v16867_v56, %v9770_v63  ;;  %v7200_v6 = vsel %vm92_vm1, %v17006_v48, 0.0  ;;  %v18893_v45 = vld [vmem:[#allocation61_spill] sm:$0xff] }
 0x604   :  { %v7198_v62 = vsel %vm92_vm1, %v17025_v38, 0.0  ;;  %v7277_v42 = vmul.f32 %v17025_v38, %v17025_v38  ;;  %v7395_v37 = vadd.f32 %v7394_v8, %v7393_v5  ;;  %v17035_v35 = vmax.f32 %v6954_v47, %v7018_v21 }
 0x605   :  { %v7199_v0 = vadd.f32 %v7198_v62, %v7197_v33  ;;  %v17037_v39 = vmax.f32 %v6953_v60, %v7017_v32  ;;  %v7020_v20 = vmul.f32 0.01, %v6956_v24  ;;  %v6699_v14 = vadd.f32 %v18891_v31, %v6429_v12  ;;  %v18894_v32 = vld [vmem:[#allocation5_spill] sm:$0xff] }
 0x606   :  { %v7396_v2 = vsel %vm92_vm1, %v7277_v42, 0.0  ;;  %v6702_v13 = vadd.f32 %v18892_v53, %v6444_v58  ;;  %v7398_v8 = vsel %vm92_vm1, %v7278_v43, 0.0  ;;  %v6439_v61 = vadd.f32 %v16867_v56, %v6438_v4  ;;  %v18895_v43 = vld [vmem:[#allocation2_spill] sm:$0xff]  ;;  %v18896_v31 = vld [vmem:[#allocation53_spill] sm:$0xff] }
 0x607   :  { %v7397_v50 = vadd.f32 %v7396_v2, %v7395_v37  ;;  %v7201_v63 = vadd.f32 %v7200_v6, %v7199_v0  ;;  %v7280_v41 = vmul.f32 %v17035_v35, %v17035_v35  ;;  %v7202_v47 = vsel %vm92_vm1, %v17037_v39, 0.0 }
 0x608   :  { %v7279_v60 = vmul.f32 %v17037_v39, %v17037_v39  ;;  %v6955_v5 = vadd.f32 %v18893_v45, %v6699_v14  ;;  %v6958_v12 = vadd.f32 %v18894_v32, %v6702_v13  ;;  %v6637_v62 = vsel %vm23_vm3, %v18895_v43, 0.0 }
 0x609   :  { %v7203_v33 = vadd.f32 %v7202_v47, %v7201_v63  ;;  %v7399_v21 = vadd.f32 %v7398_v8, %v7397_v50  ;;  %v7204_v56 = vsel %vm92_vm1, %v17035_v35, 0.0  ;;  %v17058_v37 = vmax.f32 %v6956_v24, %v7020_v20 }
 0x60a   :  { %v7400_v42 = vsel %vm92_vm1, %v7279_v60, 0.0  ;;  %v7019_v58 = vmul.f32 0.01, %v6955_v5  ;;  %v7022_v0 = vmul.f32 0.01, %v6958_v12  ;;  %v6701_v2 = vadd.f32 %v6637_v62, %v6439_v61 }
 0x60b   :  { %v7401_v4 = vadd.f32 %v7400_v42, %v7399_v21  ;;  %v7205_v6 = vadd.f32 %v7204_v56, %v7203_v33  ;;  %v18897_v14 = vrot.slane %v18896_v31, 1  ;;  %v18898_v53 = vrot.slane %v16329_v44, 1 }
 0x60c   :  { %v7402_v8 = vsel %vm92_vm1, %v7280_v41, 0.0  ;;  %v17067_v50 = vmax.f32 %v6955_v5, %v7019_v58  ;;  %v7282_v24 = vmul.f32 %v17058_v37, %v17058_v37  ;;  %v17075_v44 = vmax.f32 %v6958_v12, %v7022_v0 }
 0x60d   :  { %v6767_v13 = vsel %vm1782_vm4, %v18898_v53, %v18897_v14  ;;  %v7403_v63 = vadd.f32 %v7402_v8, %v7401_v4  ;;  %v7208_v41 = vsel %vm92_vm1, %v17058_v37, 0.0 }
 0x60e   :  { %v6957_v47 = vadd.f32 %v6767_v13, %v6701_v2  ;;  %v7206_v20 = vsel %vm92_vm1, %v17067_v50, 0.0  ;;  %v7281_v61 = vmul.f32 %v17067_v50, %v17067_v50  ;;  %v7406_v32 = vsel %vm92_vm1, %v7282_v24, 0.0 }
 0x60f   :  { %v7207_v60 = vadd.f32 %v7206_v20, %v7205_v6  ;;  %v7284_v43 = vmul.f32 %v17075_v44, %v17075_v44  ;;  %v7212_v58 = vsel %vm92_vm1, %v17075_v44, 0.0 }
 0x610   :  { %v7021_v52 = vmul.f32 0.01, %v6957_v47  ;;  %v7404_v45 = vsel %vm92_vm1, %v7281_v61, 0.0 }
 0x611   :  { %v7405_v5 = vadd.f32 %v7404_v45, %v7403_v63  ;;  %v7209_v21 = vadd.f32 %v7208_v41, %v7207_v60  ;;  %v7410_v2 = vsel %vm92_vm1, %v7284_v43, 0.0  ;;  %v8302_v43 = vld [vmem:[%s18120_s3 + $0x2] sm:$0x1] }
 0x612   :  { %v17080_v33 = vmax.f32 %v6957_v47, %v7021_v52 }
 0x613   :  { %v7407_v56 = vadd.f32 %v7406_v32, %v7405_v5 }
 0x614   :  { %v7210_v62 = vsel %vm92_vm1, %v17080_v33, 0.0  ;;  %v7283_v12 = vmul.f32 %v17080_v33, %v17080_v33 }
 0x615   :  { %v7211_v42 = vadd.f32 %v7210_v62, %v7209_v21 }
 0x616   :  { %v7408_v4 = vsel %vm92_vm1, %v7283_v12, 0.0 }
 0x617   :  { %v7213_v6 = vadd.f32 %v7212_v58, %v7211_v42  ;;  %v7409_v0 = vadd.f32 %v7408_v4, %v7407_v56  ;;  %v17099_v42 = vld [vmem:[%s18121_s4 + $0x2] sm:$0x1]  ;;  %v18899_v4 = vld [vmem:[#allocation4_spill] sm:$0xff] }
 0x619   :  { %v7214_v31 = vrot.slane %v7213_v6, 4  ;;  %v7411_v14 = vadd.f32 %v7410_v2, %v7409_v0  ;;  %v18900_v2 = vld [vmem:[#allocation57_spill] sm:$0xff] }
 0x61b   :  { %v7215_v53 = vadd.f32 %v7214_v31, %v7213_v6  ;;  %v7412_v13 = vrot.slane %v7411_v14, 4 }
 0x61d   :  { %v7216_v8 = vrot.slane %v7215_v53, 2  ;;  %v7413_v63 = vadd.f32 %v7412_v13, %v7411_v14  ;;  %v18901_v14 = vld [vmem:[#allocation67_spill] sm:$0xff] }
 0x61e   :  { %v18902_v13 = vld [vmem:[#allocation71_spill] sm:$0xff] }
 0x61f   :  { %v7217_v47 = vadd.f32 %v7216_v8, %v7215_v53  ;;  %v7414_v24 = vrot.slane %v7413_v63, 2 }
 0x621   :  { %v7218_v20 = vrot.slane %v7217_v47, 1  ;;  %v7415_v61 = vadd.f32 %v7414_v24, %v7413_v63  ;;  %v18903_v63 = vld [vmem:[#allocation73_spill] sm:$0xff] }
 0x623   :  { %v7219_v60 = vadd.f32 %v7218_v20, %v7217_v47  ;;  %v7416_v52 = vrot.slane %v7415_v61, 1  ;;  %v18904_v20 = vld [vmem:[#allocation58_spill] sm:$0xff] }
 0x625   :  { %v7220_v41 = vmul.f32 0.001953125, %v7219_v60  ;;  %v7417_v45 = vadd.f32 %v7416_v52, %v7415_v61  ;;  %v18905_v60 = vld [vmem:[#allocation72_spill] sm:$0xff] }
 0x627   :  { %v7418_v5 = vmul.f32 0.001953125, %v7417_v45  ;;  %v7419_v21 = vmul.f32 %v7220_v41, %v7220_v41 }
 0x629   :  { %v7420_v32 = vsub.f32 %v7418_v5, %v7419_v21  ;;  %v18907_v5 = vld [vmem:[#allocation74_spill] sm:$0xff] }
 0x62b   :  { %v7423_v62 = vadd.f32 1e-05, %v7420_v32  ;;  %v18908_v32 = vld [vmem:[#allocation59_spill] sm:$0xff] }
 0x62d   :  { %9777 = vrsqrt.f32 %v7423_v62 }
 0x63a   :  { %v9778_v12 = vpop.eup %9777 }
 0x63b   :  { %v7425_v56 = vmul.f32 %v9778_v12, %v8302_v43  ;;  %v18909_v43 = vld [vmem:[#allocation76_spill] sm:$0xff] }
 0x63d   :  { %v17101_v58 = vmul.f32 %v7425_v56, %v7220_v41  ;;  %v17104_v6 = vrot.slane %v7425_v56, %v18899_v4  ;;  %v18906_v41 = vld [vmem:[#allocation54_spill] sm:$0xff] }
 0x63f   :  { %v7429_v0 = vsub.f32 %v17099_v42, %v17101_v58  ;;  %v17110_v31 = vmul.f32 %v17104_v6, %v18900_v2  ;;  %v17114_v53 = vmul.f32 %v17104_v6, %v18901_v14  ;;  %v17118_v8 = vmul.f32 %v17104_v6, %v18902_v13  ;;  %v18910_v42 = vld [vmem:[#allocation60_spill] sm:$0xff]  ;;  %v18911_v2 = vld [vmem:[#allocation77_spill] sm:$0xff]  ;;  %v18912_v13 = vld [vmem:[#allocation6_spill] sm:$0xff] }
 0x640   :  { %v17122_v47 = vmul.f32 %v17104_v6, %v18903_v63  ;;  %v17126_v24 = vmul.f32 %v17104_v6, %v16418_v11  ;;  %v17130_v61 = vmul.f32 %v17104_v6, %v18904_v20  ;;  %v17134_v52 = vmul.f32 %v17104_v6, %v18905_v60  ;;  %v18913_v63 = vld [vmem:[#allocation8_spill] sm:$0xff]  ;;  %v18915_v60 = vld [vmem:[#allocation79_spill] sm:$0xff] }
 0x641   :  { %v17138_v45 = vmul.f32 %v17104_v6, %v18906_v41  ;;  %v17142_v21 = vmul.f32 %v17104_v6, %v18907_v5  ;;  %v17146_v11 = vmul.f32 %v17104_v6, %v18908_v32  ;;  %v17150_v62 = vmul.f32 %v17104_v6, %v16483_v57  ;;  %v18917_v41 = vld [vmem:[#allocation7_spill] sm:$0xff]  ;;  %v18918_v32 = vld [vmem:[#allocation80_spill] sm:$0xff] }
 0x642   :  { %v17154_v12 = vmul.f32 %v17104_v6, %v18909_v43  ;;  %v17158_v56 = vmul.f32 %v17104_v6, %v16497_v54  ;;  %v17162_v58 = vmul.f32 %v17104_v6, %v18910_v42  ;;  %v17166_v14 = vmul.f32 %v17104_v6, %v18911_v2  ;;  %v18920_v42 = vld [vmem:[#allocation86_spill] sm:$0xff] }
 0x643   :  { %v17170_v57 = vmul.f32 %v17104_v6, %v18912_v13  ;;  %v17174_v20 = vmul.f32 %v17104_v6, %v18913_v63  ;;  %v17178_v54 = vmul.f32 %v17104_v6, %v18915_v60  ;;  %v17182_v5 = vmul.f32 %v17104_v6, %v18917_v41  ;;  %v18922_v13 = vld [vmem:[#allocation81_spill] sm:$0xff] }
 0x644   :  { %v17186_v43 = vmul.f32 %v17104_v6, %v18918_v32  ;;  %v17190_v2 = vmul.f32 %v17104_v6, %v18920_v42  ;;  %v17194_v63 = vmul.f32 %v17104_v6, %v18922_v13  ;;  %v17206_v32 = vmul.f32 %v17104_v6, %v16623_v49 }
 0x645   :  { %18914 = vst [vmem:[#allocation89_spill] sm:$0xff] %v17174_v20  ;;  %18916 = vst [vmem:[#allocation93_spill] sm:$0xff] %v17178_v54  ;;  %v18924_v20 = vld [vmem:[#allocation84_spill] sm:$0xff]  ;;  %v18925_v54 = vld [vmem:[#allocation9_spill] sm:$0xff]  ;;  %v17226_v49 = vmul.f32 %v17104_v6, %v16666_v22  ;;  %v17246_v22 = vmul.f32 %v17104_v6, %v16755_v30  ;;  %v17266_v30 = vmul.f32 %v17104_v6, %v16796_v7 }
 0x646   :  { %18919 = vst [vmem:[#allocation90_spill] sm:$0xff] %v17186_v43  ;;  %18921 = vst [vmem:[#allocation22_spill] sm:$0xff] %v17190_v2  ;;  %v17198_v60 = vmul.f32 %v17104_v6, %v18924_v20  ;;  %v17202_v41 = vmul.f32 %v17104_v6, %v18925_v54  ;;  %v18927_v43 = vld [vmem:[#allocation82_spill] sm:$0xff]  ;;  %v17222_v54 = vmul.f32 %v17104_v6, %v16668_v18 }
 0x647   :  { %18923 = vst [vmem:[#allocation88_spill] sm:$0xff] %v17194_v63  ;;  %18926 = vst [vmem:[#allocation13_spill] sm:$0xff] %v17206_v32  ;;  %v17210_v42 = vmul.f32 %v17104_v6, %v18927_v43  ;;  %v18929_v2 = vld [vmem:[#allocation14_spill] sm:$0xff]  ;;  %v18930_v63 = vld [vmem:[#allocation21_spill] sm:$0xff]  ;;  %v17286_v7 = vmul.f32 %v17104_v6, %v16895_v1  ;;  %v17306_v1 = vmul.f32 %v17104_v6, %v16924_v3 }
 0x648   :  { %v17214_v13 = vmul.f32 %v17104_v6, %v18929_v2  ;;  %v17218_v20 = vmul.f32 %v17104_v6, %v18930_v63  ;;  %v18932_v32 = vld [vmem:[#allocation28_spill] sm:$0xff]  ;;  %v17238_v63 = vmul.f32 %v17104_v6, %v16740_v27  ;;  %v17258_v27 = vmul.f32 %v17104_v6, %v16773_v19 }
 0x649   :  { %18928 = vst [vmem:[#allocation25_spill] sm:$0xff] %v17210_v42  ;;  %v17230_v43 = vmul.f32 %v17104_v6, %v18932_v32  ;;  %v18933_v42 = vld [vmem:[#allocation87_spill] sm:$0xff]  ;;  %v17250_v32 = vmul.f32 %v17104_v6, %v16753_v15  ;;  %v17270_v15 = vmul.f32 %v17104_v6, %v16831_v40  ;;  %v17278_v19 = vmul.f32 %v17104_v6, %v16862_v25 }
 0x64a   :  { %18931 = vst [vmem:[#allocation26_spill] sm:$0xff] %v17218_v20  ;;  %v17234_v2 = vmul.f32 %v17104_v6, %v18933_v42  ;;  %v18934_v20 = vld [vmem:[#allocation10_spill] sm:$0xff]  ;;  %v17254_v42 = vmul.f32 %v17104_v6, %v16788_v23  ;;  %v17274_v23 = vmul.f32 %v17104_v6, %v16829_v26  ;;  %v17290_v40 = vmul.f32 %v17104_v6, %v16873_v51 }
 0x64b   :  { %v17242_v18 = vmul.f32 %v17104_v6, %v18934_v20  ;;  %v17262_v20 = vmul.f32 %v17104_v6, %v16818_v36  ;;  %v17282_v36 = vmul.f32 %v17104_v6, %v16847_v59  ;;  %v17294_v26 = vmul.f32 %v17104_v6, %v16910_v16 }
 0x64c   :  { %v17298_v25 = vmul.f32 %v17104_v6, %v16908_v29  ;;  %v17302_v59 = vmul.f32 %v17104_v6, %v16937_v46  ;;  %v17310_v51 = vmul.f32 %v17104_v6, %v16963_v9  ;;  %v17314_v16 = vmul.f32 %v17104_v6, %v16943_v55 }
 0x64d   :  { %v17318_v29 = vmul.f32 %v17104_v6, %v16975_v34  ;;  %v17322_v46 = vmul.f32 %v17104_v6, %v16973_v17  ;;  %v17326_v3 = vmul.f32 %v17104_v6, %v17067_v50  ;;  %v17330_v9 = vmul.f32 %v17104_v6, %v17058_v37 }
 0x64e   :  { %v17334_v55 = vmul.f32 %v17104_v6, %v17080_v33  ;;  %v7490_v34 = vmul.f32 %v17104_v6, %v17002_v28  ;;  %v17342_v17 = vmul.f32 %v17104_v6, %v17075_v44  ;;  %v17345_v50 = vrot.slane %v7429_v0, %v18899_v4 }
 0x64f   :  { %18935 = vst [vmem:[#allocation15_spill] sm:$0xff] %v17318_v29  ;;  %v7491_v29 = vmul.f32 %v17104_v6, %v16988_v10  ;;  %v7492_v37 = vmul.f32 %v17104_v6, %v17025_v38  ;;  %v7493_v33 = vmul.f32 %v17104_v6, %v17006_v48  ;;  %v7495_v28 = vmul.f32 %v17104_v6, %v17035_v35 }
 0x650   :  { %18936 = vst [vmem:[#allocation24_spill] sm:$0xff] %v17334_v55  ;;  %v7494_v55 = vmul.f32 %v17104_v6, %v17037_v39  ;;  %v17357_v10 = vadd.f32 %v17345_v50, %v17110_v31  ;;  %v17361_v44 = vadd.f32 %v17345_v50, %v17114_v53  ;;  %v17365_v38 = vadd.f32 %v17345_v50, %v17118_v8 }
 0x651   :  { %v17369_v48 = vadd.f32 %v17345_v50, %v17122_v47  ;;  %v17373_v39 = vadd.f32 %v17345_v50, %v17126_v24  ;;  %v17377_v35 = vadd.f32 %v17345_v50, %v17130_v61  ;;  %v17381_v4 = vadd.f32 %v17345_v50, %v17134_v52 }
 0x652   :  { %v17385_v6 = vadd.f32 %v17345_v50, %v17138_v45  ;;  %v17389_v0 = vadd.f32 %v17345_v50, %v17142_v21  ;;  %v17393_v31 = vadd.f32 %v17345_v50, %v17146_v11  ;;  %v17397_v53 = vadd.f32 %v17345_v50, %v17150_v62  ;;  %v18938_v45 = vld [vmem:[#allocation89_spill] sm:$0xff] }
 0x653   :  { %v17401_v8 = vadd.f32 %v17345_v50, %v17154_v12  ;;  %v17405_v47 = vadd.f32 %v17345_v50, %v17158_v56  ;;  %v17409_v24 = vadd.f32 %v17345_v50, %v17162_v58  ;;  %v17413_v61 = vadd.f32 %v17345_v50, %v17166_v14  ;;  %v18939_v11 = vld [vmem:[#allocation93_spill] sm:$0xff]  ;;  %v18941_v56 = vld [vmem:[#allocation90_spill] sm:$0xff] }
 0x654   :  { %v17417_v52 = vadd.f32 %v17345_v50, %v17170_v57  ;;  %v17421_v21 = vadd.f32 %v17345_v50, %v18938_v45  ;;  %v17425_v62 = vadd.f32 %v17345_v50, %v18939_v11  ;;  %v17429_v12 = vadd.f32 %v17345_v50, %v17182_v5  ;;  %v18943_v14 = vld [vmem:[#allocation22_spill] sm:$0xff] }
 0x655   :  { %v17433_v58 = vadd.f32 %v17345_v50, %v18941_v56  ;;  %v17437_v57 = vadd.f32 %v17345_v50, %v18943_v14  ;;  %v17445_v11 = vadd.f32 %v17345_v50, %v17198_v60  ;;  %v17449_v5 = vadd.f32 %v17345_v50, %v17202_v41 }
 0x656   :  { %18937 = vst [vmem:[#allocation34_spill] sm:$0xff] %v17417_v52  ;;  %18940 = vst [vmem:[#allocation83_spill] sm:$0xff] %v17429_v12  ;;  %v18944_v52 = vld [vmem:[#allocation88_spill] sm:$0xff]  ;;  %v18946_v12 = vld [vmem:[#allocation13_spill] sm:$0xff]  ;;  %v17469_v41 = vadd.f32 %v17345_v50, %v17222_v54  ;;  %v17489_v54 = vadd.f32 %v17345_v50, %v17242_v18  ;;  %v17509_v18 = vadd.f32 %v17345_v50, %v17262_v20 }
 0x657   :  { %18942 = vst [vmem:[#allocation20_spill] sm:$0xff] %v17433_v58  ;;  %v17441_v45 = vadd.f32 %v17345_v50, %v18944_v52  ;;  %v17453_v56 = vadd.f32 %v17345_v50, %v18946_v12  ;;  %v18947_v58 = vld [vmem:[#allocation25_spill] sm:$0xff]  ;;  %v17461_v52 = vadd.f32 %v17345_v50, %v17214_v13  ;;  %v17473_v12 = vadd.f32 %v17345_v50, %v17226_v49 }
 0x658   :  { %v17457_v14 = vadd.f32 %v17345_v50, %v18947_v58  ;;  %v17477_v58 = vadd.f32 %v17345_v50, %v17230_v43  ;;  %v17481_v13 = vadd.f32 %v17345_v50, %v17234_v2  ;;  %v17493_v49 = vadd.f32 %v17345_v50, %v17246_v22 }
 0x659   :  { %18945 = vst [vmem:[#allocation35_spill] sm:$0xff] %v17441_v45  ;;  %v18948_v45 = vld [vmem:[#allocation26_spill] sm:$0xff]  ;;  %v17497_v43 = vadd.f32 %v17345_v50, %v17250_v32  ;;  %v17501_v2 = vadd.f32 %v17345_v50, %v17254_v42  ;;  %v17513_v22 = vadd.f32 %v17345_v50, %v17266_v30  ;;  %v17517_v32 = vadd.f32 %v17345_v50, %v17270_v15 }
 0x65a   :  { %v17465_v60 = vadd.f32 %v17345_v50, %v18948_v45  ;;  %v17485_v45 = vadd.f32 %v17345_v50, %v17238_v63  ;;  %v17505_v63 = vadd.f32 %v17345_v50, %v17258_v27  ;;  %v17521_v42 = vadd.f32 %v17345_v50, %v17274_v23 }
 0x65b   :  { %v17525_v27 = vadd.f32 %v17345_v50, %v17278_v19  ;;  %v17529_v20 = vadd.f32 %v17345_v50, %v17282_v36  ;;  %v17533_v30 = vadd.f32 %v17345_v50, %v17286_v7  ;;  %v17537_v15 = vadd.f32 %v17345_v50, %v17290_v40 }
 0x65c   :  { %v17541_v23 = vadd.f32 %v17345_v50, %v17294_v26  ;;  %v17545_v19 = vadd.f32 %v17345_v50, %v17298_v25  ;;  %v17549_v36 = vadd.f32 %v17345_v50, %v17302_v59  ;;  %v17553_v7 = vadd.f32 %v17345_v50, %v17306_v1 }
 0x65d   :  { %v17557_v40 = vadd.f32 %v17345_v50, %v17310_v51  ;;  %v17561_v26 = vadd.f32 %v17345_v50, %v17314_v16  ;;  %v17569_v59 = vadd.f32 %v17345_v50, %v17322_v46  ;;  %v17575_v1 = vadd.f32 %v17345_v50, %v7491_v29 }
 0x65e   :  { %18949 = vst [vmem:[#allocation16_spill] sm:$0xff] %v17541_v23  ;;  %18950 = vst [vmem:[#allocation62_spill] sm:$0xff] %v17549_v36  ;;  %v18952_v23 = vld [vmem:[#allocation15_spill] sm:$0xff]  ;;  %v17572_v36 = vadd.f32 %v17345_v50, %v7490_v34  ;;  %v17578_v51 = vadd.f32 %v17345_v50, %v7492_v37  ;;  %v17581_v16 = vadd.f32 %v17345_v50, %v7493_v33  ;;  %v18953_v34 = vld [vmem:[#allocation24_spill] sm:$0xff] }
 0x65f   :  { %18951 = vst [vmem:[#allocation38_spill] sm:$0xff] %v17561_v26  ;;  %v17565_v25 = vadd.f32 %v17345_v50, %v18952_v23  ;;  %v17584_v26 = vadd.f32 %v17345_v50, %v7494_v55  ;;  %v17587_v23 = vadd.f32 %v17345_v50, %v7495_v28  ;;  %v17591_v46 = vadd.f32 %v17345_v50, %v17326_v3  ;;  %v9782_v55 = vld [vmem:[%s18118_s0] sm:$0xff]  ;;  %v9783_v3 = vld [vmem:[%s18118_s0 + $0x8] sm:$0xff] }
 0x660   :  { %v17595_v29 = vadd.f32 %v17345_v50, %v17330_v9  ;;  %v17599_v37 = vadd.f32 %v17345_v50, %v18953_v34  ;;  %v17603_v33 = vadd.f32 %v17345_v50, %v17342_v17  ;;  %v7570_v28 = vadd.f32 %v9782_v55, %v17357_v10  ;;  %v9784_v34 = vld [vmem:[%s18118_s0 + $0x10] sm:$0xff]  ;;  %v9785_v17 = vld [vmem:[%s18118_s0 + $0x18] sm:$0xff]  ;;  %v9786_v10 = vld [vmem:[%s18118_s0 + $0x20] sm:$0xff] }
 0x661   :  { %v7571_v9 = vadd.f32 %v9783_v3, %v17361_v44  ;;  %v7573_v50 = vadd.f32 %v9785_v17, %v17369_v48  ;;  %v7574_v55 = vadd.f32 %v9786_v10, %v17373_v39  ;;  %v9787_v44 = vld [vmem:[%s18118_s0 + $0x28] sm:$0xff]  ;;  %v9789_v48 = vld [vmem:[%s18118_s0 + $0x38] sm:$0xff]  ;;  %v9790_v39 = vld [vmem:[%s18118_s0 + $0x40] sm:$0xff] }
 0x662   :  { %18954 = vst [vmem:[#allocation41_spill] sm:$0xff] %v17599_v37  ;;  %v7572_v37 = vadd.f32 %v9784_v34, %v17365_v38  ;;  %v7575_v3 = vadd.f32 %v9787_v44, %v17377_v35  ;;  %v9788_v38 = vld [vmem:[%s18118_s0 + $0x30] sm:$0xff]  ;;  %v7577_v17 = vadd.f32 %v9789_v48, %v17385_v6  ;;  %v7578_v10 = vadd.f32 %v9790_v39, %v17389_v0  ;;  %v9791_v35 = vld [vmem:[%s18118_s0 + $0x48] sm:$0xff]  ;;  %v9793_v6 = vld [vmem:[%s18118_s0 + $0x58] sm:$0xff] }
 0x663   :  { %v7576_v34 = vadd.f32 %v9788_v38, %v17381_v4  ;;  %v7579_v44 = vadd.f32 %v9791_v35, %v17393_v31  ;;  %v9792_v4 = vld [vmem:[%s18118_s0 + $0x50] sm:$0xff]  ;;  %v7581_v48 = vadd.f32 %v9793_v6, %v17401_v8  ;;  %7634 = vst.msk [vmem:[%s18122_s5] sm:$0xff] %vm92_vm1, %v7570_v28  ;;  %7635 = vst.msk [vmem:[%s18122_s5 + $0x8] sm:$0xff] %vm92_vm1, %v7571_v9  ;;  %v9794_v0 = vld [vmem:[%s18118_s0 + $0x60] sm:$0xff] }
 0x664   :  { %v7580_v38 = vadd.f32 %v9792_v4, %v17397_v53  ;;  %7636 = vst.msk [vmem:[%s18122_s5 + $0x10] sm:$0xff] %vm92_vm1, %v7572_v37  ;;  %7637 = vst.msk [vmem:[%s18122_s5 + $0x18] sm:$0xff] %vm92_vm1, %v7573_v50  ;;  %v7582_v31 = vadd.f32 %v9794_v0, %v17405_v47  ;;  %v9795_v53 = vld [vmem:[%s18118_s0 + $0x68] sm:$0xff]  ;;  %v9796_v37 = vld [vmem:[%s18118_s0 + $0x70] sm:$0xff] }
 0x665   :  { %v7583_v8 = vadd.f32 %v9795_v53, %v17409_v24  ;;  %v7584_v28 = vadd.f32 %v9796_v37, %v17413_v61  ;;  %v9797_v9 = vld [vmem:[%s18118_s0 + $0x78] sm:$0xff]  ;;  %v18955_v50 = vld [vmem:[#allocation34_spill] sm:$0xff]  ;;  %7638 = vst.msk [vmem:[%s18122_s5 + $0x20] sm:$0xff] %vm92_vm1, %v7574_v55  ;;  %7639 = vst.msk [vmem:[%s18122_s5 + $0x28] sm:$0xff] %vm92_vm1, %v7575_v3 }
 0x666   :  { %v7585_v39 = vadd.f32 %v9797_v9, %v18955_v50  ;;  %7640 = vst.msk [vmem:[%s18122_s5 + $0x30] sm:$0xff] %vm92_vm1, %v7576_v34  ;;  %7641 = vst.msk [vmem:[%s18122_s5 + $0x38] sm:$0xff] %vm92_vm1, %v7577_v17  ;;  %v9798_v47 = vld [vmem:[%s18118_s0 + $0x80] sm:$0xff]  ;;  %v9799_v61 = vld [vmem:[%s18118_s0 + $0x88] sm:$0xff] }
 0x667   :  { %v7586_v24 = vadd.f32 %v9798_v47, %v17421_v21  ;;  %v7587_v55 = vadd.f32 %v9799_v61, %v17425_v62  ;;  %v9800_v3 = vld [vmem:[%s18118_s0 + $0x90] sm:$0xff]  ;;  %v18956_v34 = vld [vmem:[#allocation83_spill] sm:$0xff]  ;;  %v9801_v17 = vld [vmem:[%s18118_s0 + $0x98] sm:$0xff]  ;;  %7642 = vst.msk [vmem:[%s18122_s5 + $0x40] sm:$0xff] %vm92_vm1, %v7578_v10 }
 0x668   :  { %v7588_v35 = vadd.f32 %v9800_v3, %v18956_v34  ;;  %v18957_v4 = vld [vmem:[#allocation20_spill] sm:$0xff]  ;;  %7643 = vst.msk [vmem:[%s18122_s5 + $0x48] sm:$0xff] %vm92_vm1, %v7579_v44  ;;  %7644 = vst.msk [vmem:[%s18122_s5 + $0x50] sm:$0xff] %vm92_vm1, %v7580_v38  ;;  %v9802_v21 = vld [vmem:[%s18118_s0 + $0xa0] sm:$0xff] }
 0x669   :  { %v7589_v6 = vadd.f32 %v9801_v17, %v18957_v4  ;;  %7645 = vst.msk [vmem:[%s18122_s5 + $0x58] sm:$0xff] %vm92_vm1, %v7581_v48  ;;  %v7590_v62 = vadd.f32 %v9802_v21, %v17437_v57  ;;  %v9803_v10 = vld [vmem:[%s18118_s0 + $0xa8] sm:$0xff]  ;;  %v9804_v38 = vld [vmem:[%s18118_s0 + $0xb0] sm:$0xff]  ;;  %v9805_v48 = vld [vmem:[%s18118_s0 + $0xb8] sm:$0xff] }
 0x66a   :  { %v18958_v44 = vld [vmem:[#allocation35_spill] sm:$0xff]  ;;  %v7592_v53 = vadd.f32 %v9804_v38, %v17445_v11  ;;  %v7593_v37 = vadd.f32 %v9805_v48, %v17449_v5  ;;  %7646 = vst.msk [vmem:[%s18122_s5 + $0x60] sm:$0xff] %vm92_vm1, %v7582_v31  ;;  %7647 = vst.msk [vmem:[%s18122_s5 + $0x68] sm:$0xff] %vm92_vm1, %v7583_v8  ;;  %v9806_v57 = vld [vmem:[%s18118_s0 + $0xc0] sm:$0xff] }
 0x66b   :  { %v7591_v0 = vadd.f32 %v9803_v10, %v18958_v44  ;;  %7648 = vst.msk [vmem:[%s18122_s5 + $0x70] sm:$0xff] %vm92_vm1, %v7584_v28  ;;  %7649 = vst.msk [vmem:[%s18122_s5 + $0x78] sm:$0xff] %vm92_vm1, %v7585_v39  ;;  %v7594_v11 = vadd.f32 %v9806_v57, %v17453_v56  ;;  %v9807_v5 = vld [vmem:[%s18118_s0 + $0xc8] sm:$0xff]  ;;  %v9808_v8 = vld [vmem:[%s18118_s0 + $0xd0] sm:$0xff] }
 0x66c   :  { %v7595_v31 = vadd.f32 %v9807_v5, %v17457_v14  ;;  %v7596_v28 = vadd.f32 %v9808_v8, %v17461_v52  ;;  %v9809_v9 = vld [vmem:[%s18118_s0 + $0xd8] sm:$0xff]  ;;  %7650 = vst.msk [vmem:[%s18122_s5 + $0x80] sm:$0xff] %vm92_vm1, %v7586_v24  ;;  %7651 = vst.msk [vmem:[%s18122_s5 + $0x88] sm:$0xff] %vm92_vm1, %v7587_v55  ;;  %v9810_v56 = vld [vmem:[%s18118_s0 + $0xe0] sm:$0xff] }
 0x66d   :  { %v7597_v50 = vadd.f32 %v9809_v9, %v17465_v60  ;;  %7652 = vst.msk [vmem:[%s18122_s5 + $0x90] sm:$0xff] %vm92_vm1, %v7588_v35  ;;  %7653 = vst.msk [vmem:[%s18122_s5 + $0x98] sm:$0xff] %vm92_vm1, %v7589_v6  ;;  %v7598_v14 = vadd.f32 %v9810_v56, %v17469_v41  ;;  %v9811_v52 = vld [vmem:[%s18118_s0 + $0xe8] sm:$0xff]  ;;  %v9812_v39 = vld [vmem:[%s18118_s0 + $0xf0] sm:$0xff] }
 0x66e   :  { %v7599_v60 = vadd.f32 %v9811_v52, %v17473_v12  ;;  %v7600_v47 = vadd.f32 %v9812_v39, %v17477_v58  ;;  %v9813_v24 = vld [vmem:[%s18118_s0 + $0xf8] sm:$0xff]  ;;  %7654 = vst.msk [vmem:[%s18122_s5 + $0xa0] sm:$0xff] %vm92_vm1, %v7590_v62  ;;  %7655 = vst.msk [vmem:[%s18122_s5 + $0xa8] sm:$0xff] %vm92_vm1, %v7591_v0  ;;  %v9814_v41 = vld [vmem:[%s18118_s0 + $0x100] sm:$0xff] }
 0x66f   :  { %v7601_v61 = vadd.f32 %v9813_v24, %v17481_v13  ;;  %7656 = vst.msk [vmem:[%s18122_s5 + $0xb0] sm:$0xff] %vm92_vm1, %v7592_v53  ;;  %7657 = vst.msk [vmem:[%s18122_s5 + $0xb8] sm:$0xff] %vm92_vm1, %v7593_v37  ;;  %v7602_v12 = vadd.f32 %v9814_v41, %v17485_v45  ;;  %v9815_v58 = vld [vmem:[%s18118_s0 + $0x108] sm:$0xff]  ;;  %v9816_v55 = vld [vmem:[%s18118_s0 + $0x110] sm:$0xff] }
 0x670   :  { %v7603_v13 = vadd.f32 %v9815_v58, %v17489_v54  ;;  %v7604_v3 = vadd.f32 %v9816_v55, %v17493_v49  ;;  %v9817_v34 = vld [vmem:[%s18118_s0 + $0x118] sm:$0xff]  ;;  %7658 = vst.msk [vmem:[%s18122_s5 + $0xc0] sm:$0xff] %vm92_vm1, %v7594_v11  ;;  %7659 = vst.msk [vmem:[%s18122_s5 + $0xc8] sm:$0xff] %vm92_vm1, %v7595_v31  ;;  %v9818_v45 = vld [vmem:[%s18118_s0 + $0x120] sm:$0xff] }
 0x671   :  { %v7605_v35 = vadd.f32 %v9817_v34, %v17497_v43  ;;  %7660 = vst.msk [vmem:[%s18122_s5 + $0xd0] sm:$0xff] %vm92_vm1, %v7596_v28  ;;  %7661 = vst.msk [vmem:[%s18122_s5 + $0xd8] sm:$0xff] %vm92_vm1, %v7597_v50  ;;  %v7606_v54 = vadd.f32 %v9818_v45, %v17501_v2  ;;  %v9819_v49 = vld [vmem:[%s18118_s0 + $0x128] sm:$0xff]  ;;  %v9820_v17 = vld [vmem:[%s18118_s0 + $0x130] sm:$0xff] }
 0x672   :  { %v7607_v43 = vadd.f32 %v9819_v49, %v17505_v63  ;;  %v7608_v4 = vadd.f32 %v9820_v17, %v17509_v18  ;;  %v9821_v6 = vld [vmem:[%s18118_s0 + $0x138] sm:$0xff]  ;;  %7662 = vst.msk [vmem:[%s18122_s5 + $0xe0] sm:$0xff] %vm92_vm1, %v7598_v14  ;;  %7663 = vst.msk [vmem:[%s18122_s5 + $0xe8] sm:$0xff] %vm92_vm1, %v7599_v60  ;;  %v9822_v2 = vld [vmem:[%s18118_s0 + $0x140] sm:$0xff] }
 0x673   :  { %v7609_v21 = vadd.f32 %v9821_v6, %v17513_v22  ;;  %7664 = vst.msk [vmem:[%s18122_s5 + $0xf0] sm:$0xff] %vm92_vm1, %v7600_v47  ;;  %7665 = vst.msk [vmem:[%s18122_s5 + $0xf8] sm:$0xff] %vm92_vm1, %v7601_v61  ;;  %v7610_v63 = vadd.f32 %v9822_v2, %v17517_v32  ;;  %v9823_v18 = vld [vmem:[%s18118_s0 + $0x148] sm:$0xff]  ;;  %v9824_v62 = vld [vmem:[%s18118_s0 + $0x150] sm:$0xff] }
 0x674   :  { %v7611_v22 = vadd.f32 %v9823_v18, %v17521_v42  ;;  %v7612_v10 = vadd.f32 %v9824_v62, %v17525_v27  ;;  %v9825_v44 = vld [vmem:[%s18118_s0 + $0x158] sm:$0xff]  ;;  %7666 = vst.msk [vmem:[%s18122_s5 + $0x100] sm:$0xff] %vm92_vm1, %v7602_v12  ;;  %7667 = vst.msk [vmem:[%s18122_s5 + $0x108] sm:$0xff] %vm92_vm1, %v7603_v13  ;;  %v9826_v32 = vld [vmem:[%s18118_s0 + $0x160] sm:$0xff] }
 0x675   :  { %v7613_v0 = vadd.f32 %v9825_v44, %v17529_v20  ;;  %7668 = vst.msk [vmem:[%s18122_s5 + $0x110] sm:$0xff] %vm92_vm1, %v7604_v3  ;;  %7669 = vst.msk [vmem:[%s18122_s5 + $0x118] sm:$0xff] %vm92_vm1, %v7605_v35  ;;  %v7614_v42 = vadd.f32 %v9826_v32, %v17533_v30  ;;  %v9827_v27 = vld [vmem:[%s18118_s0 + $0x168] sm:$0xff]  ;;  %v9828_v38 = vld [vmem:[%s18118_s0 + $0x170] sm:$0xff] }
 0x676   :  { %v7615_v20 = vadd.f32 %v9827_v27, %v17537_v15  ;;  %v18959_v53 = vld [vmem:[#allocation16_spill] sm:$0xff]  ;;  %v9829_v37 = vld [vmem:[%s18118_s0 + $0x178] sm:$0xff]  ;;  %7670 = vst.msk [vmem:[%s18122_s5 + $0x120] sm:$0xff] %vm92_vm1, %v7606_v54  ;;  %7671 = vst.msk [vmem:[%s18122_s5 + $0x128] sm:$0xff] %vm92_vm1, %v7607_v43 }
 0x677   :  { %v7616_v48 = vadd.f32 %v9828_v38, %v18959_v53  ;;  %v7617_v57 = vadd.f32 %v9829_v37, %v17545_v19  ;;  %7672 = vst.msk [vmem:[%s18122_s5 + $0x130] sm:$0xff] %vm92_vm1, %v7608_v4  ;;  %7673 = vst.msk [vmem:[%s18122_s5 + $0x138] sm:$0xff] %vm92_vm1, %v7609_v21  ;;  %v9830_v30 = vld [vmem:[%s18118_s0 + $0x180] sm:$0xff]  ;;  %v9831_v11 = vld [vmem:[%s18118_s0 + $0x188] sm:$0xff] }
 0x678   :  { %v18960_v15 = vld [vmem:[#allocation62_spill] sm:$0xff]  ;;  %v7619_v5 = vadd.f32 %v9831_v11, %v17553_v7  ;;  %v9832_v31 = vld [vmem:[%s18118_s0 + $0x190] sm:$0xff]  ;;  %v9833_v28 = vld [vmem:[%s18118_s0 + $0x198] sm:$0xff]  ;;  %7674 = vst.msk [vmem:[%s18122_s5 + $0x140] sm:$0xff] %vm92_vm1, %v7610_v63 }
 0x679   :  { %v7618_v19 = vadd.f32 %v9830_v30, %v18960_v15  ;;  %v7620_v8 = vadd.f32 %v9832_v31, %v17557_v40  ;;  %v18961_v9 = vld [vmem:[#allocation38_spill] sm:$0xff]  ;;  %7675 = vst.msk [vmem:[%s18122_s5 + $0x148] sm:$0xff] %vm92_vm1, %v7611_v22  ;;  %7676 = vst.msk [vmem:[%s18122_s5 + $0x150] sm:$0xff] %vm92_vm1, %v7612_v10  ;;  %v9835_v56 = vld [vmem:[%s18118_s0 + $0x1a8] sm:$0xff] }
 0x67a   :  { %v7621_v50 = vadd.f32 %v9833_v28, %v18961_v9  ;;  %7677 = vst.msk [vmem:[%s18122_s5 + $0x158] sm:$0xff] %vm92_vm1, %v7613_v0  ;;  %v9834_v7 = vld [vmem:[%s18118_s0 + $0x1a0] sm:$0xff]  ;;  %v7623_v14 = vadd.f32 %v9835_v56, %v17569_v59  ;;  %v9836_v52 = vld [vmem:[%s18118_s0 + $0x1b0] sm:$0xff]  ;;  %v9837_v39 = vld [vmem:[%s18118_s0 + $0x1b8] sm:$0xff] }
 0x67b   :  { %v7622_v40 = vadd.f32 %v9834_v7, %v17565_v25  ;;  %v7624_v60 = vadd.f32 %v9836_v52, %v17572_v36  ;;  %v7625_v47 = vadd.f32 %v9837_v39, %v17575_v1  ;;  %7678 = vst.msk [vmem:[%s18122_s5 + $0x160] sm:$0xff] %vm92_vm1, %v7614_v42  ;;  %7679 = vst.msk [vmem:[%s18122_s5 + $0x168] sm:$0xff] %vm92_vm1, %v7615_v20  ;;  %v9838_v36 = vld [vmem:[%s18118_s0 + $0x1c0] sm:$0xff]  ;;  %v9839_v59 = vld [vmem:[%s18118_s0 + $0x1c8] sm:$0xff] }
 0x67c   :  { %7680 = vst.msk [vmem:[%s18122_s5 + $0x170] sm:$0xff] %vm92_vm1, %v7616_v48  ;;  %7681 = vst.msk [vmem:[%s18122_s5 + $0x178] sm:$0xff] %vm92_vm1, %v7617_v57  ;;  %v7626_v25 = vadd.f32 %v9838_v36, %v17578_v51  ;;  %v7627_v1 = vadd.f32 %v9839_v59, %v17581_v16  ;;  %v9840_v24 = vld [vmem:[%s18118_s0 + $0x1d0] sm:$0xff]  ;;  %v9841_v41 = vld [vmem:[%s18118_s0 + $0x1d8] sm:$0xff] }
 0x67d   :  { %v7628_v61 = vadd.f32 %v9840_v24, %v17584_v26  ;;  %v7629_v12 = vadd.f32 %v9841_v41, %v17587_v23  ;;  %7682 = vst.msk [vmem:[%s18122_s5 + $0x180] sm:$0xff] %vm92_vm1, %v7618_v19  ;;  %7683 = vst.msk [vmem:[%s18122_s5 + $0x188] sm:$0xff] %vm92_vm1, %v7619_v5  ;;  %v9842_v26 = vld [vmem:[%s18118_s0 + $0x1e0] sm:$0xff]  ;;  %v9843_v16 = vld [vmem:[%s18118_s0 + $0x1e8] sm:$0xff] }
 0x67e   :  { %7684 = vst.msk [vmem:[%s18122_s5 + $0x190] sm:$0xff] %vm92_vm1, %v7620_v8  ;;  %7685 = vst.msk [vmem:[%s18122_s5 + $0x198] sm:$0xff] %vm92_vm1, %v7621_v50  ;;  %v7630_v51 = vadd.f32 %v9842_v26, %v17591_v46  ;;  %v7631_v23 = vadd.f32 %v9843_v16, %v17595_v29  ;;  %v9844_v58 = vld [vmem:[%s18118_s0 + $0x1f0] sm:$0xff]  ;;  %v18962_v13 = vld [vmem:[#allocation41_spill] sm:$0xff] }
 0x67f   :  { %v7632_v55 = vadd.f32 %v9844_v58, %v18962_v13  ;;  %v9845_v3 = vld [vmem:[%s18118_s0 + $0x1f8] sm:$0xff]  ;;  %7686 = vst.msk [vmem:[%s18122_s5 + $0x1a0] sm:$0xff] %vm92_vm1, %v7622_v40  ;;  %7687 = vst.msk [vmem:[%s18122_s5 + $0x1a8] sm:$0xff] %vm92_vm1, %v7623_v14 }
 0x680   :  { %v7633_v34 = vadd.f32 %v9845_v3, %v17603_v33  ;;  %7688 = vst.msk [vmem:[%s18122_s5 + $0x1b0] sm:$0xff] %vm92_vm1, %v7624_v60  ;;  %7689 = vst.msk [vmem:[%s18122_s5 + $0x1b8] sm:$0xff] %vm92_vm1, %v7625_v47 }
 0x681   :  { %7690 = vst.msk [vmem:[%s18122_s5 + $0x1c0] sm:$0xff] %vm92_vm1, %v7626_v25  ;;  %7691 = vst.msk [vmem:[%s18122_s5 + $0x1c8] sm:$0xff] %vm92_vm1, %v7627_v1 }
 0x682   :  { %7692 = vst.msk [vmem:[%s18122_s5 + $0x1d0] sm:$0xff] %vm92_vm1, %v7628_v61  ;;  %7693 = vst.msk [vmem:[%s18122_s5 + $0x1d8] sm:$0xff] %vm92_vm1, %v7629_v12 }
 0x683   :  { %7694 = vst.msk [vmem:[%s18122_s5 + $0x1e0] sm:$0xff] %vm92_vm1, %v7630_v51  ;;  %7695 = vst.msk [vmem:[%s18122_s5 + $0x1e8] sm:$0xff] %vm92_vm1, %v7631_v23 }
 0x684   :  { %7696 = vst.msk [vmem:[%s18122_s5 + $0x1f0] sm:$0xff] %vm92_vm1, %v7632_v55  ;;  %7697 = vst.msk [vmem:[%s18122_s5 + $0x1f8] sm:$0xff] %vm92_vm1, %v7633_v34 }

</bundles_post_ra>
